<compile_context>
chip_gen: v7x
topology: tpu7x:2x2x1
jax: 0.10.0
libtpu: 0.0.40
codegen_flags: <defaults>
</compile_context>

<pallas_src>
import functools

import jax
import jax.numpy as jnp
from jax import lax
from jax.experimental import pallas as pl
from jax.experimental.pallas import tpu as pltpu


_PAD_L = 8  # left halo width inside the padded scratch -> interior store is
            # sublane-aligned; tap loads use (cheap) unaligned offsets instead.


# ------------------------------ fused kernel ---------------------------------

def _block_kernel(x_ref, wup_ref, bup_ref, wconv_ref, bconv_ref, alpha_ref,
                  o_ref, pad_ref, col_ref, xup_ref,
                  *, h, w, c, num_convs, ksize):
    hw = h * w
    kk = ksize * ksize
    halo = ksize // 2

    # Zero the padded scratch once per grid step. Only the interior is ever
    # rewritten, so the halo stays zero for every conv layer (SAME padding).
    pad_ref[...] = jnp.zeros(pad_ref.shape, jnp.float32)

    # ---- 1x1 "upchannels" conv (+ bias); result stays in VMEM ----
    x = x_ref[0]                                               # (HW, Cin)
    x_up = jnp.dot(x, wup_ref[...], preferred_element_type=jnp.float32)
    x_up = x_up + bup_ref[...]                                 # (HW, C)
    xup_ref[...] = x_up                                        # kept for residual

    act = x_up
    for i in range(num_convs):
        # Current activation into the zero-haloed padded scratch (aligned
        # interior: row offset=halo is a leading dim, col offset=_PAD_L is a
        # multiple of 8 sublanes).
        pad_ref[halo:halo + h, _PAD_L:_PAD_L + w, :] = act.reshape(h, w, c)

        # Build the im2col tile (HW, 9*C) from shifted views -- all in VMEM.
        for t in range(kk):
            ky, kx = t // ksize, t % ksize
            c0 = _PAD_L - halo + kx
            tap = pad_ref[ky:ky + h, c0:c0 + w, :]             # (H, W, C)
            col_ref[:, t * c:(t + 1) * c] = tap.reshape(hw, c)

        # Single K = 9*C matmul per conv layer (DEFAULT precision, f32 acc).
        acc = jnp.dot(col_ref[...], wconv_ref[i],
                      preferred_element_type=jnp.float32)      # (HW, C)
        act = jnp.maximum(acc + bconv_ref[i], 0.0)             # bias + ReLU

    # ---- fused weighted-residual epilogue ----
    out = act + alpha_ref[0] * xup_ref[...]
    o_ref[0] = out.astype(o_ref.dtype)


# ------------------------------ public wrapper --------------------------------

def block_forward(x_nchw, params, use_res=True, use_weight=True):
    # TODO(synk): batch_norm=True and deconv=True variants of the module are
    # not implemented (the default Block config uses neither).
    n, cin, h, w = x_nchw.shape
    c = params["w_up"].shape[1]
    ksize = params["conv_ws"][0].shape[0]
    num_convs = len(params["conv_ws"])
    assert ksize % 2 == 1, "only odd kernel sizes (SAME padding) supported"
    halo = ksize // 2
    hw = h * w

    # Tiny boundary layout ops (all heavy work is inside the single kernel).
    x_flat = jnp.transpose(x_nchw, (0, 2, 3, 1)).reshape(n, hw, cin)
    w_convs = jnp.stack([wi.reshape(ksize * ksize * c, c)
                         for wi in params["conv_ws"]])          # (L, 9C, C)
    b_convs = jnp.stack([bi.reshape(1, c) for bi in params["conv_bs"]])

    # A single scalar covers all use_res/use_weight combinations:
    #   use_res & use_weight -> learned alpha ; use_res only -> 1 ; no res -> 0.
    if use_res:
        alpha = params["alpha"] if use_weight else jnp.ones((1,), jnp.float32)
    else:
        alpha = jnp.zeros((1,), jnp.float32)

    kernel = functools.partial(_block_kernel, h=h, w=w, c=c,
                               num_convs=num_convs, ksize=ksize)

    out = pl.pallas_call(
        kernel,
        out_shape=jax.ShapeDtypeStruct((n, hw, c), x_nchw.dtype),
        grid_spec=pltpu.PrefetchScalarGridSpec(
            num_scalar_prefetch=0,
            grid=(n,),
            in_specs=[
                pl.BlockSpec((1, hw, cin), lambda b: (b, 0, 0)),          # x
                pl.BlockSpec((cin, c), lambda b: (0, 0)),                 # w_up
                pl.BlockSpec((1, c), lambda b: (0, 0)),                   # b_up
                pl.BlockSpec((num_convs, ksize * ksize * c, c),
                             lambda b: (0, 0, 0)),                        # conv ws
                pl.BlockSpec((num_convs, 1, c), lambda b: (0, 0, 0)),     # conv bs
                pl.BlockSpec(memory_space=pltpu.MemorySpace.SMEM),        # alpha
            ],
            out_specs=pl.BlockSpec((1, hw, c), lambda b: (b, 0, 0)),
            scratch_shapes=[
                pltpu.VMEM((h + 2 * halo, _PAD_L + w + _PAD_L, c),
                           jnp.float32),                                  # padded act
                pltpu.VMEM((hw, ksize * ksize * c), jnp.float32),         # im2col
                pltpu.VMEM((hw, c), jnp.float32),                         # x_up
            ],
        ),
        compiler_params=pltpu.CompilerParams(
            dimension_semantics=("parallel",)),
    )(x_flat, params["w_up"], params["b_up"].reshape(1, c),
      w_convs, b_convs, alpha)

    return jnp.transpose(out.reshape(n, h, w, c), (0, 3, 1, 2))


# ------------------------------ parameters ------------------------------------

def init_params(key, in_channels, channels, num_convs=3, k=3):
    """Deterministic synthetic parameters (shapes match the PyTorch module)."""
    keys = jax.random.split(key, 2 + 2 * num_convs + 1)
    w_up = jax.random.normal(keys[0], (in_channels, channels), jnp.float32)
    w_up = w_up * (1.0 / jnp.sqrt(jnp.float32(in_channels)))
    b_up = 0.1 * jax.random.normal(keys[1], (channels,), jnp.float32)
    conv_ws, conv_bs = [], []
    for i in range(num_convs):
        wgt = jax.random.normal(keys[2 + 2 * i], (k, k, channels, channels),
                                jnp.float32)
        wgt = wgt * (1.0 / jnp.sqrt(jnp.float32(k * k * channels)))
        b = 0.1 * jax.random.normal(keys[3 + 2 * i], (channels,), jnp.float32)
        conv_ws.append(wgt)
        conv_bs.append(b)
    alpha = jax.random.normal(keys[-1], (1,), jnp.float32)  # nn.Parameter(randn(1))
    return dict(w_up=w_up, b_up=b_up, conv_ws=conv_ws, conv_bs=conv_bs,
                alpha=alpha)


# --------------------------- pure-JAX reference --------------------------------

def ref_forward(x_nchw, params, use_res=True, use_weight=True):
    x = jnp.transpose(x_nchw, (0, 2, 3, 1))  # NHWC
    x_up = jnp.einsum("nhwc,co->nhwo", x, params["w_up"],
                      precision=lax.Precision.HIGHEST) + params["b_up"]
    out = x_up
    for wgt, b in zip(params["conv_ws"], params["conv_bs"]):
        out = lax.conv_general_dilated(
            out, wgt, window_strides=(1, 1), padding="SAME",
            dimension_numbers=("NHWC", "HWIO", "NHWC"),
            precision=lax.Precision.HIGHEST) + b
        out = jnp.maximum(out, 0.0)
    if use_res:
        alpha = params["alpha"][0] if use_weight else 1.0
        out = out + alpha * x_up
    return jnp.transpose(out, (0, 3, 1, 2))


# ---------------------------------- main ---------------------------------------

if __name__ == "__main__":
    key = jax.random.PRNGKey(0)
    k_x, k_p = jax.random.split(key)

    in_channels, channels = 4, 16
    x = jax.random.normal(k_x, (2, in_channels, 16, 16), jnp.float32)  # NCHW
    params = init_params(k_p, in_channels, channels)

    fwd = jax.jit(block_forward)
    y = jax.block_until_ready(fwd(x, params))

    y_ref = ref_forward(x, params)
    assert y.shape == (2, channels, 16, 16), y.shape
    # Kernel matmuls run at DEFAULT precision (bf16 MXU inputs, f32 acc);
    # reference is full-f32, so allow bf16-level error across 4 chained layers.
    max_err = float(jnp.max(jnp.abs(y - y_ref)))
    assert max_err < 3e-2, f"max abs error {max_err}"

    print("KERNEL_OK")
</pallas_src>

<mosaic_0001>
module attributes {stable_mosaic.version = 11 : i64} {
  func.func @_block_kernel(%arg0: i32, %arg1: memref<1x256x4xf32, #tpu.memory_space<vmem>>, %arg2: memref<4x16xf32, #tpu.memory_space<vmem>>, %arg3: memref<1x16xf32, #tpu.memory_space<vmem>>, %arg4: memref<3x144x16xf32, #tpu.memory_space<vmem>>, %arg5: memref<3x1x16xf32, #tpu.memory_space<vmem>>, %arg6: memref<1xf32, #tpu.memory_space<smem>>, %arg7: memref<1x256x16xf32, #tpu.memory_space<vmem>>, %arg8: memref<18x32x16xf32, #tpu.memory_space<vmem>>, %arg9: memref<256x144xf32, #tpu.memory_space<vmem>>, %arg10: memref<256x16xf32, #tpu.memory_space<vmem>>) attributes {dimension_semantics = [#tpu.dimension_semantics<parallel>], iteration_bounds = array<i64: 2>, scalar_prefetch = 0 : i64, scratch_operands = 3 : i64, tpu.core_type = #tpu.core_type<tc>, window_params = [{transform_indices = @transform_0, window_bounds = array<i64: 1, 256, 4>}, {pipeline_mode = #tpu.pipeline_mode<synchronous>, transform_indices = @transform_1, window_bounds = array<i64: 4, 16>}, {pipeline_mode = #tpu.pipeline_mode<synchronous>, transform_indices = @transform_2, window_bounds = array<i64: 1, 16>}, {pipeline_mode = #tpu.pipeline_mode<synchronous>, transform_indices = @transform_3, window_bounds = array<i64: 3, 144, 16>}, {pipeline_mode = #tpu.pipeline_mode<synchronous>, transform_indices = @transform_4, window_bounds = array<i64: 3, 1, 16>}, {transform_indices = @transform_5, window_bounds = array<i64: 1>}, {transform_indices = @transform_6, window_bounds = array<i64: 1, 256, 16>}]} {
    %cst = arith.constant 0.000000e+00 : f32
    %0 = vector.broadcast %cst : f32 to vector<18x32x16xf32>
    %c0 = arith.constant 0 : index
    %c0_0 = arith.constant 0 : index
    %c0_1 = arith.constant 0 : index
    %1 = vector.load %arg8[%c0, %c0_0, %c0_1] : memref<18x32x16xf32, #tpu.memory_space<vmem>>, vector<18x32x16xf32>
    tpu.vector_store %arg8[%c0, %c0_0, %c0_1], %0 {strides = array<i32>} : memref<18x32x16xf32, #tpu.memory_space<vmem>>, vector<18x32x16xf32>,
    %c0_2 = arith.constant 0 : index
    %c0_3 = arith.constant 0 : index
    %c0_4 = arith.constant 0 : index
    %2 = vector.load %arg1[%c0_2, %c0_3, %c0_4] : memref<1x256x4xf32, #tpu.memory_space<vmem>>, vector<1x256x4xf32>
    %3 = vector.shape_cast %2 : vector<1x256x4xf32> to vector<256x4xf32>
    %c0_5 = arith.constant 0 : index
    %c0_6 = arith.constant 0 : index
    %4 = vector.load %arg2[%c0_5, %c0_6] : memref<4x16xf32, #tpu.memory_space<vmem>>, vector<4x16xf32>
    %cst_7 = arith.constant dense<0.000000e+00> : vector<256x16xf32>
    %5 = tpu.matmul %3, %4, %cst_7 {dimension_numbers = #tpu.dot_dimension_numbers<[1], [0], [0], [1], [0, 0, 1, 1], [], []>} : vector<256x4xf32>, vector<4x16xf32>, vector<256x16xf32> -> vector<256x16xf32>
    %c0_8 = arith.constant 0 : index
    %c0_9 = arith.constant 0 : index
    %6 = vector.load %arg3[%c0_8, %c0_9] : memref<1x16xf32, #tpu.memory_space<vmem>>, vector<1x16xf32>
    %7 = vector.broadcast %6 : vector<1x16xf32> to vector<256x16xf32>
    %8 = arith.addf %5, %7 : vector<256x16xf32>
    %c0_10 = arith.constant 0 : index
    %c0_11 = arith.constant 0 : index
    %9 = vector.load %arg10[%c0_10, %c0_11] : memref<256x16xf32, #tpu.memory_space<vmem>>, vector<256x16xf32>
    tpu.vector_store %arg10[%c0_10, %c0_11], %8 {strides = array<i32>} : memref<256x16xf32, #tpu.memory_space<vmem>>, vector<256x16xf32>,
    %10 = vector.shape_cast %8 : vector<256x16xf32> to vector<16x16x16xf32>
    %c1 = arith.constant 1 : index
    %c8 = arith.constant 8 : index
    %c0_12 = arith.constant 0 : index
    %11 = vector.load %arg8[%c1, %c8, %c0_12] : memref<18x32x16xf32, #tpu.memory_space<vmem>>, vector<16x16x16xf32>
    tpu.vector_store %arg8[%c1, %c8, %c0_12], %10 {strides = array<i32>} : memref<18x32x16xf32, #tpu.memory_space<vmem>>, vector<16x16x16xf32>,
    %c0_13 = arith.constant 0 : index
    %c7 = arith.constant 7 : index
    %c0_14 = arith.constant 0 : index
    %12 = vector.load %arg8[%c0_13, %c7, %c0_14] : memref<18x32x16xf32, #tpu.memory_space<vmem>>, vector<16x16x16xf32>
    %13 = vector.shape_cast %12 : vector<16x16x16xf32> to vector<256x16xf32>
    %c0_15 = arith.constant 0 : index
    %c0_16 = arith.constant 0 : index
    %14 = vector.load %arg9[%c0_15, %c0_16] : memref<256x144xf32, #tpu.memory_space<vmem>>, vector<256x16xf32>
    tpu.vector_store %arg9[%c0_15, %c0_16], %13 {strides = array<i32>} : memref<256x144xf32, #tpu.memory_space<vmem>>, vector<256x16xf32>,
    %c0_17 = arith.constant 0 : index
    %c8_18 = arith.constant 8 : index
    %c0_19 = arith.constant 0 : index
    %15 = vector.load %arg8[%c0_17, %c8_18, %c0_19] : memref<18x32x16xf32, #tpu.memory_space<vmem>>, vector<16x16x16xf32>
    %16 = vector.shape_cast %15 : vector<16x16x16xf32> to vector<256x16xf32>
    %c0_20 = arith.constant 0 : index
    %c16 = arith.constant 16 : index
    %17 = vector.load %arg9[%c0_20, %c16] : memref<256x144xf32, #tpu.memory_space<vmem>>, vector<256x16xf32>
    tpu.vector_store %arg9[%c0_20, %c16], %16 {strides = array<i32>} : memref<256x144xf32, #tpu.memory_space<vmem>>, vector<256x16xf32>,
    %c0_21 = arith.constant 0 : index
    %c9 = arith.constant 9 : index
    %c0_22 = arith.constant 0 : index
    %18 = vector.load %arg8[%c0_21, %c9, %c0_22] : memref<18x32x16xf32, #tpu.memory_space<vmem>>, vector<16x16x16xf32>
    %19 = vector.shape_cast %18 : vector<16x16x16xf32> to vector<256x16xf32>
    %c0_23 = arith.constant 0 : index
    %c32 = arith.constant 32 : index
    %20 = vector.load %arg9[%c0_23, %c32] : memref<256x144xf32, #tpu.memory_space<vmem>>, vector<256x16xf32>
    tpu.vector_store %arg9[%c0_23, %c32], %19 {strides = array<i32>} : memref<256x144xf32, #tpu.memory_space<vmem>>, vector<256x16xf32>,
    %c1_24 = arith.constant 1 : index
    %c7_25 = arith.constant 7 : index
    %c0_26 = arith.constant 0 : index
    %21 = vector.load %arg8[%c1_24, %c7_25, %c0_26] : memref<18x32x16xf32, #tpu.memory_space<vmem>>, vector<16x16x16xf32>
    %22 = vector.shape_cast %21 : vector<16x16x16xf32> to vector<256x16xf32>
    %c0_27 = arith.constant 0 : index
    %c48 = arith.constant 48 : index
    %23 = vector.load %arg9[%c0_27, %c48] : memref<256x144xf32, #tpu.memory_space<vmem>>, vector<256x16xf32>
    tpu.vector_store %arg9[%c0_27, %c48], %22 {strides = array<i32>} : memref<256x144xf32, #tpu.memory_space<vmem>>, vector<256x16xf32>,
    %c1_28 = arith.constant 1 : index
    %c8_29 = arith.constant 8 : index
    %c0_30 = arith.constant 0 : index
    %24 = vector.load %arg8[%c1_28, %c8_29, %c0_30] : memref<18x32x16xf32, #tpu.memory_space<vmem>>, vector<16x16x16xf32>
    %25 = vector.shape_cast %24 : vector<16x16x16xf32> to vector<256x16xf32>
    %c0_31 = arith.constant 0 : index
    %c64 = arith.constant 64 : index
    %26 = vector.load %arg9[%c0_31, %c64] : memref<256x144xf32, #tpu.memory_space<vmem>>, vector<256x16xf32>
    tpu.vector_store %arg9[%c0_31, %c64], %25 {strides = array<i32>} : memref<256x144xf32, #tpu.memory_space<vmem>>, vector<256x16xf32>,
    %c1_32 = arith.constant 1 : index
    %c9_33 = arith.constant 9 : index
    %c0_34 = arith.constant 0 : index
    %27 = vector.load %arg8[%c1_32, %c9_33, %c0_34] : memref<18x32x16xf32, #tpu.memory_space<vmem>>, vector<16x16x16xf32>
    %28 = vector.shape_cast %27 : vector<16x16x16xf32> to vector<256x16xf32>
    %c0_35 = arith.constant 0 : index
    %c80 = arith.constant 80 : index
    %29 = vector.load %arg9[%c0_35, %c80] : memref<256x144xf32, #tpu.memory_space<vmem>>, vector<256x16xf32>
    tpu.vector_store %arg9[%c0_35, %c80], %28 {strides = array<i32>} : memref<256x144xf32, #tpu.memory_space<vmem>>, vector<256x16xf32>,
    %c2 = arith.constant 2 : index
    %c7_36 = arith.constant 7 : index
    %c0_37 = arith.constant 0 : index
    %30 = vector.load %arg8[%c2, %c7_36, %c0_37] : memref<18x32x16xf32, #tpu.memory_space<vmem>>, vector<16x16x16xf32>
    %31 = vector.shape_cast %30 : vector<16x16x16xf32> to vector<256x16xf32>
    %c0_38 = arith.constant 0 : index
    %c96 = arith.constant 96 : index
    %32 = vector.load %arg9[%c0_38, %c96] : memref<256x144xf32, #tpu.memory_space<vmem>>, vector<256x16xf32>
    tpu.vector_store %arg9[%c0_38, %c96], %31 {strides = array<i32>} : memref<256x144xf32, #tpu.memory_space<vmem>>, vector<256x16xf32>,
    %c2_39 = arith.constant 2 : index
    %c8_40 = arith.constant 8 : index
    %c0_41 = arith.constant 0 : index
    %33 = vector.load %arg8[%c2_39, %c8_40, %c0_41] : memref<18x32x16xf32, #tpu.memory_space<vmem>>, vector<16x16x16xf32>
    %34 = vector.shape_cast %33 : vector<16x16x16xf32> to vector<256x16xf32>
    %c0_42 = arith.constant 0 : index
    %c112 = arith.constant 112 : index
    %35 = vector.load %arg9[%c0_42, %c112] : memref<256x144xf32, #tpu.memory_space<vmem>>, vector<256x16xf32>
    tpu.vector_store %arg9[%c0_42, %c112], %34 {strides = array<i32>} : memref<256x144xf32, #tpu.memory_space<vmem>>, vector<256x16xf32>,
    %c2_43 = arith.constant 2 : index
    %c9_44 = arith.constant 9 : index
    %c0_45 = arith.constant 0 : index
    %36 = vector.load %arg8[%c2_43, %c9_44, %c0_45] : memref<18x32x16xf32, #tpu.memory_space<vmem>>, vector<16x16x16xf32>
    %37 = vector.shape_cast %36 : vector<16x16x16xf32> to vector<256x16xf32>
    %c0_46 = arith.constant 0 : index
    %c128 = arith.constant 128 : index
    %38 = vector.load %arg9[%c0_46, %c128] : memref<256x144xf32, #tpu.memory_space<vmem>>, vector<256x16xf32>
    tpu.vector_store %arg9[%c0_46, %c128], %37 {strides = array<i32>} : memref<256x144xf32, #tpu.memory_space<vmem>>, vector<256x16xf32>,
    %c0_47 = arith.constant 0 : index
    %c0_48 = arith.constant 0 : index
    %39 = vector.load %arg9[%c0_47, %c0_48] : memref<256x144xf32, #tpu.memory_space<vmem>>, vector<256x144xf32>
    %c0_49 = arith.constant 0 : index
    %c0_50 = arith.constant 0 : index
    %c0_51 = arith.constant 0 : index
    %40 = vector.load %arg4[%c0_49, %c0_50, %c0_51] : memref<3x144x16xf32, #tpu.memory_space<vmem>>, vector<1x144x16xf32>
    %41 = vector.shape_cast %40 : vector<1x144x16xf32> to vector<144x16xf32>
    %cst_52 = arith.constant dense<0.000000e+00> : vector<256x16xf32>
    %42 = tpu.matmul %39, %41, %cst_52 {dimension_numbers = #tpu.dot_dimension_numbers<[1], [0], [0], [1], [0, 0, 1, 1], [], []>} : vector<256x144xf32>, vector<144x16xf32>, vector<256x16xf32> -> vector<256x16xf32>
    %c0_53 = arith.constant 0 : index
    %c0_54 = arith.constant 0 : index
    %c0_55 = arith.constant 0 : index
    %43 = vector.load %arg5[%c0_53, %c0_54, %c0_55] : memref<3x1x16xf32, #tpu.memory_space<vmem>>, vector<1x1x16xf32>
    %44 = vector.shape_cast %43 : vector<1x1x16xf32> to vector<1x16xf32>
    %45 = vector.broadcast %44 : vector<1x16xf32> to vector<256x16xf32>
    %46 = arith.addf %42, %45 : vector<256x16xf32>
    %cst_56 = arith.constant 0.000000e+00 : f32
    %47 = vector.broadcast %cst_56 : f32 to vector<256x16xf32>
    %48 = arith.maximumf %46, %47 : vector<256x16xf32>
    %49 = vector.shape_cast %48 : vector<256x16xf32> to vector<16x16x16xf32>
    %c1_57 = arith.constant 1 : index
    %c8_58 = arith.constant 8 : index
    %c0_59 = arith.constant 0 : index
    %50 = vector.load %arg8[%c1_57, %c8_58, %c0_59] : memref<18x32x16xf32, #tpu.memory_space<vmem>>, vector<16x16x16xf32>
    tpu.vector_store %arg8[%c1_57, %c8_58, %c0_59], %49 {strides = array<i32>} : memref<18x32x16xf32, #tpu.memory_space<vmem>>, vector<16x16x16xf32>,
    %c0_60 = arith.constant 0 : index
    %c7_61 = arith.constant 7 : index
    %c0_62 = arith.constant 0 : index
    %51 = vector.load %arg8[%c0_60, %c7_61, %c0_62] : memref<18x32x16xf32, #tpu.memory_space<vmem>>, vector<16x16x16xf32>
    %52 = vector.shape_cast %51 : vector<16x16x16xf32> to vector<256x16xf32>
    %c0_63 = arith.constant 0 : index
    %c0_64 = arith.constant 0 : index
    %53 = vector.load %arg9[%c0_63, %c0_64] : memref<256x144xf32, #tpu.memory_space<vmem>>, vector<256x16xf32>
    tpu.vector_store %arg9[%c0_63, %c0_64], %52 {strides = array<i32>} : memref<256x144xf32, #tpu.memory_space<vmem>>, vector<256x16xf32>,
    %c0_65 = arith.constant 0 : index
    %c8_66 = arith.constant 8 : index
    %c0_67 = arith.constant 0 : index
    %54 = vector.load %arg8[%c0_65, %c8_66, %c0_67] : memref<18x32x16xf32, #tpu.memory_space<vmem>>, vector<16x16x16xf32>
    %55 = vector.shape_cast %54 : vector<16x16x16xf32> to vector<256x16xf32>
    %c0_68 = arith.constant 0 : index
    %c16_69 = arith.constant 16 : index
    %56 = vector.load %arg9[%c0_68, %c16_69] : memref<256x144xf32, #tpu.memory_space<vmem>>, vector<256x16xf32>
    tpu.vector_store %arg9[%c0_68, %c16_69], %55 {strides = array<i32>} : memref<256x144xf32, #tpu.memory_space<vmem>>, vector<256x16xf32>,
    %c0_70 = arith.constant 0 : index
    %c9_71 = arith.constant 9 : index
    %c0_72 = arith.constant 0 : index
    %57 = vector.load %arg8[%c0_70, %c9_71, %c0_72] : memref<18x32x16xf32, #tpu.memory_space<vmem>>, vector<16x16x16xf32>
    %58 = vector.shape_cast %57 : vector<16x16x16xf32> to vector<256x16xf32>
    %c0_73 = arith.constant 0 : index
    %c32_74 = arith.constant 32 : index
    %59 = vector.load %arg9[%c0_73, %c32_74] : memref<256x144xf32, #tpu.memory_space<vmem>>, vector<256x16xf32>
    tpu.vector_store %arg9[%c0_73, %c32_74], %58 {strides = array<i32>} : memref<256x144xf32, #tpu.memory_space<vmem>>, vector<256x16xf32>,
    %c1_75 = arith.constant 1 : index
    %c7_76 = arith.constant 7 : index
    %c0_77 = arith.constant 0 : index
    %60 = vector.load %arg8[%c1_75, %c7_76, %c0_77] : memref<18x32x16xf32, #tpu.memory_space<vmem>>, vector<16x16x16xf32>
    %61 = vector.shape_cast %60 : vector<16x16x16xf32> to vector<256x16xf32>
    %c0_78 = arith.constant 0 : index
    %c48_79 = arith.constant 48 : index
    %62 = vector.load %arg9[%c0_78, %c48_79] : memref<256x144xf32, #tpu.memory_space<vmem>>, vector<256x16xf32>
    tpu.vector_store %arg9[%c0_78, %c48_79], %61 {strides = array<i32>} : memref<256x144xf32, #tpu.memory_space<vmem>>, vector<256x16xf32>,
    %c1_80 = arith.constant 1 : index
    %c8_81 = arith.constant 8 : index
    %c0_82 = arith.constant 0 : index
    %63 = vector.load %arg8[%c1_80, %c8_81, %c0_82] : memref<18x32x16xf32, #tpu.memory_space<vmem>>, vector<16x16x16xf32>
    %64 = vector.shape_cast %63 : vector<16x16x16xf32> to vector<256x16xf32>
    %c0_83 = arith.constant 0 : index
    %c64_84 = arith.constant 64 : index
    %65 = vector.load %arg9[%c0_83, %c64_84] : memref<256x144xf32, #tpu.memory_space<vmem>>, vector<256x16xf32>
    tpu.vector_store %arg9[%c0_83, %c64_84], %64 {strides = array<i32>} : memref<256x144xf32, #tpu.memory_space<vmem>>, vector<256x16xf32>,
    %c1_85 = arith.constant 1 : index
    %c9_86 = arith.constant 9 : index
    %c0_87 = arith.constant 0 : index
    %66 = vector.load %arg8[%c1_85, %c9_86, %c0_87] : memref<18x32x16xf32, #tpu.memory_space<vmem>>, vector<16x16x16xf32>
    %67 = vector.shape_cast %66 : vector<16x16x16xf32> to vector<256x16xf32>
    %c0_88 = arith.constant 0 : index
    %c80_89 = arith.constant 80 : index
    %68 = vector.load %arg9[%c0_88, %c80_89] : memref<256x144xf32, #tpu.memory_space<vmem>>, vector<256x16xf32>
    tpu.vector_store %arg9[%c0_88, %c80_89], %67 {strides = array<i32>} : memref<256x144xf32, #tpu.memory_space<vmem>>, vector<256x16xf32>,
    %c2_90 = arith.constant 2 : index
    %c7_91 = arith.constant 7 : index
    %c0_92 = arith.constant 0 : index
    %69 = vector.load %arg8[%c2_90, %c7_91, %c0_92] : memref<18x32x16xf32, #tpu.memory_space<vmem>>, vector<16x16x16xf32>
    %70 = vector.shape_cast %69 : vector<16x16x16xf32> to vector<256x16xf32>
    %c0_93 = arith.constant 0 : index
    %c96_94 = arith.constant 96 : index
    %71 = vector.load %arg9[%c0_93, %c96_94] : memref<256x144xf32, #tpu.memory_space<vmem>>, vector<256x16xf32>
    tpu.vector_store %arg9[%c0_93, %c96_94], %70 {strides = array<i32>} : memref<256x144xf32, #tpu.memory_space<vmem>>, vector<256x16xf32>,
    %c2_95 = arith.constant 2 : index
    %c8_96 = arith.constant 8 : index
    %c0_97 = arith.constant 0 : index
    %72 = vector.load %arg8[%c2_95, %c8_96, %c0_97] : memref<18x32x16xf32, #tpu.memory_space<vmem>>, vector<16x16x16xf32>
    %73 = vector.shape_cast %72 : vector<16x16x16xf32> to vector<256x16xf32>
    %c0_98 = arith.constant 0 : index
    %c112_99 = arith.constant 112 : index
    %74 = vector.load %arg9[%c0_98, %c112_99] : memref<256x144xf32, #tpu.memory_space<vmem>>, vector<256x16xf32>
    tpu.vector_store %arg9[%c0_98, %c112_99], %73 {strides = array<i32>} : memref<256x144xf32, #tpu.memory_space<vmem>>, vector<256x16xf32>,
    %c2_100 = arith.constant 2 : index
    %c9_101 = arith.constant 9 : index
    %c0_102 = arith.constant 0 : index
    %75 = vector.load %arg8[%c2_100, %c9_101, %c0_102] : memref<18x32x16xf32, #tpu.memory_space<vmem>>, vector<16x16x16xf32>
    %76 = vector.shape_cast %75 : vector<16x16x16xf32> to vector<256x16xf32>
    %c0_103 = arith.constant 0 : index
    %c128_104 = arith.constant 128 : index
    %77 = vector.load %arg9[%c0_103, %c128_104] : memref<256x144xf32, #tpu.memory_space<vmem>>, vector<256x16xf32>
    tpu.vector_store %arg9[%c0_103, %c128_104], %76 {strides = array<i32>} : memref<256x144xf32, #tpu.memory_space<vmem>>, vector<256x16xf32>,
    %c0_105 = arith.constant 0 : index
    %c0_106 = arith.constant 0 : index
    %78 = vector.load %arg9[%c0_105, %c0_106] : memref<256x144xf32, #tpu.memory_space<vmem>>, vector<256x144xf32>
    %c1_107 = arith.constant 1 : index
    %c0_108 = arith.constant 0 : index
    %c0_109 = arith.constant 0 : index
    %79 = vector.load %arg4[%c1_107, %c0_108, %c0_109] : memref<3x144x16xf32, #tpu.memory_space<vmem>>, vector<1x144x16xf32>
    %80 = vector.shape_cast %79 : vector<1x144x16xf32> to vector<144x16xf32>
    %cst_110 = arith.constant dense<0.000000e+00> : vector<256x16xf32>
    %81 = tpu.matmul %78, %80, %cst_110 {dimension_numbers = #tpu.dot_dimension_numbers<[1], [0], [0], [1], [0, 0, 1, 1], [], []>} : vector<256x144xf32>, vector<144x16xf32>, vector<256x16xf32> -> vector<256x16xf32>
    %c1_111 = arith.constant 1 : index
    %c0_112 = arith.constant 0 : index
    %c0_113 = arith.constant 0 : index
    %82 = vector.load %arg5[%c1_111, %c0_112, %c0_113] : memref<3x1x16xf32, #tpu.memory_space<vmem>>, vector<1x1x16xf32>
    %83 = vector.shape_cast %82 : vector<1x1x16xf32> to vector<1x16xf32>
    %84 = vector.broadcast %83 : vector<1x16xf32> to vector<256x16xf32>
    %85 = arith.addf %81, %84 : vector<256x16xf32>
    %cst_114 = arith.constant 0.000000e+00 : f32
    %86 = vector.broadcast %cst_114 : f32 to vector<256x16xf32>
    %87 = arith.maximumf %85, %86 : vector<256x16xf32>
    %88 = vector.shape_cast %87 : vector<256x16xf32> to vector<16x16x16xf32>
    %c1_115 = arith.constant 1 : index
    %c8_116 = arith.constant 8 : index
    %c0_117 = arith.constant 0 : index
    %89 = vector.load %arg8[%c1_115, %c8_116, %c0_117] : memref<18x32x16xf32, #tpu.memory_space<vmem>>, vector<16x16x16xf32>
    tpu.vector_store %arg8[%c1_115, %c8_116, %c0_117], %88 {strides = array<i32>} : memref<18x32x16xf32, #tpu.memory_space<vmem>>, vector<16x16x16xf32>,
    %c0_118 = arith.constant 0 : index
    %c7_119 = arith.constant 7 : index
    %c0_120 = arith.constant 0 : index
    %90 = vector.load %arg8[%c0_118, %c7_119, %c0_120] : memref<18x32x16xf32, #tpu.memory_space<vmem>>, vector<16x16x16xf32>
    %91 = vector.shape_cast %90 : vector<16x16x16xf32> to vector<256x16xf32>
    %c0_121 = arith.constant 0 : index
    %c0_122 = arith.constant 0 : index
    %92 = vector.load %arg9[%c0_121, %c0_122] : memref<256x144xf32, #tpu.memory_space<vmem>>, vector<256x16xf32>
    tpu.vector_store %arg9[%c0_121, %c0_122], %91 {strides = array<i32>} : memref<256x144xf32, #tpu.memory_space<vmem>>, vector<256x16xf32>,
    %c0_123 = arith.constant 0 : index
    %c8_124 = arith.constant 8 : index
    %c0_125 = arith.constant 0 : index
    %93 = vector.load %arg8[%c0_123, %c8_124, %c0_125] : memref<18x32x16xf32, #tpu.memory_space<vmem>>, vector<16x16x16xf32>
    %94 = vector.shape_cast %93 : vector<16x16x16xf32> to vector<256x16xf32>
    %c0_126 = arith.constant 0 : index
    %c16_127 = arith.constant 16 : index
    %95 = vector.load %arg9[%c0_126, %c16_127] : memref<256x144xf32, #tpu.memory_space<vmem>>, vector<256x16xf32>
    tpu.vector_store %arg9[%c0_126, %c16_127], %94 {strides = array<i32>} : memref<256x144xf32, #tpu.memory_space<vmem>>, vector<256x16xf32>,
    %c0_128 = arith.constant 0 : index
    %c9_129 = arith.constant 9 : index
    %c0_130 = arith.constant 0 : index
    %96 = vector.load %arg8[%c0_128, %c9_129, %c0_130] : memref<18x32x16xf32, #tpu.memory_space<vmem>>, vector<16x16x16xf32>
    %97 = vector.shape_cast %96 : vector<16x16x16xf32> to vector<256x16xf32>
    %c0_131 = arith.constant 0 : index
    %c32_132 = arith.constant 32 : index
    %98 = vector.load %arg9[%c0_131, %c32_132] : memref<256x144xf32, #tpu.memory_space<vmem>>, vector<256x16xf32>
    tpu.vector_store %arg9[%c0_131, %c32_132], %97 {strides = array<i32>} : memref<256x144xf32, #tpu.memory_space<vmem>>, vector<256x16xf32>,
    %c1_133 = arith.constant 1 : index
    %c7_134 = arith.constant 7 : index
    %c0_135 = arith.constant 0 : index
    %99 = vector.load %arg8[%c1_133, %c7_134, %c0_135] : memref<18x32x16xf32, #tpu.memory_space<vmem>>, vector<16x16x16xf32>
    %100 = vector.shape_cast %99 : vector<16x16x16xf32> to vector<256x16xf32>
    %c0_136 = arith.constant 0 : index
    %c48_137 = arith.constant 48 : index
    %101 = vector.load %arg9[%c0_136, %c48_137] : memref<256x144xf32, #tpu.memory_space<vmem>>, vector<256x16xf32>
    tpu.vector_store %arg9[%c0_136, %c48_137], %100 {strides = array<i32>} : memref<256x144xf32, #tpu.memory_space<vmem>>, vector<256x16xf32>,
    %c1_138 = arith.constant 1 : index
    %c8_139 = arith.constant 8 : index
    %c0_140 = arith.constant 0 : index
    %102 = vector.load %arg8[%c1_138, %c8_139, %c0_140] : memref<18x32x16xf32, #tpu.memory_space<vmem>>, vector<16x16x16xf32>
    %103 = vector.shape_cast %102 : vector<16x16x16xf32> to vector<256x16xf32>
    %c0_141 = arith.constant 0 : index
    %c64_142 = arith.constant 64 : index
    %104 = vector.load %arg9[%c0_141, %c64_142] : memref<256x144xf32, #tpu.memory_space<vmem>>, vector<256x16xf32>
    tpu.vector_store %arg9[%c0_141, %c64_142], %103 {strides = array<i32>} : memref<256x144xf32, #tpu.memory_space<vmem>>, vector<256x16xf32>,
    %c1_143 = arith.constant 1 : index
    %c9_144 = arith.constant 9 : index
    %c0_145 = arith.constant 0 : index
    %105 = vector.load %arg8[%c1_143, %c9_144, %c0_145] : memref<18x32x16xf32, #tpu.memory_space<vmem>>, vector<16x16x16xf32>
    %106 = vector.shape_cast %105 : vector<16x16x16xf32> to vector<256x16xf32>
    %c0_146 = arith.constant 0 : index
    %c80_147 = arith.constant 80 : index
    %107 = vector.load %arg9[%c0_146, %c80_147] : memref<256x144xf32, #tpu.memory_space<vmem>>, vector<256x16xf32>
    tpu.vector_store %arg9[%c0_146, %c80_147], %106 {strides = array<i32>} : memref<256x144xf32, #tpu.memory_space<vmem>>, vector<256x16xf32>,
    %c2_148 = arith.constant 2 : index
    %c7_149 = arith.constant 7 : index
    %c0_150 = arith.constant 0 : index
    %108 = vector.load %arg8[%c2_148, %c7_149, %c0_150] : memref<18x32x16xf32, #tpu.memory_space<vmem>>, vector<16x16x16xf32>
    %109 = vector.shape_cast %108 : vector<16x16x16xf32> to vector<256x16xf32>
    %c0_151 = arith.constant 0 : index
    %c96_152 = arith.constant 96 : index
    %110 = vector.load %arg9[%c0_151, %c96_152] : memref<256x144xf32, #tpu.memory_space<vmem>>, vector<256x16xf32>
    tpu.vector_store %arg9[%c0_151, %c96_152], %109 {strides = array<i32>} : memref<256x144xf32, #tpu.memory_space<vmem>>, vector<256x16xf32>,
    %c2_153 = arith.constant 2 : index
    %c8_154 = arith.constant 8 : index
    %c0_155 = arith.constant 0 : index
    %111 = vector.load %arg8[%c2_153, %c8_154, %c0_155] : memref<18x32x16xf32, #tpu.memory_space<vmem>>, vector<16x16x16xf32>
    %112 = vector.shape_cast %111 : vector<16x16x16xf32> to vector<256x16xf32>
    %c0_156 = arith.constant 0 : index
    %c112_157 = arith.constant 112 : index
    %113 = vector.load %arg9[%c0_156, %c112_157] : memref<256x144xf32, #tpu.memory_space<vmem>>, vector<256x16xf32>
    tpu.vector_store %arg9[%c0_156, %c112_157], %112 {strides = array<i32>} : memref<256x144xf32, #tpu.memory_space<vmem>>, vector<256x16xf32>,
    %c2_158 = arith.constant 2 : index
    %c9_159 = arith.constant 9 : index
    %c0_160 = arith.constant 0 : index
    %114 = vector.load %arg8[%c2_158, %c9_159, %c0_160] : memref<18x32x16xf32, #tpu.memory_space<vmem>>, vector<16x16x16xf32>
    %115 = vector.shape_cast %114 : vector<16x16x16xf32> to vector<256x16xf32>
    %c0_161 = arith.constant 0 : index
    %c128_162 = arith.constant 128 : index
    %116 = vector.load %arg9[%c0_161, %c128_162] : memref<256x144xf32, #tpu.memory_space<vmem>>, vector<256x16xf32>
    tpu.vector_store %arg9[%c0_161, %c128_162], %115 {strides = array<i32>} : memref<256x144xf32, #tpu.memory_space<vmem>>, vector<256x16xf32>,
    %c0_163 = arith.constant 0 : index
    %c0_164 = arith.constant 0 : index
    %117 = vector.load %arg9[%c0_163, %c0_164] : memref<256x144xf32, #tpu.memory_space<vmem>>, vector<256x144xf32>
    %c2_165 = arith.constant 2 : index
    %c0_166 = arith.constant 0 : index
    %c0_167 = arith.constant 0 : index
    %118 = vector.load %arg4[%c2_165, %c0_166, %c0_167] : memref<3x144x16xf32, #tpu.memory_space<vmem>>, vector<1x144x16xf32>
    %119 = vector.shape_cast %118 : vector<1x144x16xf32> to vector<144x16xf32>
    %cst_168 = arith.constant dense<0.000000e+00> : vector<256x16xf32>
    %120 = tpu.matmul %117, %119, %cst_168 {dimension_numbers = #tpu.dot_dimension_numbers<[1], [0], [0], [1], [0, 0, 1, 1], [], []>} : vector<256x144xf32>, vector<144x16xf32>, vector<256x16xf32> -> vector<256x16xf32>
    %c2_169 = arith.constant 2 : index
    %c0_170 = arith.constant 0 : index
    %c0_171 = arith.constant 0 : index
    %121 = vector.load %arg5[%c2_169, %c0_170, %c0_171] : memref<3x1x16xf32, #tpu.memory_space<vmem>>, vector<1x1x16xf32>
    %122 = vector.shape_cast %121 : vector<1x1x16xf32> to vector<1x16xf32>
    %123 = vector.broadcast %122 : vector<1x16xf32> to vector<256x16xf32>
    %124 = arith.addf %120, %123 : vector<256x16xf32>
    %cst_172 = arith.constant 0.000000e+00 : f32
    %125 = vector.broadcast %cst_172 : f32 to vector<256x16xf32>
    %126 = arith.maximumf %124, %125 : vector<256x16xf32>
    %c0_173 = arith.constant 0 : index
    %127 = memref.load %arg6[%c0_173] : memref<1xf32, #tpu.memory_space<smem>>
    %c0_174 = arith.constant 0 : index
    %c0_175 = arith.constant 0 : index
    %128 = vector.load %arg10[%c0_174, %c0_175] : memref<256x16xf32, #tpu.memory_space<vmem>>, vector<256x16xf32>
    %129 = vector.broadcast %127 : f32 to vector<256x16xf32>
    %130 = arith.mulf %129, %128 : vector<256x16xf32>
    %131 = arith.addf %126, %130 : vector<256x16xf32>
    %c0_176 = arith.constant 0 : index
    %c0_177 = arith.constant 0 : index
    %c0_178 = arith.constant 0 : index
    %132 = vector.load %arg7[%c0_176, %c0_177, %c0_178] : memref<1x256x16xf32, #tpu.memory_space<vmem>>, vector<1x256x16xf32>
    %133 = vector.shape_cast %132 : vector<1x256x16xf32> to vector<256x16xf32>
    %134 = vector.shape_cast %131 : vector<256x16xf32> to vector<1x256x16xf32>
    tpu.vector_store %arg7[%c0_176, %c0_177, %c0_178], %134 {strides = array<i32>} : memref<1x256x16xf32, #tpu.memory_space<vmem>>, vector<1x256x16xf32>,
    return
  }
  func.func @transform_0(%arg0: i32) -> (i32, i32, i32) {
    %c0_i32 = arith.constant 0 : i32
    %c0_i32_0 = arith.constant 0 : i32
    %c0_i32_1 = arith.constant 0 : i32
    return %arg0, %c0_i32, %c0_i32_0 : i32, i32, i32
  }
  func.func @transform_1(%arg0: i32) -> (i32, i32) {
    %c0_i32 = arith.constant 0 : i32
    %c0_i32_0 = arith.constant 0 : i32
    %c0_i32_1 = arith.constant 0 : i32
    return %c0_i32, %c0_i32_0 : i32, i32
  }
  func.func @transform_2(%arg0: i32) -> (i32, i32) {
    %c0_i32 = arith.constant 0 : i32
    %c0_i32_0 = arith.constant 0 : i32
    %c0_i32_1 = arith.constant 0 : i32
    return %c0_i32, %c0_i32_0 : i32, i32
  }
  func.func @transform_3(%arg0: i32) -> (i32, i32, i32) {
    %c0_i32 = arith.constant 0 : i32
    %c0_i32_0 = arith.constant 0 : i32
    %c0_i32_1 = arith.constant 0 : i32
    %c0_i32_2 = arith.constant 0 : i32
    return %c0_i32, %c0_i32_0, %c0_i32_1 : i32, i32, i32
  }
  func.func @transform_4(%arg0: i32) -> (i32, i32, i32) {
    %c0_i32 = arith.constant 0 : i32
    %c0_i32_0 = arith.constant 0 : i32
    %c0_i32_1 = arith.constant 0 : i32
    %c0_i32_2 = arith.constant 0 : i32
    return %c0_i32, %c0_i32_0, %c0_i32_1 : i32, i32, i32
  }
  func.func @transform_5(%arg0: i32) -> i32 {
    %c0_i32 = arith.constant 0 : i32
    %c0_i32_0 = arith.constant 0 : i32
    return %c0_i32 : i32
  }
  func.func @transform_6(%arg0: i32) -> (i32, i32, i32) {
    %c0_i32 = arith.constant 0 : i32
    %c0_i32_0 = arith.constant 0 : i32
    %c0_i32_1 = arith.constant 0 : i32
    return %arg0, %c0_i32, %c0_i32_0 : i32, i32, i32
  }
}

</mosaic_0001>

<bundles_post_ra>
// kernel: block_forward.1
= control target key start
LH: loop header
LB: loop body
LE: loop exit
PB: predicated region body
PF: predicated region fallthrough
CT: control target
= control target key end

     0   :  { %s7201_s23 = smov 0   ;;  %s10739_s0 = inlined_call_operand.vmem [shape: f32[2,256,4], index: 0, kind: input, shape index: {}]   ;;  %s10740_s1 = inlined_call_operand.vmem [shape: f32[4,16], index: 1, kind: input, shape index: {}]   ;;  %s10741_s2 = inlined_call_operand.vmem [shape: f32[1,16], index: 2, kind: input, shape index: {}]   ;;  %s10742_s3 = inlined_call_operand.vmem [shape: f32[3,144,16], index: 3, kind: input, shape index: {}]   ;;  %s10743_s4 = inlined_call_operand.vmem [shape: f32[3,1,16], index: 4, kind: input, shape index: {}]   ;;  %s10744_s5 = inlined_call_operand.<no memory space> [shape: f32[1], index: 5, kind: input, shape index: {}]   ;;  %s10745_s6 = inlined_call_operand.vmem [shape: f32[2,256,16], index: 6, kind: output, shape index: {}]  }
   0x1   :  { %11 = sst [smem:[#allocation5]] %s10744_s5 }
   0x2 LB: > { %s6760_s24 = sadd.s32 4294967295, %s7152_s23   ;;  %p6764_p0 = scmp.ge.s32.totalorder %s7152_s23, 1  ;;  %s7152_s23 = sphi %s7201_s23, %s17_s23  }
   0x3   : > { %p213_p1 = scmp.lt.s32.totalorder %s7152_s23, 3 }
   0x5   : > { %p214_p2 = pnand %p6764_p0, %p213_p1 }
   0x7   : > { %217 = sbr.rel (%p214_p2) target bundleno = 2261 (0x8d5), region = 44 }
   0xe   : > { %v358_v0 = vld [vmem:[%s10740_s1] sm:$0xf]  ;;  %vm463_vm0 = vcmask 1043456   ;;  %p243_p3 = scmp.lt.s32.totalorder %s6760_s24, 1  ;;  %vm253_vm1 = vcmask 130048   ;;  %v7154_v1 = vmov 0.0  }
   0xf   : > { %6977 = vmatprep.subr.msk.mxu0 %vm463_vm0, %v358_v0  ;;  %255 = vst.msk [vmem:[#allocation2 + $0x8] sm:$0xff] %vm253_vm1, %v7154_v1  ;;  %254 = vst.msk [vmem:[#allocation2] sm:$0xff] %vm253_vm1, %v7154_v1  ;;  %vm366_vm2 = vcmask 31744   ;;  %s7155_s30 = smov 16   ;;  %s7156_s7 = smov 32   ;;  %vm981_vm3 = vcmask 261248  }
  0x10   : > { %6978 = vmatpush3.msk.msra.mxu0 %vm463_vm0, %v358_v0  ;;  %s10800_s24 = smov (!%p243_p3, %s6760_s24), 1  ;;  %256 = vst.msk [vmem:[#allocation2 + $0x10] sm:$0xff] %vm253_vm1, %v7154_v1  ;;  %257 = vst.msk [vmem:[#allocation2 + $0x18] sm:$0xff] %vm253_vm1, %v7154_v1  ;;  %vm1174_vm4 = vcmask 392448   ;;  %v7443_v44 = vld [vmem:[%s10741_s2] ss:$0 sm:$0xff] }
  0x11   : > { %258 = vst.msk [vmem:[#allocation2 + $0x20] sm:$0xff] %vm253_vm1, %v7154_v1  ;;  %259 = vst.msk [vmem:[#allocation2 + $0x28] sm:$0xff] %vm253_vm1, %v7154_v1  ;;  %s6942_s5 = sshll.u32 %s10800_s24, 8  ;;  %s7157_s10 = smov 48   ;;  %vm1367_vm5 = vcmask 523648   ;;  %vm1560_vm6 = vcmask 654848  }
  0x12   : > { %260 = vst.msk [vmem:[#allocation2 + $0x30] sm:$0xff] %vm253_vm1, %v7154_v1  ;;  %261 = vst.msk [vmem:[#allocation2 + $0x38] sm:$0xff] %vm253_vm1, %v7154_v1  ;;  %s7364_s29 = scalar_lea.vmem %s10739_s0, %s6942_s5  ;;  %s7158_s11 = smov 64   ;;  %vm1753_vm7 = vcmask 786048   ;;  %vm1947_vm8 = vcmask 917248   ;;  %vm2140_vm9 = vcmask 1048448  }
  0x13   : > { %262 = vst.msk [vmem:[#allocation2 + $0x40] sm:$0xff] %vm253_vm1, %v7154_v1  ;;  %263 = vst.msk [vmem:[#allocation2 + $0x48] sm:$0xff] %vm253_vm1, %v7154_v1  ;;  %v326_v2 = vld [vmem:[%s7364_s29] sm:$0xff]  ;;  %v327_v3 = vld [vmem:[%s7364_s29 + $0x8] sm:$0xff]  ;;  %s7159_s12 = smov 80   ;;  %s7161_s26 = smov 96  }
  0x14   : > { %264 = vst.msk [vmem:[#allocation2 + $0x50] sm:$0xff] %vm253_vm1, %v7154_v1  ;;  %265 = vst.msk [vmem:[#allocation2 + $0x58] sm:$0xff] %vm253_vm1, %v7154_v1  ;;  %v328_v4 = vld [vmem:[%s7364_s29 + $0x10] sm:$0xff]  ;;  %6979 = vmatprep.mubr.msk.f32.mxu0 %vm366_vm2, %v326_v2  ;;  %v329_v5 = vld [vmem:[%s7364_s29 + $0x18] sm:$0xff]  ;;  %s7162_s16 = smov 112   ;;  %s6575_s22 = sld [smem:[#allocation5]] }
  0x15   : > { %266 = vst.msk [vmem:[#allocation2 + $0x60] sm:$0xff] %vm253_vm1, %v7154_v1  ;;  %267 = vst.msk [vmem:[#allocation2 + $0x68] sm:$0xff] %vm253_vm1, %v7154_v1  ;;  %6980 = vmatmul.mubr.msk.f32.vlgmr.msra.gmra.mrb[0].mxu0 %vm366_vm2, %v327_v3  ;;  %v330_v6 = vld [vmem:[%s7364_s29 + $0x20] sm:$0xff]  ;;  %v331_v7 = vld [vmem:[%s7364_s29 + $0x28] sm:$0xff]  ;;  %s10225_s8 = scalar_lea.vmem %s10745_s6, %s6942_s5 }
  0x16   : > { %268 = vst.msk [vmem:[#allocation2 + $0x70] sm:$0xff] %vm253_vm1, %v7154_v1  ;;  %269 = vst.msk [vmem:[#allocation2 + $0x78] sm:$0xff] %vm253_vm1, %v7154_v1  ;;  %6982 = vmatprep.mubr.msk.f32.mxu0 %vm366_vm2, %v328_v4  ;;  %v332_v8 = vld [vmem:[%s7364_s29 + $0x30] sm:$0xff]  ;;  %v821_v9 = vld [vmem:[#allocation2 + $0x8] sm:$0xff] }
  0x17   : > { %270 = vst.msk [vmem:[#allocation2 + $0x80] sm:$0xff] %vm253_vm1, %v7154_v1  ;;  %271 = vst.msk [vmem:[#allocation2 + $0x88] sm:$0xff] %vm253_vm1, %v7154_v1  ;;  %885 = vrot.lane.b32.xlu0 %v821_v9, %s7155_s30  ;;  %v333_v10 = vld [vmem:[%s7364_s29 + $0x38] sm:$0xff]  ;;  %v334_v11 = vld [vmem:[%s7364_s29 + $0x40] sm:$0xff] }
  0x18   : > { %272 = vst.msk [vmem:[#allocation2 + $0x90] sm:$0xff] %vm253_vm1, %v7154_v1  ;;  %273 = vst.msk [vmem:[#allocation2 + $0x98] sm:$0xff] %vm253_vm1, %v7154_v1  ;;  %v335_v12 = vld [vmem:[%s7364_s29 + $0x48] sm:$0xff]  ;;  %v336_v13 = vld [vmem:[%s7364_s29 + $0x50] sm:$0xff] }
  0x19   : > { %274 = vst.msk [vmem:[#allocation2 + $0xa0] sm:$0xff] %vm253_vm1, %v7154_v1  ;;  %275 = vst.msk [vmem:[#allocation2 + $0xa8] sm:$0xff] %vm253_vm1, %v7154_v1  ;;  %6983 = vmatmul.mubr.msk.f32.gmra.mrb[2].mxu0 %vm366_vm2, %v329_v5  ;;  %v337_v14 = vld [vmem:[%s7364_s29 + $0x58] sm:$0xff]  ;;  %v338_v15 = vld [vmem:[%s7364_s29 + $0x60] sm:$0xff] }
  0x1a   : > { %276 = vst.msk [vmem:[#allocation2 + $0xb0] sm:$0xff] %vm253_vm1, %v7154_v1  ;;  %277 = vst.msk [vmem:[#allocation2 + $0xb8] sm:$0xff] %vm253_vm1, %v7154_v1  ;;  %6985 = vmatprep.mubr.msk.f32.mxu0 %vm366_vm2, %v330_v6  ;;  %v339_v16 = vld [vmem:[%s7364_s29 + $0x68] sm:$0xff]  ;;  %v340_v17 = vld [vmem:[%s7364_s29 + $0x70] sm:$0xff] }
  0x1b   : > { %278 = vst.msk [vmem:[#allocation2 + $0xc0] sm:$0xff] %vm253_vm1, %v7154_v1  ;;  %279 = vst.msk [vmem:[#allocation2 + $0xc8] sm:$0xff] %vm253_vm1, %v7154_v1  ;;  %v341_v18 = vld [vmem:[%s7364_s29 + $0x78] sm:$0xff]  ;;  %v342_v19 = vld [vmem:[%s7364_s29 + $0x80] sm:$0xff] }
  0x1c   : > { %280 = vst.msk [vmem:[#allocation2 + $0xd0] sm:$0xff] %vm253_vm1, %v7154_v1  ;;  %281 = vst.msk [vmem:[#allocation2 + $0xd8] sm:$0xff] %vm253_vm1, %v7154_v1  ;;  %v343_v20 = vld [vmem:[%s7364_s29 + $0x88] sm:$0xff]  ;;  %v344_v21 = vld [vmem:[%s7364_s29 + $0x90] sm:$0xff] }
  0x1d   : > { %282 = vst.msk [vmem:[#allocation2 + $0xe0] sm:$0xff] %vm253_vm1, %v7154_v1  ;;  %283 = vst.msk [vmem:[#allocation2 + $0xe8] sm:$0xff] %vm253_vm1, %v7154_v1  ;;  %6986 = vmatmul.mubr.msk.f32.gmra.mrb[4].mxu0 %vm366_vm2, %v331_v7  ;;  %v345_v22 = vld [vmem:[%s7364_s29 + $0x98] sm:$0xff]  ;;  %v346_v23 = vld [vmem:[%s7364_s29 + $0xa0] sm:$0xff] }
  0x1e   : > { %284 = vst.msk [vmem:[#allocation2 + $0xf0] sm:$0xff] %vm253_vm1, %v7154_v1  ;;  %285 = vst.msk [vmem:[#allocation2 + $0xf8] sm:$0xff] %vm253_vm1, %v7154_v1  ;;  %6988 = vmatprep.mubr.msk.f32.mxu0 %vm366_vm2, %v332_v8  ;;  %v347_v24 = vld [vmem:[%s7364_s29 + $0xa8] sm:$0xff]  ;;  %v348_v25 = vld [vmem:[%s7364_s29 + $0xb0] sm:$0xff] }
  0x1f   : > { %286 = vst.msk [vmem:[#allocation2 + $0x100] sm:$0xff] %vm253_vm1, %v7154_v1  ;;  %287 = vst.msk [vmem:[#allocation2 + $0x108] sm:$0xff] %vm253_vm1, %v7154_v1  ;;  %v349_v26 = vld [vmem:[%s7364_s29 + $0xb8] sm:$0xff]  ;;  %v822_v27 = vld [vmem:[#allocation2 + $0x10] sm:$0xff] }
  0x20   : > { %288 = vst.msk [vmem:[#allocation2 + $0x110] sm:$0xff] %vm253_vm1, %v7154_v1  ;;  %289 = vst.msk [vmem:[#allocation2 + $0x118] sm:$0xff] %vm253_vm1, %v7154_v1  ;;  %887 = vrot.lane.b32.xlu0 %v822_v27, %s7155_s30  ;;  %v1015_v28 = vld [vmem:[#allocation2 + $0x11] sm:$0xff]  ;;  %v1014_v29 = vld [vmem:[#allocation2 + $0x9] sm:$0xff] }
  0x21   : > { %290 = vst.msk [vmem:[#allocation2 + $0x120] sm:$0xff] %vm253_vm1, %v7154_v1  ;;  %291 = vst.msk [vmem:[#allocation2 + $0x128] sm:$0xff] %vm253_vm1, %v7154_v1  ;;  %6989 = vmatmul.mubr.msk.f32.gmra.mrb[6].mxu0 %vm366_vm2, %v333_v10  ;;  %1080 = vrot.lane.b32.xlu1 %v1015_v28, %s7156_s7  ;;  %v350_v30 = vld [vmem:[%s7364_s29 + $0xc0] sm:$0xff]  ;;  %v351_v31 = vld [vmem:[%s7364_s29 + $0xc8] sm:$0xff] }
  0x22   : > { %292 = vst.msk [vmem:[#allocation2 + $0x130] sm:$0xff] %vm253_vm1, %v7154_v1  ;;  %293 = vst.msk [vmem:[#allocation2 + $0x138] sm:$0xff] %vm253_vm1, %v7154_v1  ;;  %6991 = vmatprep.mubr.msk.f32.mxu0 %vm366_vm2, %v334_v11  ;;  %v352_v32 = vld [vmem:[%s7364_s29 + $0xd0] sm:$0xff]  ;;  %v353_v33 = vld [vmem:[%s7364_s29 + $0xd8] sm:$0xff] }
  0x23   : > { %294 = vst.msk [vmem:[#allocation2 + $0x140] sm:$0xff] %vm253_vm1, %v7154_v1  ;;  %295 = vst.msk [vmem:[#allocation2 + $0x148] sm:$0xff] %vm253_vm1, %v7154_v1  ;;  %v354_v34 = vld [vmem:[%s7364_s29 + $0xe0] sm:$0xff]  ;;  %v355_v35 = vld [vmem:[%s7364_s29 + $0xe8] sm:$0xff] }
  0x24   : > { %296 = vst.msk [vmem:[#allocation2 + $0x150] sm:$0xff] %vm253_vm1, %v7154_v1  ;;  %297 = vst.msk [vmem:[#allocation2 + $0x158] sm:$0xff] %vm253_vm1, %v7154_v1  ;;  %1078 = vrot.lane.b32.xlu0 %v1014_v29, %s7156_s7  ;;  %v356_v36 = vld [vmem:[%s7364_s29 + $0xf0] sm:$0xff]  ;;  %v357_v37 = vld [vmem:[%s7364_s29 + $0xf8] sm:$0xff] }
  0x25   : > { %298 = vst.msk [vmem:[#allocation2 + $0x160] sm:$0xff] %vm253_vm1, %v7154_v1  ;;  %299 = vst.msk [vmem:[#allocation2 + $0x168] sm:$0xff] %vm253_vm1, %v7154_v1  ;;  %6992 = vmatmul.mubr.msk.f32.gmra.mrb[8].mxu0 %vm366_vm2, %v335_v12  ;;  %v757_v39 = vld [vmem:[#allocation2 + $0x7] sm:$0xff]  ;;  %v758_v40 = vld [vmem:[#allocation2 + $0xf] sm:$0xff] }
  0x26   : > { %300 = vst.msk [vmem:[#allocation2 + $0x170] sm:$0xff] %vm253_vm1, %v7154_v1  ;;  %301 = vst.msk [vmem:[#allocation2 + $0x178] sm:$0xff] %vm253_vm1, %v7154_v1  ;;  %6994 = vmatprep.mubr.msk.f32.mxu0 %vm366_vm2, %v336_v13 }
  0x27   : > { %302 = vst.msk [vmem:[#allocation2 + $0x180] sm:$0xff] %vm253_vm1, %v7154_v1  ;;  %303 = vst.msk [vmem:[#allocation2 + $0x188] sm:$0xff] %vm253_vm1, %v7154_v1 }
  0x28   : > { %304 = vst.msk [vmem:[#allocation2 + $0x190] sm:$0xff] %vm253_vm1, %v7154_v1  ;;  %305 = vst.msk [vmem:[#allocation2 + $0x198] sm:$0xff] %vm253_vm1, %v7154_v1 }
  0x29   : > { %306 = vst.msk [vmem:[#allocation2 + $0x1a0] sm:$0xff] %vm253_vm1, %v7154_v1  ;;  %307 = vst.msk [vmem:[#allocation2 + $0x1a8] sm:$0xff] %vm253_vm1, %v7154_v1  ;;  %6995 = vmatmul.mubr.msk.f32.gmra.mrb[10].mxu0 %vm366_vm2, %v337_v14 }
  0x2a   : > { %308 = vst.msk [vmem:[#allocation2 + $0x1b0] sm:$0xff] %vm253_vm1, %v7154_v1  ;;  %309 = vst.msk [vmem:[#allocation2 + $0x1b8] sm:$0xff] %vm253_vm1, %v7154_v1  ;;  %6997 = vmatprep.mubr.msk.f32.mxu0 %vm366_vm2, %v338_v15 }
  0x2b   : > { %310 = vst.msk [vmem:[#allocation2 + $0x1c0] sm:$0xff] %vm253_vm1, %v7154_v1  ;;  %311 = vst.msk [vmem:[#allocation2 + $0x1c8] sm:$0xff] %vm253_vm1, %v7154_v1 }
  0x2c   : > { %312 = vst.msk [vmem:[#allocation2 + $0x1d0] sm:$0xff] %vm253_vm1, %v7154_v1  ;;  %313 = vst.msk [vmem:[#allocation2 + $0x1d8] sm:$0xff] %vm253_vm1, %v7154_v1 }
  0x2d   : > { %314 = vst.msk [vmem:[#allocation2 + $0x1e0] sm:$0xff] %vm253_vm1, %v7154_v1  ;;  %315 = vst.msk [vmem:[#allocation2 + $0x1e8] sm:$0xff] %vm253_vm1, %v7154_v1  ;;  %6998 = vmatmul.mubr.msk.f32.gmra.mrb[12].mxu0 %vm366_vm2, %v339_v16 }
  0x2e   : > { %316 = vst.msk [vmem:[#allocation2 + $0x1f0] sm:$0xff] %vm253_vm1, %v7154_v1  ;;  %317 = vst.msk [vmem:[#allocation2 + $0x1f8] sm:$0xff] %vm253_vm1, %v7154_v1  ;;  %7000 = vmatprep.mubr.msk.f32.mxu0 %vm366_vm2, %v340_v17 }
  0x2f   : > { %318 = vst.msk [vmem:[#allocation2 + $0x200] sm:$0xff] %vm253_vm1, %v7154_v1  ;;  %319 = vst.msk [vmem:[#allocation2 + $0x208] sm:$0xff] %vm253_vm1, %v7154_v1 }
  0x30   : > { %320 = vst.msk [vmem:[#allocation2 + $0x210] sm:$0xff] %vm253_vm1, %v7154_v1  ;;  %321 = vst.msk [vmem:[#allocation2 + $0x218] sm:$0xff] %vm253_vm1, %v7154_v1 }
  0x31   : > { %322 = vst.msk [vmem:[#allocation2 + $0x220] sm:$0xff] %vm253_vm1, %v7154_v1  ;;  %323 = vst.msk [vmem:[#allocation2 + $0x228] sm:$0xff] %vm253_vm1, %v7154_v1  ;;  %7001 = vmatmul.mubr.msk.f32.gmra.mrb[14].mxu0 %vm366_vm2, %v341_v18 }
  0x32   : > { %324 = vst.msk [vmem:[#allocation2 + $0x230] sm:$0xff] %vm253_vm1, %v7154_v1  ;;  %325 = vst.msk [vmem:[#allocation2 + $0x238] sm:$0xff] %vm253_vm1, %v7154_v1  ;;  %7003 = vmatprep.mubr.msk.f32.mxu0 %vm366_vm2, %v342_v19 }
  0x33   : > { %789 = vst.msk [vmem:[#allocation3] sm:$0xff] %vm253_vm1, %v757_v39  ;;  %790 = vst.msk [vmem:[#allocation3 + $0x10] sm:$0xff] %vm253_vm1, %v758_v40 }
  0x35   : > { %7004 = vmatmul.mubr.msk.f32.gmra.mrb[16].mxu0 %vm366_vm2, %v343_v20 }
  0x36   : > { %7006 = vmatprep.mubr.msk.f32.mxu0 %vm366_vm2, %v344_v21 }
  0x39   : > { %7007 = vmatmul.mubr.msk.f32.gmra.mrb[18].mxu0 %vm366_vm2, %v345_v22 }
  0x3a   : > { %7009 = vmatprep.mubr.msk.f32.mxu0 %vm366_vm2, %v346_v23 }
  0x3d   : > { %7010 = vmatmul.mubr.msk.f32.gmra.mrb[20].mxu0 %vm366_vm2, %v347_v24 }
  0x3e   : > { %7012 = vmatprep.mubr.msk.f32.mxu0 %vm366_vm2, %v348_v25 }
  0x41   : > { %7013 = vmatmul.mubr.msk.f32.gmra.mrb[22].mxu0 %vm366_vm2, %v349_v26 }
  0x42   : > { %7015 = vmatprep.mubr.msk.f32.mxu0 %vm366_vm2, %v350_v30 }
  0x45   : > { %7016 = vmatmul.mubr.msk.f32.gmra.mrb[24].mxu0 %vm366_vm2, %v351_v31 }
  0x46   : > { %7018 = vmatprep.mubr.msk.f32.mxu0 %vm366_vm2, %v352_v32 }
  0x49   : > { %7019 = vmatmul.mubr.msk.f32.gmra.mrb[26].mxu0 %vm366_vm2, %v353_v33 }
  0x4a   : > { %7021 = vmatprep.mubr.msk.f32.mxu0 %vm366_vm2, %v354_v34 }
  0x4d   : > { %7022 = vmatmul.mubr.msk.f32.gmra.mrb[28].mxu0 %vm366_vm2, %v355_v35 }
  0x4e   : > { %7024 = vmatprep.mubr.msk.f32.mxu0 %vm366_vm2, %v356_v36 }
  0x51   : > { %7025 = vmatmul.mubr.msk.f32.gmra.mrb[30].mxu0 %vm366_vm2, %v357_v37 }
  0x89   : > { %v886_v38 = vpop.permute.xlu0 %885 }
  0x8a   : > { %982 = vst.msk [vmem:[#allocation3] sm:$0xff] %vm981_vm3, %v886_v38 }
  0x92   : > { %v888_v41 = vpop.permute.xlu0 %887 }
  0x93   : > { %983 = vst.msk [vmem:[#allocation3 + $0x10] sm:$0xff] %vm981_vm3, %v888_v41  ;;  %v1081_v42 = vpop.permute.xlu1 %1080 }
  0x94   : > { %1176 = vst.msk [vmem:[#allocation3 + $0x10] sm:$0xff] %vm1174_vm4, %v1081_v42 }
  0x96   : > { %v1079_v43 = vpop.permute.xlu0 %1078 }
  0x97   : > { %1175 = vst.msk [vmem:[#allocation3] sm:$0xff] %vm1174_vm4, %v1079_v43 }
  0xe8   : > { %v6981_v45 = vpop.f32.mrb[0].mxu0 }
  0xe9   : > { %v539_v46 = vadd.f32 %v6981_v45, %v7443_v44  ;;  %v533_v47 = vpop.f32.mrb[1].mxu0 }
  0xea   : > { %v534_v48 = vadd.f32 %v7443_v44, %v533_v47 }
  0xeb   : > { %693 = vst.msk [vmem:[#allocation4 + $0x8] sm:$0xff] %vm253_vm1, %v539_v46  ;;  %726 = vst.msk [vmem:[#allocation2 + $0x30] sm:$0xff] %vm253_vm1, %v539_v46 }
  0xec   : > { %692 = vst.msk [vmem:[#allocation4] sm:$0xff] %vm253_vm1, %v534_v48  ;;  %725 = vst.msk [vmem:[#allocation2 + $0x28] sm:$0xff] %vm253_vm1, %v534_v48  ;;  %v6984_v49 = vpop.f32.mrb[2].mxu0 }
  0xed   : > { %v549_v50 = vadd.f32 %v6984_v49, %v7443_v44  ;;  %v543_v51 = vpop.f32.mrb[3].mxu0 }
  0xee   : > { %v544_v52 = vadd.f32 %v7443_v44, %v543_v51 }
  0xef   : > { %695 = vst.msk [vmem:[#allocation4 + $0x18] sm:$0xff] %vm253_vm1, %v549_v50  ;;  %728 = vst.msk [vmem:[#allocation2 + $0x50] sm:$0xff] %vm253_vm1, %v549_v50 }
  0xf0   : > { %694 = vst.msk [vmem:[#allocation4 + $0x10] sm:$0xff] %vm253_vm1, %v544_v52  ;;  %727 = vst.msk [vmem:[#allocation2 + $0x48] sm:$0xff] %vm253_vm1, %v544_v52  ;;  %v6987_v53 = vpop.f32.mrb[4].mxu0 }
  0xf1   : > { %v559_v54 = vadd.f32 %v6987_v53, %v7443_v44  ;;  %v553_v55 = vpop.f32.mrb[5].mxu0 }
  0xf2   : > { %v824_v56 = vld [vmem:[#allocation2 + $0x30] sm:$0xff]  ;;  %v554_v57 = vadd.f32 %v7443_v44, %v553_v55 }
  0xf3   : > { %891 = vrot.lane.b32.xlu1 %v824_v56, %s7155_s30  ;;  %v1016_v58 = vld [vmem:[#allocation2 + $0x29] sm:$0xff]  ;;  %697 = vst.msk [vmem:[#allocation4 + $0x28] sm:$0xff] %vm253_vm1, %v559_v54  ;;  %730 = vst.msk [vmem:[#allocation2 + $0x70] sm:$0xff] %vm253_vm1, %v559_v54  ;;  %v1017_v0 = vld [vmem:[#allocation2 + $0x31] sm:$0xff] }
  0xf4   : > { %v1207_v59 = vld [vmem:[#allocation2 + $0x27] sm:$0xff]  ;;  %1082 = vrot.lane.b32.xlu0 %v1016_v58, %s7156_s7  ;;  %v7463_v60 = vld [vmem:[#allocation2 + $0x2f] sm:$0xff]  ;;  %696 = vst.msk [vmem:[#allocation4 + $0x20] sm:$0xff] %vm253_vm1, %v554_v57  ;;  %729 = vst.msk [vmem:[#allocation2 + $0x68] sm:$0xff] %vm253_vm1, %v554_v57  ;;  %v6990_v61 = vpop.f32.mrb[6].mxu0 }
  0xf5   : > { %791 = vst.msk [vmem:[#allocation3 + $0x20] sm:$0xff] %vm253_vm1, %v1207_v59  ;;  %v569_v62 = vadd.f32 %v6990_v61, %v7443_v44  ;;  %v563_v63 = vpop.f32.mrb[7].mxu0  ;;  %792 = vst.msk [vmem:[#allocation3 + $0x30] sm:$0xff] %vm253_vm1, %v7463_v60  ;;  %v1400_v10 = vld [vmem:[#allocation2 + $0x28] sm:$0xff] }
  0xf6   : > { %v564_v1 = vadd.f32 %v7443_v44, %v563_v63  ;;  %v2174_v8 = vld [vmem:[#allocation2 + $0x51] sm:$0xff] }
  0xf7   : > { %1084 = vrot.lane.b32.xlu1 %v1017_v0, %s7156_s7  ;;  %v7473_v2 = vld [vmem:[#allocation2 + $0x49] sm:$0xff]  ;;  %699 = vst.msk [vmem:[#allocation4 + $0x38] sm:$0xff] %vm253_vm1, %v569_v62  ;;  %732 = vst.msk [vmem:[#allocation2 + $0x90] sm:$0xff] %vm253_vm1, %v569_v62  ;;  %v1019_v49 = vld [vmem:[#allocation2 + $0x51] sm:$0xff] }
  0xf8   : > { %v7475_v3 = vld [vmem:[#allocation2 + $0x47] sm:$0xff]  ;;  %1271 = vrot.lane.b32.xlu0 %v1207_v59, %s7157_s10  ;;  %2205 = vst.msk [vmem:[#allocation3 + $0x8] sm:$0xff] %vm253_vm1, %v7473_v2  ;;  %v7482_v4 = vld [vmem:[#allocation2 + $0x4f] sm:$0xff]  ;;  %698 = vst.msk [vmem:[#allocation4 + $0x30] sm:$0xff] %vm253_vm1, %v564_v1  ;;  %v6993_v5 = vpop.f32.mrb[8].mxu0 }
  0xf9   : > { %731 = vst.msk [vmem:[#allocation2 + $0x88] sm:$0xff] %vm253_vm1, %v564_v1  ;;  %793 = vst.msk [vmem:[#allocation3 + $0x40] sm:$0xff] %vm253_vm1, %v7475_v3  ;;  %v579_v6 = vadd.f32 %v6993_v5, %v7443_v44  ;;  %v573_v7 = vpop.f32.mrb[9].mxu0  ;;  %v825_v24 = vld [vmem:[#allocation2 + $0x48] sm:$0xff]  ;;  %v826_v37 = vld [vmem:[#allocation2 + $0x50] sm:$0xff] }
  0xfa   : > { %794 = vst.msk [vmem:[#allocation3 + $0x50] sm:$0xff] %vm253_vm1, %v7482_v4  ;;  %v574_v9 = vadd.f32 %v7443_v44, %v573_v7  ;;  %2206 = vst.msk [vmem:[#allocation3 + $0x18] sm:$0xff] %vm253_vm1, %v2174_v8  ;;  %v2176_v17 = vld [vmem:[#allocation2 + $0x71] sm:$0xff] }
  0xfb   : > { %1466 = vrot.lane.b32.xlu1 %v824_v56, %s7158_s11  ;;  %v7494_v11 = vld [vmem:[#allocation2 + $0x69] sm:$0xff]  ;;  %701 = vst.msk [vmem:[#allocation4 + $0x48] sm:$0xff] %vm253_vm1, %v579_v6  ;;  %734 = vst.msk [vmem:[#allocation2 + $0xb0] sm:$0xff] %vm253_vm1, %v579_v6 }
  0xfc   : > { %v7496_v12 = vld [vmem:[#allocation2 + $0x67] sm:$0xff]  ;;  %1464 = vrot.lane.b32.xlu0 %v1400_v10, %s7158_s11  ;;  %2207 = vst.msk [vmem:[#allocation3 + $0x28] sm:$0xff] %vm253_vm1, %v7494_v11  ;;  %v7503_v13 = vld [vmem:[#allocation2 + $0x6f] sm:$0xff]  ;;  %700 = vst.msk [vmem:[#allocation4 + $0x40] sm:$0xff] %vm253_vm1, %v574_v9  ;;  %v6996_v14 = vpop.f32.mrb[10].mxu0 }
  0xfd   : > { %733 = vst.msk [vmem:[#allocation2 + $0xa8] sm:$0xff] %vm253_vm1, %v574_v9  ;;  %795 = vst.msk [vmem:[#allocation3 + $0x60] sm:$0xff] %vm253_vm1, %v7496_v12  ;;  %v589_v15 = vadd.f32 %v6996_v14, %v7443_v44  ;;  %v583_v16 = vpop.f32.mrb[11].mxu0  ;;  %v827_v57 = vld [vmem:[#allocation2 + $0x68] sm:$0xff] }
  0xfe   : > { %796 = vst.msk [vmem:[#allocation3 + $0x70] sm:$0xff] %vm253_vm1, %v7503_v13  ;;  %v584_v18 = vadd.f32 %v7443_v44, %v583_v16  ;;  %2208 = vst.msk [vmem:[#allocation3 + $0x38] sm:$0xff] %vm253_vm1, %v2176_v17  ;;  %v2178_v42 = vld [vmem:[#allocation2 + $0x91] sm:$0xff] }
  0xff   : > { %1659 = vrot.lane.b32.xlu1 %v1017_v0, %s7159_s12  ;;  %v2238_v19 = vld [vmem:[#allocation3 + $0x8] sm:$0xff]  ;;  %703 = vst.msk [vmem:[#allocation4 + $0x58] sm:$0xff] %vm253_vm1, %v589_v15  ;;  %736 = vst.msk [vmem:[#allocation2 + $0xd0] sm:$0xff] %vm253_vm1, %v589_v15  ;;  %v830_v14 = vld [vmem:[#allocation2 + $0x90] sm:$0xff] }
 0x100   : > { %v7515_v20 = vld [vmem:[#allocation2 + $0x89] sm:$0xff]  ;;  %1657 = vrot.lane.b32.xlu0 %v1016_v58, %s7159_s12  ;;  %6804 = vmatprep.mubr.msk.f32.mxu0 %vm253_vm1, %v2238_v19  ;;  %702 = vst.msk [vmem:[#allocation4 + $0x50] sm:$0xff] %vm253_vm1, %v584_v18  ;;  %735 = vst.msk [vmem:[#allocation2 + $0xc8] sm:$0xff] %vm253_vm1, %v584_v18  ;;  %v6999_v23 = vpop.f32.mrb[12].mxu0  ;;  %v1023_v16 = vld [vmem:[#allocation2 + $0x91] sm:$0xff] }
 0x101   : > { %2209 = vst.msk [vmem:[#allocation3 + $0x48] sm:$0xff] %vm253_vm1, %v7515_v20  ;;  %v7523_v21 = vld [vmem:[#allocation2 + $0x87] sm:$0xff]  ;;  %v7525_v22 = vld [vmem:[#allocation2 + $0x8f] sm:$0xff]  ;;  %v599_v25 = vadd.f32 %v6999_v23, %v7443_v44  ;;  %v593_v26 = vpop.f32.mrb[13].mxu0  ;;  %2210 = vst.msk [vmem:[#allocation3 + $0x58] sm:$0xff] %vm253_vm1, %v2178_v42 }
 0x102   : > { %797 = vst.msk [vmem:[#allocation3 + $0x80] sm:$0xff] %vm253_vm1, %v7523_v21  ;;  %798 = vst.msk [vmem:[#allocation3 + $0x90] sm:$0xff] %vm253_vm1, %v7525_v22  ;;  %v594_v27 = vadd.f32 %v7443_v44, %v593_v26  ;;  %v2180_v48 = vld [vmem:[#allocation2 + $0xb1] sm:$0xff]  ;;  %v829_v8 = vld [vmem:[#allocation2 + $0x88] sm:$0xff] }
 0x103   : > { %889 = vrot.lane.b32.xlu1 %v1400_v10, %s7155_s30  ;;  %705 = vst.msk [vmem:[#allocation4 + $0x68] sm:$0xff] %vm253_vm1, %v599_v25  ;;  %738 = vst.msk [vmem:[#allocation2 + $0xf0] sm:$0xff] %vm253_vm1, %v599_v25  ;;  %v832_v26 = vld [vmem:[#allocation2 + $0xb0] sm:$0xff] }
 0x104   : > { %v7536_v28 = vld [vmem:[#allocation2 + $0xa9] sm:$0xff]  ;;  %893 = vrot.lane.b32.xlu0 %v825_v24, %s7155_s30  ;;  %704 = vst.msk [vmem:[#allocation4 + $0x60] sm:$0xff] %vm253_vm1, %v594_v27  ;;  %737 = vst.msk [vmem:[#allocation2 + $0xe8] sm:$0xff] %vm253_vm1, %v594_v27  ;;  %v7002_v31 = vpop.f32.mrb[14].mxu0 }
 0x105   : > { %v7538_v29 = vld [vmem:[#allocation2 + $0xa7] sm:$0xff]  ;;  %2211 = vst.msk [vmem:[#allocation3 + $0x68] sm:$0xff] %vm253_vm1, %v7536_v28  ;;  %v7545_v30 = vld [vmem:[#allocation2 + $0xaf] sm:$0xff]  ;;  %v609_v32 = vadd.f32 %v7002_v31, %v7443_v44  ;;  %v603_v33 = vpop.f32.mrb[15].mxu0  ;;  %2212 = vst.msk [vmem:[#allocation3 + $0x78] sm:$0xff] %vm253_vm1, %v2180_v48 }
 0x106   : > { %799 = vst.msk [vmem:[#allocation3 + $0xa0] sm:$0xff] %vm253_vm1, %v7538_v29  ;;  %800 = vst.msk [vmem:[#allocation3 + $0xb0] sm:$0xff] %vm253_vm1, %v7545_v30  ;;  %v604_v34 = vadd.f32 %v7443_v44, %v603_v33  ;;  %v2182_v53 = vld [vmem:[#allocation2 + $0xd1] sm:$0xff] }
 0x107   : > { %1273 = vrot.lane.b32.xlu1 %v7463_v60, %s7157_s10  ;;  %v7557_v35 = vld [vmem:[#allocation2 + $0xc9] sm:$0xff]  ;;  %707 = vst.msk [vmem:[#allocation4 + $0x78] sm:$0xff] %vm253_vm1, %v609_v32  ;;  %740 = vst.msk [vmem:[#allocation2 + $0x110] sm:$0xff] %vm253_vm1, %v609_v32  ;;  %v1025_v33 = vld [vmem:[#allocation2 + $0xb1] sm:$0xff] }
 0x108   : > { %v7559_v36 = vld [vmem:[#allocation2 + $0xc7] sm:$0xff]  ;;  %1086 = vrot.lane.b32.xlu0 %v7473_v2, %s7156_s7  ;;  %2213 = vst.msk [vmem:[#allocation3 + $0x88] sm:$0xff] %vm253_vm1, %v7557_v35  ;;  %v7567_v38 = vld [vmem:[#allocation2 + $0xcf] sm:$0xff]  ;;  %706 = vst.msk [vmem:[#allocation4 + $0x70] sm:$0xff] %vm253_vm1, %v604_v34  ;;  %v7005_v39 = vpop.f32.mrb[16].mxu0 }
 0x109   : > { %739 = vst.msk [vmem:[#allocation2 + $0x108] sm:$0xff] %vm253_vm1, %v604_v34  ;;  %801 = vst.msk [vmem:[#allocation3 + $0xc0] sm:$0xff] %vm253_vm1, %v7559_v36  ;;  %v619_v40 = vadd.f32 %v7005_v39, %v7443_v44  ;;  %v613_v41 = vpop.f32.mrb[17].mxu0  ;;  %v833_v39 = vld [vmem:[#allocation2 + $0xc8] sm:$0xff] }
 0x10a   : > { %802 = vst.msk [vmem:[#allocation3 + $0xd0] sm:$0xff] %vm253_vm1, %v7567_v38  ;;  %v614_v43 = vadd.f32 %v7443_v44, %v613_v41  ;;  %2214 = vst.msk [vmem:[#allocation3 + $0x98] sm:$0xff] %vm253_vm1, %v2182_v53  ;;  %v2184_v54 = vld [vmem:[#allocation2 + $0xf1] sm:$0xff] }
 0x10b   : > { %895 = vrot.lane.b32.xlu1 %v826_v37, %s7155_s30  ;;  %v7579_v45 = vld [vmem:[#allocation2 + $0xe9] sm:$0xff]  ;;  %709 = vst.msk [vmem:[#allocation4 + $0x88] sm:$0xff] %vm253_vm1, %v619_v40  ;;  %742 = vst.msk [vmem:[#allocation2 + $0x130] sm:$0xff] %vm253_vm1, %v619_v40 }
 0x10c   : > { %v7581_v46 = vld [vmem:[#allocation2 + $0xe7] sm:$0xff]  ;;  %1275 = vrot.lane.b32.xlu0 %v7475_v3, %s7157_s10  ;;  %2215 = vst.msk [vmem:[#allocation3 + $0xa8] sm:$0xff] %vm253_vm1, %v7579_v45  ;;  %v7589_v47 = vld [vmem:[#allocation2 + $0xef] sm:$0xff]  ;;  %708 = vst.msk [vmem:[#allocation4 + $0x80] sm:$0xff] %vm253_vm1, %v614_v43  ;;  %v7008_v59 = vpop.f32.mrb[18].mxu0 }
 0x10d   : > { %741 = vst.msk [vmem:[#allocation2 + $0x128] sm:$0xff] %vm253_vm1, %v614_v43  ;;  %803 = vst.msk [vmem:[#allocation3 + $0xe0] sm:$0xff] %vm253_vm1, %v7581_v46  ;;  %v629_v61 = vadd.f32 %v7008_v59, %v7443_v44  ;;  %v623_v62 = vpop.f32.mrb[19].mxu0  ;;  %v1021_v3 = vld [vmem:[#allocation2 + $0x71] sm:$0xff] }
 0x10e   : > { %804 = vst.msk [vmem:[#allocation3 + $0xf0] sm:$0xff] %vm253_vm1, %v7589_v47  ;;  %v2186_v55 = vld [vmem:[#allocation2 + $0x111] sm:$0xff]  ;;  %2216 = vst.msk [vmem:[#allocation3 + $0xb8] sm:$0xff] %vm253_vm1, %v2184_v54  ;;  %v624_v0 = vadd.f32 %v7443_v44, %v623_v62 }
 0x10f   : > { %1088 = vrot.lane.b32.xlu1 %v1019_v49, %s7156_s7  ;;  %2218 = vst.msk [vmem:[#allocation3 + $0xd8] sm:$0xff] %vm253_vm1, %v2186_v55  ;;  %711 = vst.msk [vmem:[#allocation4 + $0x98] sm:$0xff] %vm253_vm1, %v629_v61  ;;  %v834_v41 = vld [vmem:[#allocation2 + $0xd0] sm:$0xff] }
 0x110   : > { %v7599_v50 = vld [vmem:[#allocation2 + $0x109] sm:$0xff]  ;;  %1468 = vrot.lane.b32.xlu0 %v825_v24, %s7158_s11  ;;  %744 = vst.msk [vmem:[#allocation2 + $0x150] sm:$0xff] %vm253_vm1, %v629_v61  ;;  %710 = vst.msk [vmem:[#allocation4 + $0x90] sm:$0xff] %vm253_vm1, %v624_v0  ;;  %v1027_v54 = vld [vmem:[#allocation2 + $0xd1] sm:$0xff] }
 0x111   : > { %v7601_v51 = vld [vmem:[#allocation2 + $0x107] sm:$0xff]  ;;  %2217 = vst.msk [vmem:[#allocation3 + $0xc8] sm:$0xff] %vm253_vm1, %v7599_v50  ;;  %v7606_v52 = vld [vmem:[#allocation2 + $0x10f] sm:$0xff]  ;;  %743 = vst.msk [vmem:[#allocation2 + $0x148] sm:$0xff] %vm253_vm1, %v624_v0 }
 0x112   : > { %805 = vst.msk [vmem:[#allocation3 + $0x100] sm:$0xff] %vm253_vm1, %v7601_v51  ;;  %806 = vst.msk [vmem:[#allocation3 + $0x110] sm:$0xff] %vm253_vm1, %v7606_v52  ;;  %v2188_v1 = vld [vmem:[#allocation2 + $0x131] sm:$0xff]  ;;  %v831_v24 = vld [vmem:[#allocation2 + $0xa8] sm:$0xff] }
 0x113   : > { %1470 = vrot.lane.b32.xlu1 %v826_v37, %s7158_s11  ;;  %2220 = vst.msk [vmem:[#allocation3 + $0xf8] sm:$0xff] %vm253_vm1, %v2188_v1 }
 0x114   : > { %v7614_v56 = vld [vmem:[#allocation2 + $0x129] sm:$0xff]  ;;  %1661 = vrot.lane.b32.xlu0 %v7473_v2, %s7159_s12 }
 0x115   : > { %2219 = vst.msk [vmem:[#allocation3 + $0xe8] sm:$0xff] %vm253_vm1, %v7614_v56  ;;  %v7623_v60 = vld [vmem:[#allocation2 + $0x127] sm:$0xff]  ;;  %v7628_v63 = vld [vmem:[#allocation2 + $0x12f] sm:$0xff] }
 0x116   : > { %807 = vst.msk [vmem:[#allocation3 + $0x120] sm:$0xff] %vm253_vm1, %v7623_v60  ;;  %808 = vst.msk [vmem:[#allocation3 + $0x130] sm:$0xff] %vm253_vm1, %v7628_v63  ;;  %v828_v2 = vld [vmem:[#allocation2 + $0x70] sm:$0xff] }
 0x117   : > { %1663 = vrot.lane.b32.xlu1 %v1019_v49, %s7159_s12 }
 0x118   : > { %v2262_v58 = vld [vmem:[#allocation3 + $0xc8] sm:$0xff]  ;;  %897 = vrot.lane.b32.xlu0 %v827_v57, %s7155_s30 }
 0x119   : > { %6816 = vmatprep.mubr.msk.f32.mxu1 %vm253_vm1, %v2262_v58  ;;  %v7647_v5 = vld [vmem:[#allocation2 + $0x149] sm:$0xff] }
 0x11a   : > { %2221 = vst.msk [vmem:[#allocation3 + $0x108] sm:$0xff] %vm253_vm1, %v7647_v5  ;;  %v7663_v10 = vld [vmem:[#allocation2 + $0x147] sm:$0xff] }
 0x11b   : > { %1277 = vrot.lane.b32.xlu1 %v7482_v4, %s7157_s10  ;;  %v7011_v4 = vpop.f32.mrb[20].mxu0  ;;  %809 = vst.msk [vmem:[#allocation3 + $0x140] sm:$0xff] %vm253_vm1, %v7663_v10 }
 0x11c   : > { %1090 = vrot.lane.b32.xlu0 %v7494_v11, %s7156_s7  ;;  %v639_v6 = vadd.f32 %v7011_v4, %v7443_v44  ;;  %v633_v7 = vpop.f32.mrb[21].mxu0 }
 0x11d   : > { %v634_v9 = vadd.f32 %v7443_v44, %v633_v7 }
 0x11e   : > { %713 = vst.msk [vmem:[#allocation4 + $0xa8] sm:$0xff] %vm253_vm1, %v639_v6  ;;  %746 = vst.msk [vmem:[#allocation2 + $0x170] sm:$0xff] %vm253_vm1, %v639_v6 }
 0x11f   : > { %899 = vrot.lane.b32.xlu1 %v828_v2, %s7155_s30  ;;  %712 = vst.msk [vmem:[#allocation4 + $0xa0] sm:$0xff] %vm253_vm1, %v634_v9  ;;  %745 = vst.msk [vmem:[#allocation2 + $0x168] sm:$0xff] %vm253_vm1, %v634_v9 }
 0x120   : > { %1279 = vrot.lane.b32.xlu0 %v7496_v12, %s7157_s10  ;;  %v2190_v12 = vld [vmem:[#allocation2 + $0x151] sm:$0xff] }
 0x121   : > { %2222 = vst.msk [vmem:[#allocation3 + $0x118] sm:$0xff] %vm253_vm1, %v2190_v12  ;;  %v1029_v12 = vld [vmem:[#allocation2 + $0xf1] sm:$0xff] }
 0x123   : > { %1092 = vrot.lane.b32.xlu1 %v1021_v3, %s7156_s7 }
 0x124   : > { %1472 = vrot.lane.b32.xlu0 %v827_v57, %s7158_s11  ;;  %v835_v57 = vld [vmem:[#allocation2 + $0xe8] sm:$0xff] }
 0x125   : > { %v2192_v25 = vld [vmem:[#allocation2 + $0x171] sm:$0xff] }
 0x126   : > { %v7677_v15 = vld [vmem:[#allocation2 + $0x169] sm:$0xff]  ;;  %2224 = vst.msk [vmem:[#allocation3 + $0x138] sm:$0xff] %vm253_vm1, %v2192_v25 }
 0x127   : > { %1474 = vrot.lane.b32.xlu1 %v828_v2, %s7158_s11  ;;  %2223 = vst.msk [vmem:[#allocation3 + $0x128] sm:$0xff] %vm253_vm1, %v7677_v15  ;;  %v7691_v23 = vld [vmem:[#allocation2 + $0x167] sm:$0xff] }
 0x128   : > { %1665 = vrot.lane.b32.xlu0 %v7494_v11, %s7159_s12  ;;  %v7666_v11 = vld [vmem:[#allocation2 + $0x14f] sm:$0xff]  ;;  %811 = vst.msk [vmem:[#allocation3 + $0x160] sm:$0xff] %vm253_vm1, %v7691_v23 }
 0x129   : > { %810 = vst.msk [vmem:[#allocation3 + $0x150] sm:$0xff] %vm253_vm1, %v7666_v11 }
 0x12b   : > { %1667 = vrot.lane.b32.xlu1 %v1021_v3, %s7159_s12  ;;  %v836_v3 = vld [vmem:[#allocation2 + $0xf0] sm:$0xff] }
 0x12c   : > { %901 = vrot.lane.b32.xlu0 %v829_v8, %s7155_s30 }
 0x12f   : > { %1281 = vrot.lane.b32.xlu1 %v7503_v13, %s7157_s10  ;;  %v7014_v13 = vpop.f32.mrb[22].mxu0 }
 0x130   : > { %1094 = vrot.lane.b32.xlu0 %v7515_v20, %s7156_s7  ;;  %v649_v17 = vadd.f32 %v7014_v13, %v7443_v44  ;;  %v643_v18 = vpop.f32.mrb[23].mxu0 }
 0x131   : > { %v644_v19 = vadd.f32 %v7443_v44, %v643_v18  ;;  %v7017_v27 = vpop.f32.mrb[24].mxu0 }
 0x132   : > { %715 = vst.msk [vmem:[#allocation4 + $0xb8] sm:$0xff] %vm253_vm1, %v649_v17  ;;  %748 = vst.msk [vmem:[#allocation2 + $0x190] sm:$0xff] %vm253_vm1, %v649_v17  ;;  %v659_v31 = vadd.f32 %v7017_v27, %v7443_v44  ;;  %v653_v32 = vpop.f32.mrb[25].mxu0 }
 0x133   : > { %903 = vrot.lane.b32.xlu1 %v830_v14, %s7155_s30  ;;  %714 = vst.msk [vmem:[#allocation4 + $0xb0] sm:$0xff] %vm253_vm1, %v644_v19  ;;  %747 = vst.msk [vmem:[#allocation2 + $0x188] sm:$0xff] %vm253_vm1, %v644_v19  ;;  %v7020_v42 = vpop.f32.mrb[26].mxu0 }
 0x134   : > { %1283 = vrot.lane.b32.xlu0 %v7523_v21, %s7157_s10  ;;  %v7697_v21 = vld [vmem:[#allocation2 + $0x16f] sm:$0xff]  ;;  %717 = vst.msk [vmem:[#allocation4 + $0xc8] sm:$0xff] %vm253_vm1, %v659_v31  ;;  %750 = vst.msk [vmem:[#allocation2 + $0x1b0] sm:$0xff] %vm253_vm1, %v659_v31  ;;  %v663_v43 = vpop.f32.mrb[27].mxu0 }
 0x135   : > { %812 = vst.msk [vmem:[#allocation3 + $0x170] sm:$0xff] %vm253_vm1, %v7697_v21  ;;  %v664_v48 = vadd.f32 %v7443_v44, %v663_v43  ;;  %v7023_v59 = vpop.f32.mrb[28].mxu0 }
 0x136   : > { %v679_v61 = vadd.f32 %v7023_v59, %v7443_v44  ;;  %v673_v62 = vpop.f32.mrb[29].mxu0 }
 0x137   : > { %1096 = vrot.lane.b32.xlu1 %v1023_v16, %s7156_s7  ;;  %718 = vst.msk [vmem:[#allocation4 + $0xd0] sm:$0xff] %vm253_vm1, %v664_v48  ;;  %751 = vst.msk [vmem:[#allocation2 + $0x1c8] sm:$0xff] %vm253_vm1, %v664_v48 }
 0x138   : > { %1476 = vrot.lane.b32.xlu0 %v829_v8, %s7158_s11  ;;  %721 = vst.msk [vmem:[#allocation4 + $0xe8] sm:$0xff] %vm253_vm1, %v679_v61  ;;  %754 = vst.msk [vmem:[#allocation2 + $0x1f0] sm:$0xff] %vm253_vm1, %v679_v61 }
 0x139   : > { %v2194_v37 = vld [vmem:[#allocation2 + $0x191] sm:$0xff] }
 0x13a   : > { %v7722_v34 = vld [vmem:[#allocation2 + $0x187] sm:$0xff]  ;;  %2226 = vst.msk [vmem:[#allocation3 + $0x158] sm:$0xff] %vm253_vm1, %v2194_v37 }
 0x13b   : > { %1478 = vrot.lane.b32.xlu1 %v830_v14, %s7158_s11  ;;  %813 = vst.msk [vmem:[#allocation3 + $0x180] sm:$0xff] %vm253_vm1, %v7722_v34  ;;  %v2196_v53 = vld [vmem:[#allocation2 + $0x1b1] sm:$0xff] }
 0x13c   : > { %1669 = vrot.lane.b32.xlu0 %v7515_v20, %s7159_s12  ;;  %v7708_v20 = vld [vmem:[#allocation2 + $0x189] sm:$0xff]  ;;  %2228 = vst.msk [vmem:[#allocation3 + $0x178] sm:$0xff] %vm253_vm1, %v2196_v53 }
 0x13d   : > { %2225 = vst.msk [vmem:[#allocation3 + $0x148] sm:$0xff] %vm253_vm1, %v7708_v20  ;;  %v839_v53 = vld [vmem:[#allocation2 + $0x128] sm:$0xff] }
 0x13e   : > { %v7787_v2 = vld [vmem:[#allocation2 + $0x1c7] sm:$0xff] }
 0x13f   : > { %1671 = vrot.lane.b32.xlu1 %v1023_v16, %s7159_s12  ;;  %817 = vst.msk [vmem:[#allocation3 + $0x1c0] sm:$0xff] %vm253_vm1, %v7787_v2  ;;  %v2200_v27 = vld [vmem:[#allocation2 + $0x1f1] sm:$0xff] }
 0x140   : > { %905 = vrot.lane.b32.xlu0 %v831_v24, %s7155_s30  ;;  %2232 = vst.msk [vmem:[#allocation3 + $0x1b8] sm:$0xff] %vm253_vm1, %v2200_v27 }
 0x143   : > { %1285 = vrot.lane.b32.xlu1 %v7525_v22, %s7157_s10  ;;  %v654_v22 = vadd.f32 %v7443_v44, %v653_v32 }
 0x144   : > { %1098 = vrot.lane.b32.xlu0 %v7536_v28, %s7156_s7 }
 0x145   : > { %716 = vst.msk [vmem:[#allocation4 + $0xc0] sm:$0xff] %vm253_vm1, %v654_v22  ;;  %749 = vst.msk [vmem:[#allocation2 + $0x1a8] sm:$0xff] %vm253_vm1, %v654_v22 }
 0x147   : > { %907 = vrot.lane.b32.xlu1 %v832_v26, %s7155_s30 }
 0x148   : > { %1287 = vrot.lane.b32.xlu0 %v7538_v29, %s7157_s10  ;;  %v7727_v29 = vld [vmem:[#allocation2 + $0x18f] sm:$0xff] }
 0x149   : > { %814 = vst.msk [vmem:[#allocation3 + $0x190] sm:$0xff] %vm253_vm1, %v7727_v29 }
 0x14b   : > { %1100 = vrot.lane.b32.xlu1 %v1025_v33, %s7156_s7 }
 0x14c   : > { %1480 = vrot.lane.b32.xlu0 %v831_v24, %s7158_s11  ;;  %v7738_v40 = vld [vmem:[#allocation2 + $0x1a9] sm:$0xff] }
 0x14d   : > { %2227 = vst.msk [vmem:[#allocation3 + $0x168] sm:$0xff] %vm253_vm1, %v7738_v40  ;;  %v7752_v49 = vld [vmem:[#allocation2 + $0x1a7] sm:$0xff] }
 0x14e   : > { %815 = vst.msk [vmem:[#allocation3 + $0x1a0] sm:$0xff] %vm253_vm1, %v7752_v49  ;;  %v837_v24 = vld [vmem:[#allocation2 + $0x108] sm:$0xff] }
 0x14f   : > { %1482 = vrot.lane.b32.xlu1 %v832_v26, %s7158_s11 }
 0x150   : > { %1673 = vrot.lane.b32.xlu0 %v7536_v28, %s7159_s12  ;;  %v669_v28 = vadd.f32 %v7020_v42, %v7443_v44  ;;  %v1031_v42 = vld [vmem:[#allocation2 + $0x111] sm:$0xff] }
 0x152   : > { %719 = vst.msk [vmem:[#allocation4 + $0xd8] sm:$0xff] %vm253_vm1, %v669_v28  ;;  %752 = vst.msk [vmem:[#allocation2 + $0x1d0] sm:$0xff] %vm253_vm1, %v669_v28 }
 0x153   : > { %1675 = vrot.lane.b32.xlu1 %v1025_v33, %s7159_s12  ;;  %v838_v33 = vld [vmem:[#allocation2 + $0x110] sm:$0xff] }
 0x154   : > { %909 = vrot.lane.b32.xlu0 %v833_v39, %s7155_s30 }
 0x157   : > { %1289 = vrot.lane.b32.xlu1 %v7545_v30, %s7157_s10  ;;  %v7758_v30 = vld [vmem:[#allocation2 + $0x1af] sm:$0xff] }
 0x158   : > { %1102 = vrot.lane.b32.xlu0 %v7557_v35, %s7156_s7  ;;  %816 = vst.msk [vmem:[#allocation3 + $0x1b0] sm:$0xff] %vm253_vm1, %v7758_v30 }
 0x159   : > { %v7791_v4 = vld [vmem:[#allocation2 + $0x1cf] sm:$0xff] }
 0x15a   : > { %v2198_v6 = vld [vmem:[#allocation2 + $0x1d1] sm:$0xff]  ;;  %818 = vst.msk [vmem:[#allocation3 + $0x1d0] sm:$0xff] %vm253_vm1, %v7791_v4 }
 0x15b   : > { %911 = vrot.lane.b32.xlu1 %v834_v41, %s7155_s30  ;;  %2230 = vst.msk [vmem:[#allocation3 + $0x198] sm:$0xff] %vm253_vm1, %v2198_v6  ;;  %v841_v6 = vld [vmem:[#allocation2 + $0x148] sm:$0xff] }
 0x15c   : > { %1291 = vrot.lane.b32.xlu0 %v7559_v36, %s7157_s10  ;;  %v7768_v36 = vld [vmem:[#allocation2 + $0x1c9] sm:$0xff] }
 0x15d   : > { %2229 = vst.msk [vmem:[#allocation3 + $0x188] sm:$0xff] %vm253_vm1, %v7768_v36 }
 0x15f   : > { %1104 = vrot.lane.b32.xlu1 %v1027_v54, %s7156_s7 }
 0x160   : > { %1484 = vrot.lane.b32.xlu0 %v833_v39, %s7158_s11 }
 0x163   : > { %1486 = vrot.lane.b32.xlu1 %v834_v41, %s7158_s11 }
 0x164   : > { %1677 = vrot.lane.b32.xlu0 %v7557_v35, %s7159_s12  ;;  %v674_v35 = vadd.f32 %v7443_v44, %v673_v62 }
 0x165   : > { %v892_v55 = vpop.permute.xlu1 %891 }
 0x166   : > { %985 = vst.msk [vmem:[#allocation3 + $0x30] sm:$0xff] %vm981_vm3, %v892_v55  ;;  %v1083_v58 = vpop.permute.xlu0 %1082 }
 0x167   : > { %1679 = vrot.lane.b32.xlu1 %v1027_v54, %s7159_s12  ;;  %720 = vst.msk [vmem:[#allocation4 + $0xe0] sm:$0xff] %vm253_vm1, %v674_v35  ;;  %753 = vst.msk [vmem:[#allocation2 + $0x1e8] sm:$0xff] %vm253_vm1, %v674_v35 }
 0x168   : > { %913 = vrot.lane.b32.xlu0 %v835_v57, %s7155_s30 }
 0x169   : > { %v1085_v0 = vpop.permute.xlu1 %1084 }
 0x16a   : > { %1178 = vst.msk [vmem:[#allocation3 + $0x30] sm:$0xff] %vm1174_vm4, %v1085_v0  ;;  %v1272_v1 = vpop.permute.xlu0 %1271  ;;  %v1033_v0 = vld [vmem:[#allocation2 + $0x131] sm:$0xff] }
 0x16b   : > { %1368 = vst.msk [vmem:[#allocation3] sm:$0xff] %vm1367_vm5, %v1272_v1  ;;  %1293 = vrot.lane.b32.xlu1 %v7567_v38, %s7157_s10 }
 0x16c   : > { %1106 = vrot.lane.b32.xlu0 %v7579_v45, %s7156_s7 }
 0x16d   : > { %v1467_v7 = vpop.permute.xlu1 %1466 }
 0x16e   : > { %v1465_v38 = vpop.permute.xlu0 %1464  ;;  %v7802_v14 = vld [vmem:[#allocation2 + $0x1e9] sm:$0xff] }
 0x16f   : > { %1561 = vst.msk [vmem:[#allocation3] sm:$0xff] %vm1560_vm6, %v1465_v38  ;;  %915 = vrot.lane.b32.xlu1 %v836_v3, %s7155_s30 }
 0x170   : > { %1295 = vrot.lane.b32.xlu0 %v7581_v46, %s7157_s10  ;;  %2231 = vst.msk [vmem:[#allocation3 + $0x1a8] sm:$0xff] %vm253_vm1, %v7802_v14  ;;  %v7026_v46 = vpop.f32.mrb[30].mxu0 }
 0x171   : > { %v1660_v8 = vpop.permute.xlu1 %1659  ;;  %v689_v17 = vadd.f32 %v7026_v46, %v7443_v44  ;;  %v683_v18 = vpop.f32.mrb[31].mxu0  ;;  %v7900_v46 = vld [vmem:[#allocation2 + $0x151] sm:$0xff] }
 0x172   : > { %v1658_v9 = vpop.permute.xlu0 %1657  ;;  %v684_v25 = vadd.f32 %v7443_v44, %v683_v18  ;;  %v7829_v44 = vld [vmem:[#allocation2 + $0x1ef] sm:$0xff] }
 0x173   : > { %1754 = vst.msk [vmem:[#allocation3] sm:$0xff] %vm1753_vm7, %v1658_v9  ;;  %1108 = vrot.lane.b32.xlu1 %v1029_v12, %s7156_s7  ;;  %v843_v18 = vld [vmem:[#allocation2 + $0x168] sm:$0xff] }
 0x174   : > { %1488 = vrot.lane.b32.xlu0 %v835_v57, %s7158_s11  ;;  %723 = vst.msk [vmem:[#allocation4 + $0xf8] sm:$0xff] %vm253_vm1, %v689_v17  ;;  %756 = vst.msk [vmem:[#allocation2 + $0x210] sm:$0xff] %vm253_vm1, %v689_v17  ;;  %v840_v57 = vld [vmem:[#allocation2 + $0x130] sm:$0xff] }
 0x175   : > { %v890_v16 = vpop.permute.xlu1 %889  ;;  %722 = vst.msk [vmem:[#allocation4 + $0xf0] sm:$0xff] %vm253_vm1, %v684_v25  ;;  %755 = vst.msk [vmem:[#allocation2 + $0x208] sm:$0xff] %vm253_vm1, %v684_v25 }
 0x176   : > { %984 = vst.msk [vmem:[#allocation3 + $0x20] sm:$0xff] %vm981_vm3, %v890_v16  ;;  %v894_v13 = vpop.permute.xlu0 %893 }
 0x177   : > { %1177 = vst.msk [vmem:[#allocation3 + $0x20] sm:$0xff] %vm1174_vm4, %v1083_v58  ;;  %1490 = vrot.lane.b32.xlu1 %v836_v3, %s7158_s11 }
 0x178   : > { %986 = vst.msk [vmem:[#allocation3 + $0x40] sm:$0xff] %vm981_vm3, %v894_v13  ;;  %1681 = vrot.lane.b32.xlu0 %v7579_v45, %s7159_s12  ;;  %v7825_v45 = vld [vmem:[#allocation2 + $0x1e7] sm:$0xff] }
 0x179   : > { %v1274_v19 = vpop.permute.xlu1 %1273  ;;  %819 = vst.msk [vmem:[#allocation3 + $0x1e0] sm:$0xff] %vm253_vm1, %v7825_v45  ;;  %820 = vst.msk [vmem:[#allocation3 + $0x1f0] sm:$0xff] %vm253_vm1, %v7829_v44 }
 0x17a   : > { %1369 = vst.msk [vmem:[#allocation3 + $0x10] sm:$0xff] %vm1367_vm5, %v1274_v19  ;;  %v1087_v26 = vpop.permute.xlu0 %1086 }
 0x17b   : > { %1562 = vst.msk [vmem:[#allocation3 + $0x10] sm:$0xff] %vm1560_vm6, %v1467_v7  ;;  %1683 = vrot.lane.b32.xlu1 %v1029_v12, %s7159_s12  ;;  %v2202_v48 = vld [vmem:[#allocation2 + $0x211] sm:$0xff] }
 0x17c   : > { %1179 = vst.msk [vmem:[#allocation3 + $0x40] sm:$0xff] %vm1174_vm4, %v1087_v26  ;;  %917 = vrot.lane.b32.xlu0 %v837_v24, %s7155_s30  ;;  %v7843_v39 = vld [vmem:[#allocation2 + $0x209] sm:$0xff] }
 0x17d   : > { %1755 = vst.msk [vmem:[#allocation3 + $0x10] sm:$0xff] %vm1753_vm7, %v1660_v8  ;;  %v896_v31 = vpop.permute.xlu1 %895  ;;  %v844_v26 = vld [vmem:[#allocation2 + $0x170] sm:$0xff] }
 0x17e   : > { %987 = vst.msk [vmem:[#allocation3 + $0x50] sm:$0xff] %vm981_vm3, %v896_v31  ;;  %v1276_v32 = vpop.permute.xlu0 %1275 }
 0x17f   : > { %1370 = vst.msk [vmem:[#allocation3 + $0x20] sm:$0xff] %vm1367_vm5, %v1276_v32  ;;  %1297 = vrot.lane.b32.xlu1 %v7589_v47, %s7157_s10 }
 0x180   : > { %1110 = vrot.lane.b32.xlu0 %v7599_v50, %s7156_s7  ;;  %2233 = vst.msk [vmem:[#allocation3 + $0x1c8] sm:$0xff] %vm253_vm1, %v7843_v39  ;;  %2234 = vst.msk [vmem:[#allocation3 + $0x1d8] sm:$0xff] %vm253_vm1, %v2202_v48 }
 0x181   : > { %v1089_v22 = vpop.permute.xlu1 %1088 }
 0x182   : > { %1180 = vst.msk [vmem:[#allocation3 + $0x50] sm:$0xff] %vm1174_vm4, %v1089_v22  ;;  %v1469_v37 = vpop.permute.xlu0 %1468  ;;  %v7923_v22 = vld [vmem:[#allocation2 + $0x171] sm:$0xff] }
 0x183   : > { %1563 = vst.msk [vmem:[#allocation3 + $0x20] sm:$0xff] %vm1560_vm6, %v1469_v37  ;;  %919 = vrot.lane.b32.xlu1 %v838_v33, %s7155_s30 }
 0x184   : > { %1299 = vrot.lane.b32.xlu0 %v7601_v51, %s7157_s10 }
 0x185   : > { %v1471_v47 = vpop.permute.xlu1 %1470 }
 0x186   : > { %v1662_v41 = vpop.permute.xlu0 %1661 }
 0x187   : > { %1756 = vst.msk [vmem:[#allocation3 + $0x20] sm:$0xff] %vm1753_vm7, %v1662_v41  ;;  %1112 = vrot.lane.b32.xlu1 %v1031_v42, %s7156_s7 }
 0x188   : > { %1492 = vrot.lane.b32.xlu0 %v837_v24, %s7158_s11 }
 0x189   : > { %v1664_v28 = vpop.permute.xlu1 %1663 }
 0x18a   : > { %v898_v43 = vpop.permute.xlu0 %897 }
 0x18b   : > { %988 = vst.msk [vmem:[#allocation3 + $0x60] sm:$0xff] %vm981_vm3, %v898_v43  ;;  %1494 = vrot.lane.b32.xlu1 %v838_v33, %s7158_s11  ;;  %v7940_v43 = vld [vmem:[#allocation2 + $0x190] sm:$0xff] }
 0x18c   : > { %1685 = vrot.lane.b32.xlu0 %v7599_v50, %s7159_s12 }
 0x18d   : > { %v1278_v51 = vpop.permute.xlu1 %1277 }
 0x18e   : > { %1371 = vst.msk [vmem:[#allocation3 + $0x30] sm:$0xff] %vm1367_vm5, %v1278_v51  ;;  %v1091_v54 = vpop.permute.xlu0 %1090 }
 0x18f   : > { %1564 = vst.msk [vmem:[#allocation3 + $0x30] sm:$0xff] %vm1560_vm6, %v1471_v47  ;;  %1687 = vrot.lane.b32.xlu1 %v1031_v42, %s7159_s12  ;;  %v7929_v47 = vld [vmem:[#allocation2 + $0x188] sm:$0xff] }
 0x190   : > { %1181 = vst.msk [vmem:[#allocation3 + $0x60] sm:$0xff] %vm1174_vm4, %v1091_v54  ;;  %921 = vrot.lane.b32.xlu0 %v839_v53, %s7155_s30 }
 0x191   : > { %1757 = vst.msk [vmem:[#allocation3 + $0x30] sm:$0xff] %vm1753_vm7, %v1664_v28  ;;  %v900_v55 = vpop.permute.xlu1 %899 }
 0x192   : > { %989 = vst.msk [vmem:[#allocation3 + $0x70] sm:$0xff] %vm981_vm3, %v900_v55  ;;  %v1280_v50 = vpop.permute.xlu0 %1279  ;;  %v7951_v55 = vld [vmem:[#allocation2 + $0x191] sm:$0xff] }
 0x193   : > { %1372 = vst.msk [vmem:[#allocation3 + $0x40] sm:$0xff] %vm1367_vm5, %v1280_v50  ;;  %1301 = vrot.lane.b32.xlu1 %v7606_v52, %s7157_s10 }
 0x194   : > { %1114 = vrot.lane.b32.xlu0 %v7614_v56, %s7156_s7 }
 0x195   : > { %v1093_v58 = vpop.permute.xlu1 %1092 }
 0x196   : > { %1182 = vst.msk [vmem:[#allocation3 + $0x70] sm:$0xff] %vm1174_vm4, %v1093_v58  ;;  %v1473_v59 = vpop.permute.xlu0 %1472 }
 0x197   : > { %1565 = vst.msk [vmem:[#allocation3 + $0x40] sm:$0xff] %vm1560_vm6, %v1473_v59  ;;  %923 = vrot.lane.b32.xlu1 %v840_v57, %s7155_s30 }
 0x198   : > { %1303 = vrot.lane.b32.xlu0 %v7623_v60, %s7157_s10 }
 0x199   : > { %v1475_v61 = vpop.permute.xlu1 %1474 }
 0x19a   : > { %v1666_v62 = vpop.permute.xlu0 %1665 }
 0x19b   : > { %1758 = vst.msk [vmem:[#allocation3 + $0x40] sm:$0xff] %vm1753_vm7, %v1666_v62  ;;  %1116 = vrot.lane.b32.xlu1 %v1033_v0, %s7156_s7  ;;  %v7971_v62 = vld [vmem:[#allocation2 + $0x1b0] sm:$0xff] }
 0x19c   : > { %1496 = vrot.lane.b32.xlu0 %v839_v53, %s7158_s11 }
 0x19d   : > { %v1668_v35 = vpop.permute.xlu1 %1667 }
 0x19e   : > { %v902_v1 = vpop.permute.xlu0 %901 }
 0x19f   : > { %990 = vst.msk [vmem:[#allocation3 + $0x80] sm:$0xff] %vm981_vm3, %v902_v1  ;;  %1498 = vrot.lane.b32.xlu1 %v840_v57, %s7158_s11  ;;  %v7958_v57 = vld [vmem:[#allocation2 + $0x1a8] sm:$0xff] }
 0x1a0   : > { %1689 = vrot.lane.b32.xlu0 %v7614_v56, %s7159_s12  ;;  %v842_v56 = vld [vmem:[#allocation2 + $0x150] sm:$0xff] }
 0x1a1   : > { %v1282_v3 = vpop.permute.xlu1 %1281 }
 0x1a2   : > { %1373 = vst.msk [vmem:[#allocation3 + $0x50] sm:$0xff] %vm1367_vm5, %v1282_v3  ;;  %v1095_v7 = vpop.permute.xlu0 %1094 }
 0x1a3   : > { %1566 = vst.msk [vmem:[#allocation3 + $0x50] sm:$0xff] %vm1560_vm6, %v1475_v61  ;;  %1691 = vrot.lane.b32.xlu1 %v1033_v0, %s7159_s12 }
 0x1a4   : > { %1183 = vst.msk [vmem:[#allocation3 + $0x80] sm:$0xff] %vm1174_vm4, %v1095_v7  ;;  %925 = vrot.lane.b32.xlu0 %v841_v6, %s7155_s30 }
 0x1a5   : > { %1759 = vst.msk [vmem:[#allocation3 + $0x50] sm:$0xff] %vm1753_vm7, %v1668_v35  ;;  %v904_v38 = vpop.permute.xlu1 %903 }
 0x1a6   : > { %991 = vst.msk [vmem:[#allocation3 + $0x90] sm:$0xff] %vm981_vm3, %v904_v38  ;;  %v1284_v8 = vpop.permute.xlu0 %1283  ;;  %v7988_v38 = vld [vmem:[#allocation2 + $0x1c8] sm:$0xff] }
 0x1a7   : > { %1374 = vst.msk [vmem:[#allocation3 + $0x60] sm:$0xff] %vm1367_vm5, %v1284_v8  ;;  %1305 = vrot.lane.b32.xlu1 %v7628_v63, %s7157_s10 }
 0x1a8   : > { %1118 = vrot.lane.b32.xlu0 %v7647_v5, %s7156_s7 }
 0x1a9   : > { %v1097_v9 = vpop.permute.xlu1 %1096 }
 0x1aa   : > { %1184 = vst.msk [vmem:[#allocation3 + $0x90] sm:$0xff] %vm1174_vm4, %v1097_v9  ;;  %v1477_v12 = vpop.permute.xlu0 %1476 }
 0x1ab   : > { %1567 = vst.msk [vmem:[#allocation3 + $0x60] sm:$0xff] %vm1560_vm6, %v1477_v12  ;;  %927 = vrot.lane.b32.xlu1 %v842_v56, %s7155_s30  ;;  %v8002_v12 = vld [vmem:[#allocation2 + $0x1d0] sm:$0xff] }
 0x1ac   : > { %1307 = vrot.lane.b32.xlu0 %v7663_v10, %s7157_s10 }
 0x1ad   : > { %v1479_v16 = vpop.permute.xlu1 %1478 }
 0x1ae   : > { %v1670_v13 = vpop.permute.xlu0 %1669 }
 0x1af   : > { %1760 = vst.msk [vmem:[#allocation3 + $0x60] sm:$0xff] %vm1753_vm7, %v1670_v13  ;;  %1120 = vrot.lane.b32.xlu1 %v7900_v46, %s7156_s7 }
 0x1b0   : > { %1500 = vrot.lane.b32.xlu0 %v841_v6, %s7158_s11  ;;  %v7979_v6 = vld [vmem:[#allocation2 + $0x1b1] sm:$0xff] }
 0x1b1   : > { %v1672_v17 = vpop.permute.xlu1 %1671 }
 0x1b2   : > { %v906_v19 = vpop.permute.xlu0 %905 }
 0x1b3   : > { %992 = vst.msk [vmem:[#allocation3 + $0xa0] sm:$0xff] %vm981_vm3, %v906_v19  ;;  %1502 = vrot.lane.b32.xlu1 %v842_v56, %s7158_s11  ;;  %v8009_v19 = vld [vmem:[#allocation2 + $0x1d1] sm:$0xff] }
 0x1b4   : > { %929 = vrot.lane.b32.xlu0 %v843_v18, %s7155_s30 }
 0x1b5   : > { %v1286_v24 = vpop.permute.xlu1 %1285 }
 0x1b6   : > { %1375 = vst.msk [vmem:[#allocation3 + $0x70] sm:$0xff] %vm1367_vm5, %v1286_v24  ;;  %v1099_v25 = vpop.permute.xlu0 %1098 }
 0x1b7   : > { %1568 = vst.msk [vmem:[#allocation3 + $0x70] sm:$0xff] %vm1560_vm6, %v1479_v16  ;;  %1309 = vrot.lane.b32.xlu1 %v7666_v11, %s7157_s10 }
 0x1b8   : > { %1185 = vst.msk [vmem:[#allocation3 + $0xa0] sm:$0xff] %vm1174_vm4, %v1099_v25  ;;  %1122 = vrot.lane.b32.xlu0 %v7677_v15, %s7156_s7  ;;  %v8016_v25 = vld [vmem:[#allocation2 + $0x1e8] sm:$0xff] }
 0x1b9   : > { %1761 = vst.msk [vmem:[#allocation3 + $0x70] sm:$0xff] %vm1753_vm7, %v1672_v17  ;;  %v908_v27 = vpop.permute.xlu1 %907 }
 0x1ba   : > { %993 = vst.msk [vmem:[#allocation3 + $0xb0] sm:$0xff] %vm981_vm3, %v908_v27  ;;  %v1288_v31 = vpop.permute.xlu0 %1287 }
 0x1bb   : > { %1376 = vst.msk [vmem:[#allocation3 + $0x80] sm:$0xff] %vm1367_vm5, %v1288_v31  ;;  %931 = vrot.lane.b32.xlu1 %v844_v26, %s7155_s30 }
 0x1bc   : > { %1311 = vrot.lane.b32.xlu0 %v7691_v23, %s7157_s10 }
 0x1bd   : > { %v1101_v32 = vpop.permute.xlu1 %1100 }
 0x1be   : > { %1186 = vst.msk [vmem:[#allocation3 + $0xb0] sm:$0xff] %vm1174_vm4, %v1101_v32  ;;  %v1481_v33 = vpop.permute.xlu0 %1480  ;;  %v8032_v32 = vld [vmem:[#allocation2 + $0x1f0] sm:$0xff] }
 0x1bf   : > { %1569 = vst.msk [vmem:[#allocation3 + $0x80] sm:$0xff] %vm1560_vm6, %v1481_v33  ;;  %1124 = vrot.lane.b32.xlu1 %v7923_v22, %s7156_s7 }
 0x1c0   : > { %1504 = vrot.lane.b32.xlu0 %v843_v18, %s7158_s11 }
 0x1c1   : > { %v1483_v37 = vpop.permute.xlu1 %1482 }
 0x1c2   : > { %v1674_v41 = vpop.permute.xlu0 %1673 }
 0x1c3   : > { %1762 = vst.msk [vmem:[#allocation3 + $0x80] sm:$0xff] %vm1753_vm7, %v1674_v41  ;;  %1506 = vrot.lane.b32.xlu1 %v844_v26, %s7158_s11 }
 0x1c4   : > { %933 = vrot.lane.b32.xlu0 %v7929_v47, %s7155_s30 }
 0x1c5   : > { %v1676_v42 = vpop.permute.xlu1 %1675 }
 0x1c6   : > { %v910_v28 = vpop.permute.xlu0 %909 }
 0x1c7   : > { %994 = vst.msk [vmem:[#allocation3 + $0xc0] sm:$0xff] %vm981_vm3, %v910_v28  ;;  %1313 = vrot.lane.b32.xlu1 %v7697_v21, %s7157_s10  ;;  %v2302_v28 = vld [vmem:[%s10742_s3 + $0x8] sm:$0xff] }
 0x1c8   : > { %1126 = vrot.lane.b32.xlu0 %v7708_v20, %s7156_s7 }
 0x1c9   : > { %v1290_v48 = vpop.permute.xlu1 %1289 }
 0x1ca   : > { %1377 = vst.msk [vmem:[#allocation3 + $0x90] sm:$0xff] %vm1367_vm5, %v1290_v48  ;;  %v1103_v51 = vpop.permute.xlu0 %1102 }
 0x1cb   : > { %1570 = vst.msk [vmem:[#allocation3 + $0x90] sm:$0xff] %vm1560_vm6, %v1483_v37  ;;  %935 = vrot.lane.b32.xlu1 %v7940_v43, %s7155_s30  ;;  %v10746_v37 = vmov 0.0|0.0  }
 0x1cc   : > { %1187 = vst.msk [vmem:[#allocation3 + $0xc0] sm:$0xff] %vm1174_vm4, %v1103_v51  ;;  %1315 = vrot.lane.b32.xlu0 %v7722_v34, %s7157_s10  ;;  %7027 = vmatprep.subr.bf16.mxu0 %v10746_v37 }
 0x1cd   : > { %1763 = vst.msk [vmem:[#allocation3 + $0x90] sm:$0xff] %vm1753_vm7, %v1676_v42  ;;  %v912_v53 = vpop.permute.xlu1 %911  ;;  %7108 = vmatprep.subr.bf16.mxu1 %v10746_v37  ;;  %v2301_v42 = vld [vmem:[%s10742_s3] sm:$0xff] }
 0x1ce   : > { %995 = vst.msk [vmem:[#allocation3 + $0xd0] sm:$0xff] %vm981_vm3, %v912_v53  ;;  %v1292_v54 = vpop.permute.xlu0 %1291  ;;  %v7028_v48 = vpack.c.bf16 %v2302_v28, %v2301_v42 }
 0x1cf   : > { %1378 = vst.msk [vmem:[#allocation3 + $0xa0] sm:$0xff] %vm1367_vm5, %v1292_v54  ;;  %1128 = vrot.lane.b32.xlu1 %v7951_v55, %s7156_s7  ;;  %v8048_v54 = vld [vmem:[#allocation2 + $0x1f1] sm:$0xff] }
 0x1d0   : > { %1508 = vrot.lane.b32.xlu0 %v7929_v47, %s7158_s11  ;;  %7029 = vmatpush1.bf16.msra.mxu0 %v7028_v48 }
 0x1d1   : > { %v1105_v50 = vpop.permute.xlu1 %1104  ;;  %7117 = vmatpush1.bf16.msra.mxu1 %v7028_v48  ;;  %7030 = vmatprep.subr.bf16.mxu0 %v10746_v37 }
 0x1d2   : > { %1188 = vst.msk [vmem:[#allocation3 + $0xd0] sm:$0xff] %vm1174_vm4, %v1105_v50  ;;  %v1485_v58 = vpop.permute.xlu0 %1484  ;;  %7109 = vmatprep.subr.bf16.mxu1 %v10746_v37 }
 0x1d3   : > { %1571 = vst.msk [vmem:[#allocation3 + $0xa0] sm:$0xff] %vm1560_vm6, %v1485_v58  ;;  %1510 = vrot.lane.b32.xlu1 %v7940_v43, %s7158_s11  ;;  %v8057_v58 = vld [vmem:[#allocation2 + $0x207] sm:$0xff] }
 0x1d4   : > { %937 = vrot.lane.b32.xlu0 %v7958_v57, %s7155_s30 }
 0x1d5   : > { %v1487_v59 = vpop.permute.xlu1 %1486 }
 0x1d6   : > { %v1678_v61 = vpop.permute.xlu0 %1677 }
 0x1d7   : > { %1764 = vst.msk [vmem:[#allocation3 + $0xa0] sm:$0xff] %vm1753_vm7, %v1678_v61  ;;  %1317 = vrot.lane.b32.xlu1 %v7727_v29, %s7157_s10  ;;  %v2303_v61 = vld [vmem:[%s10742_s3 + $0x10] sm:$0xff] }
 0x1d8   : > { %1130 = vrot.lane.b32.xlu0 %v7738_v40, %s7156_s7 }
 0x1d9   : > { %v1680_v0 = vpop.permute.xlu1 %1679 }
 0x1da   : > { %v914_v35 = vpop.permute.xlu0 %913 }
 0x1db   : > { %996 = vst.msk [vmem:[#allocation3 + $0xe0] sm:$0xff] %vm981_vm3, %v914_v35  ;;  %939 = vrot.lane.b32.xlu1 %v7971_v62, %s7155_s30 }
 0x1dc   : > { %1319 = vrot.lane.b32.xlu0 %v7752_v49, %s7157_s10 }
 0x1dd   : > { %v1294_v1 = vpop.permute.xlu1 %1293 }
 0x1de   : > { %1379 = vst.msk [vmem:[#allocation3 + $0xb0] sm:$0xff] %vm1367_vm5, %v1294_v1  ;;  %v1107_v3 = vpop.permute.xlu0 %1106 }
 0x1df   : > { %1572 = vst.msk [vmem:[#allocation3 + $0xb0] sm:$0xff] %vm1560_vm6, %v1487_v59  ;;  %1132 = vrot.lane.b32.xlu1 %v7979_v6, %s7156_s7 }
 0x1e0   : > { %1189 = vst.msk [vmem:[#allocation3 + $0xe0] sm:$0xff] %vm1174_vm4, %v1107_v3  ;;  %1512 = vrot.lane.b32.xlu0 %v7958_v57, %s7158_s11  ;;  %v8070_v3 = vld [vmem:[#allocation2 + $0x208] sm:$0xff] }
 0x1e1   : > { %1765 = vst.msk [vmem:[#allocation3 + $0xb0] sm:$0xff] %vm1753_vm7, %v1680_v0  ;;  %v916_v7 = vpop.permute.xlu1 %915  ;;  %v2304_v0 = vld [vmem:[%s10742_s3 + $0x18] sm:$0xff] }
 0x1e2   : > { %997 = vst.msk [vmem:[#allocation3 + $0xf0] sm:$0xff] %vm981_vm3, %v916_v7  ;;  %v1296_v8 = vpop.permute.xlu0 %1295  ;;  %v7031_v35 = vpack.c.bf16 %v2304_v0, %v2303_v61 }
 0x1e3   : > { %1380 = vst.msk [vmem:[#allocation3 + $0xc0] sm:$0xff] %vm1367_vm5, %v1296_v8  ;;  %1514 = vrot.lane.b32.xlu1 %v7971_v62, %s7158_s11  ;;  %v8081_v8 = vld [vmem:[#allocation2 + $0x210] sm:$0xff] }
 0x1e4   : > { %941 = vrot.lane.b32.xlu0 %v7988_v38, %s7155_s30  ;;  %7032 = vmatpush1.bf16.msra.mxu0 %v7031_v35 }
 0x1e5   : > { %v1109_v56 = vpop.permute.xlu1 %1108  ;;  %7118 = vmatpush1.bf16.msra.mxu1 %v7031_v35  ;;  %7033 = vmatprep.subr.bf16.mxu0 %v10746_v37 }
 0x1e6   : > { %1190 = vst.msk [vmem:[#allocation3 + $0xf0] sm:$0xff] %vm1174_vm4, %v1109_v56  ;;  %v1489_v9 = vpop.permute.xlu0 %1488  ;;  %v2305_v56 = vld [vmem:[%s10742_s3 + $0x20] sm:$0xff]  ;;  %7110 = vmatprep.subr.bf16.mxu1 %v10746_v37 }
 0x1e7   : > { %1573 = vst.msk [vmem:[#allocation3 + $0xc0] sm:$0xff] %vm1560_vm6, %v1489_v9  ;;  %1321 = vrot.lane.b32.xlu1 %v7758_v30, %s7157_s10  ;;  %v2306_v9 = vld [vmem:[%s10742_s3 + $0x28] sm:$0xff] }
 0x1e8   : > { %1134 = vrot.lane.b32.xlu0 %v7768_v36, %s7156_s7 }
 0x1e9   : > { %v1491_v16 = vpop.permute.xlu1 %1490 }
 0x1ea   : > { %v1682_v13 = vpop.permute.xlu0 %1681 }
 0x1eb   : > { %1766 = vst.msk [vmem:[#allocation3 + $0xc0] sm:$0xff] %vm1753_vm7, %v1682_v13  ;;  %943 = vrot.lane.b32.xlu1 %v8002_v12, %s7155_s30  ;;  %v7034_v13 = vpack.c.bf16 %v2306_v9, %v2305_v56  ;;  %v2315_v56 = vld [vmem:[%s10742_s3 + $0x70] sm:$0xff]  ;;  %v2316_v9 = vld [vmem:[%s10742_s3 + $0x78] sm:$0xff] }
 0x1ec   : > { %1323 = vrot.lane.b32.xlu0 %v7787_v2, %s7157_s10 }
 0x1ed   : > { %v1684_v17 = vpop.permute.xlu1 %1683  ;;  %7035 = vmatpush1.bf16.msra.mxu0 %v7034_v13  ;;  %7119 = vmatpush1.bf16.msra.mxu1 %v7034_v13 }
 0x1ee   : > { %v918_v18 = vpop.permute.xlu0 %917  ;;  %7036 = vmatprep.subr.bf16.mxu0 %v10746_v37  ;;  %7111 = vmatprep.subr.bf16.mxu1 %v10746_v37 }
 0x1ef   : > { %998 = vst.msk [vmem:[#allocation3 + $0x100] sm:$0xff] %vm981_vm3, %v918_v18  ;;  %1136 = vrot.lane.b32.xlu1 %v8009_v19, %s7156_s7 }
 0x1f0   : > { %1516 = vrot.lane.b32.xlu0 %v7988_v38, %s7158_s11 }
 0x1f1   : > { %v1298_v24 = vpop.permute.xlu1 %1297 }
 0x1f2   : > { %1381 = vst.msk [vmem:[#allocation3 + $0xd0] sm:$0xff] %vm1367_vm5, %v1298_v24  ;;  %v1111_v26 = vpop.permute.xlu0 %1110 }
 0x1f3   : > { %1574 = vst.msk [vmem:[#allocation3 + $0xd0] sm:$0xff] %vm1560_vm6, %v1491_v16  ;;  %1518 = vrot.lane.b32.xlu1 %v8002_v12, %s7158_s11 }
 0x1f4   : > { %1191 = vst.msk [vmem:[#allocation3 + $0x100] sm:$0xff] %vm1174_vm4, %v1111_v26  ;;  %945 = vrot.lane.b32.xlu0 %v8016_v25, %s7155_s30  ;;  %v8098_v26 = vld [vmem:[#allocation2 + $0x20f] sm:$0xff] }
 0x1f5   : > { %1767 = vst.msk [vmem:[#allocation3 + $0xd0] sm:$0xff] %vm1753_vm7, %v1684_v17  ;;  %v920_v27 = vpop.permute.xlu1 %919 }
 0x1f6   : > { %999 = vst.msk [vmem:[#allocation3 + $0x110] sm:$0xff] %vm981_vm3, %v920_v27  ;;  %v1300_v31 = vpop.permute.xlu0 %1299  ;;  %v2308_v27 = vld [vmem:[%s10742_s3 + $0x38] sm:$0xff] }
 0x1f7   : > { %1382 = vst.msk [vmem:[#allocation3 + $0xe0] sm:$0xff] %vm1367_vm5, %v1300_v31  ;;  %1325 = vrot.lane.b32.xlu1 %v7791_v4, %s7157_s10 }
 0x1f8   : > { %1138 = vrot.lane.b32.xlu0 %v7802_v14, %s7156_s7 }
 0x1f9   : > { %v1113_v33 = vpop.permute.xlu1 %1112 }
 0x1fa   : > { %1192 = vst.msk [vmem:[#allocation3 + $0x110] sm:$0xff] %vm1174_vm4, %v1113_v33  ;;  %v1493_v41 = vpop.permute.xlu0 %1492 }
 0x1fb   : > { %1575 = vst.msk [vmem:[#allocation3 + $0xe0] sm:$0xff] %vm1560_vm6, %v1493_v41  ;;  %947 = vrot.lane.b32.xlu1 %v8032_v32, %s7155_s30 }
 0x1fc   : > { %1327 = vrot.lane.b32.xlu0 %v7825_v45, %s7157_s10 }
 0x1fd   : > { %v1495_v51 = vpop.permute.xlu1 %1494 }
 0x1fe   : > { %v1686_v53 = vpop.permute.xlu0 %1685 }
 0x1ff   : > { %1768 = vst.msk [vmem:[#allocation3 + $0xe0] sm:$0xff] %vm1753_vm7, %v1686_v53  ;;  %1140 = vrot.lane.b32.xlu1 %v8048_v54, %s7156_s7  ;;  %v2311_v53 = vld [vmem:[%s10742_s3 + $0x50] sm:$0xff] }
 0x200   : > { %1520 = vrot.lane.b32.xlu0 %v8016_v25, %s7158_s11 }
 0x201   : > { %v1688_v50 = vpop.permute.xlu1 %1687 }
 0x202   : > { %v922_v59 = vpop.permute.xlu0 %921 }
 0x203   : > { %1000 = vst.msk [vmem:[#allocation3 + $0x120] sm:$0xff] %vm981_vm3, %v922_v59  ;;  %1522 = vrot.lane.b32.xlu1 %v8032_v32, %s7158_s11 }
 0x204   : > { %1331 = vrot.lane.b32.xlu0 %v8057_v58, %s7157_s10 }
 0x205   : > { %v1302_v1 = vpop.permute.xlu1 %1301 }
 0x206   : > { %1383 = vst.msk [vmem:[#allocation3 + $0xf0] sm:$0xff] %vm1367_vm5, %v1302_v1  ;;  %v1115_v7 = vpop.permute.xlu0 %1114 }
 0x207   : > { %1576 = vst.msk [vmem:[#allocation3 + $0xf0] sm:$0xff] %vm1560_vm6, %v1495_v51  ;;  %1329 = vrot.lane.b32.xlu1 %v7829_v44, %s7157_s10 }
 0x208   : > { %1193 = vst.msk [vmem:[#allocation3 + $0x120] sm:$0xff] %vm1174_vm4, %v1115_v7  ;;  %1524 = vrot.lane.b32.xlu0 %v8070_v3, %s7158_s11  ;;  %v1624_v7 = vld [vmem:[#allocation2 + $0x211] sm:$0xff] }
 0x209   : > { %1769 = vst.msk [vmem:[#allocation3 + $0xf0] sm:$0xff] %vm1753_vm7, %v1688_v50  ;;  %v924_v16 = vpop.permute.xlu1 %923 }
 0x20a   : > { %1001 = vst.msk [vmem:[#allocation3 + $0x130] sm:$0xff] %vm981_vm3, %v924_v16  ;;  %v1304_v17 = vpop.permute.xlu0 %1303  ;;  %v7049_v16 = vpack.c.bf16 %v2316_v9, %v2315_v56  ;;  %v1983_v56 = vld [vmem:[#allocation2 + $0x70] sm:$0xff] }
 0x20b   : > { %1384 = vst.msk [vmem:[#allocation3 + $0x100] sm:$0xff] %vm1367_vm5, %v1304_v17  ;;  %1526 = vrot.lane.b32.xlu1 %v8081_v8, %s7158_s11 }
 0x20c   : > { %1693 = vrot.lane.b32.xlu0 %v7647_v5, %s7159_s12  ;;  %v2307_v5 = vld [vmem:[%s10742_s3 + $0x30] sm:$0xff] }
 0x20d   : > { %v1117_v18 = vpop.permute.xlu1 %1116  ;;  %v7037_v31 = vpack.c.bf16 %v2308_v27, %v2307_v5 }
 0x20e   : > { %1194 = vst.msk [vmem:[#allocation3 + $0x130] sm:$0xff] %vm1174_vm4, %v1117_v18  ;;  %v1497_v24 = vpop.permute.xlu0 %1496  ;;  %v1788_v18 = vld [vmem:[#allocation2 + $0x4f] sm:$0xff] }
 0x20f   : > { %1577 = vst.msk [vmem:[#allocation3 + $0x100] sm:$0xff] %vm1560_vm6, %v1497_v24  ;;  %1333 = vrot.lane.b32.xlu1 %v8098_v26, %s7157_s10  ;;  %7038 = vmatpush1.bf16.msra.mxu0 %v7037_v31  ;;  %v1791_v24 = vld [vmem:[#allocation2 + $0x87] sm:$0xff] }
 0x210   : > { %1697 = vrot.lane.b32.xlu0 %v7677_v15, %s7159_s12  ;;  %7120 = vmatpush1.bf16.msra.mxu1 %v7037_v31  ;;  %v2309_v15 = vld [vmem:[%s10742_s3 + $0x40] sm:$0xff]  ;;  %v1790_v31 = vld [vmem:[#allocation2 + $0x6f] sm:$0xff] }
 0x211   : > { %v1499_v33 = vpop.permute.xlu1 %1498  ;;  %7039 = vmatprep.subr.bf16.mxu0 %v10746_v37  ;;  %7112 = vmatprep.subr.bf16.mxu1 %v10746_v37 }
 0x212   : > { %v1690_v41 = vpop.permute.xlu0 %1689 }
 0x213   : > { %1770 = vst.msk [vmem:[#allocation3 + $0x100] sm:$0xff] %vm1753_vm7, %v1690_v41  ;;  %1695 = vrot.lane.b32.xlu1 %v7900_v46, %s7159_s12  ;;  %v2310_v46 = vld [vmem:[%s10742_s3 + $0x48] sm:$0xff]  ;;  %v2317_v41 = vld [vmem:[%s10742_s3 + $0x80] sm:$0xff] }
 0x214   : > { %1701 = vrot.lane.b32.xlu0 %v7708_v20, %s7159_s12  ;;  %v7040_v20 = vpack.c.bf16 %v2310_v46, %v2309_v15 }
 0x215   : > { %v1692_v42 = vpop.permute.xlu1 %1691 }
 0x216   : > { %v926_v28 = vpop.permute.xlu0 %925  ;;  %7041 = vmatpush1.bf16.msra.mxu0 %v7040_v20  ;;  %7121 = vmatpush1.bf16.msra.mxu1 %v7040_v20  ;;  %v1792_v20 = vld [vmem:[#allocation2 + $0x8f] sm:$0xff] }
 0x217   : > { %1002 = vst.msk [vmem:[#allocation3 + $0x140] sm:$0xff] %vm981_vm3, %v926_v28  ;;  %1699 = vrot.lane.b32.xlu1 %v7923_v22, %s7159_s12  ;;  %7042 = vmatprep.subr.bf16.mxu0 %v10746_v37 }
 0x218   : > { %1705 = vrot.lane.b32.xlu0 %v7738_v40, %s7159_s12  ;;  %7113 = vmatprep.subr.bf16.mxu1 %v10746_v37 }
 0x219   : > { %v1306_v48 = vpop.permute.xlu1 %1305 }
 0x21a   : > { %1385 = vst.msk [vmem:[#allocation3 + $0x110] sm:$0xff] %vm1367_vm5, %v1306_v48  ;;  %v1119_v51 = vpop.permute.xlu0 %1118  ;;  %v1795_v48 = vld [vmem:[#allocation2 + $0xc7] sm:$0xff] }
 0x21b   : > { %1578 = vst.msk [vmem:[#allocation3 + $0x110] sm:$0xff] %vm1560_vm6, %v1499_v33  ;;  %1703 = vrot.lane.b32.xlu1 %v7951_v55, %s7159_s12  ;;  %v2312_v55 = vld [vmem:[%s10742_s3 + $0x58] sm:$0xff]  ;;  %v1793_v33 = vld [vmem:[#allocation2 + $0xa7] sm:$0xff] }
 0x21c   : > { %1195 = vst.msk [vmem:[#allocation3 + $0x140] sm:$0xff] %vm1174_vm4, %v1119_v51  ;;  %1709 = vrot.lane.b32.xlu0 %v7768_v36, %s7159_s12  ;;  %v7043_v36 = vpack.c.bf16 %v2312_v55, %v2311_v53  ;;  %v1796_v53 = vld [vmem:[#allocation2 + $0xcf] sm:$0xff] }
 0x21d   : > { %1771 = vst.msk [vmem:[#allocation3 + $0x110] sm:$0xff] %vm1753_vm7, %v1692_v42  ;;  %v928_v40 = vpop.permute.xlu1 %927  ;;  %v2318_v42 = vld [vmem:[%s10742_s3 + $0x88] sm:$0xff] }
 0x21e   : > { %1003 = vst.msk [vmem:[#allocation3 + $0x150] sm:$0xff] %vm981_vm3, %v928_v40  ;;  %v1308_v22 = vpop.permute.xlu0 %1307  ;;  %7044 = vmatpush1.bf16.msra.mxu0 %v7043_v36  ;;  %7122 = vmatpush1.bf16.msra.mxu1 %v7043_v36  ;;  %v7052_v28 = vpack.c.bf16 %v2318_v42, %v2317_v41  ;;  %v1988_v42 = vld [vmem:[#allocation2 + $0xc8] sm:$0xff] }
 0x21f   : > { %1386 = vst.msk [vmem:[#allocation3 + $0x120] sm:$0xff] %vm1367_vm5, %v1308_v22  ;;  %1707 = vrot.lane.b32.xlu1 %v7979_v6, %s7159_s12  ;;  %7045 = vmatprep.subr.bf16.mxu0 %v10746_v37  ;;  %v2313_v6 = vld [vmem:[%s10742_s3 + $0x60] sm:$0xff]  ;;  %v1794_v22 = vld [vmem:[#allocation2 + $0xaf] sm:$0xff] }
 0x220   : > { %1713 = vrot.lane.b32.xlu0 %v7802_v14, %s7159_s12  ;;  %7114 = vmatprep.subr.bf16.mxu1 %v10746_v37  ;;  %v2314_v14 = vld [vmem:[%s10742_s3 + $0x68] sm:$0xff] }
 0x221   : > { %v1121_v50 = vpop.permute.xlu1 %1120  ;;  %v7046_v61 = vpack.c.bf16 %v2314_v14, %v2313_v6 }
 0x222   : > { %1196 = vst.msk [vmem:[#allocation3 + $0x150] sm:$0xff] %vm1174_vm4, %v1121_v50  ;;  %v1501_v59 = vpop.permute.xlu0 %1500  ;;  %v1980_v50 = vld [vmem:[#allocation2 + $0x48] sm:$0xff] }
 0x223   : > { %1579 = vst.msk [vmem:[#allocation3 + $0x120] sm:$0xff] %vm1560_vm6, %v1501_v59  ;;  %1711 = vrot.lane.b32.xlu1 %v8009_v19, %s7159_s12  ;;  %7047 = vmatpush1.bf16.msra.mxu0 %v7046_v61  ;;  %v1787_v19 = vld [vmem:[#allocation2 + $0x47] sm:$0xff] }
 0x224   : > { %1717 = vrot.lane.b32.xlu0 %v7843_v39, %s7159_s12  ;;  %7123 = vmatpush1.bf16.msra.mxu1 %v7046_v61  ;;  %v1797_v59 = vld [vmem:[#allocation2 + $0xe7] sm:$0xff]  ;;  %v1981_v61 = vld [vmem:[#allocation2 + $0x50] sm:$0xff] }
 0x225   : > { %v1503_v0 = vpop.permute.xlu1 %1502  ;;  %7048 = vmatprep.subr.bf16.mxu0 %v10746_v37  ;;  %7115 = vmatprep.subr.bf16.mxu1 %v10746_v37 }
 0x226   : > { %v930_v35 = vpop.permute.xlu0 %929 }
 0x227   : > { %1004 = vst.msk [vmem:[#allocation3 + $0x160] sm:$0xff] %vm981_vm3, %v930_v35  ;;  %1715 = vrot.lane.b32.xlu1 %v8048_v54, %s7159_s12  ;;  %v1789_v54 = vld [vmem:[#allocation2 + $0x67] sm:$0xff]  ;;  %7050 = vmatpush1.bf16.msra.mxu0 %v7049_v16 }
 0x228   : > { %1851 = vrot.lane.b32.xlu0 %v1787_v19, %s7161_s26  ;;  %7124 = vmatpush1.bf16.msra.mxu1 %v7049_v16 }
 0x229   : > { %v1310_v1 = vpop.permute.xlu1 %1309  ;;  %7051 = vmatprep.subr.bf16.mxu0 %v10746_v37  ;;  %7116 = vmatprep.subr.bf16.mxu1 %v10746_v37 }
 0x22a   : > { %1387 = vst.msk [vmem:[#allocation3 + $0x130] sm:$0xff] %vm1367_vm5, %v1310_v1  ;;  %v1123_v39 = vpop.permute.xlu0 %1122  ;;  %v1982_v1 = vld [vmem:[#allocation2 + $0x68] sm:$0xff] }
 0x22b   : > { %1580 = vst.msk [vmem:[#allocation3 + $0x130] sm:$0xff] %vm1560_vm6, %v1503_v0  ;;  %1719 = vrot.lane.b32.xlu1 %v1624_v7, %s7159_s12  ;;  %7053 = vmatpush1.bf16.msra.mxu0 %v7052_v28  ;;  %v1798_v0 = vld [vmem:[#allocation2 + $0xef] sm:$0xff] }
 0x22c   : > { %1197 = vst.msk [vmem:[#allocation3 + $0x160] sm:$0xff] %vm1174_vm4, %v1123_v39  ;;  %1855 = vrot.lane.b32.xlu0 %v1789_v54, %s7161_s26  ;;  %7125 = vmatpush1.bf16.msra.mxu1 %v7052_v28  ;;  %v1799_v39 = vld [vmem:[#allocation2 + $0x107] sm:$0xff] }
 0x22d   : > { %v932_v13 = vpop.permute.xlu1 %931  ;;  %7054 = vmatprep.subr.bf16.mxu0 %v10746_v37  ;;  %7081 = vmatprep.subr.bf16.mxu1 %v10746_v37 }
 0x22e   : > { %1005 = vst.msk [vmem:[#allocation3 + $0x170] sm:$0xff] %vm981_vm3, %v932_v13  ;;  %v1312_v17 = vpop.permute.xlu0 %1311  ;;  %v1984_v13 = vld [vmem:[#allocation2 + $0x88] sm:$0xff] }
 0x22f   : > { %1388 = vst.msk [vmem:[#allocation3 + $0x140] sm:$0xff] %vm1367_vm5, %v1312_v17  ;;  %1853 = vrot.lane.b32.xlu1 %v1788_v18, %s7161_s26 }
 0x230   : > { %1859 = vrot.lane.b32.xlu0 %v1791_v24, %s7161_s26  ;;  %v1985_v24 = vld [vmem:[#allocation2 + $0x90] sm:$0xff] }
 0x231   : > { %v1125_v5 = vpop.permute.xlu1 %1124 }
 0x232   : > { %1198 = vst.msk [vmem:[#allocation3 + $0x170] sm:$0xff] %vm1174_vm4, %v1125_v5  ;;  %v1505_v27 = vpop.permute.xlu0 %1504 }
 0x233   : > { %1581 = vst.msk [vmem:[#allocation3 + $0x140] sm:$0xff] %vm1560_vm6, %v1505_v27  ;;  %1857 = vrot.lane.b32.xlu1 %v1790_v31, %s7161_s26  ;;  %v1986_v27 = vld [vmem:[#allocation2 + $0xa8] sm:$0xff] }
 0x234   : > { %1863 = vrot.lane.b32.xlu0 %v1793_v33, %s7161_s26  ;;  %v1987_v33 = vld [vmem:[#allocation2 + $0xb0] sm:$0xff] }
 0x235   : > { %v1507_v15 = vpop.permute.xlu1 %1506 }
 0x236   : > { %v934_v46 = vpop.permute.xlu0 %933 }
 0x237   : > { %1006 = vst.msk [vmem:[#allocation3 + $0x180] sm:$0xff] %vm981_vm3, %v934_v46  ;;  %1861 = vrot.lane.b32.xlu1 %v1792_v20, %s7161_s26  ;;  %v1990_v20 = vld [vmem:[#allocation2 + $0xe8] sm:$0xff] }
 0x238   : > { %1867 = vrot.lane.b32.xlu0 %v1795_v48, %s7161_s26 }
 0x239   : > { %v1314_v51 = vpop.permute.xlu1 %1313 }
 0x23a   : > { %1389 = vst.msk [vmem:[#allocation3 + $0x150] sm:$0xff] %vm1367_vm5, %v1314_v51  ;;  %v1127_v40 = vpop.permute.xlu0 %1126  ;;  %v1991_v51 = vld [vmem:[#allocation2 + $0xf0] sm:$0xff] }
 0x23b   : > { %1582 = vst.msk [vmem:[#allocation3 + $0x150] sm:$0xff] %vm1560_vm6, %v1507_v15  ;;  %1865 = vrot.lane.b32.xlu1 %v1794_v22, %s7161_s26  ;;  %v1989_v15 = vld [vmem:[#allocation2 + $0xd0] sm:$0xff]  ;;  %v1992_v22 = vld [vmem:[#allocation2 + $0x108] sm:$0xff] }
 0x23c   : > { %1199 = vst.msk [vmem:[#allocation3 + $0x180] sm:$0xff] %vm1174_vm4, %v1127_v40  ;;  %1869 = vrot.lane.b32.xlu0 %v1796_v53, %s7161_s26 }
 0x23d   : > { %v936_v55 = vpop.permute.xlu1 %935 }
 0x23e   : > { %1007 = vst.msk [vmem:[#allocation3 + $0x190] sm:$0xff] %vm981_vm3, %v936_v55  ;;  %v1316_v36 = vpop.permute.xlu0 %1315  ;;  %v1993_v55 = vld [vmem:[#allocation2 + $0x110] sm:$0xff] }
 0x23f   : > { %1390 = vst.msk [vmem:[#allocation3 + $0x160] sm:$0xff] %vm1367_vm5, %v1316_v36  ;;  %2044 = vrot.lane.b32.xlu1 %v1980_v50, %s7162_s16  ;;  %v1994_v50 = vld [vmem:[#allocation2 + $0x128] sm:$0xff] }
 0x240   : > { %1871 = vrot.lane.b32.xlu0 %v1797_v59, %s7161_s26 }
 0x241   : > { %v1129_v6 = vpop.permute.xlu1 %1128 }
 0x242   : > { %1200 = vst.msk [vmem:[#allocation3 + $0x190] sm:$0xff] %vm1174_vm4, %v1129_v6  ;;  %v1509_v14 = vpop.permute.xlu0 %1508  ;;  %v1995_v6 = vld [vmem:[#allocation2 + $0x130] sm:$0xff] }
 0x243   : > { %1583 = vst.msk [vmem:[#allocation3 + $0x160] sm:$0xff] %vm1560_vm6, %v1509_v14  ;;  %2046 = vrot.lane.b32.xlu1 %v1981_v61, %s7162_s16  ;;  %v1996_v61 = vld [vmem:[#allocation2 + $0x148] sm:$0xff] }
 0x244   : > { %1873 = vrot.lane.b32.xlu0 %v1798_v0, %s7161_s26 }
 0x245   : > { %v1511_v35 = vpop.permute.xlu1 %1510 }
 0x246   : > { %v938_v19 = vpop.permute.xlu0 %937 }
 0x247   : > { %1008 = vst.msk [vmem:[#allocation3 + $0x1a0] sm:$0xff] %vm981_vm3, %v938_v19  ;;  %2048 = vrot.lane.b32.xlu1 %v1982_v1, %s7162_s16  ;;  %v1998_v1 = vld [vmem:[#allocation2 + $0x168] sm:$0xff] }
 0x248   : > { %1875 = vrot.lane.b32.xlu0 %v1799_v39, %s7161_s26 }
 0x249   : > { %v1318_v7 = vpop.permute.xlu1 %1317 }
 0x24a   : > { %1391 = vst.msk [vmem:[#allocation3 + $0x170] sm:$0xff] %vm1367_vm5, %v1318_v7  ;;  %v1131_v54 = vpop.permute.xlu0 %1130  ;;  %v1999_v7 = vld [vmem:[#allocation2 + $0x170] sm:$0xff] }
 0x24b   : > { %1584 = vst.msk [vmem:[#allocation3 + $0x170] sm:$0xff] %vm1560_vm6, %v1511_v35  ;;  %2050 = vrot.lane.b32.xlu1 %v1983_v56, %s7162_s16  ;;  %v1997_v35 = vld [vmem:[#allocation2 + $0x150] sm:$0xff] }
 0x24c   : > { %1201 = vst.msk [vmem:[#allocation3 + $0x1a0] sm:$0xff] %vm1174_vm4, %v1131_v54  ;;  %1877 = vrot.lane.b32.xlu0 %v7606_v52, %s7161_s26  ;;  %v1817_v54 = vld [vmem:[#allocation2 + $0x227] sm:$0xff] }
 0x24d   : > { %v940_v9 = vpop.permute.xlu1 %939 }
 0x24e   : > { %1009 = vst.msk [vmem:[#allocation3 + $0x1b0] sm:$0xff] %vm981_vm3, %v940_v9  ;;  %v1320_v16 = vpop.permute.xlu0 %1319  ;;  %v1818_v9 = vld [vmem:[#allocation2 + $0x22f] sm:$0xff] }
 0x24f   : > { %1392 = vst.msk [vmem:[#allocation3 + $0x180] sm:$0xff] %vm1367_vm5, %v1320_v16  ;;  %2052 = vrot.lane.b32.xlu1 %v1984_v13, %s7162_s16 }
 0x250   : > { %1879 = vrot.lane.b32.xlu0 %v7623_v60, %s7161_s26 }
 0x251   : > { %v1133_v17 = vpop.permute.xlu1 %1132 }
 0x252   : > { %1202 = vst.msk [vmem:[#allocation3 + $0x1b0] sm:$0xff] %vm1174_vm4, %v1133_v17  ;;  %v1513_v18 = vpop.permute.xlu0 %1512 }
 0x253   : > { %1585 = vst.msk [vmem:[#allocation3 + $0x180] sm:$0xff] %vm1560_vm6, %v1513_v18  ;;  %2054 = vrot.lane.b32.xlu1 %v1985_v24, %s7162_s16 }
 0x254   : > { %1881 = vrot.lane.b32.xlu0 %v7628_v63, %s7161_s26 }
 0x255   : > { %v1515_v52 = vpop.permute.xlu1 %1514 }
 0x256   : > { %v942_v5 = vpop.permute.xlu0 %941 }
 0x257   : > { %1010 = vst.msk [vmem:[#allocation3 + $0x1c0] sm:$0xff] %vm981_vm3, %v942_v5  ;;  %2056 = vrot.lane.b32.xlu1 %v1986_v27, %s7162_s16 }
 0x258   : > { %1883 = vrot.lane.b32.xlu0 %v7663_v10, %s7161_s26 }
 0x259   : > { %v1322_v60 = vpop.permute.xlu1 %1321 }
 0x25a   : > { %1393 = vst.msk [vmem:[#allocation3 + $0x190] sm:$0xff] %vm1367_vm5, %v1322_v60  ;;  %v1135_v31 = vpop.permute.xlu0 %1134 }
 0x25b   : > { %1586 = vst.msk [vmem:[#allocation3 + $0x190] sm:$0xff] %vm1560_vm6, %v1515_v52  ;;  %2058 = vrot.lane.b32.xlu1 %v1987_v33, %s7162_s16 }
 0x25c   : > { %1203 = vst.msk [vmem:[#allocation3 + $0x1c0] sm:$0xff] %vm1174_vm4, %v1135_v31  ;;  %1885 = vrot.lane.b32.xlu0 %v7666_v11, %s7161_s26 }
 0x25d   : > { %v944_v63 = vpop.permute.xlu1 %943 }
 0x25e   : > { %1011 = vst.msk [vmem:[#allocation3 + $0x1d0] sm:$0xff] %vm981_vm3, %v944_v63  ;;  %v1324_v41 = vpop.permute.xlu0 %1323 }
 0x25f   : > { %1394 = vst.msk [vmem:[#allocation3 + $0x1a0] sm:$0xff] %vm1367_vm5, %v1324_v41  ;;  %2060 = vrot.lane.b32.xlu1 %v1988_v42, %s7162_s16  ;;  %v2240_v41 = vld [vmem:[#allocation3 + $0x18] sm:$0xff] }
 0x260   : > { %1887 = vrot.lane.b32.xlu0 %v7691_v23, %s7161_s26 }
 0x261   : > { %v1137_v10 = vpop.permute.xlu1 %1136 }
 0x262   : > { %1204 = vst.msk [vmem:[#allocation3 + $0x1d0] sm:$0xff] %vm1174_vm4, %v1137_v10  ;;  %v1517_v28 = vpop.permute.xlu0 %1516 }
 0x263   : > { %1587 = vst.msk [vmem:[#allocation3 + $0x1a0] sm:$0xff] %vm1560_vm6, %v1517_v28  ;;  %2062 = vrot.lane.b32.xlu1 %v1989_v15, %s7162_s16  ;;  %v2242_v15 = vld [vmem:[#allocation3 + $0x28] sm:$0xff] }
 0x264   : > { %1889 = vrot.lane.b32.xlu0 %v7697_v21, %s7161_s26 }
 0x265   : > { %v1519_v11 = vpop.permute.xlu1 %1518 }
 0x266   : > { %v946_v46 = vpop.permute.xlu0 %945 }
 0x267   : > { %1012 = vst.msk [vmem:[#allocation3 + $0x1e0] sm:$0xff] %vm981_vm3, %v946_v46  ;;  %2064 = vrot.lane.b32.xlu1 %v1990_v20, %s7162_s16 }
 0x268   : > { %1891 = vrot.lane.b32.xlu0 %v7722_v34, %s7161_s26 }
 0x269   : > { %v1326_v23 = vpop.permute.xlu1 %1325 }
 0x26a   : > { %1395 = vst.msk [vmem:[#allocation3 + $0x1b0] sm:$0xff] %vm1367_vm5, %v1326_v23  ;;  %v1139_v48 = vpop.permute.xlu0 %1138  ;;  %v2244_v23 = vld [vmem:[#allocation3 + $0x38] sm:$0xff] }
 0x26b   : > { %1588 = vst.msk [vmem:[#allocation3 + $0x1b0] sm:$0xff] %vm1560_vm6, %v1519_v11  ;;  %2066 = vrot.lane.b32.xlu1 %v1991_v51, %s7162_s16 }
 0x26c   : > { %1205 = vst.msk [vmem:[#allocation3 + $0x1e0] sm:$0xff] %vm1174_vm4, %v1139_v48  ;;  %1893 = vrot.lane.b32.xlu0 %v7727_v29, %s7161_s26 }
 0x26d   : > { %v948_v21 = vpop.permute.xlu1 %947 }
 0x26e   : > { %1013 = vst.msk [vmem:[#allocation3 + $0x1f0] sm:$0xff] %vm981_vm3, %v948_v21  ;;  %v1328_v40 = vpop.permute.xlu0 %1327 }
 0x26f   : > { %1396 = vst.msk [vmem:[#allocation3 + $0x1c0] sm:$0xff] %vm1367_vm5, %v1328_v40  ;;  %2068 = vrot.lane.b32.xlu1 %v1992_v22, %s7162_s16  ;;  %v2246_v40 = vld [vmem:[#allocation3 + $0x48] sm:$0xff] }
 0x270   : > { %1895 = vrot.lane.b32.xlu0 %v7752_v49, %s7161_s26 }
 0x271   : > { %v1141_v34 = vpop.permute.xlu1 %1140 }
 0x272   : > { %1206 = vst.msk [vmem:[#allocation3 + $0x1f0] sm:$0xff] %vm1174_vm4, %v1141_v34  ;;  %v1521_v53 = vpop.permute.xlu0 %1520 }
 0x273   : > { %1589 = vst.msk [vmem:[#allocation3 + $0x1c0] sm:$0xff] %vm1560_vm6, %v1521_v53  ;;  %2070 = vrot.lane.b32.xlu1 %v1993_v55, %s7162_s16  ;;  %v2248_v55 = vld [vmem:[#allocation3 + $0x58] sm:$0xff] }
 0x274   : > { %1897 = vrot.lane.b32.xlu0 %v7758_v30, %s7161_s26 }
 0x275   : > { %v1523_v29 = vpop.permute.xlu1 %1522 }
 0x276   : > { %v1332_v36 = vpop.permute.xlu0 %1331 }
 0x277   : > { %1398 = vst.msk [vmem:[#allocation3 + $0x1e0] sm:$0xff] %vm1367_vm5, %v1332_v36  ;;  %2072 = vrot.lane.b32.xlu1 %v1994_v50, %s7162_s16 }
 0x278   : > { %1899 = vrot.lane.b32.xlu0 %v7787_v2, %s7161_s26 }
 0x279   : > { %v1330_v49 = vpop.permute.xlu1 %1329 }
 0x27a   : > { %1397 = vst.msk [vmem:[#allocation3 + $0x1d0] sm:$0xff] %vm1367_vm5, %v1330_v49  ;;  %v1525_v59 = vpop.permute.xlu0 %1524  ;;  %v2250_v49 = vld [vmem:[#allocation3 + $0x68] sm:$0xff] }
 0x27b   : > { %1590 = vst.msk [vmem:[#allocation3 + $0x1d0] sm:$0xff] %vm1560_vm6, %v1523_v29  ;;  %1591 = vst.msk [vmem:[#allocation3 + $0x1e0] sm:$0xff] %vm1560_vm6, %v1525_v59  ;;  %2074 = vrot.lane.b32.xlu1 %v1995_v6, %s7162_s16 }
 0x27c   : > { %1901 = vrot.lane.b32.xlu0 %v7791_v4, %s7161_s26 }
 0x27d   : > { %v1527_v30 = vpop.permute.xlu1 %1526 }
 0x27e   : > { %v1694_v14 = vpop.permute.xlu0 %1693 }
 0x27f   : > { %1772 = vst.msk [vmem:[#allocation3 + $0x120] sm:$0xff] %vm1753_vm7, %v1694_v14  ;;  %2076 = vrot.lane.b32.xlu1 %v1996_v61, %s7162_s16  ;;  %v2252_v14 = vld [vmem:[#allocation3 + $0x78] sm:$0xff] }
 0x280   : > { %1903 = vrot.lane.b32.xlu0 %v7825_v45, %s7161_s26 }
 0x281   : > { %v1334_v2 = vpop.permute.xlu1 %1333 }
 0x282   : > { %1399 = vst.msk [vmem:[#allocation3 + $0x1f0] sm:$0xff] %vm1367_vm5, %v1334_v2  ;;  %v1698_v0 = vpop.permute.xlu0 %1697 }
 0x283   : > { %1592 = vst.msk [vmem:[#allocation3 + $0x1f0] sm:$0xff] %vm1560_vm6, %v1527_v30  ;;  %2078 = vrot.lane.b32.xlu1 %v1997_v35, %s7162_s16  ;;  %v2254_v35 = vld [vmem:[#allocation3 + $0x88] sm:$0xff] }
 0x284   : > { %1774 = vst.msk [vmem:[#allocation3 + $0x140] sm:$0xff] %vm1753_vm7, %v1698_v0  ;;  %1905 = vrot.lane.b32.xlu0 %v7829_v44, %s7161_s26 }
 0x285   : > { %v1696_v4 = vpop.permute.xlu1 %1695 }
 0x286   : > { %1773 = vst.msk [vmem:[#allocation3 + $0x130] sm:$0xff] %vm1753_vm7, %v1696_v4  ;;  %v1702_v19 = vpop.permute.xlu0 %1701 }
 0x287   : > { %1776 = vst.msk [vmem:[#allocation3 + $0x160] sm:$0xff] %vm1753_vm7, %v1702_v19  ;;  %2080 = vrot.lane.b32.xlu1 %v1998_v1, %s7162_s16 }
 0x288   : > { %1907 = vrot.lane.b32.xlu0 %v8057_v58, %s7161_s26 }
 0x289   : > { %v1700_v45 = vpop.permute.xlu1 %1699 }
 0x28a   : > { %1775 = vst.msk [vmem:[#allocation3 + $0x150] sm:$0xff] %vm1753_vm7, %v1700_v45  ;;  %v1706_v39 = vpop.permute.xlu0 %1705  ;;  %v2256_v45 = vld [vmem:[#allocation3 + $0x98] sm:$0xff] }
 0x28b   : > { %1778 = vst.msk [vmem:[#allocation3 + $0x180] sm:$0xff] %vm1753_vm7, %v1706_v39  ;;  %2082 = vrot.lane.b32.xlu1 %v1999_v7, %s7162_s16 }
 0x28c   : > { %1909 = vrot.lane.b32.xlu0 %v8098_v26, %s7161_s26 }
 0x28d   : > { %v1704_v44 = vpop.permute.xlu1 %1703 }
 0x28e   : > { %1777 = vst.msk [vmem:[#allocation3 + $0x170] sm:$0xff] %vm1753_vm7, %v1704_v44  ;;  %v1710_v56 = vpop.permute.xlu0 %1709 }
 0x28f   : > { %1780 = vst.msk [vmem:[#allocation3 + $0x1a0] sm:$0xff] %vm1753_vm7, %v1710_v56  ;;  %2084 = vrot.lane.b32.xlu1 %v7929_v47, %s7162_s16 }
 0x290   : > { %1911 = vrot.lane.b32.xlu0 %v1817_v54, %s7161_s26  ;;  %v2258_v54 = vld [vmem:[#allocation3 + $0xa8] sm:$0xff] }
 0x291   : > { %v1708_v58 = vpop.permute.xlu1 %1707 }
 0x292   : > { %1779 = vst.msk [vmem:[#allocation3 + $0x190] sm:$0xff] %vm1753_vm7, %v1708_v58  ;;  %v1714_v16 = vpop.permute.xlu0 %1713 }
 0x293   : > { %1782 = vst.msk [vmem:[#allocation3 + $0x1c0] sm:$0xff] %vm1753_vm7, %v1714_v16  ;;  %2086 = vrot.lane.b32.xlu1 %v7940_v43, %s7162_s16  ;;  %v2260_v16 = vld [vmem:[#allocation3 + $0xb8] sm:$0xff] }
 0x294   : > { %1913 = vrot.lane.b32.xlu0 %v1818_v9, %s7161_s26 }
 0x295   : > { %v1712_v26 = vpop.permute.xlu1 %1711 }
 0x296   : > { %1781 = vst.msk [vmem:[#allocation3 + $0x1b0] sm:$0xff] %vm1753_vm7, %v1712_v26  ;;  %v1718_v13 = vpop.permute.xlu0 %1717 }
 0x297   : > { %1784 = vst.msk [vmem:[#allocation3 + $0x1e0] sm:$0xff] %vm1753_vm7, %v1718_v13  ;;  %2088 = vrot.lane.b32.xlu1 %v7958_v57, %s7162_s16 }
 0x298   : > { %2092 = vrot.lane.b32.xlu0 %v7988_v38, %s7162_s16 }
 0x299   : > { %v1716_v47 = vpop.permute.xlu1 %1715 }
 0x29a   : > { %1783 = vst.msk [vmem:[#allocation3 + $0x1d0] sm:$0xff] %vm1753_vm7, %v1716_v47  ;;  %v1852_v17 = vpop.permute.xlu0 %1851 }
 0x29b   : > { %1948 = vst.msk [vmem:[#allocation3] sm:$0xff] %vm1947_vm8, %v1852_v17  ;;  %2090 = vrot.lane.b32.xlu1 %v7971_v62, %s7162_s16 }
 0x29c   : > { %2096 = vrot.lane.b32.xlu0 %v8016_v25, %s7162_s16 }
 0x29d   : > { %v1720_v43 = vpop.permute.xlu1 %1719 }
 0x29e   : > { %1785 = vst.msk [vmem:[#allocation3 + $0x1f0] sm:$0xff] %vm1753_vm7, %v1720_v43  ;;  %v1856_v57 = vpop.permute.xlu0 %1855 }
 0x29f   : > { %1950 = vst.msk [vmem:[#allocation3 + $0x20] sm:$0xff] %vm1947_vm8, %v1856_v57  ;;  %2094 = vrot.lane.b32.xlu1 %v8002_v12, %s7162_s16 }
 0x2a0   : > { %2100 = vrot.lane.b32.xlu0 %v8070_v3, %s7162_s16 }
 0x2a1   : > { %v1854_v38 = vpop.permute.xlu1 %1853 }
 0x2a2   : > { %1949 = vst.msk [vmem:[#allocation3 + $0x10] sm:$0xff] %vm1947_vm8, %v1854_v38  ;;  %v1860_v18 = vpop.permute.xlu0 %1859  ;;  %v2264_v38 = vld [vmem:[#allocation3 + $0xd8] sm:$0xff] }
 0x2a3   : > { %1952 = vst.msk [vmem:[#allocation3 + $0x40] sm:$0xff] %vm1947_vm8, %v1860_v18  ;;  %2098 = vrot.lane.b32.xlu1 %v8032_v32, %s7162_s16  ;;  %v2010_v32 = vld [vmem:[#allocation2 + $0x228] sm:$0xff] }
 0x2a4   : > { %2104 = vrot.lane.b32.xlu0 %v2010_v32, %s7162_s16  ;;  %v2268_v32 = vld [vmem:[#allocation3 + $0xf8] sm:$0xff] }
 0x2a5   : > { %v1858_v62 = vpop.permute.xlu1 %1857 }
 0x2a6   : > { %1951 = vst.msk [vmem:[#allocation3 + $0x30] sm:$0xff] %vm1947_vm8, %v1858_v62  ;;  %v1864_v25 = vpop.permute.xlu0 %1863 }
 0x2a7   : > { %1954 = vst.msk [vmem:[#allocation3 + $0x60] sm:$0xff] %vm1947_vm8, %v1864_v25  ;;  %2102 = vrot.lane.b32.xlu1 %v8081_v8, %s7162_s16 }
 0x2a9   : > { %v1862_v12 = vpop.permute.xlu1 %1861 }
 0x2aa   : > { %1953 = vst.msk [vmem:[#allocation3 + $0x50] sm:$0xff] %vm1947_vm8, %v1862_v12  ;;  %v1868_v3 = vpop.permute.xlu0 %1867  ;;  %v2266_v12 = vld [vmem:[#allocation3 + $0xe8] sm:$0xff] }
 0x2ab   : > { %1956 = vst.msk [vmem:[#allocation3 + $0x80] sm:$0xff] %vm1947_vm8, %v1868_v3 }
 0x2ad   : > { %v1866_v24 = vpop.permute.xlu1 %1865 }
 0x2ae   : > { %1955 = vst.msk [vmem:[#allocation3 + $0x70] sm:$0xff] %vm1947_vm8, %v1866_v24  ;;  %v1870_v52 = vpop.permute.xlu0 %1869 }
 0x2af   : > { %1957 = vst.msk [vmem:[#allocation3 + $0x90] sm:$0xff] %vm1947_vm8, %v1870_v52 }
 0x2b1   : > { %v2045_v5 = vpop.permute.xlu1 %2044 }
 0x2b2   : > { %2141 = vst.msk [vmem:[#allocation3] sm:$0xff] %vm2140_vm9, %v2045_v5  ;;  %v1872_v8 = vpop.permute.xlu0 %1871 }
 0x2b3   : > { %1958 = vst.msk [vmem:[#allocation3 + $0xa0] sm:$0xff] %vm1947_vm8, %v1872_v8 }
 0x2b5   : > { %v2047_v27 = vpop.permute.xlu1 %2046 }
 0x2b6   : > { %2142 = vst.msk [vmem:[#allocation3 + $0x10] sm:$0xff] %vm2140_vm9, %v2047_v27  ;;  %v1874_v60 = vpop.permute.xlu0 %1873 }
 0x2b7   : > { %1959 = vst.msk [vmem:[#allocation3 + $0xb0] sm:$0xff] %vm1947_vm8, %v1874_v60  ;;  %v2270_v60 = vld [vmem:[#allocation3 + $0x108] sm:$0xff] }
 0x2b9   : > { %v2049_v31 = vpop.permute.xlu1 %2048  ;;  %v2237_v33 = vld [vmem:[#allocation3] sm:$0xff] }
 0x2ba   : > { %2143 = vst.msk [vmem:[#allocation3 + $0x20] sm:$0xff] %vm2140_vm9, %v2049_v31  ;;  %v1876_v63 = vpop.permute.xlu0 %1875  ;;  %2487 = vmatmul.mubr.f32.vlgmr.msra.gmra.mrb[32].mxu0 %v2237_v33 }
 0x2bb   : > { %1960 = vst.msk [vmem:[#allocation3 + $0xc0] sm:$0xff] %vm1947_vm8, %v1876_v63  ;;  %6805 = vmatprep.mubr.msk.f32.mxu0 %vm253_vm1, %v2240_v41  ;;  %v2272_v41 = vld [vmem:[#allocation3 + $0x118] sm:$0xff] }
 0x2bd   : > { %v2051_v42 = vpop.permute.xlu1 %2050  ;;  %v2239_v10 = vld [vmem:[#allocation3 + $0x10] sm:$0xff] }
 0x2be   : > { %2144 = vst.msk [vmem:[#allocation3 + $0x30] sm:$0xff] %vm2140_vm9, %v2051_v42  ;;  %v1878_v28 = vpop.permute.xlu0 %1877  ;;  %2492 = vmatmul.mubr.f32.gmra.mrb[34].mxu0 %v2239_v10 }
 0x2bf   : > { %1961 = vst.msk [vmem:[#allocation3 + $0xd0] sm:$0xff] %vm1947_vm8, %v1878_v28  ;;  %6806 = vmatprep.mubr.msk.f32.mxu0 %vm253_vm1, %v2242_v15  ;;  %v2274_v15 = vld [vmem:[#allocation3 + $0x128] sm:$0xff] }
 0x2c1   : > { %v2053_v11 = vpop.permute.xlu1 %2052  ;;  %v2241_v46 = vld [vmem:[#allocation3 + $0x20] sm:$0xff] }
 0x2c2   : > { %2145 = vst.msk [vmem:[#allocation3 + $0x40] sm:$0xff] %vm2140_vm9, %v2053_v11  ;;  %v1880_v20 = vpop.permute.xlu0 %1879  ;;  %2497 = vmatmul.mubr.f32.gmra.mrb[36].mxu0 %v2241_v46 }
 0x2c3   : > { %1962 = vst.msk [vmem:[#allocation3 + $0xe0] sm:$0xff] %vm1947_vm8, %v1880_v20  ;;  %6807 = vmatprep.mubr.msk.f32.mxu0 %vm253_vm1, %v2244_v23  ;;  %v2276_v23 = vld [vmem:[#allocation3 + $0x138] sm:$0xff] }
 0x2c5   : > { %v2055_v48 = vpop.permute.xlu1 %2054  ;;  %v2243_v51 = vld [vmem:[#allocation3 + $0x30] sm:$0xff] }
 0x2c6   : > { %2146 = vst.msk [vmem:[#allocation3 + $0x50] sm:$0xff] %vm2140_vm9, %v2055_v48  ;;  %v1882_v21 = vpop.permute.xlu0 %1881  ;;  %2502 = vmatmul.mubr.f32.gmra.mrb[38].mxu0 %v2243_v51 }
 0x2c7   : > { %1963 = vst.msk [vmem:[#allocation3 + $0xf0] sm:$0xff] %vm1947_vm8, %v1882_v21  ;;  %6808 = vmatprep.mubr.msk.f32.mxu0 %vm253_vm1, %v2246_v40  ;;  %v2278_v40 = vld [vmem:[#allocation3 + $0x148] sm:$0xff] }
 0x2c9   : > { %v2057_v22 = vpop.permute.xlu1 %2056  ;;  %v2245_v34 = vld [vmem:[#allocation3 + $0x40] sm:$0xff] }
 0x2ca   : > { %2147 = vst.msk [vmem:[#allocation3 + $0x60] sm:$0xff] %vm2140_vm9, %v2057_v22  ;;  %v1884_v53 = vpop.permute.xlu0 %1883  ;;  %2507 = vmatmul.mubr.f32.gmra.mrb[40].mxu0 %v2245_v34 }
 0x2cb   : > { %1964 = vst.msk [vmem:[#allocation3 + $0x100] sm:$0xff] %vm1947_vm8, %v1884_v53  ;;  %6809 = vmatprep.mubr.msk.f32.mxu0 %vm253_vm1, %v2248_v55  ;;  %v2280_v55 = vld [vmem:[#allocation3 + $0x158] sm:$0xff] }
 0x2cd   : > { %v2059_v29 = vpop.permute.xlu1 %2058  ;;  %v2247_v36 = vld [vmem:[#allocation3 + $0x50] sm:$0xff] }
 0x2ce   : > { %2148 = vst.msk [vmem:[#allocation3 + $0x70] sm:$0xff] %vm2140_vm9, %v2059_v29  ;;  %v1886_v50 = vpop.permute.xlu0 %1885  ;;  %2512 = vmatmul.mubr.f32.gmra.mrb[42].mxu0 %v2247_v36 }
 0x2cf   : > { %1965 = vst.msk [vmem:[#allocation3 + $0x110] sm:$0xff] %vm1947_vm8, %v1886_v50  ;;  %6810 = vmatprep.mubr.msk.f32.mxu0 %vm253_vm1, %v2250_v49  ;;  %v2282_v49 = vld [vmem:[#allocation3 + $0x168] sm:$0xff] }
 0x2d1   : > { %v2061_v59 = vpop.permute.xlu1 %2060  ;;  %v2249_v6 = vld [vmem:[#allocation3 + $0x60] sm:$0xff] }
 0x2d2   : > { %2149 = vst.msk [vmem:[#allocation3 + $0x80] sm:$0xff] %vm2140_vm9, %v2061_v59  ;;  %v1888_v30 = vpop.permute.xlu0 %1887  ;;  %2517 = vmatmul.mubr.f32.gmra.mrb[44].mxu0 %v2249_v6  ;;  %v2011_v59 = vld [vmem:[#allocation2 + $0x230] sm:$0xff] }
 0x2d3   : > { %1966 = vst.msk [vmem:[#allocation3 + $0x120] sm:$0xff] %vm1947_vm8, %v1888_v30  ;;  %6811 = vmatprep.mubr.msk.f32.mxu0 %vm253_vm1, %v2252_v14  ;;  %2106 = vrot.lane.b32.xlu1 %v2011_v59, %s7162_s16 }
 0x2d5   : > { %v2063_v61 = vpop.permute.xlu1 %2062  ;;  %v2251_v2 = vld [vmem:[#allocation3 + $0x70] sm:$0xff] }
 0x2d6   : > { %2150 = vst.msk [vmem:[#allocation3 + $0x90] sm:$0xff] %vm2140_vm9, %v2063_v61  ;;  %v1890_v0 = vpop.permute.xlu0 %1889  ;;  %2522 = vmatmul.mubr.f32.gmra.mrb[46].mxu0 %v2251_v2  ;;  %v2284_v61 = vld [vmem:[#allocation3 + $0x178] sm:$0xff]  ;;  %v2775_v2 = vld [vmem:[#allocation2 + $0x8] sm:$0xff] }
 0x2d7   : > { %1967 = vst.msk [vmem:[#allocation3 + $0x130] sm:$0xff] %vm1947_vm8, %v1890_v0  ;;  %6812 = vmatprep.mubr.msk.f32.mxu0 %vm253_vm1, %v2254_v35  ;;  %v2776_v0 = vld [vmem:[#allocation2 + $0x10] sm:$0xff]  ;;  %2839 = vrot.lane.b32.xlu0 %v2775_v2, %s7155_s30 }
 0x2d8   : > { %2841 = vrot.lane.b32.xlu1 %v2776_v0, %s7155_s30  ;;  %v6844_v0 = vld [vmem:[%s10742_s3 + $0xd0] sm:$0xff] }
 0x2d9   : > { %v2065_v4 = vpop.permute.xlu1 %2064  ;;  %v2253_v19 = vld [vmem:[#allocation3 + $0x80] sm:$0xff] }
 0x2da   : > { %2151 = vst.msk [vmem:[#allocation3 + $0xa0] sm:$0xff] %vm2140_vm9, %v2065_v4  ;;  %v1892_v1 = vpop.permute.xlu0 %1891  ;;  %2527 = vmatmul.mubr.f32.gmra.mrb[48].mxu0 %v2253_v19  ;;  %v2286_v19 = vld [vmem:[#allocation3 + $0x188] sm:$0xff] }
 0x2db   : > { %1968 = vst.msk [vmem:[#allocation3 + $0x140] sm:$0xff] %vm1947_vm8, %v1892_v1  ;;  %6813 = vmatprep.mubr.msk.f32.mxu0 %vm253_vm1, %v2256_v45  ;;  %v2967_v1 = vld [vmem:[#allocation2 + $0x9] sm:$0xff]  ;;  %v2968_v45 = vld [vmem:[#allocation2 + $0x11] sm:$0xff] }
 0x2dc   : > { %3031 = vrot.lane.b32.xlu0 %v2967_v1, %s7156_s7  ;;  %3033 = vrot.lane.b32.xlu1 %v2968_v45, %s7156_s7 }
 0x2dd   : > { %v2067_v39 = vpop.permute.xlu1 %2066  ;;  %v2255_v7 = vld [vmem:[#allocation3 + $0x90] sm:$0xff] }
 0x2de   : > { %2152 = vst.msk [vmem:[#allocation3 + $0xb0] sm:$0xff] %vm2140_vm9, %v2067_v39  ;;  %v1894_v44 = vpop.permute.xlu0 %1893  ;;  %2532 = vmatmul.mubr.f32.gmra.mrb[50].mxu0 %v2255_v7 }
 0x2df   : > { %1969 = vst.msk [vmem:[#allocation3 + $0x150] sm:$0xff] %vm1947_vm8, %v1894_v44  ;;  %6814 = vmatprep.mubr.msk.f32.mxu0 %vm253_vm1, %v2258_v54  ;;  %v2288_v44 = vld [vmem:[#allocation3 + $0x198] sm:$0xff] }
 0x2e1   : > { %v2069_v56 = vpop.permute.xlu1 %2068  ;;  %v2257_v58 = vld [vmem:[#allocation3 + $0xa0] sm:$0xff] }
 0x2e2   : > { %2153 = vst.msk [vmem:[#allocation3 + $0xc0] sm:$0xff] %vm2140_vm9, %v2069_v56  ;;  %v1896_v9 = vpop.permute.xlu0 %1895  ;;  %2537 = vmatmul.mubr.f32.gmra.mrb[52].mxu0 %v2257_v58  ;;  %v2290_v56 = vld [vmem:[#allocation3 + $0x1a8] sm:$0xff] }
 0x2e3   : > { %1970 = vst.msk [vmem:[#allocation3 + $0x160] sm:$0xff] %vm1947_vm8, %v1896_v9  ;;  %6815 = vmatprep.mubr.msk.f32.mxu0 %vm253_vm1, %v2260_v16  ;;  %v2292_v9 = vld [vmem:[#allocation3 + $0x1b8] sm:$0xff] }
 0x2e5   : > { %v2071_v26 = vpop.permute.xlu1 %2070  ;;  %v2259_v13 = vld [vmem:[#allocation3 + $0xb0] sm:$0xff] }
 0x2e6   : > { %2154 = vst.msk [vmem:[#allocation3 + $0xd0] sm:$0xff] %vm2140_vm9, %v2071_v26  ;;  %v1898_v47 = vpop.permute.xlu0 %1897  ;;  %2542 = vmatmul.mubr.f32.gmra.mrb[54].mxu0 %v2259_v13  ;;  %v2294_v26 = vld [vmem:[#allocation3 + $0x1c8] sm:$0xff] }
 0x2e7   : > { %1971 = vst.msk [vmem:[#allocation3 + $0x170] sm:$0xff] %vm1947_vm8, %v1898_v47  ;;  %v2296_v47 = vld [vmem:[#allocation3 + $0x1d8] sm:$0xff] }
 0x2e9   : > { %v2073_v17 = vpop.permute.xlu1 %2072  ;;  %v2261_v43 = vld [vmem:[#allocation3 + $0xc0] sm:$0xff] }
 0x2ea   : > { %2155 = vst.msk [vmem:[#allocation3 + $0xe0] sm:$0xff] %vm2140_vm9, %v2073_v17  ;;  %v1900_v57 = vpop.permute.xlu0 %1899  ;;  %2547 = vmatmul.mubr.f32.vlgmr.msra.gmra.mrb[0].mxu1 %v2261_v43  ;;  %v2203_v43 = vld [vmem:[#allocation2 + $0x229] sm:$0xff] }
 0x2eb   : > { %1972 = vst.msk [vmem:[#allocation3 + $0x180] sm:$0xff] %vm1947_vm8, %v1900_v57  ;;  %6817 = vmatprep.mubr.msk.f32.mxu1 %vm253_vm1, %v2264_v38  ;;  %v2204_v38 = vld [vmem:[#allocation2 + $0x231] sm:$0xff] }
 0x2ec   : > { %2235 = vst.msk [vmem:[#allocation3 + $0x1e8] sm:$0xff] %vm253_vm1, %v2203_v43  ;;  %2236 = vst.msk [vmem:[#allocation3 + $0x1f8] sm:$0xff] %vm253_vm1, %v2204_v38 }
 0x2ed   : > { %v2075_v18 = vpop.permute.xlu1 %2074  ;;  %v2263_v62 = vld [vmem:[#allocation3 + $0xd0] sm:$0xff] }
 0x2ee   : > { %2156 = vst.msk [vmem:[#allocation3 + $0xf0] sm:$0xff] %vm2140_vm9, %v2075_v18  ;;  %v1902_v25 = vpop.permute.xlu0 %1901  ;;  %2552 = vmatmul.mubr.f32.gmra.mrb[2].mxu1 %v2263_v62  ;;  %v2711_v62 = vld [vmem:[#allocation2 + $0x7] sm:$0xff] }
 0x2ef   : > { %1973 = vst.msk [vmem:[#allocation3 + $0x190] sm:$0xff] %vm1947_vm8, %v1902_v25  ;;  %6818 = vmatprep.mubr.msk.f32.mxu1 %vm253_vm1, %v2266_v12 }
 0x2f0   : > { %2743 = vst.msk [vmem:[#allocation3] sm:$0xff] %vm253_vm1, %v2711_v62 }
 0x2f1   : > { %v2077_v3 = vpop.permute.xlu1 %2076  ;;  %v2265_v24 = vld [vmem:[#allocation3 + $0xe0] sm:$0xff] }
 0x2f2   : > { %2157 = vst.msk [vmem:[#allocation3 + $0x100] sm:$0xff] %vm2140_vm9, %v2077_v3  ;;  %v1904_v52 = vpop.permute.xlu0 %1903  ;;  %2557 = vmatmul.mubr.f32.gmra.mrb[4].mxu1 %v2265_v24  ;;  %v2712_v24 = vld [vmem:[#allocation2 + $0xf] sm:$0xff] }
 0x2f3   : > { %1974 = vst.msk [vmem:[#allocation3 + $0x1a0] sm:$0xff] %vm1947_vm8, %v1904_v52  ;;  %6819 = vmatprep.mubr.msk.f32.mxu1 %vm253_vm1, %v2268_v32  ;;  %v2298_v25 = vld [vmem:[#allocation3 + $0x1e8] sm:$0xff]  ;;  %v2300_v32 = vld [vmem:[#allocation3 + $0x1f8] sm:$0xff] }
 0x2f4   : > { %4181 = vst.msk [vmem:[#allocation3 + $0x1e8] sm:$0xff] %vm253_vm1, %v2203_v43  ;;  %2744 = vst.msk [vmem:[#allocation3 + $0x10] sm:$0xff] %vm253_vm1, %v2712_v24 }
 0x2f5   : > { %v2079_v5 = vpop.permute.xlu1 %2078  ;;  %v2267_v8 = vld [vmem:[#allocation3 + $0xf0] sm:$0xff]  ;;  %4182 = vst.msk [vmem:[#allocation3 + $0x1f8] sm:$0xff] %vm253_vm1, %v2204_v38  ;;  %v6849_v38 = vld [vmem:[%s10742_s3 + $0xf8] sm:$0xff] }
 0x2f6   : > { %2158 = vst.msk [vmem:[#allocation3 + $0x110] sm:$0xff] %vm2140_vm9, %v2079_v5  ;;  %v1906_v27 = vpop.permute.xlu0 %1905  ;;  %2562 = vmatmul.mubr.f32.gmra.mrb[6].mxu1 %v2267_v8 }
 0x2f7   : > { %1975 = vst.msk [vmem:[#allocation3 + $0x1b0] sm:$0xff] %vm1947_vm8, %v1906_v27  ;;  %6820 = vmatprep.mubr.msk.f32.mxu1 %vm253_vm1, %v2270_v60  ;;  %v8448_v60 = vld [vmem:[%s10743_s4] ss:$0 sm:$0xff] }
 0x2f9   : > { %v2081_v31 = vpop.permute.xlu1 %2080  ;;  %v2269_v33 = vld [vmem:[#allocation3 + $0x100] sm:$0xff] }
 0x2fa   : > { %2159 = vst.msk [vmem:[#allocation3 + $0x120] sm:$0xff] %vm2140_vm9, %v2081_v31  ;;  %v1908_v63 = vpop.permute.xlu0 %1907  ;;  %2567 = vmatmul.mubr.f32.gmra.mrb[8].mxu1 %v2269_v33  ;;  %v6836_v31 = vld [vmem:[%s10742_s3 + $0x90] sm:$0xff]  ;;  %v6837_v33 = vld [vmem:[%s10742_s3 + $0x98] sm:$0xff] }
 0x2fb   : > { %1976 = vst.msk [vmem:[#allocation3 + $0x1c0] sm:$0xff] %vm1947_vm8, %v1908_v63  ;;  %6821 = vmatprep.mubr.msk.f32.mxu1 %vm253_vm1, %v2272_v41  ;;  %v7055_v41 = vpack.c.bf16 %v6837_v33, %v6836_v31 }
 0x2fd   : > { %v2083_v42 = vpop.permute.xlu1 %2082  ;;  %v2271_v10 = vld [vmem:[#allocation3 + $0x110] sm:$0xff]  ;;  %7056 = vmatpush1.bf16.msra.mxu0 %v7055_v41 }
 0x2fe   : > { %2160 = vst.msk [vmem:[#allocation3 + $0x130] sm:$0xff] %vm2140_vm9, %v2083_v42  ;;  %v1910_v28 = vpop.permute.xlu0 %1909  ;;  %2572 = vmatmul.mubr.f32.gmra.mrb[10].mxu1 %v2271_v10  ;;  %7057 = vmatprep.subr.bf16.mxu0 %v10746_v37 }
 0x2ff   : > { %1977 = vst.msk [vmem:[#allocation3 + $0x1d0] sm:$0xff] %vm1947_vm8, %v1910_v28  ;;  %6822 = vmatprep.mubr.msk.f32.mxu1 %vm253_vm1, %v2274_v15  ;;  %v6838_v15 = vld [vmem:[%s10742_s3 + $0xa0] sm:$0xff] }
 0x301   : > { %v2085_v11 = vpop.permute.xlu1 %2084  ;;  %v2273_v46 = vld [vmem:[#allocation3 + $0x120] sm:$0xff] }
 0x302   : > { %2161 = vst.msk [vmem:[#allocation3 + $0x140] sm:$0xff] %vm2140_vm9, %v2085_v11  ;;  %v1912_v20 = vpop.permute.xlu0 %1911  ;;  %2577 = vmatmul.mubr.f32.gmra.mrb[12].mxu1 %v2273_v46  ;;  %v6839_v11 = vld [vmem:[%s10742_s3 + $0xa8] sm:$0xff] }
 0x303   : > { %1978 = vst.msk [vmem:[#allocation3 + $0x1e0] sm:$0xff] %vm1947_vm8, %v1912_v20  ;;  %6823 = vmatprep.mubr.msk.f32.mxu1 %vm253_vm1, %v2276_v23  ;;  %v7058_v20 = vpack.c.bf16 %v6839_v11, %v6838_v15 }
 0x305   : > { %v2087_v48 = vpop.permute.xlu1 %2086  ;;  %v2275_v51 = vld [vmem:[#allocation3 + $0x130] sm:$0xff]  ;;  %7059 = vmatpush1.bf16.msra.mxu0 %v7058_v20 }
 0x306   : > { %2162 = vst.msk [vmem:[#allocation3 + $0x150] sm:$0xff] %vm2140_vm9, %v2087_v48  ;;  %v1914_v21 = vpop.permute.xlu0 %1913  ;;  %2582 = vmatmul.mubr.f32.gmra.mrb[14].mxu1 %v2275_v51  ;;  %7060 = vmatprep.subr.bf16.mxu0 %v10746_v37 }
 0x307   : > { %1979 = vst.msk [vmem:[#allocation3 + $0x1f0] sm:$0xff] %vm1947_vm8, %v1914_v21  ;;  %6824 = vmatprep.mubr.msk.f32.mxu1 %vm253_vm1, %v2278_v40  ;;  %v6840_v21 = vld [vmem:[%s10742_s3 + $0xb0] sm:$0xff]  ;;  %v6841_v40 = vld [vmem:[%s10742_s3 + $0xb8] sm:$0xff] }
 0x309   : > { %v2089_v22 = vpop.permute.xlu1 %2088  ;;  %v2277_v34 = vld [vmem:[#allocation3 + $0x140] sm:$0xff] }
 0x30a   : > { %2163 = vst.msk [vmem:[#allocation3 + $0x160] sm:$0xff] %vm2140_vm9, %v2089_v22  ;;  %v2093_v53 = vpop.permute.xlu0 %2092  ;;  %2587 = vmatmul.mubr.f32.gmra.mrb[16].mxu1 %v2277_v34  ;;  %v7061_v34 = vpack.c.bf16 %v6841_v40, %v6840_v21 }
 0x30b   : > { %2165 = vst.msk [vmem:[#allocation3 + $0x180] sm:$0xff] %vm2140_vm9, %v2093_v53  ;;  %6825 = vmatprep.mubr.msk.f32.mxu1 %vm253_vm1, %v2280_v55 }
 0x30c   : > { %7062 = vmatpush1.bf16.msra.mxu0 %v7061_v34 }
 0x30d   : > { %v2091_v29 = vpop.permute.xlu1 %2090  ;;  %v2279_v36 = vld [vmem:[#allocation3 + $0x150] sm:$0xff]  ;;  %7063 = vmatprep.subr.bf16.mxu0 %v10746_v37 }
 0x30e   : > { %2164 = vst.msk [vmem:[#allocation3 + $0x170] sm:$0xff] %vm2140_vm9, %v2091_v29  ;;  %v2097_v50 = vpop.permute.xlu0 %2096  ;;  %2592 = vmatmul.mubr.f32.gmra.mrb[18].mxu1 %v2279_v36  ;;  %v6842_v36 = vld [vmem:[%s10742_s3 + $0xc0] sm:$0xff] }
 0x30f   : > { %2167 = vst.msk [vmem:[#allocation3 + $0x1a0] sm:$0xff] %vm2140_vm9, %v2097_v50  ;;  %6826 = vmatprep.mubr.msk.f32.mxu1 %vm253_vm1, %v2282_v49  ;;  %v6843_v50 = vld [vmem:[%s10742_s3 + $0xc8] sm:$0xff] }
 0x311   : > { %v2095_v6 = vpop.permute.xlu1 %2094  ;;  %v2281_v30 = vld [vmem:[#allocation3 + $0x160] sm:$0xff] }
 0x312   : > { %2166 = vst.msk [vmem:[#allocation3 + $0x190] sm:$0xff] %vm2140_vm9, %v2095_v6  ;;  %v2101_v14 = vpop.permute.xlu0 %2100  ;;  %2597 = vmatmul.mubr.f32.gmra.mrb[20].mxu1 %v2281_v30  ;;  %v2285_v7 = vld [vmem:[#allocation3 + $0x180] sm:$0xff]  ;;  %v7064_v30 = vpack.c.bf16 %v6843_v50, %v6842_v36 }
 0x313   : > { %2169 = vst.msk [vmem:[#allocation3 + $0x1c0] sm:$0xff] %vm2140_vm9, %v2101_v14  ;;  %6827 = vmatprep.mubr.msk.f32.mxu1 %vm253_vm1, %v2284_v61 }
 0x314   : > { %7065 = vmatpush1.bf16.msra.mxu0 %v7064_v30 }
 0x315   : > { %v2099_v35 = vpop.permute.xlu1 %2098  ;;  %v2283_v4 = vld [vmem:[#allocation3 + $0x170] sm:$0xff]  ;;  %7066 = vmatprep.subr.bf16.mxu0 %v10746_v37 }
 0x316   : > { %2168 = vst.msk [vmem:[#allocation3 + $0x1b0] sm:$0xff] %vm2140_vm9, %v2099_v35  ;;  %2602 = vmatmul.mubr.f32.gmra.mrb[22].mxu1 %v2283_v4  ;;  %v2289_v58 = vld [vmem:[#allocation3 + $0x1a0] sm:$0xff]  ;;  %v2105_v57 = vpop.permute.xlu0 %2104  ;;  %v6845_v35 = vld [vmem:[%s10742_s3 + $0xd8] sm:$0xff] }
 0x317   : > { %6828 = vmatprep.mubr.msk.f32.mxu1 %vm253_vm1, %v2286_v19  ;;  %2171 = vst.msk [vmem:[#allocation3 + $0x1e0] sm:$0xff] %vm2140_vm9, %v2105_v57  ;;  %v7067_v1 = vpack.c.bf16 %v6845_v35, %v6844_v0  ;;  %v6848_v57 = vld [vmem:[%s10742_s3 + $0xf0] sm:$0xff] }
 0x319   : > { %v2103_v39 = vpop.permute.xlu1 %2102  ;;  %v2287_v54 = vld [vmem:[#allocation3 + $0x190] sm:$0xff]  ;;  %7068 = vmatpush1.bf16.msra.mxu0 %v7067_v1 }
 0x31a   : > { %2170 = vst.msk [vmem:[#allocation3 + $0x1d0] sm:$0xff] %vm2140_vm9, %v2103_v39  ;;  %2607 = vmatmul.mubr.f32.gmra.mrb[24].mxu1 %v2285_v7  ;;  %v2293_v13 = vld [vmem:[#allocation3 + $0x1c0] sm:$0xff]  ;;  %7069 = vmatprep.subr.bf16.mxu0 %v10746_v37 }
 0x31b   : > { %6829 = vmatprep.mubr.msk.f32.mxu1 %vm253_vm1, %v2288_v44 }
 0x31d   : > { %v2291_v16 = vld [vmem:[#allocation3 + $0x1b0] sm:$0xff] }
 0x31e   : > { %2612 = vmatmul.mubr.f32.gmra.mrb[26].mxu1 %v2287_v54  ;;  %v2297_v3 = vld [vmem:[#allocation3 + $0x1e0] sm:$0xff] }
 0x31f   : > { %6830 = vmatprep.mubr.msk.f32.mxu1 %vm253_vm1, %v2290_v56  ;;  %v6846_v54 = vld [vmem:[%s10742_s3 + $0xe0] sm:$0xff]  ;;  %v6847_v56 = vld [vmem:[%s10742_s3 + $0xe8] sm:$0xff] }
 0x321   : > { %v2295_v17 = vld [vmem:[#allocation3 + $0x1d0] sm:$0xff] }
 0x322   : > { %2617 = vmatmul.mubr.f32.gmra.mrb[28].mxu1 %v2289_v58 }
 0x323   : > { %6831 = vmatprep.mubr.msk.f32.mxu1 %vm253_vm1, %v2292_v9 }
 0x326   : > { %2622 = vmatmul.mubr.f32.gmra.mrb[30].mxu1 %v2291_v16 }
 0x327   : > { %6832 = vmatprep.mubr.msk.f32.mxu1 %vm253_vm1, %v2294_v26 }
 0x32a   : > { %2627 = vmatmul.mubr.f32.gmra.mrb[32].mxu1 %v2293_v13  ;;  %v7070_v13 = vpack.c.bf16 %v6847_v56, %v6846_v54 }
 0x32b   : > { %6833 = vmatprep.mubr.msk.f32.mxu1 %vm253_vm1, %v2296_v47 }
 0x32c   : > { %7071 = vmatpush1.bf16.msra.mxu0 %v7070_v13 }
 0x32d   : > { %7072 = vmatprep.subr.bf16.mxu0 %v10746_v37 }
 0x32e   : > { %2632 = vmatmul.mubr.f32.gmra.mrb[34].mxu1 %v2295_v17 }
 0x32f   : > { %6834 = vmatprep.mubr.msk.f32.mxu1 %vm253_vm1, %v2298_v25 }
 0x332   : > { %2637 = vmatmul.mubr.f32.gmra.mrb[36].mxu1 %v2297_v3 }
 0x333   : > { %6835 = vmatprep.mubr.msk.f32.mxu1 %vm253_vm1, %v2300_v32 }
 0x345   : > { %v2107_v18 = vpop.permute.xlu1 %2106 }
 0x346   : > { %2172 = vst.msk [vmem:[#allocation3 + $0x1f0] sm:$0xff] %vm2140_vm9, %v2107_v18 }
 0x349   : > { %v2840_v12 = vpop.permute.xlu0 %2839 }
 0x34a   : > { %2935 = vst.msk [vmem:[#allocation3] sm:$0xff] %vm981_vm3, %v2840_v12  ;;  %v2842_v52 = vpop.permute.xlu1 %2841  ;;  %v7073_v12 = vpack.c.bf16 %v6849_v38, %v6848_v57 }
 0x34b   : > { %2936 = vst.msk [vmem:[#allocation3 + $0x10] sm:$0xff] %vm981_vm3, %v2842_v52 }
 0x34c   : > { %7074 = vmatpush1.bf16.msra.mxu0 %v7073_v12 }
 0x34d   : > { %v2299_v8 = vld [vmem:[#allocation3 + $0x1f0] sm:$0xff]  ;;  %7075 = vmatprep.subr.bf16.mxu0 %v10746_v37 }
 0x34e   : > { %v3032_v5 = vpop.permute.xlu0 %3031  ;;  %v3034_v27 = vpop.permute.xlu1 %3033  ;;  %2642 = vmatmul.mubr.f32.gmra.mrb[38].mxu1 %v2299_v8  ;;  %v6851_v8 = vld [vmem:[%s10742_s3 + $0x108] sm:$0xff] }
 0x34f   : > { %3127 = vst.msk [vmem:[#allocation3] sm:$0xff] %vm1174_vm4, %v3032_v5  ;;  %3128 = vst.msk [vmem:[#allocation3 + $0x10] sm:$0xff] %vm1174_vm4, %v3034_v27  ;;  %v6850_v5 = vld [vmem:[%s10742_s3 + $0x100] sm:$0xff] }
 0x350   : > { %v7076_v33 = vpack.c.bf16 %v6851_v8, %v6850_v5 }
 0x352   : > { %7077 = vmatpush1.bf16.msra.mxu0 %v7076_v33 }
 0x353   : > { %7078 = vmatprep.subr.bf16.mxu0 %v10746_v37 }
 0x38d   : > { %v2488_v63 = vpop.f32.mrb[32].mxu0 }
 0x38e   : > { %v2489_v42 = vadd.f32 %v8448_v60, %v2488_v63  ;;  %v2490_v10 = vpop.f32.mrb[33].mxu0 }
 0x38f   : > { %v6852_v10 = vld [vmem:[%s10742_s3 + $0x110] sm:$0xff] }
 0x390   : > { %v2647_v28 = vmax.f32 %v2489_v42, 0.0 }
 0x391   : > { %v2493_v46 = vpop.f32.mrb[34].mxu0 }
 0x392   : > { %2679 = vst.msk [vmem:[#allocation2 + $0x28] sm:$0xff] %vm253_vm1, %v2647_v28  ;;  %v2494_v23 = vadd.f32 %v8448_v60, %v2493_v46  ;;  %v2495_v48 = vpop.f32.mrb[35].mxu0  ;;  %v6853_v28 = vld [vmem:[%s10742_s3 + $0x118] sm:$0xff] }
 0x393   : > { %v7079_v20 = vpack.c.bf16 %v6853_v28, %v6852_v10 }
 0x394   : > { %v2648_v51 = vmax.f32 %v2494_v23, 0.0 }
 0x395   : > { %v2498_v22 = vpop.f32.mrb[36].mxu0  ;;  %7080 = vmatpush1.bf16.msra.mxu0 %v7079_v20 }
 0x396   : > { %2680 = vst.msk [vmem:[#allocation2 + $0x30] sm:$0xff] %vm253_vm1, %v2648_v51  ;;  %v2499_v53 = vadd.f32 %v8448_v60, %v2498_v22  ;;  %v2500_v55 = vpop.f32.mrb[37].mxu0 }
 0x398   : > { %v2649_v29 = vmax.f32 %v2499_v53, 0.0 }
 0x399   : > { %v2503_v49 = vpop.f32.mrb[38].mxu0  ;;  %v3351_v59 = vld [vmem:[#allocation2 + $0x28] sm:$0xff] }
 0x39a   : > { %v3159_v6 = vld [vmem:[#allocation2 + $0x27] sm:$0xff]  ;;  %2681 = vst.msk [vmem:[#allocation2 + $0x48] sm:$0xff] %vm253_vm1, %v2649_v29  ;;  %v2504_v14 = vadd.f32 %v8448_v60, %v2503_v49  ;;  %3415 = vrot.lane.b32.xlu1 %v3351_v59, %s7158_s11  ;;  %2843 = vrot.lane.b32.xlu0 %v3351_v59, %s7155_s30  ;;  %v2505_v61 = vpop.f32.mrb[39].mxu0 }
 0x39b   : > { %2745 = vst.msk [vmem:[#allocation3 + $0x20] sm:$0xff] %vm253_vm1, %v3159_v6 }
 0x39c   : > { %v2650_v2 = vmax.f32 %v2504_v14, 0.0 }
 0x39d   : > { %v2508_v4 = vpop.f32.mrb[40].mxu0  ;;  %v2778_v19 = vld [vmem:[#allocation2 + $0x30] sm:$0xff] }
 0x39e   : > { %2682 = vst.msk [vmem:[#allocation2 + $0x50] sm:$0xff] %vm253_vm1, %v2650_v2  ;;  %v2509_v45 = vadd.f32 %v8448_v60, %v2508_v4  ;;  %2845 = vrot.lane.b32.xlu1 %v2778_v19, %s7155_s30  ;;  %3223 = vrot.lane.b32.xlu0 %v3159_v6, %s7157_s10  ;;  %v2510_v39 = vpop.f32.mrb[41].mxu0  ;;  %v3160_v7 = vld [vmem:[#allocation2 + $0x2f] sm:$0xff] }
 0x39f   : > { %2746 = vst.msk [vmem:[#allocation3 + $0x30] sm:$0xff] %vm253_vm1, %v3160_v7  ;;  %v2970_v9 = vld [vmem:[#allocation2 + $0x31] sm:$0xff]  ;;  %v2969_v16 = vld [vmem:[#allocation2 + $0x29] sm:$0xff] }
 0x3a0   : > { %v2651_v44 = vmax.f32 %v2509_v45, 0.0 }
 0x3a1   : > { %v2513_v58 = vpop.f32.mrb[42].mxu0  ;;  %v8507_v26 = vld [vmem:[#allocation2 + $0x47] sm:$0xff] }
 0x3a2   : > { %2683 = vst.msk [vmem:[#allocation2 + $0x68] sm:$0xff] %vm253_vm1, %v2651_v44  ;;  %v2514_v47 = vadd.f32 %v8448_v60, %v2513_v58  ;;  %3037 = vrot.lane.b32.xlu1 %v2970_v9, %s7156_s7  ;;  %3035 = vrot.lane.b32.xlu0 %v2969_v16, %s7156_s7  ;;  %v2515_v17 = vpop.f32.mrb[43].mxu0  ;;  %2747 = vst.msk [vmem:[#allocation3 + $0x40] sm:$0xff] %vm253_vm1, %v8507_v26  ;;  %v2779_v51 = vld [vmem:[#allocation2 + $0x48] sm:$0xff] }
 0x3a4   : > { %v2652_v43 = vmax.f32 %v2514_v47, 0.0 }
 0x3a5   : > { %v2518_v18 = vpop.f32.mrb[44].mxu0  ;;  %v8522_v62 = vld [vmem:[#allocation2 + $0x49] sm:$0xff]  ;;  %v8524_v25 = vld [vmem:[#allocation2 + $0x51] sm:$0xff] }
 0x3a6   : > { %2684 = vst.msk [vmem:[#allocation2 + $0x70] sm:$0xff] %vm253_vm1, %v2652_v43  ;;  %v2519_v3 = vadd.f32 %v8448_v60, %v2518_v18  ;;  %3225 = vrot.lane.b32.xlu1 %v3160_v7, %s7157_s10  ;;  %3607 = vrot.lane.b32.xlu0 %v2969_v16, %s7159_s12  ;;  %v2520_v24 = vpop.f32.mrb[45].mxu0  ;;  %4151 = vst.msk [vmem:[#allocation3 + $0x8] sm:$0xff] %vm253_vm1, %v8522_v62  ;;  %v8532_v52 = vld [vmem:[#allocation2 + $0x4f] sm:$0xff] }
 0x3a7   : > { %4152 = vst.msk [vmem:[#allocation3 + $0x18] sm:$0xff] %vm253_vm1, %v8524_v25  ;;  %2748 = vst.msk [vmem:[#allocation3 + $0x50] sm:$0xff] %vm253_vm1, %v8532_v52  ;;  %v2780_v49 = vld [vmem:[#allocation2 + $0x50] sm:$0xff] }
 0x3a8   : > { %v2653_v32 = vmax.f32 %v2519_v3, 0.0 }
 0x3a9   : > { %v2523_v27 = vpop.f32.mrb[46].mxu0  ;;  %v8545_v31 = vld [vmem:[#allocation2 + $0x67] sm:$0xff] }
 0x3aa   : > { %2685 = vst.msk [vmem:[#allocation2 + $0x88] sm:$0xff] %vm253_vm1, %v2653_v32  ;;  %v2524_v63 = vadd.f32 %v8448_v60, %v2523_v27  ;;  %3417 = vrot.lane.b32.xlu1 %v2778_v19, %s7158_s11  ;;  %3609 = vrot.lane.b32.xlu0 %v2970_v9, %s7159_s12  ;;  %v2525_v41 = vpop.f32.mrb[47].mxu0  ;;  %2749 = vst.msk [vmem:[#allocation3 + $0x60] sm:$0xff] %vm253_vm1, %v8545_v31 }
 0x3ac   : > { %v2654_v42 = vmax.f32 %v2524_v63, 0.0 }
 0x3ad   : > { %v2528_v15 = vpop.f32.mrb[48].mxu0  ;;  %v4184_v11 = vld [vmem:[#allocation3 + $0x8] sm:$0xff]  ;;  %v8560_v46 = vld [vmem:[#allocation2 + $0x71] sm:$0xff] }
 0x3ae   : > { %2686 = vst.msk [vmem:[#allocation2 + $0x90] sm:$0xff] %vm253_vm1, %v2654_v42  ;;  %v2529_v23 = vadd.f32 %v8448_v60, %v2528_v15  ;;  %v2530_v48 = vpop.f32.mrb[49].mxu0  ;;  %6856 = vmatprep.mubr.msk.f32.mxu0 %vm253_vm1, %v4184_v11  ;;  %3799 = vrot.lane.b32.xlu1 %v8507_v26, %s7161_s26  ;;  %v8567_v21 = vld [vmem:[#allocation2 + $0x69] sm:$0xff]  ;;  %4154 = vst.msk [vmem:[#allocation3 + $0x38] sm:$0xff] %vm253_vm1, %v8560_v46 }
 0x3af   : > { %v8569_v40 = vld [vmem:[#allocation2 + $0x6f] sm:$0xff]  ;;  %2847 = vrot.lane.b32.xlu0 %v2779_v51, %s7155_s30  ;;  %4153 = vst.msk [vmem:[#allocation3 + $0x28] sm:$0xff] %vm253_vm1, %v8567_v21 }
 0x3b0   : > { %2750 = vst.msk [vmem:[#allocation3 + $0x70] sm:$0xff] %vm253_vm1, %v8569_v40  ;;  %v2655_v22 = vmax.f32 %v2529_v23, 0.0  ;;  %v2782_v15 = vld [vmem:[#allocation2 + $0x70] sm:$0xff] }
 0x3b1   : > { %v2533_v34 = vpop.f32.mrb[50].mxu0  ;;  %v8578_v53 = vld [vmem:[#allocation2 + $0x87] sm:$0xff] }
 0x3b2   : > { %2687 = vst.msk [vmem:[#allocation2 + $0xa8] sm:$0xff] %vm253_vm1, %v2655_v22  ;;  %v2534_v55 = vadd.f32 %v8448_v60, %v2533_v34  ;;  %v2535_v29 = vpop.f32.mrb[51].mxu0  ;;  %3419 = vrot.lane.b32.xlu1 %v2779_v51, %s7158_s11  ;;  %2751 = vst.msk [vmem:[#allocation3 + $0x80] sm:$0xff] %vm253_vm1, %v8578_v53 }
 0x3b3   : > { %3227 = vrot.lane.b32.xlu0 %v8507_v26, %s7157_s10 }
 0x3b4   : > { %v2656_v36 = vmax.f32 %v2534_v55, 0.0 }
 0x3b5   : > { %v2538_v50 = vpop.f32.mrb[52].mxu0  ;;  %v8587_v59 = vld [vmem:[#allocation2 + $0x91] sm:$0xff]  ;;  %v8589_v6 = vld [vmem:[#allocation2 + $0x89] sm:$0xff] }
 0x3b6   : > { %2688 = vst.msk [vmem:[#allocation2 + $0xb0] sm:$0xff] %vm253_vm1, %v2656_v36  ;;  %v2539_v30 = vadd.f32 %v8448_v60, %v2538_v50  ;;  %v2540_v14 = vpop.f32.mrb[53].mxu0  ;;  %2849 = vrot.lane.b32.xlu1 %v2780_v49, %s7155_s30  ;;  %v8594_v61 = vld [vmem:[#allocation2 + $0x8f] sm:$0xff]  ;;  %4155 = vst.msk [vmem:[#allocation3 + $0x48] sm:$0xff] %vm253_vm1, %v8589_v6 }
 0x3b7   : > { %4156 = vst.msk [vmem:[#allocation3 + $0x58] sm:$0xff] %vm253_vm1, %v8587_v59  ;;  %3991 = vrot.lane.b32.xlu0 %v2779_v51, %s7162_s16  ;;  %2752 = vst.msk [vmem:[#allocation3 + $0x90] sm:$0xff] %vm253_vm1, %v8594_v61 }
 0x3b8   : > { %v2657_v2 = vmax.f32 %v2539_v30, 0.0 }
 0x3b9   : > { %v2543_v0 = vpop.f32.mrb[54].mxu0  ;;  %v8603_v35 = vld [vmem:[#allocation2 + $0xa7] sm:$0xff] }
 0x3ba   : > { %2689 = vst.msk [vmem:[#allocation2 + $0xc8] sm:$0xff] %vm253_vm1, %v2657_v2  ;;  %v2544_v4 = vadd.f32 %v8448_v60, %v2543_v0  ;;  %v2545_v19 = vpop.f32.mrb[55].mxu0  ;;  %3041 = vrot.lane.b32.xlu1 %v8524_v25, %s7156_s7  ;;  %2753 = vst.msk [vmem:[#allocation3 + $0xa0] sm:$0xff] %vm253_vm1, %v8603_v35 }
 0x3bb   : > { %3039 = vrot.lane.b32.xlu0 %v8522_v62, %s7156_s7 }
 0x3bc   : > { %v2658_v1 = vmax.f32 %v2544_v4, 0.0 }
 0x3bd   : > { %v2548_v45 = vpop.f32.mrb[0].mxu1  ;;  %v8617_v44 = vld [vmem:[#allocation2 + $0xaf] sm:$0xff] }
 0x3be   : > { %2690 = vst.msk [vmem:[#allocation2 + $0xd0] sm:$0xff] %vm253_vm1, %v2658_v1  ;;  %v2549_v39 = vadd.f32 %v8448_v60, %v2548_v45  ;;  %v2550_v7 = vpop.f32.mrb[1].mxu1  ;;  %3229 = vrot.lane.b32.xlu1 %v8532_v52, %s7157_s10  ;;  %2754 = vst.msk [vmem:[#allocation3 + $0xb0] sm:$0xff] %vm253_vm1, %v8617_v44  ;;  %v4125_v54 = vld [vmem:[#allocation2 + $0xa9] sm:$0xff]  ;;  %v4126_v56 = vld [vmem:[#allocation2 + $0xb1] sm:$0xff] }
 0x3bf   : > { %3993 = vrot.lane.b32.xlu0 %v2780_v49, %s7162_s16  ;;  %4157 = vst.msk [vmem:[#allocation3 + $0x68] sm:$0xff] %vm253_vm1, %v4125_v54  ;;  %4158 = vst.msk [vmem:[#allocation3 + $0x78] sm:$0xff] %vm253_vm1, %v4126_v56 }
 0x3c0   : > { %v2659_v58 = vmax.f32 %v2549_v39, 0.0 }
 0x3c1   : > { %v2553_v9 = vpop.f32.mrb[2].mxu1  ;;  %v8624_v16 = vld [vmem:[#allocation2 + $0xc7] sm:$0xff] }
 0x3c2   : > { %2691 = vst.msk [vmem:[#allocation2 + $0xe8] sm:$0xff] %vm253_vm1, %v2659_v58  ;;  %v2554_v26 = vadd.f32 %v8448_v60, %v2553_v9  ;;  %v2555_v13 = vpop.f32.mrb[3].mxu1  ;;  %3801 = vrot.lane.b32.xlu1 %v8532_v52, %s7161_s26  ;;  %2755 = vst.msk [vmem:[#allocation3 + $0xc0] sm:$0xff] %vm253_vm1, %v8624_v16 }
 0x3c3   : > { %3611 = vrot.lane.b32.xlu0 %v8522_v62, %s7159_s12 }
 0x3c4   : > { %v2660_v47 = vmax.f32 %v2554_v26, 0.0 }
 0x3c5   : > { %v2558_v17 = vpop.f32.mrb[4].mxu1  ;;  %v8637_v38 = vld [vmem:[#allocation2 + $0xcf] sm:$0xff] }
 0x3c6   : > { %2692 = vst.msk [vmem:[#allocation2 + $0xf0] sm:$0xff] %vm253_vm1, %v2660_v47  ;;  %v2559_v43 = vadd.f32 %v8448_v60, %v2558_v17  ;;  %v2560_v57 = vpop.f32.mrb[5].mxu1  ;;  %3421 = vrot.lane.b32.xlu1 %v2780_v49, %s7158_s11  ;;  %v4127_v18 = vld [vmem:[#allocation2 + $0xc9] sm:$0xff]  ;;  %v4128_v12 = vld [vmem:[#allocation2 + $0xd1] sm:$0xff]  ;;  %2756 = vst.msk [vmem:[#allocation3 + $0xd0] sm:$0xff] %vm253_vm1, %v8637_v38 }
 0x3c7   : > { %3613 = vrot.lane.b32.xlu0 %v8524_v25, %s7159_s12  ;;  %4159 = vst.msk [vmem:[#allocation3 + $0x88] sm:$0xff] %vm253_vm1, %v4127_v18  ;;  %4160 = vst.msk [vmem:[#allocation3 + $0x98] sm:$0xff] %vm253_vm1, %v4128_v12  ;;  %v2781_v25 = vld [vmem:[#allocation2 + $0x68] sm:$0xff] }
 0x3c8   : > { %v2661_v62 = vmax.f32 %v2559_v43, 0.0 }
 0x3c9   : > { %v2563_v3 = vpop.f32.mrb[6].mxu1  ;;  %v8645_v24 = vld [vmem:[#allocation2 + $0xe7] sm:$0xff] }
 0x3ca   : > { %2693 = vst.msk [vmem:[#allocation2 + $0x108] sm:$0xff] %vm253_vm1, %v2661_v62  ;;  %v2564_v52 = vadd.f32 %v8448_v60, %v2563_v3  ;;  %v2565_v32 = vpop.f32.mrb[7].mxu1  ;;  %3803 = vrot.lane.b32.xlu1 %v8545_v31, %s7161_s26  ;;  %2757 = vst.msk [vmem:[#allocation3 + $0xe0] sm:$0xff] %vm253_vm1, %v8645_v24  ;;  %v2789_v17 = vld [vmem:[#allocation2 + $0xe8] sm:$0xff]  ;;  %v8731_v3 = vld [vmem:[#allocation2 + $0x90] sm:$0xff] }
 0x3cb   : > { %2851 = vrot.lane.b32.xlu0 %v2781_v25, %s7155_s30 }
 0x3cc   : > { %v2662_v5 = vmax.f32 %v2564_v52, 0.0 }
 0x3cd   : > { %v2568_v8 = vpop.f32.mrb[8].mxu1  ;;  %v8657_v63 = vld [vmem:[#allocation2 + $0xef] sm:$0xff] }
 0x3ce   : > { %2694 = vst.msk [vmem:[#allocation2 + $0x110] sm:$0xff] %vm253_vm1, %v2662_v5  ;;  %v2569_v27 = vadd.f32 %v8448_v60, %v2568_v8  ;;  %v2570_v33 = vpop.f32.mrb[9].mxu1  ;;  %3423 = vrot.lane.b32.xlu1 %v2781_v25, %s7158_s11  ;;  %v8659_v41 = vld [vmem:[#allocation2 + $0xf1] sm:$0xff]  ;;  %2758 = vst.msk [vmem:[#allocation3 + $0xf0] sm:$0xff] %vm253_vm1, %v8657_v63  ;;  %v4129_v42 = vld [vmem:[#allocation2 + $0xe9] sm:$0xff] }
 0x3cf   : > { %3231 = vrot.lane.b32.xlu0 %v8545_v31, %s7157_s10  ;;  %4162 = vst.msk [vmem:[#allocation3 + $0xb8] sm:$0xff] %vm253_vm1, %v8659_v41  ;;  %4161 = vst.msk [vmem:[#allocation3 + $0xa8] sm:$0xff] %vm253_vm1, %v4129_v42 }
 0x3d0   : > { %v2663_v10 = vmax.f32 %v2569_v27, 0.0  ;;  %v2790_v27 = vld [vmem:[#allocation2 + $0xf0] sm:$0xff] }
 0x3d1   : > { %v2573_v28 = vpop.f32.mrb[10].mxu1  ;;  %v8668_v11 = vld [vmem:[#allocation2 + $0x107] sm:$0xff] }
 0x3d2   : > { %2695 = vst.msk [vmem:[#allocation2 + $0x128] sm:$0xff] %vm253_vm1, %v2663_v10  ;;  %v2574_v20 = vadd.f32 %v8448_v60, %v2573_v28  ;;  %v2575_v23 = vpop.f32.mrb[11].mxu1  ;;  %2853 = vrot.lane.b32.xlu1 %v2782_v15, %s7155_s30  ;;  %2759 = vst.msk [vmem:[#allocation3 + $0x100] sm:$0xff] %vm253_vm1, %v8668_v11 }
 0x3d3   : > { %3995 = vrot.lane.b32.xlu0 %v2781_v25, %s7162_s16 }
 0x3d4   : > { %v2664_v31 = vmax.f32 %v2574_v20, 0.0 }
 0x3d5   : > { %v2578_v48 = vpop.f32.mrb[12].mxu1  ;;  %v8680_v34 = vld [vmem:[#allocation2 + $0x10f] sm:$0xff] }
 0x3d6   : > { %2696 = vst.msk [vmem:[#allocation2 + $0x130] sm:$0xff] %vm253_vm1, %v2664_v31  ;;  %v2579_v51 = vadd.f32 %v8448_v60, %v2578_v48  ;;  %v2580_v22 = vpop.f32.mrb[13].mxu1  ;;  %3045 = vrot.lane.b32.xlu1 %v8560_v46, %s7156_s7  ;;  %v4131_v55 = vld [vmem:[#allocation2 + $0x109] sm:$0xff]  ;;  %2760 = vst.msk [vmem:[#allocation3 + $0x110] sm:$0xff] %vm253_vm1, %v8680_v34  ;;  %v4132_v29 = vld [vmem:[#allocation2 + $0x111] sm:$0xff] }
 0x3d7   : > { %3043 = vrot.lane.b32.xlu0 %v8567_v21, %s7156_s7  ;;  %4163 = vst.msk [vmem:[#allocation3 + $0xc8] sm:$0xff] %vm253_vm1, %v4131_v55  ;;  %4164 = vst.msk [vmem:[#allocation3 + $0xd8] sm:$0xff] %vm253_vm1, %v4132_v29  ;;  %v2982_v55 = vld [vmem:[#allocation2 + $0xf1] sm:$0xff] }
 0x3d8   : > { %v2665_v36 = vmax.f32 %v2579_v51, 0.0 }
 0x3d9   : > { %v2583_v50 = vpop.f32.mrb[14].mxu1  ;;  %v8688_v49 = vld [vmem:[#allocation2 + $0x127] sm:$0xff] }
 0x3da   : > { %2697 = vst.msk [vmem:[#allocation2 + $0x148] sm:$0xff] %vm253_vm1, %v2665_v36  ;;  %v2584_v30 = vadd.f32 %v8448_v60, %v2583_v50  ;;  %v2585_v14 = vpop.f32.mrb[15].mxu1  ;;  %3233 = vrot.lane.b32.xlu1 %v8569_v40, %s7157_s10  ;;  %2761 = vst.msk [vmem:[#allocation3 + $0x120] sm:$0xff] %vm253_vm1, %v8688_v49 }
 0x3db   : > { %3997 = vrot.lane.b32.xlu0 %v2782_v15, %s7162_s16 }
 0x3dc   : > { %v2666_v2 = vmax.f32 %v2584_v30, 0.0 }
 0x3dd   : > { %v2588_v0 = vpop.f32.mrb[16].mxu1  ;;  %v8701_v1 = vld [vmem:[#allocation2 + $0x12f] sm:$0xff] }
 0x3de   : > { %2698 = vst.msk [vmem:[#allocation2 + $0x150] sm:$0xff] %vm253_vm1, %v2666_v2  ;;  %v2589_v4 = vadd.f32 %v8448_v60, %v2588_v0  ;;  %v2590_v19 = vpop.f32.mrb[17].mxu1  ;;  %3805 = vrot.lane.b32.xlu1 %v8569_v40, %s7161_s26  ;;  %v4133_v45 = vld [vmem:[#allocation2 + $0x129] sm:$0xff]  ;;  %2762 = vst.msk [vmem:[#allocation3 + $0x130] sm:$0xff] %vm253_vm1, %v8701_v1  ;;  %v4134_v39 = vld [vmem:[#allocation2 + $0x131] sm:$0xff] }
 0x3df   : > { %3615 = vrot.lane.b32.xlu0 %v8567_v21, %s7159_s12  ;;  %4165 = vst.msk [vmem:[#allocation3 + $0xe8] sm:$0xff] %vm253_vm1, %v4133_v45  ;;  %4166 = vst.msk [vmem:[#allocation3 + $0xf8] sm:$0xff] %vm253_vm1, %v4134_v39  ;;  %v8714_v21 = vld [vmem:[#allocation2 + $0x88] sm:$0xff] }
 0x3e0   : > { %v2667_v7 = vmax.f32 %v2589_v4, 0.0  ;;  %v8781_v39 = vld [vmem:[#allocation2 + $0xe9] sm:$0xff] }
 0x3e1   : > { %v2593_v54 = vpop.f32.mrb[18].mxu1  ;;  %v8709_v56 = vld [vmem:[#allocation2 + $0x147] sm:$0xff] }
 0x3e2   : > { %2699 = vst.msk [vmem:[#allocation2 + $0x168] sm:$0xff] %vm253_vm1, %v2667_v7  ;;  %v2594_v40 = vadd.f32 %v8448_v60, %v2593_v54  ;;  %v2595_v58 = vpop.f32.mrb[19].mxu1  ;;  %3425 = vrot.lane.b32.xlu1 %v2782_v15, %s7158_s11  ;;  %2763 = vst.msk [vmem:[#allocation3 + $0x140] sm:$0xff] %vm253_vm1, %v8709_v56 }
 0x3e3   : > { %2855 = vrot.lane.b32.xlu0 %v8714_v21, %s7155_s30 }
 0x3e4   : > { %v2668_v9 = vmax.f32 %v2594_v40, 0.0 }
 0x3e5   : > { %v2598_v26 = vpop.f32.mrb[20].mxu1  ;;  %v8724_v43 = vld [vmem:[#allocation2 + $0x14f] sm:$0xff] }
 0x3e6   : > { %2700 = vst.msk [vmem:[#allocation2 + $0x170] sm:$0xff] %vm253_vm1, %v2668_v9  ;;  %v2599_v13 = vadd.f32 %v8448_v60, %v2598_v26  ;;  %v2600_v47 = vpop.f32.mrb[21].mxu1  ;;  %3807 = vrot.lane.b32.xlu1 %v8578_v53, %s7161_s26  ;;  %v4135_v57 = vld [vmem:[#allocation2 + $0x149] sm:$0xff]  ;;  %2764 = vst.msk [vmem:[#allocation3 + $0x150] sm:$0xff] %vm253_vm1, %v8724_v43  ;;  %v4136_v18 = vld [vmem:[#allocation2 + $0x151] sm:$0xff] }
 0x3e7   : > { %2867 = vrot.lane.b32.xlu0 %v2789_v17, %s7155_s30  ;;  %4167 = vst.msk [vmem:[#allocation3 + $0x108] sm:$0xff] %vm253_vm1, %v4135_v57  ;;  %4168 = vst.msk [vmem:[#allocation3 + $0x118] sm:$0xff] %vm253_vm1, %v4136_v18  ;;  %v8791_v9 = vld [vmem:[#allocation2 + $0xa8] sm:$0xff]  ;;  %v8801_v18 = vld [vmem:[#allocation2 + $0xb0] sm:$0xff] }
 0x3e8   : > { %v2669_v12 = vmax.f32 %v2599_v13, 0.0 }
 0x3e9   : > { %v2603_v62 = vpop.f32.mrb[22].mxu1  ;;  %v8733_v52 = vld [vmem:[#allocation2 + $0x167] sm:$0xff] }
 0x3ea   : > { %2701 = vst.msk [vmem:[#allocation2 + $0x188] sm:$0xff] %vm253_vm1, %v2669_v12  ;;  %v2604_v32 = vadd.f32 %v8448_v60, %v2603_v62  ;;  %v2605_v25 = vpop.f32.mrb[23].mxu1  ;;  %2857 = vrot.lane.b32.xlu1 %v8731_v3, %s7155_s30  ;;  %2765 = vst.msk [vmem:[#allocation3 + $0x160] sm:$0xff] %vm253_vm1, %v8733_v52 }
 0x3eb   : > { %3235 = vrot.lane.b32.xlu0 %v8578_v53, %s7157_s10  ;;  %v8809_v25 = vld [vmem:[#allocation2 + $0x108] sm:$0xff] }
 0x3ec   : > { %v2670_v5 = vmax.f32 %v2604_v32, 0.0 }
 0x3ed   : > { %v2608_v8 = vpop.f32.mrb[24].mxu1  ;;  %v8746_v10 = vld [vmem:[#allocation2 + $0x16f] sm:$0xff] }
 0x3ee   : > { %2702 = vst.msk [vmem:[#allocation2 + $0x190] sm:$0xff] %vm253_vm1, %v2670_v5  ;;  %v2609_v33 = vadd.f32 %v8448_v60, %v2608_v8  ;;  %v2610_v42 = vpop.f32.mrb[25].mxu1  ;;  %2869 = vrot.lane.b32.xlu1 %v2790_v27, %s7155_s30  ;;  %v4137_v28 = vld [vmem:[#allocation2 + $0x169] sm:$0xff]  ;;  %2766 = vst.msk [vmem:[#allocation3 + $0x170] sm:$0xff] %vm253_vm1, %v8746_v10  ;;  %v4138_v53 = vld [vmem:[#allocation2 + $0x171] sm:$0xff] }
 0x3ef   : > { %3247 = vrot.lane.b32.xlu0 %v8645_v24, %s7157_s10  ;;  %4169 = vst.msk [vmem:[#allocation3 + $0x128] sm:$0xff] %vm253_vm1, %v4137_v28  ;;  %4170 = vst.msk [vmem:[#allocation3 + $0x138] sm:$0xff] %vm253_vm1, %v4138_v53  ;;  %v8815_v8 = vld [vmem:[#allocation2 + $0x110] sm:$0xff] }
 0x3f0   : > { %v2671_v15 = vmax.f32 %v2609_v33, 0.0  ;;  %v8828_v42 = vld [vmem:[#allocation2 + $0xb1] sm:$0xff] }
 0x3f1   : > { %v2613_v20 = vpop.f32.mrb[26].mxu1  ;;  %v8754_v23 = vld [vmem:[#allocation2 + $0x187] sm:$0xff] }
 0x3f2   : > { %2703 = vst.msk [vmem:[#allocation2 + $0x1a8] sm:$0xff] %vm253_vm1, %v2671_v15  ;;  %v2614_v31 = vadd.f32 %v8448_v60, %v2613_v20  ;;  %v2615_v48 = vpop.f32.mrb[27].mxu1  ;;  %3049 = vrot.lane.b32.xlu1 %v8587_v59, %s7156_s7  ;;  %2767 = vst.msk [vmem:[#allocation3 + $0x180] sm:$0xff] %vm253_vm1, %v8754_v23  ;;  %v8839_v20 = vld [vmem:[#allocation2 + $0x111] sm:$0xff] }
 0x3f3   : > { %3999 = vrot.lane.b32.xlu0 %v8714_v21, %s7162_s16 }
 0x3f4   : > { %v2672_v51 = vmax.f32 %v2614_v31, 0.0  ;;  %v8843_v31 = vld [vmem:[#allocation2 + $0xa9] sm:$0xff] }
 0x3f5   : > { %v2618_v22 = vpop.f32.mrb[28].mxu1  ;;  %v8767_v50 = vld [vmem:[#allocation2 + $0x18f] sm:$0xff] }
 0x3f6   : > { %2704 = vst.msk [vmem:[#allocation2 + $0x1b0] sm:$0xff] %vm253_vm1, %v2672_v51  ;;  %v2619_v29 = vadd.f32 %v8448_v60, %v2618_v22  ;;  %v2620_v36 = vpop.f32.mrb[29].mxu1  ;;  %3061 = vrot.lane.b32.xlu1 %v2982_v55, %s7156_s7  ;;  %v4139_v30 = vld [vmem:[#allocation2 + $0x189] sm:$0xff]  ;;  %2768 = vst.msk [vmem:[#allocation3 + $0x190] sm:$0xff] %vm253_vm1, %v8767_v50  ;;  %v4140_v14 = vld [vmem:[#allocation2 + $0x191] sm:$0xff] }
 0x3f7   : > { %3047 = vrot.lane.b32.xlu0 %v8589_v6, %s7156_s7  ;;  %4171 = vst.msk [vmem:[#allocation3 + $0x148] sm:$0xff] %vm253_vm1, %v4139_v30  ;;  %4172 = vst.msk [vmem:[#allocation3 + $0x158] sm:$0xff] %vm253_vm1, %v4140_v14  ;;  %v8861_v36 = vld [vmem:[#allocation2 + $0x109] sm:$0xff] }
 0x3f8   : > { %v2673_v2 = vmax.f32 %v2619_v29, 0.0 }
 0x3f9   : > { %v2623_v0 = vpop.f32.mrb[30].mxu1  ;;  %v8775_v4 = vld [vmem:[#allocation2 + $0x1a7] sm:$0xff] }
 0x3fa   : > { %10768 = vst [vmem:[#allocation6_spill] sm:$0xff] %v8775_v4  ;;  %2705 = vst.msk [vmem:[#allocation2 + $0x1c8] sm:$0xff] %vm253_vm1, %v2673_v2  ;;  %v2624_v19 = vadd.f32 %v8448_v60, %v2623_v0  ;;  %v2625_v45 = vpop.f32.mrb[31].mxu1  ;;  %3237 = vrot.lane.b32.xlu1 %v8594_v61, %s7157_s10  ;;  %v8869_v2 = vld [vmem:[#allocation2 + $0xc8] sm:$0xff] }
 0x3fb   : > { %2769 = vst.msk [vmem:[#allocation3 + $0x1a0] sm:$0xff] %vm253_vm1, %v8775_v4  ;;  %3059 = vrot.lane.b32.xlu0 %v8781_v39, %s7156_s7  ;;  %v8875_v45 = vld [vmem:[#allocation2 + $0xd0] sm:$0xff] }
 0x3fc   : > { %v2674_v7 = vmax.f32 %v2624_v19, 0.0 }
 0x3fd   : > { %v2628_v54 = vpop.f32.mrb[32].mxu1  ;;  %v8793_v26 = vld [vmem:[#allocation2 + $0x1af] sm:$0xff] }
 0x3fe   : > { %2706 = vst.msk [vmem:[#allocation2 + $0x1d0] sm:$0xff] %vm253_vm1, %v2674_v7  ;;  %v2629_v40 = vadd.f32 %v8448_v60, %v2628_v54  ;;  %v2630_v58 = vpop.f32.mrb[33].mxu1  ;;  %3249 = vrot.lane.b32.xlu1 %v8657_v63, %s7157_s10  ;;  %v4141_v13 = vld [vmem:[#allocation2 + $0x1a9] sm:$0xff]  ;;  %2770 = vst.msk [vmem:[#allocation3 + $0x1b0] sm:$0xff] %vm253_vm1, %v8793_v26  ;;  %v4142_v47 = vld [vmem:[#allocation2 + $0x1b1] sm:$0xff] }
 0x3ff   : > { %2859 = vrot.lane.b32.xlu0 %v8791_v9, %s7155_s30  ;;  %4173 = vst.msk [vmem:[#allocation3 + $0x168] sm:$0xff] %vm253_vm1, %v4141_v13  ;;  %4174 = vst.msk [vmem:[#allocation3 + $0x178] sm:$0xff] %vm253_vm1, %v4142_v47  ;;  %v8879_v7 = vld [vmem:[#allocation2 + $0x128] sm:$0xff]  ;;  %v8884_v58 = vld [vmem:[#allocation2 + $0x130] sm:$0xff] }
 0x400   : > { %v2675_v17 = vmax.f32 %v2629_v40, 0.0 }
 0x401   : > { %v2633_v57 = vpop.f32.mrb[34].mxu1  ;;  %v8803_v12 = vld [vmem:[#allocation2 + $0x1c7] sm:$0xff] }
 0x402   : > { %2707 = vst.msk [vmem:[#allocation2 + $0x1e8] sm:$0xff] %vm253_vm1, %v2675_v17  ;;  %v2634_v62 = vadd.f32 %v8448_v60, %v2633_v57  ;;  %v2635_v32 = vpop.f32.mrb[35].mxu1  ;;  %2861 = vrot.lane.b32.xlu1 %v8801_v18, %s7155_s30  ;;  %2771 = vst.msk [vmem:[#allocation3 + $0x1c0] sm:$0xff] %vm253_vm1, %v8803_v12  ;;  %v8892_v17 = vld [vmem:[#allocation2 + $0xd1] sm:$0xff] }
 0x403   : > { %2871 = vrot.lane.b32.xlu0 %v8809_v25, %s7155_s30  ;;  %v8899_v32 = vld [vmem:[#allocation2 + $0x131] sm:$0xff] }
 0x404   : > { %v2676_v5 = vmax.f32 %v2634_v62, 0.0 }
 0x405   : > { %v8820_v60 = vld [vmem:[#allocation2 + $0x1cf] sm:$0xff] }
 0x406   : > { %2708 = vst.msk [vmem:[#allocation2 + $0x1f0] sm:$0xff] %vm253_vm1, %v2676_v5  ;;  %2873 = vrot.lane.b32.xlu1 %v8815_v8, %s7155_s30  ;;  %v4143_v27 = vld [vmem:[#allocation2 + $0x1c9] sm:$0xff]  ;;  %2772 = vst.msk [vmem:[#allocation3 + $0x1d0] sm:$0xff] %vm253_vm1, %v8820_v60  ;;  %v4144_v33 = vld [vmem:[#allocation2 + $0x1d1] sm:$0xff] }
 0x407   : > { %3239 = vrot.lane.b32.xlu0 %v8603_v35, %s7157_s10  ;;  %4175 = vst.msk [vmem:[#allocation3 + $0x188] sm:$0xff] %vm253_vm1, %v4143_v27  ;;  %4176 = vst.msk [vmem:[#allocation3 + $0x198] sm:$0xff] %vm253_vm1, %v4144_v33  ;;  %v8904_v5 = vld [vmem:[#allocation2 + $0xc9] sm:$0xff] }
 0x409   : > { %v8830_v28 = vld [vmem:[#allocation2 + $0x1e7] sm:$0xff] }
 0x40a   : > { %3053 = vrot.lane.b32.xlu1 %v8828_v42, %s7156_s7  ;;  %2773 = vst.msk [vmem:[#allocation3 + $0x1e0] sm:$0xff] %vm253_vm1, %v8830_v28 }
 0x40b   : > { %3251 = vrot.lane.b32.xlu0 %v8668_v11, %s7157_s10 }
 0x40c   : > { %v3416_v53 = vpop.permute.xlu1 %3415  ;;  %v2844_v15 = vpop.permute.xlu0 %2843 }
 0x40d   : > { %2937 = vst.msk [vmem:[#allocation3 + $0x20] sm:$0xff] %vm981_vm3, %v2844_v15  ;;  %v8845_v48 = vld [vmem:[#allocation2 + $0x1ef] sm:$0xff] }
 0x40e   : > { %3065 = vrot.lane.b32.xlu1 %v8839_v20, %s7156_s7  ;;  %10769 = vst [vmem:[#allocation7_spill] sm:$0xff] %v8845_v48  ;;  %v8847_v51 = vld [vmem:[#allocation2 + $0x1f1] sm:$0xff]  ;;  %2774 = vst.msk [vmem:[#allocation3 + $0x1f0] sm:$0xff] %vm253_vm1, %v8845_v48  ;;  %v4145_v22 = vld [vmem:[#allocation2 + $0x1e9] sm:$0xff] }
 0x40f   : > { %10770 = vst [vmem:[#allocation8_spill] sm:$0xff] %v8847_v51  ;;  %3051 = vrot.lane.b32.xlu0 %v8843_v31, %s7156_s7  ;;  %4178 = vst.msk [vmem:[#allocation3 + $0x1b8] sm:$0xff] %vm253_vm1, %v8847_v51  ;;  %v9007_v48 = vld [vmem:[#allocation2 + $0x1b0] sm:$0xff] }
 0x410   : > { %v2846_v55 = vpop.permute.xlu1 %2845  ;;  %v3224_v29 = vpop.permute.xlu0 %3223  ;;  %4177 = vst.msk [vmem:[#allocation3 + $0x1a8] sm:$0xff] %vm253_vm1, %v4145_v22  ;;  %10775 = vst [vmem:[#allocation13_spill] sm:$0xff] %v9007_v48 }
 0x411   : > { %2938 = vst.msk [vmem:[#allocation3 + $0x30] sm:$0xff] %vm981_vm3, %v2846_v55  ;;  %v8921_v55 = vld [vmem:[#allocation2 + $0x148] sm:$0xff] }
 0x412   : > { %3319 = vst.msk [vmem:[#allocation3] sm:$0xff] %vm1367_vm5, %v3224_v29  ;;  %3241 = vrot.lane.b32.xlu1 %v8617_v44, %s7157_s10 }
 0x413   : > { %3511 = vst.msk [vmem:[#allocation3] sm:$0xff] %vm1560_vm6, %v3416_v53  ;;  %3063 = vrot.lane.b32.xlu0 %v8861_v36, %s7156_s7  ;;  %v8913_v53 = vld [vmem:[#allocation2 + $0x129] sm:$0xff] }
 0x414   : > { %v3038_v30 = vpop.permute.xlu1 %3037  ;;  %v3036_v14 = vpop.permute.xlu0 %3035 }
 0x415   : > { %3130 = vst.msk [vmem:[#allocation3 + $0x30] sm:$0xff] %vm1174_vm4, %v3038_v30  ;;  %3129 = vst.msk [vmem:[#allocation3 + $0x20] sm:$0xff] %vm1174_vm4, %v3036_v14 }
 0x416   : > { %3253 = vrot.lane.b32.xlu1 %v8680_v34, %s7157_s10 }
 0x417   : > { %2863 = vrot.lane.b32.xlu0 %v8869_v2, %s7155_s30 }
 0x418   : > { %v3226_v0 = vpop.permute.xlu1 %3225  ;;  %v3608_v19 = vpop.permute.xlu0 %3607 }
 0x419   : > { %3320 = vst.msk [vmem:[#allocation3 + $0x10] sm:$0xff] %vm1367_vm5, %v3226_v0  ;;  %v8926_v0 = vld [vmem:[#allocation2 + $0x150] sm:$0xff] }
 0x41a   : > { %3703 = vst.msk [vmem:[#allocation3] sm:$0xff] %vm1753_vm7, %v3608_v19  ;;  %2865 = vrot.lane.b32.xlu1 %v8875_v45, %s7155_s30  ;;  %v4186_v19 = vld [vmem:[#allocation3 + $0x18] sm:$0xff] }
 0x41b   : > { %2875 = vrot.lane.b32.xlu0 %v8879_v7, %s7155_s30 }
 0x41c   : > { %v3418_v54 = vpop.permute.xlu1 %3417  ;;  %v3610_v40 = vpop.permute.xlu0 %3609 }
 0x41d   : > { %3512 = vst.msk [vmem:[#allocation3 + $0x10] sm:$0xff] %vm1560_vm6, %v3418_v54 }
 0x41e   : > { %3704 = vst.msk [vmem:[#allocation3 + $0x10] sm:$0xff] %vm1753_vm7, %v3610_v40  ;;  %2877 = vrot.lane.b32.xlu1 %v8884_v58, %s7155_s30 }
 0x41f   : > { %3243 = vrot.lane.b32.xlu0 %v8624_v16, %s7157_s10 }
 0x420   : > { %v3800_v13 = vpop.permute.xlu1 %3799 }
 0x421   : > { %3895 = vst.msk [vmem:[#allocation3] sm:$0xff] %vm1947_vm8, %v3800_v13  ;;  %v2848_v47 = vpop.permute.xlu0 %2847  ;;  %v8934_v13 = vld [vmem:[#allocation2 + $0x151] sm:$0xff] }
 0x422   : > { %2939 = vst.msk [vmem:[#allocation3 + $0x40] sm:$0xff] %vm981_vm3, %v2848_v47  ;;  %3057 = vrot.lane.b32.xlu1 %v8892_v17, %s7156_s7  ;;  %v8940_v47 = vld [vmem:[#allocation2 + $0x149] sm:$0xff] }
 0x423   : > { %3255 = vrot.lane.b32.xlu0 %v8688_v49, %s7157_s10 }
 0x424   : > { %v3420_v57 = vpop.permute.xlu1 %3419 }
 0x425   : > { %v3228_v62 = vpop.permute.xlu0 %3227 }
 0x426   : > { %3321 = vst.msk [vmem:[#allocation3 + $0x20] sm:$0xff] %vm1367_vm5, %v3228_v62  ;;  %3069 = vrot.lane.b32.xlu1 %v8899_v32, %s7156_s7 }
 0x427   : > { %3513 = vst.msk [vmem:[#allocation3 + $0x20] sm:$0xff] %vm1560_vm6, %v3420_v57  ;;  %3055 = vrot.lane.b32.xlu0 %v8904_v5, %s7156_s7 }
 0x428   : > { %v2850_v27 = vpop.permute.xlu1 %2849 }
 0x429   : > { %2940 = vst.msk [vmem:[#allocation3 + $0x50] sm:$0xff] %vm981_vm3, %v2850_v27  ;;  %v3992_v33 = vpop.permute.xlu0 %3991  ;;  %v8948_v27 = vld [vmem:[#allocation2 + $0x168] sm:$0xff] }
 0x42a   : > { %4087 = vst.msk [vmem:[#allocation3] sm:$0xff] %vm2140_vm9, %v3992_v33  ;;  %3245 = vrot.lane.b32.xlu1 %v8637_v38, %s7157_s10 }
 0x42b   : > { %3067 = vrot.lane.b32.xlu0 %v8913_v53, %s7156_s7 }
 0x42c   : > { %v3042_v15 = vpop.permute.xlu1 %3041 }
 0x42d   : > { %3132 = vst.msk [vmem:[#allocation3 + $0x50] sm:$0xff] %vm1174_vm4, %v3042_v15  ;;  %v3040_v22 = vpop.permute.xlu0 %3039 }
 0x42e   : > { %3131 = vst.msk [vmem:[#allocation3 + $0x40] sm:$0xff] %vm1174_vm4, %v3040_v22  ;;  %3257 = vrot.lane.b32.xlu1 %v8701_v1, %s7157_s10  ;;  %v8953_v22 = vld [vmem:[#allocation2 + $0x170] sm:$0xff] }
 0x42f   : > { %2879 = vrot.lane.b32.xlu0 %v8921_v55, %s7155_s30 }
 0x430   : > { %v3230_v29 = vpop.permute.xlu1 %3229 }
 0x431   : > { %3322 = vst.msk [vmem:[#allocation3 + $0x30] sm:$0xff] %vm1367_vm5, %v3230_v29  ;;  %v3994_v30 = vpop.permute.xlu0 %3993  ;;  %v4183_v14 = vld [vmem:[#allocation3] sm:$0xff] }
 0x432   : > { %4435 = vmatmul.mubr.f32.vlgmr.msra.gmra.mrb[56].mxu0 %v4183_v14  ;;  %2881 = vrot.lane.b32.xlu1 %v8926_v0, %s7155_s30 }
 0x433   : > { %3259 = vrot.lane.b32.xlu0 %v8709_v56, %s7157_s10  ;;  %6857 = vmatprep.mubr.msk.f32.mxu0 %vm253_vm1, %v4186_v19 }
 0x434   : > { %v3802_v54 = vpop.permute.xlu1 %3801 }
 0x435   : > { %3896 = vst.msk [vmem:[#allocation3 + $0x10] sm:$0xff] %vm1947_vm8, %v3802_v54  ;;  %v3612_v40 = vpop.permute.xlu0 %3611  ;;  %v8961_v54 = vld [vmem:[#allocation2 + $0x171] sm:$0xff] }
 0x436   : > { %4088 = vst.msk [vmem:[#allocation3 + $0x10] sm:$0xff] %vm2140_vm9, %v3994_v30  ;;  %3073 = vrot.lane.b32.xlu1 %v8934_v13, %s7156_s7  ;;  %v4188_v30 = vld [vmem:[#allocation3 + $0x28] sm:$0xff] }
 0x437   : > { %3705 = vst.msk [vmem:[#allocation3 + $0x20] sm:$0xff] %vm1753_vm7, %v3612_v40  ;;  %3071 = vrot.lane.b32.xlu0 %v8940_v47, %s7156_s7  ;;  %v8966_v40 = vld [vmem:[#allocation2 + $0x169] sm:$0xff] }
 0x438   : > { %v3422_v57 = vpop.permute.xlu1 %3421 }
 0x439   : > { %3514 = vst.msk [vmem:[#allocation3 + $0x30] sm:$0xff] %vm1560_vm6, %v3422_v57  ;;  %v3614_v62 = vpop.permute.xlu0 %3613 }
 0x43a   : > { %3706 = vst.msk [vmem:[#allocation3 + $0x30] sm:$0xff] %vm1753_vm7, %v3614_v62  ;;  %3261 = vrot.lane.b32.xlu1 %v8724_v43, %s7157_s10 }
 0x43b   : > { %2883 = vrot.lane.b32.xlu0 %v8948_v27, %s7155_s30 }
 0x43c   : > { %v3804_v33 = vpop.permute.xlu1 %3803 }
 0x43d   : > { %3897 = vst.msk [vmem:[#allocation3 + $0x20] sm:$0xff] %vm1947_vm8, %v3804_v33  ;;  %v2852_v15 = vpop.permute.xlu0 %2851  ;;  %v4185_v29 = vld [vmem:[#allocation3 + $0x10] sm:$0xff]  ;;  %v8975_v33 = vld [vmem:[#allocation2 + $0x188] sm:$0xff] }
 0x43e   : > { %2941 = vst.msk [vmem:[#allocation3 + $0x60] sm:$0xff] %vm981_vm3, %v2852_v15  ;;  %2885 = vrot.lane.b32.xlu1 %v8953_v22, %s7155_s30  ;;  %4440 = vmatmul.mubr.f32.gmra.mrb[58].mxu0 %v4185_v29 }
 0x43f   : > { %3263 = vrot.lane.b32.xlu0 %v8733_v52, %s7157_s10  ;;  %6858 = vmatprep.mubr.msk.f32.mxu0 %vm253_vm1, %v4188_v30  ;;  %v8980_v30 = vld [vmem:[#allocation2 + $0x190] sm:$0xff] }
 0x440   : > { %v3424_v14 = vpop.permute.xlu1 %3423  ;;  %10771 = vst [vmem:[#allocation9_spill] sm:$0xff] %v8980_v30 }
 0x441   : > { %v3232_v19 = vpop.permute.xlu0 %3231 }
 0x442   : > { %3323 = vst.msk [vmem:[#allocation3 + $0x40] sm:$0xff] %vm1367_vm5, %v3232_v19  ;;  %3077 = vrot.lane.b32.xlu1 %v8961_v54, %s7156_s7 }
 0x443   : > { %3515 = vst.msk [vmem:[#allocation3 + $0x40] sm:$0xff] %vm1560_vm6, %v3424_v14  ;;  %3075 = vrot.lane.b32.xlu0 %v8966_v40, %s7156_s7 }
 0x444   : > { %v2854_v57 = vpop.permute.xlu1 %2853 }
 0x445   : > { %2942 = vst.msk [vmem:[#allocation3 + $0x70] sm:$0xff] %vm981_vm3, %v2854_v57  ;;  %v3996_v62 = vpop.permute.xlu0 %3995 }
 0x446   : > { %4089 = vst.msk [vmem:[#allocation3 + $0x20] sm:$0xff] %vm2140_vm9, %v3996_v62  ;;  %3265 = vrot.lane.b32.xlu1 %v8746_v10, %s7157_s10  ;;  %v8988_v62 = vld [vmem:[#allocation2 + $0x191] sm:$0xff] }
 0x447   : > { %2887 = vrot.lane.b32.xlu0 %v8975_v33, %s7155_s30  ;;  %10772 = vst [vmem:[#allocation10_spill] sm:$0xff] %v8988_v62 }
 0x448   : > { %v3046_v15 = vpop.permute.xlu1 %3045 }
 0x449   : > { %3134 = vst.msk [vmem:[#allocation3 + $0x70] sm:$0xff] %vm1174_vm4, %v3046_v15  ;;  %v3044_v29 = vpop.permute.xlu0 %3043  ;;  %v8992_v15 = vld [vmem:[#allocation2 + $0x189] sm:$0xff] }
 0x44a   : > { %3133 = vst.msk [vmem:[#allocation3 + $0x60] sm:$0xff] %vm1174_vm4, %v3044_v29  ;;  %2889 = vrot.lane.b32.xlu1 %v8980_v30, %s7155_s30  ;;  %10773 = vst [vmem:[#allocation11_spill] sm:$0xff] %v8992_v15  ;;  %v4190_v29 = vld [vmem:[#allocation3 + $0x38] sm:$0xff] }
 0x44b   : > { %3267 = vrot.lane.b32.xlu0 %v8754_v23, %s7157_s10 }
 0x44c   : > { %v3234_v14 = vpop.permute.xlu1 %3233 }
 0x44d   : > { %3324 = vst.msk [vmem:[#allocation3 + $0x50] sm:$0xff] %vm1367_vm5, %v3234_v14  ;;  %v3998_v19 = vpop.permute.xlu0 %3997  ;;  %v4187_v57 = vld [vmem:[#allocation3 + $0x20] sm:$0xff] }
 0x44e   : > { %4445 = vmatmul.mubr.f32.gmra.mrb[60].mxu0 %v4187_v57  ;;  %3081 = vrot.lane.b32.xlu1 %v8988_v62, %s7156_s7  ;;  %v9002_v57 = vld [vmem:[#allocation2 + $0x1a8] sm:$0xff] }
 0x44f   : > { %3079 = vrot.lane.b32.xlu0 %v8992_v15, %s7156_s7  ;;  %6859 = vmatprep.mubr.msk.f32.mxu0 %vm253_vm1, %v4190_v29  ;;  %10774 = vst [vmem:[#allocation12_spill] sm:$0xff] %v9002_v57 }
 0x450   : > { %v3806_v37 = vpop.permute.xlu1 %3805 }
 0x451   : > { %3898 = vst.msk [vmem:[#allocation3 + $0x30] sm:$0xff] %vm1947_vm8, %v3806_v37  ;;  %v3616_v14 = vpop.permute.xlu0 %3615 }
 0x452   : > { %4090 = vst.msk [vmem:[#allocation3 + $0x30] sm:$0xff] %vm2140_vm9, %v3998_v19  ;;  %3269 = vrot.lane.b32.xlu1 %v8767_v50, %s7157_s10 }
 0x453   : > { %3707 = vst.msk [vmem:[#allocation3 + $0x40] sm:$0xff] %vm1753_vm7, %v3616_v14  ;;  %2891 = vrot.lane.b32.xlu0 %v9002_v57, %s7155_s30  ;;  %v9015_v14 = vld [vmem:[#allocation2 + $0x1b1] sm:$0xff] }
 0x454   : > { %v3426_v51 = vpop.permute.xlu1 %3425  ;;  %10776 = vst [vmem:[#allocation14_spill] sm:$0xff] %v9015_v14 }
 0x455   : > { %3516 = vst.msk [vmem:[#allocation3 + $0x50] sm:$0xff] %vm1560_vm6, %v3426_v51  ;;  %v2856_v29 = vpop.permute.xlu0 %2855  ;;  %v9020_v51 = vld [vmem:[#allocation2 + $0x1a9] sm:$0xff] }
 0x456   : > { %2943 = vst.msk [vmem:[#allocation3 + $0x80] sm:$0xff] %vm981_vm3, %v2856_v29  ;;  %2893 = vrot.lane.b32.xlu1 %v9007_v48, %s7155_s30  ;;  %10777 = vst [vmem:[#allocation15_spill] sm:$0xff] %v9020_v51  ;;  %v4192_v29 = vld [vmem:[#allocation3 + $0x48] sm:$0xff]  ;;  %v2638_v48 = vpop.f32.mrb[36].mxu1 }
 0x457   : > { %3271 = vrot.lane.b32.xlu0 %v8775_v4, %s7157_s10  ;;  %v2640_v15 = vpop.f32.mrb[37].mxu1 }
 0x458   : > { %v3808_v37 = vpop.permute.xlu1 %3807  ;;  %v2643_v30 = vpop.f32.mrb[38].mxu1 }
 0x459   : > { %3899 = vst.msk [vmem:[#allocation3 + $0x40] sm:$0xff] %vm1947_vm8, %v3808_v37  ;;  %v2868_v19 = vpop.permute.xlu0 %2867  ;;  %v4189_v62 = vld [vmem:[#allocation3 + $0x30] sm:$0xff]  ;;  %v7143_v37 = vld [vmem:[%s10743_s4] ss:$0 sm:$0xff] }
 0x45a   : > { %2949 = vst.msk [vmem:[#allocation3 + $0xe0] sm:$0xff] %vm981_vm3, %v2868_v19  ;;  %3085 = vrot.lane.b32.xlu1 %v9015_v14, %s7156_s7  ;;  %4450 = vmatmul.mubr.f32.gmra.mrb[62].mxu0 %v4189_v62  ;;  %v2639_v57 = vadd.f32 %v7143_v37, %v2638_v48  ;;  %v9032_v62 = vld [vmem:[#allocation2 + $0x1c8] sm:$0xff] }
 0x45b   : > { %3083 = vrot.lane.b32.xlu0 %v9020_v51, %s7156_s7  ;;  %6860 = vmatprep.mubr.msk.f32.mxu0 %vm253_vm1, %v4192_v29  ;;  %v2644_v29 = vadd.f32 %v7143_v37, %v2643_v30  ;;  %v2645_v51 = vpop.f32.mrb[39].mxu1 }
 0x45c   : > { %v2858_v19 = vpop.permute.xlu1 %2857  ;;  %v2677_v4 = vmax.f32 %v2639_v57, 0.0  ;;  %v9053_v51 = vld [vmem:[#allocation2 + $0x1c9] sm:$0xff] }
 0x45d   : > { %2944 = vst.msk [vmem:[#allocation3 + $0x90] sm:$0xff] %vm981_vm3, %v2858_v19  ;;  %v3236_v14 = vpop.permute.xlu0 %3235  ;;  %v2678_v15 = vmax.f32 %v2644_v29, 0.0  ;;  %v9040_v19 = vld [vmem:[#allocation2 + $0x1d0] sm:$0xff]  ;;  %10779 = vst [vmem:[#allocation17_spill] sm:$0xff] %v9053_v51 }
 0x45e   : > { %3325 = vst.msk [vmem:[#allocation3 + $0x60] sm:$0xff] %vm1367_vm5, %v3236_v14  ;;  %3273 = vrot.lane.b32.xlu1 %v8793_v26, %s7157_s10  ;;  %v9048_v14 = vld [vmem:[#allocation2 + $0x1d1] sm:$0xff] }
 0x45f   : > { %2895 = vrot.lane.b32.xlu0 %v9032_v62, %s7155_s30  ;;  %2709 = vst.msk [vmem:[#allocation2 + $0x208] sm:$0xff] %vm253_vm1, %v2677_v4  ;;  %2710 = vst.msk [vmem:[#allocation2 + $0x210] sm:$0xff] %vm253_vm1, %v2678_v15 }
 0x460   : > { %v2870_v48 = vpop.permute.xlu1 %2869  ;;  %10778 = vst [vmem:[#allocation16_spill] sm:$0xff] %v9048_v14 }
 0x461   : > { %2950 = vst.msk [vmem:[#allocation3 + $0xf0] sm:$0xff] %vm981_vm3, %v2870_v48  ;;  %v9038_v57 = vpop.permute.xlu0 %3247  ;;  %v9061_v48 = vld [vmem:[#allocation2 + $0x1e8] sm:$0xff] }
 0x462   : > { %2897 = vrot.lane.b32.xlu1 %v9040_v19, %s7155_s30  ;;  %10780 = vst [vmem:[#allocation18_spill] sm:$0xff] %v9061_v48 }
 0x463   : > { %3275 = vrot.lane.b32.xlu0 %v8803_v12, %s7157_s10 }
 0x464   : > { %v3050_v30 = vpop.permute.xlu1 %3049 }
 0x465   : > { %3136 = vst.msk [vmem:[#allocation3 + $0x90] sm:$0xff] %vm1174_vm4, %v3050_v30  ;;  %v4000_v4 = vpop.permute.xlu0 %3999 }
 0x466   : > { %4091 = vst.msk [vmem:[#allocation3 + $0x40] sm:$0xff] %vm2140_vm9, %v4000_v4  ;;  %3089 = vrot.lane.b32.xlu1 %v9048_v14, %s7156_s7  ;;  %v9065_v15 = vld [vmem:[#allocation2 + $0x209] sm:$0xff] }
 0x467   : > { %3087 = vrot.lane.b32.xlu0 %v9053_v51, %s7156_s7  ;;  %10781 = vst [vmem:[#allocation19_spill] sm:$0xff] %v9065_v15  ;;  %4179 = vst.msk [vmem:[#allocation3 + $0x1c8] sm:$0xff] %vm253_vm1, %v9065_v15  ;;  %v9070_v14 = vld [vmem:[#allocation2 + $0x1f0] sm:$0xff] }
 0x468   : > { %v3062_v37 = vpop.permute.xlu1 %3061  ;;  %v2998_v51 = vld [vmem:[#allocation2 + $0x1f1] sm:$0xff] }
 0x469   : > { %3142 = vst.msk [vmem:[#allocation3 + $0xf0] sm:$0xff] %vm1174_vm4, %v3062_v37  ;;  %v3048_v29 = vpop.permute.xlu0 %3047 }
 0x46a   : > { %3135 = vst.msk [vmem:[#allocation3 + $0x80] sm:$0xff] %vm1174_vm4, %v3048_v29  ;;  %3277 = vrot.lane.b32.xlu1 %v8820_v60, %s7157_s10  ;;  %v9072_v29 = vld [vmem:[#allocation2 + $0x211] sm:$0xff] }
 0x46b   : > { %2899 = vrot.lane.b32.xlu0 %v9061_v48, %s7155_s30  ;;  %10782 = vst [vmem:[#allocation20_spill] sm:$0xff] %v9072_v29  ;;  %v4194_v48 = vld [vmem:[#allocation3 + $0x58] sm:$0xff]  ;;  %4180 = vst.msk [vmem:[#allocation3 + $0x1d8] sm:$0xff] %vm253_vm1, %v9072_v29 }
 0x46c   : > { %v3238_v30 = vpop.permute.xlu1 %3237 }
 0x46d   : > { %3326 = vst.msk [vmem:[#allocation3 + $0x70] sm:$0xff] %vm1367_vm5, %v3238_v30  ;;  %v3060_v4 = vpop.permute.xlu0 %3059  ;;  %v4191_v37 = vld [vmem:[#allocation3 + $0x40] sm:$0xff] }
 0x46e   : > { %3141 = vst.msk [vmem:[#allocation3 + $0xe0] sm:$0xff] %vm1174_vm4, %v3060_v4  ;;  %4455 = vmatmul.mubr.f32.gmra.mrb[64].mxu0 %v4191_v37  ;;  %2901 = vrot.lane.b32.xlu1 %v9070_v14, %s7155_s30  ;;  %v9084_v4 = vld [vmem:[#allocation2 + $0x1e9] sm:$0xff] }
 0x46f   : > { %3279 = vrot.lane.b32.xlu0 %v8830_v28, %s7157_s10  ;;  %6861 = vmatprep.mubr.msk.f32.mxu0 %vm253_vm1, %v4194_v48 }
 0x470   : > { %v3250_v30 = vpop.permute.xlu1 %3249 }
 0x471   : > { %v2860_v15 = vpop.permute.xlu0 %2859 }
 0x472   : > { %2945 = vst.msk [vmem:[#allocation3 + $0xa0] sm:$0xff] %vm981_vm3, %v2860_v15  ;;  %3093 = vrot.lane.b32.xlu1 %v2998_v51, %s7156_s7 }
 0x473   : > { %3091 = vrot.lane.b32.xlu0 %v9084_v4, %s7156_s7 }
 0x474   : > { %v2862_v37 = vpop.permute.xlu1 %2861 }
 0x475   : > { %2946 = vst.msk [vmem:[#allocation3 + $0xb0] sm:$0xff] %vm981_vm3, %v2862_v37  ;;  %v2872_v29 = vpop.permute.xlu0 %2871 }
 0x476   : > { %2951 = vst.msk [vmem:[#allocation3 + $0x100] sm:$0xff] %vm981_vm3, %v2872_v29  ;;  %3809 = vrot.lane.b32.xlu1 %v8594_v61, %s7161_s26 }
 0x477   : > { %3617 = vrot.lane.b32.xlu0 %v8560_v46, %s7159_s12 }
 0x478   : > { %v2874_v48 = vpop.permute.xlu1 %2873 }
 0x479   : > { %2952 = vst.msk [vmem:[#allocation3 + $0x110] sm:$0xff] %vm981_vm3, %v2874_v48  ;;  %v3240_v51 = vpop.permute.xlu0 %3239 }
 0x47a   : > { %3327 = vst.msk [vmem:[#allocation3 + $0x80] sm:$0xff] %vm1367_vm5, %v3240_v51  ;;  %3427 = vrot.lane.b32.xlu1 %v8714_v21, %s7158_s11 }
 0x47b   : > { %4001 = vrot.lane.b32.xlu0 %v8731_v3, %s7162_s16 }
 0x47c   : > { %v3054_v15 = vpop.permute.xlu1 %3053 }
 0x47d   : > { %3138 = vst.msk [vmem:[#allocation3 + $0xb0] sm:$0xff] %vm1174_vm4, %v3054_v15  ;;  %v3252_v29 = vpop.permute.xlu0 %3251 }
 0x47e   : > { %3333 = vst.msk [vmem:[#allocation3 + $0xe0] sm:$0xff] %vm1367_vm5, %v3252_v29  ;;  %3811 = vrot.lane.b32.xlu1 %v8603_v35, %s7161_s26 }
 0x47f   : > { %3619 = vrot.lane.b32.xlu0 %v8589_v6, %s7159_s12 }
 0x480   : > { %v3066_v46 = vpop.permute.xlu1 %3065 }
 0x481   : > { %3144 = vst.msk [vmem:[#allocation3 + $0x110] sm:$0xff] %vm1174_vm4, %v3066_v46  ;;  %v3052_v61 = vpop.permute.xlu0 %3051 }
 0x482   : > { %3137 = vst.msk [vmem:[#allocation3 + $0xa0] sm:$0xff] %vm1174_vm4, %v3052_v61  ;;  %3429 = vrot.lane.b32.xlu1 %v8731_v3, %s7158_s11 }
 0x483   : > { %4003 = vrot.lane.b32.xlu0 %v8791_v9, %s7162_s16 }
 0x484   : > { %v3242_v21 = vpop.permute.xlu1 %3241 }
 0x485   : > { %3328 = vst.msk [vmem:[#allocation3 + $0x90] sm:$0xff] %vm1367_vm5, %v3242_v21  ;;  %v3064_v37 = vpop.permute.xlu0 %3063 }
 0x486   : > { %3143 = vst.msk [vmem:[#allocation3 + $0x100] sm:$0xff] %vm1174_vm4, %v3064_v37  ;;  %3813 = vrot.lane.b32.xlu1 %v8617_v44, %s7161_s26 }
 0x487   : > { %3621 = vrot.lane.b32.xlu0 %v8587_v59, %s7159_s12 }
 0x488   : > { %v3254_v6 = vpop.permute.xlu1 %3253 }
 0x489   : > { %3334 = vst.msk [vmem:[#allocation3 + $0xf0] sm:$0xff] %vm1367_vm5, %v3254_v6  ;;  %v2864_v35 = vpop.permute.xlu0 %2863 }
 0x48a   : > { %2947 = vst.msk [vmem:[#allocation3 + $0xc0] sm:$0xff] %vm981_vm3, %v2864_v35  ;;  %3431 = vrot.lane.b32.xlu1 %v8791_v9, %s7158_s11 }
 0x48b   : > { %4005 = vrot.lane.b32.xlu0 %v8801_v18, %s7162_s16 }
 0x48c   : > { %v2866_v3 = vpop.permute.xlu1 %2865 }
 0x48d   : > { %2948 = vst.msk [vmem:[#allocation3 + $0xd0] sm:$0xff] %vm981_vm3, %v2866_v3  ;;  %v2876_v48 = vpop.permute.xlu0 %2875 }
 0x48e   : > { %2953 = vst.msk [vmem:[#allocation3 + $0x120] sm:$0xff] %vm981_vm3, %v2876_v48  ;;  %3815 = vrot.lane.b32.xlu1 %v8624_v16, %s7161_s26 }
 0x48f   : > { %3623 = vrot.lane.b32.xlu0 %v8843_v31, %s7159_s12 }
 0x490   : > { %v2878_v59 = vpop.permute.xlu1 %2877 }
 0x491   : > { %2954 = vst.msk [vmem:[#allocation3 + $0x130] sm:$0xff] %vm981_vm3, %v2878_v59  ;;  %v3244_v44 = vpop.permute.xlu0 %3243 }
 0x492   : > { %3329 = vst.msk [vmem:[#allocation3 + $0xa0] sm:$0xff] %vm1367_vm5, %v3244_v44  ;;  %3433 = vrot.lane.b32.xlu1 %v8801_v18, %s7158_s11 }
 0x493   : > { %4007 = vrot.lane.b32.xlu0 %v8869_v2, %s7162_s16 }
 0x494   : > { %v3058_v9 = vpop.permute.xlu1 %3057 }
 0x495   : > { %3140 = vst.msk [vmem:[#allocation3 + $0xd0] sm:$0xff] %vm1174_vm4, %v3058_v9  ;;  %v3256_v51 = vpop.permute.xlu0 %3255 }
 0x496   : > { %3332 = vst.msk [vmem:[#allocation3 + $0xd0] sm:$0xff] %vm1367_vm5, %v3250_v30  ;;  %3335 = vst.msk [vmem:[#allocation3 + $0x100] sm:$0xff] %vm1367_vm5, %v3256_v51  ;;  %3817 = vrot.lane.b32.xlu1 %v8637_v38, %s7161_s26 }
 0x497   : > { %3625 = vrot.lane.b32.xlu0 %v8828_v42, %s7159_s12 }
 0x498   : > { %v3070_v16 = vpop.permute.xlu1 %3069 }
 0x499   : > { %3146 = vst.msk [vmem:[#allocation3 + $0x130] sm:$0xff] %vm1174_vm4, %v3070_v16  ;;  %v3056_v18 = vpop.permute.xlu0 %3055 }
 0x49a   : > { %3139 = vst.msk [vmem:[#allocation3 + $0xc0] sm:$0xff] %vm1174_vm4, %v3056_v18  ;;  %3435 = vrot.lane.b32.xlu1 %v8869_v2, %s7158_s11  ;;  %v10783_v18 = vld [vmem:[#allocation9_spill] sm:$0xff] }
 0x49b   : > { %3331 = vst.msk [vmem:[#allocation3 + $0xc0] sm:$0xff] %vm1367_vm5, %v9038_v57  ;;  %4009 = vrot.lane.b32.xlu0 %v8875_v45, %s7162_s16  ;;  %v3937_v57 = vld [vmem:[#allocation2 + $0xe8] sm:$0xff] }
 0x49c   : > { %v3246_v31 = vpop.permute.xlu1 %3245 }
 0x49d   : > { %3330 = vst.msk [vmem:[#allocation3 + $0xb0] sm:$0xff] %vm1367_vm5, %v3246_v31  ;;  %v3068_v38 = vpop.permute.xlu0 %3067 }
 0x49e   : > { %3145 = vst.msk [vmem:[#allocation3 + $0x120] sm:$0xff] %vm1174_vm4, %v3068_v38  ;;  %3819 = vrot.lane.b32.xlu1 %v8645_v24, %s7161_s26 }
 0x49f   : > { %3627 = vrot.lane.b32.xlu0 %v8904_v5, %s7159_s12 }
 0x4a0   : > { %v3258_v42 = vpop.permute.xlu1 %3257 }
 0x4a1   : > { %3336 = vst.msk [vmem:[#allocation3 + $0x110] sm:$0xff] %vm1367_vm5, %v3258_v42  ;;  %v2880_v2 = vpop.permute.xlu0 %2879  ;;  %v4198_v42 = vld [vmem:[#allocation3 + $0x78] sm:$0xff] }
 0x4a2   : > { %2955 = vst.msk [vmem:[#allocation3 + $0x140] sm:$0xff] %vm981_vm3, %v2880_v2  ;;  %3437 = vrot.lane.b32.xlu1 %v8875_v45, %s7158_s11  ;;  %v3938_v45 = vld [vmem:[#allocation2 + $0xf0] sm:$0xff]  ;;  %v10785_v2 = vld [vmem:[#allocation11_spill] sm:$0xff] }
 0x4a3   : > { %4011 = vrot.lane.b32.xlu0 %v3937_v57, %s7162_s16 }
 0x4a4   : > { %v2882_v30 = vpop.permute.xlu1 %2881 }
 0x4a5   : > { %2956 = vst.msk [vmem:[#allocation3 + $0x150] sm:$0xff] %vm981_vm3, %v2882_v30  ;;  %v3260_v15 = vpop.permute.xlu0 %3259  ;;  %v10786_v30 = vld [vmem:[#allocation12_spill] sm:$0xff] }
 0x4a6   : > { %3337 = vst.msk [vmem:[#allocation3 + $0x120] sm:$0xff] %vm1367_vm5, %v3260_v15  ;;  %3821 = vrot.lane.b32.xlu1 %v8657_v63, %s7161_s26  ;;  %v9308_v15 = vld [vmem:[%s10743_s4 + $0x1] ss:$0 sm:$0xff] }
 0x4a7   : > { %3629 = vrot.lane.b32.xlu0 %v8892_v17, %s7159_s12 }
 0x4a8   : > { %v3074_v24 = vpop.permute.xlu1 %3073 }
 0x4a9   : > { %3148 = vst.msk [vmem:[#allocation3 + $0x150] sm:$0xff] %vm1174_vm4, %v3074_v24  ;;  %v3072_v5 = vpop.permute.xlu0 %3071 }
 0x4aa   : > { %3147 = vst.msk [vmem:[#allocation3 + $0x140] sm:$0xff] %vm1174_vm4, %v3072_v5  ;;  %3439 = vrot.lane.b32.xlu1 %v3937_v57, %s7158_s11 }
 0x4ab   : > { %4013 = vrot.lane.b32.xlu0 %v3938_v45, %s7162_s16 }
 0x4ac   : > { %v3262_v29 = vpop.permute.xlu1 %3261 }
 0x4ad   : > { %3338 = vst.msk [vmem:[#allocation3 + $0x130] sm:$0xff] %vm1367_vm5, %v3262_v29  ;;  %v2884_v46 = vpop.permute.xlu0 %2883 }
 0x4ae   : > { %2957 = vst.msk [vmem:[#allocation3 + $0x160] sm:$0xff] %vm981_vm3, %v2884_v46  ;;  %3823 = vrot.lane.b32.xlu1 %v8668_v11, %s7161_s26 }
 0x4af   : > { %3631 = vrot.lane.b32.xlu0 %v8781_v39, %s7159_s12 }
 0x4b0   : > { %v2886_v63 = vpop.permute.xlu1 %2885 }
 0x4b1   : > { %2958 = vst.msk [vmem:[#allocation3 + $0x170] sm:$0xff] %vm981_vm3, %v2886_v63  ;;  %v3264_v17 = vpop.permute.xlu0 %3263 }
 0x4b2   : > { %3339 = vst.msk [vmem:[#allocation3 + $0x140] sm:$0xff] %vm1367_vm5, %v3264_v17  ;;  %3441 = vrot.lane.b32.xlu1 %v3938_v45, %s7158_s11  ;;  %v4200_v17 = vld [vmem:[#allocation3 + $0x88] sm:$0xff] }
 0x4b3   : > { %4015 = vrot.lane.b32.xlu0 %v8809_v25, %s7162_s16 }
 0x4b4   : > { %v3078_v61 = vpop.permute.xlu1 %3077 }
 0x4b5   : > { %3150 = vst.msk [vmem:[#allocation3 + $0x170] sm:$0xff] %vm1174_vm4, %v3078_v61  ;;  %v3076_v21 = vpop.permute.xlu0 %3075  ;;  %v10787_v61 = vld [vmem:[#allocation10_spill] sm:$0xff] }
 0x4b6   : > { %3149 = vst.msk [vmem:[#allocation3 + $0x160] sm:$0xff] %vm1174_vm4, %v3076_v21  ;;  %3825 = vrot.lane.b32.xlu1 %v8680_v34, %s7161_s26 }
 0x4b7   : > { %3633 = vrot.lane.b32.xlu0 %v8659_v41, %s7159_s12 }
 0x4b8   : > { %v3266_v11 = vpop.permute.xlu1 %3265 }
 0x4b9   : > { %3340 = vst.msk [vmem:[#allocation3 + $0x150] sm:$0xff] %vm1367_vm5, %v3266_v11  ;;  %v2888_v39 = vpop.permute.xlu0 %2887 }
 0x4ba   : > { %2959 = vst.msk [vmem:[#allocation3 + $0x180] sm:$0xff] %vm981_vm3, %v2888_v39  ;;  %3443 = vrot.lane.b32.xlu1 %v8809_v25, %s7158_s11 }
 0x4bb   : > { %4017 = vrot.lane.b32.xlu0 %v8815_v8, %s7162_s16 }
 0x4bc   : > { %v2890_v37 = vpop.permute.xlu1 %2889 }
 0x4bd   : > { %2960 = vst.msk [vmem:[#allocation3 + $0x190] sm:$0xff] %vm981_vm3, %v2890_v37  ;;  %v3268_v6 = vpop.permute.xlu0 %3267 }
 0x4be   : > { %3341 = vst.msk [vmem:[#allocation3 + $0x160] sm:$0xff] %vm1367_vm5, %v3268_v6  ;;  %3827 = vrot.lane.b32.xlu1 %v8688_v49, %s7161_s26 }
 0x4bf   : > { %3635 = vrot.lane.b32.xlu0 %v8861_v36, %s7159_s12 }
 0x4c0   : > { %v3082_v41 = vpop.permute.xlu1 %3081 }
 0x4c1   : > { %3152 = vst.msk [vmem:[#allocation3 + $0x190] sm:$0xff] %vm1174_vm4, %v3082_v41  ;;  %v3080_v34 = vpop.permute.xlu0 %3079 }
 0x4c2   : > { %3151 = vst.msk [vmem:[#allocation3 + $0x180] sm:$0xff] %vm1174_vm4, %v3080_v34  ;;  %3445 = vrot.lane.b32.xlu1 %v8815_v8, %s7158_s11  ;;  %v4202_v34 = vld [vmem:[#allocation3 + $0x98] sm:$0xff] }
 0x4c3   : > { %4019 = vrot.lane.b32.xlu0 %v8879_v7, %s7162_s16 }
 0x4c4   : > { %v3270_v25 = vpop.permute.xlu1 %3269 }
 0x4c5   : > { %3342 = vst.msk [vmem:[#allocation3 + $0x170] sm:$0xff] %vm1367_vm5, %v3270_v25  ;;  %v2892_v35 = vpop.permute.xlu0 %2891  ;;  %v10789_v25 = vld [vmem:[#allocation15_spill] sm:$0xff] }
 0x4c6   : > { %2961 = vst.msk [vmem:[#allocation3 + $0x1a0] sm:$0xff] %vm981_vm3, %v2892_v35  ;;  %3829 = vrot.lane.b32.xlu1 %v8701_v1, %s7161_s26 }
 0x4c7   : > { %3637 = vrot.lane.b32.xlu0 %v8839_v20, %s7159_s12 }
 0x4c8   : > { %v2894_v49 = vpop.permute.xlu1 %2893 }
 0x4c9   : > { %2962 = vst.msk [vmem:[#allocation3 + $0x1b0] sm:$0xff] %vm981_vm3, %v2894_v49  ;;  %v3272_v36 = vpop.permute.xlu0 %3271 }
 0x4ca   : > { %3343 = vst.msk [vmem:[#allocation3 + $0x180] sm:$0xff] %vm1367_vm5, %v3272_v36  ;;  %3447 = vrot.lane.b32.xlu1 %v8879_v7, %s7158_s11 }
 0x4cb   : > { %4021 = vrot.lane.b32.xlu0 %v8884_v58, %s7162_s16 }
 0x4cc   : > { %v3086_v8 = vpop.permute.xlu1 %3085 }
 0x4cd   : > { %3154 = vst.msk [vmem:[#allocation3 + $0x1b0] sm:$0xff] %vm1174_vm4, %v3086_v8  ;;  %v3084_v3 = vpop.permute.xlu0 %3083 }
 0x4ce   : > { %3153 = vst.msk [vmem:[#allocation3 + $0x1a0] sm:$0xff] %vm1174_vm4, %v3084_v3  ;;  %3831 = vrot.lane.b32.xlu1 %v8709_v56, %s7161_s26 }
 0x4cf   : > { %3639 = vrot.lane.b32.xlu0 %v8913_v53, %s7159_s12 }
 0x4d0   : > { %v3274_v1 = vpop.permute.xlu1 %3273 }
 0x4d1   : > { %3344 = vst.msk [vmem:[#allocation3 + $0x190] sm:$0xff] %vm1367_vm5, %v3274_v1  ;;  %v2896_v20 = vpop.permute.xlu0 %2895 }
 0x4d2   : > { %2963 = vst.msk [vmem:[#allocation3 + $0x1c0] sm:$0xff] %vm981_vm3, %v2896_v20  ;;  %3449 = vrot.lane.b32.xlu1 %v8884_v58, %s7158_s11 }
 0x4d3   : > { %4023 = vrot.lane.b32.xlu0 %v8921_v55, %s7162_s16 }
 0x4d4   : > { %v2898_v7 = vpop.permute.xlu1 %2897 }
 0x4d5   : > { %2964 = vst.msk [vmem:[#allocation3 + $0x1d0] sm:$0xff] %vm981_vm3, %v2898_v7  ;;  %v3276_v48 = vpop.permute.xlu0 %3275 }
 0x4d6   : > { %3345 = vst.msk [vmem:[#allocation3 + $0x1a0] sm:$0xff] %vm1367_vm5, %v3276_v48  ;;  %3833 = vrot.lane.b32.xlu1 %v8724_v43, %s7161_s26 }
 0x4d7   : > { %3641 = vrot.lane.b32.xlu0 %v8899_v32, %s7159_s12 }
 0x4d8   : > { %v3090_v56 = vpop.permute.xlu1 %3089 }
 0x4d9   : > { %3156 = vst.msk [vmem:[#allocation3 + $0x1d0] sm:$0xff] %vm1174_vm4, %v3090_v56  ;;  %v3088_v53 = vpop.permute.xlu0 %3087  ;;  %v4204_v56 = vld [vmem:[#allocation3 + $0xa8] sm:$0xff] }
 0x4da   : > { %3155 = vst.msk [vmem:[#allocation3 + $0x1c0] sm:$0xff] %vm1174_vm4, %v3088_v53  ;;  %3451 = vrot.lane.b32.xlu1 %v8921_v55, %s7158_s11  ;;  %v10790_v53 = vld [vmem:[#allocation14_spill] sm:$0xff] }
 0x4db   : > { %4025 = vrot.lane.b32.xlu0 %v8926_v0, %s7162_s16 }
 0x4dc   : > { %v3278_v58 = vpop.permute.xlu1 %3277 }
 0x4dd   : > { %3346 = vst.msk [vmem:[#allocation3 + $0x1b0] sm:$0xff] %vm1367_vm5, %v3278_v58  ;;  %v2900_v59 = vpop.permute.xlu0 %2899 }
 0x4de   : > { %2965 = vst.msk [vmem:[#allocation3 + $0x1e0] sm:$0xff] %vm981_vm3, %v2900_v59  ;;  %3835 = vrot.lane.b32.xlu1 %v8733_v52, %s7161_s26 }
 0x4df   : > { %3643 = vrot.lane.b32.xlu0 %v8940_v47, %s7159_s12 }
 0x4e0   : > { %v2902_v43 = vpop.permute.xlu1 %2901 }
 0x4e1   : > { %2966 = vst.msk [vmem:[#allocation3 + $0x1f0] sm:$0xff] %vm981_vm3, %v2902_v43  ;;  %v3280_v32 = vpop.permute.xlu0 %3279 }
 0x4e2   : > { %3347 = vst.msk [vmem:[#allocation3 + $0x1c0] sm:$0xff] %vm1367_vm5, %v3280_v32  ;;  %3453 = vrot.lane.b32.xlu1 %v8926_v0, %s7158_s11 }
 0x4e3   : > { %4027 = vrot.lane.b32.xlu0 %v8948_v27, %s7162_s16 }
 0x4e4   : > { %v3094_v55 = vpop.permute.xlu1 %3093 }
 0x4e5   : > { %3158 = vst.msk [vmem:[#allocation3 + $0x1f0] sm:$0xff] %vm1174_vm4, %v3094_v55  ;;  %v3092_v44 = vpop.permute.xlu0 %3091  ;;  %v4206_v55 = vld [vmem:[#allocation3 + $0xb8] sm:$0xff] }
 0x4e6   : > { %3157 = vst.msk [vmem:[#allocation3 + $0x1e0] sm:$0xff] %vm1174_vm4, %v3092_v44  ;;  %3837 = vrot.lane.b32.xlu1 %v8746_v10, %s7161_s26 }
 0x4e7   : > { %3645 = vrot.lane.b32.xlu0 %v8934_v13, %s7159_s12 }
 0x4e8   : > { %v3810_v52 = vpop.permute.xlu1 %3809 }
 0x4e9   : > { %v3618_v47 = vpop.permute.xlu0 %3617 }
 0x4ea   : > { %3708 = vst.msk [vmem:[#allocation3 + $0x50] sm:$0xff] %vm1753_vm7, %v3618_v47  ;;  %3455 = vrot.lane.b32.xlu1 %v8948_v27, %s7158_s11 }
 0x4eb   : > { %3900 = vst.msk [vmem:[#allocation3 + $0x50] sm:$0xff] %vm1947_vm8, %v3810_v52  ;;  %4029 = vrot.lane.b32.xlu0 %v8953_v22, %s7162_s16 }
 0x4ec   : > { %v3428_v0 = vpop.permute.xlu1 %3427 }
 0x4ed   : > { %3517 = vst.msk [vmem:[#allocation3 + $0x60] sm:$0xff] %vm1560_vm6, %v3428_v0  ;;  %v4002_v9 = vpop.permute.xlu0 %4001 }
 0x4ee   : > { %4092 = vst.msk [vmem:[#allocation3 + $0x50] sm:$0xff] %vm2140_vm9, %v4002_v9  ;;  %3839 = vrot.lane.b32.xlu1 %v8754_v23, %s7161_s26 }
 0x4ef   : > { %3647 = vrot.lane.b32.xlu0 %v8966_v40, %s7159_s12  ;;  %v4196_v40 = vld [vmem:[#allocation3 + $0x68] sm:$0xff] }
 0x4f0   : > { %v3812_v10 = vpop.permute.xlu1 %3811 }
 0x4f1   : > { %v3620_v13 = vpop.permute.xlu0 %3619 }
 0x4f2   : > { %3709 = vst.msk [vmem:[#allocation3 + $0x60] sm:$0xff] %vm1753_vm7, %v3620_v13  ;;  %3457 = vrot.lane.b32.xlu1 %v8953_v22, %s7158_s11 }
 0x4f3   : > { %3901 = vst.msk [vmem:[#allocation3 + $0x60] sm:$0xff] %vm1947_vm8, %v3812_v10  ;;  %4031 = vrot.lane.b32.xlu0 %v8975_v33, %s7162_s16 }
 0x4f4   : > { %v3430_v27 = vpop.permute.xlu1 %3429 }
 0x4f5   : > { %3518 = vst.msk [vmem:[#allocation3 + $0x70] sm:$0xff] %vm1560_vm6, %v3430_v27  ;;  %v4004_v51 = vpop.permute.xlu0 %4003  ;;  %v4193_v23 = vld [vmem:[#allocation3 + $0x50] sm:$0xff] }
 0x4f6   : > { %4093 = vst.msk [vmem:[#allocation3 + $0x60] sm:$0xff] %vm2140_vm9, %v4004_v51  ;;  %4460 = vmatmul.mubr.f32.gmra.mrb[66].mxu0 %v4193_v23  ;;  %3841 = vrot.lane.b32.xlu1 %v8767_v50, %s7161_s26 }
 0x4f7   : > { %3649 = vrot.lane.b32.xlu0 %v8961_v54, %s7159_s12  ;;  %6862 = vmatprep.mubr.msk.f32.mxu0 %vm253_vm1, %v4196_v40  ;;  %v10784_v54 = vld [vmem:[#allocation6_spill] sm:$0xff]  ;;  %v10793_v40 = vld [vmem:[#allocation7_spill] sm:$0xff] }
 0x4f8   : > { %v3814_v22 = vpop.permute.xlu1 %3813 }
 0x4f9   : > { %v3622_v16 = vpop.permute.xlu0 %3621 }
 0x4fa   : > { %3710 = vst.msk [vmem:[#allocation3 + $0x70] sm:$0xff] %vm1753_vm7, %v3622_v16  ;;  %3459 = vrot.lane.b32.xlu1 %v8975_v33, %s7158_s11 }
 0x4fb   : > { %3902 = vst.msk [vmem:[#allocation3 + $0x70] sm:$0xff] %vm1947_vm8, %v3814_v22  ;;  %4033 = vrot.lane.b32.xlu0 %v10783_v18, %s7162_s16  ;;  %v10794_v22 = vld [vmem:[#allocation16_spill] sm:$0xff] }
 0x4fc   : > { %v3432_v31 = vpop.permute.xlu1 %3431 }
 0x4fd   : > { %3519 = vst.msk [vmem:[#allocation3 + $0x80] sm:$0xff] %vm1560_vm6, %v3432_v31  ;;  %v4006_v50 = vpop.permute.xlu0 %4005  ;;  %v4195_v38 = vld [vmem:[#allocation3 + $0x60] sm:$0xff] }
 0x4fe   : > { %4094 = vst.msk [vmem:[#allocation3 + $0x70] sm:$0xff] %vm2140_vm9, %v4006_v50  ;;  %4465 = vmatmul.mubr.f32.gmra.mrb[68].mxu0 %v4195_v38  ;;  %3843 = vrot.lane.b32.xlu1 %v10784_v54, %s7161_s26 }
 0x4ff   : > { %3651 = vrot.lane.b32.xlu0 %v10785_v2, %s7159_s12  ;;  %6863 = vmatprep.mubr.msk.f32.mxu0 %vm253_vm1, %v4198_v42  ;;  %v3763_v42 = vld [vmem:[#allocation2 + $0x207] sm:$0xff] }
 0x500   : > { %v3816_v33 = vpop.permute.xlu1 %3815 }
 0x501   : > { %v3624_v57 = vpop.permute.xlu0 %3623 }
 0x502   : > { %3711 = vst.msk [vmem:[#allocation3 + $0x80] sm:$0xff] %vm1753_vm7, %v3624_v57  ;;  %3461 = vrot.lane.b32.xlu1 %v10783_v18, %s7158_s11 }
 0x503   : > { %3903 = vst.msk [vmem:[#allocation3 + $0x80] sm:$0xff] %vm1947_vm8, %v3816_v33  ;;  %4035 = vrot.lane.b32.xlu0 %v10786_v30, %s7162_s16 }
 0x504   : > { %v3434_v24 = vpop.permute.xlu1 %3433 }
 0x505   : > { %3520 = vst.msk [vmem:[#allocation3 + $0x90] sm:$0xff] %vm1560_vm6, %v3434_v24  ;;  %v4436_v5 = vpop.f32.mrb[56].mxu0  ;;  %v4008_v45 = vpop.permute.xlu0 %4007  ;;  %v4197_v29 = vld [vmem:[#allocation3 + $0x70] sm:$0xff] }
 0x506   : > { %v4437_v46 = vadd.f32 %v9308_v15, %v4436_v5  ;;  %4095 = vst.msk [vmem:[#allocation3 + $0x80] sm:$0xff] %vm2140_vm9, %v4008_v45  ;;  %v4438_v63 = vpop.f32.mrb[57].mxu0  ;;  %4470 = vmatmul.mubr.f32.gmra.mrb[70].mxu0 %v4197_v29  ;;  %3845 = vrot.lane.b32.xlu1 %v8793_v26, %s7161_s26  ;;  %v10788_v26 = vld [vmem:[#allocation13_spill] sm:$0xff]  ;;  %v3955_v45 = vld [vmem:[#allocation2 + $0x208] sm:$0xff] }
 0x507   : > { %3653 = vrot.lane.b32.xlu0 %v10787_v61, %s7159_s12  ;;  %6864 = vmatprep.mubr.msk.f32.mxu0 %vm253_vm1, %v4200_v17  ;;  %v10795_v63 = vld [vmem:[#allocation8_spill] sm:$0xff]  ;;  %v4212_v61 = vld [vmem:[#allocation3 + $0xe8] sm:$0xff] }
 0x508   : > { %v4595_v21 = vmax.f32 %v4437_v46, 0.0  ;;  %v3818_v11 = vpop.permute.xlu1 %3817  ;;  %v3380_v17 = vld [vmem:[#allocation2 + $0x1f0] sm:$0xff] }
 0x509   : > { %v3626_v39 = vpop.permute.xlu0 %3625 }
 0x50a   : > { %4627 = vst.msk [vmem:[#allocation2 + $0x28] sm:$0xff] %vm253_vm1, %v4595_v21  ;;  %3463 = vrot.lane.b32.xlu1 %v10786_v30, %s7158_s11  ;;  %v4210_v30 = vld [vmem:[#allocation3 + $0xd8] sm:$0xff] }
 0x50b   : > { %3712 = vst.msk [vmem:[#allocation3 + $0x90] sm:$0xff] %vm1753_vm7, %v3626_v39  ;;  %4037 = vrot.lane.b32.xlu0 %v10788_v26, %s7162_s16 }
 0x50c   : > { %3904 = vst.msk [vmem:[#allocation3 + $0x90] sm:$0xff] %vm1947_vm8, %v3818_v11  ;;  %v3436_v37 = vpop.permute.xlu1 %3435 }
 0x50d   : > { %3521 = vst.msk [vmem:[#allocation3 + $0xa0] sm:$0xff] %vm1560_vm6, %v3436_v37  ;;  %v4010_v6 = vpop.permute.xlu0 %4009  ;;  %v4199_v41 = vld [vmem:[#allocation3 + $0x80] sm:$0xff]  ;;  %v3764_v37 = vld [vmem:[#allocation2 + $0x20f] sm:$0xff] }
 0x50e   : > { %4096 = vst.msk [vmem:[#allocation3 + $0x90] sm:$0xff] %vm2140_vm9, %v4010_v6  ;;  %4475 = vmatmul.mubr.f32.gmra.mrb[72].mxu0 %v4199_v41  ;;  %3847 = vrot.lane.b32.xlu1 %v8803_v12, %s7161_s26 }
 0x50f   : > { %3655 = vrot.lane.b32.xlu0 %v10789_v25, %s7159_s12  ;;  %6865 = vmatprep.mubr.msk.f32.mxu0 %vm253_vm1, %v4202_v34 }
 0x510   : > { %v3820_v35 = vpop.permute.xlu1 %3819 }
 0x511   : > { %v3628_v49 = vpop.permute.xlu0 %3627  ;;  %v4441_v36 = vpop.f32.mrb[58].mxu0  ;;  %v9332_v8 = vld [vmem:[#allocation2 + $0x27] sm:$0xff] }
 0x512   : > { %3713 = vst.msk [vmem:[#allocation3 + $0xa0] sm:$0xff] %vm1753_vm7, %v3628_v49  ;;  %v4442_v3 = vadd.f32 %v9308_v15, %v4441_v36  ;;  %3465 = vrot.lane.b32.xlu1 %v10788_v26, %s7158_s11  ;;  %v4443_v1 = vpop.f32.mrb[59].mxu0  ;;  %v4214_v49 = vld [vmem:[#allocation3 + $0xf8] sm:$0xff]  ;;  %v3765_v36 = vld [vmem:[#allocation2 + $0x227] sm:$0xff] }
 0x513   : > { %4693 = vst.msk [vmem:[#allocation3 + $0x20] sm:$0xff] %vm253_vm1, %v9332_v8  ;;  %4039 = vrot.lane.b32.xlu0 %v9032_v62, %s7162_s16 }
 0x514   : > { %3905 = vst.msk [vmem:[#allocation3 + $0xa0] sm:$0xff] %vm1947_vm8, %v3820_v35  ;;  %v4596_v12 = vmax.f32 %v4442_v3, 0.0  ;;  %v3438_v20 = vpop.permute.xlu1 %3437  ;;  %v3956_v35 = vld [vmem:[#allocation2 + $0x210] sm:$0xff] }
 0x515   : > { %3522 = vst.msk [vmem:[#allocation3 + $0xb0] sm:$0xff] %vm1560_vm6, %v3438_v20  ;;  %v4012_v7 = vpop.permute.xlu0 %4011  ;;  %v4201_v48 = vld [vmem:[#allocation3 + $0x90] sm:$0xff] }
 0x516   : > { %4628 = vst.msk [vmem:[#allocation2 + $0x30] sm:$0xff] %vm253_vm1, %v4596_v12  ;;  %4480 = vmatmul.mubr.f32.gmra.mrb[74].mxu0 %v4201_v48  ;;  %3849 = vrot.lane.b32.xlu1 %v8820_v60, %s7161_s26  ;;  %v6889_v48 = vld [vmem:[%s10742_s3 + $0x128] sm:$0xff] }
 0x517   : > { %4097 = vst.msk [vmem:[#allocation3 + $0xa0] sm:$0xff] %vm2140_vm9, %v4012_v7  ;;  %3657 = vrot.lane.b32.xlu0 %v10790_v53, %s7159_s12  ;;  %6866 = vmatprep.mubr.msk.f32.mxu0 %vm253_vm1, %v4204_v56  ;;  %v6888_v7 = vld [vmem:[%s10742_s3 + $0x120] sm:$0xff] }
 0x518   : > { %v3822_v58 = vpop.permute.xlu1 %3821 }
 0x519   : > { %v3630_v59 = vpop.permute.xlu0 %3629 }
 0x51a   : > { %3714 = vst.msk [vmem:[#allocation3 + $0xb0] sm:$0xff] %vm1753_vm7, %v3630_v59  ;;  %3467 = vrot.lane.b32.xlu1 %v9032_v62, %s7158_s11  ;;  %v10791_v62 = vld [vmem:[#allocation17_spill] sm:$0xff]  ;;  %v10796_v59 = vld [vmem:[#allocation19_spill] sm:$0xff] }
 0x51b   : > { %3906 = vst.msk [vmem:[#allocation3 + $0xb0] sm:$0xff] %vm1947_vm8, %v3822_v58  ;;  %4041 = vrot.lane.b32.xlu0 %v9040_v19, %s7162_s16  ;;  %v7082_v58 = vpack.c.bf16 %v6889_v48, %v6888_v7 }
 0x51c   : > { %v3440_v43 = vpop.permute.xlu1 %3439 }
 0x51d   : > { %3523 = vst.msk [vmem:[#allocation3 + $0xc0] sm:$0xff] %vm1560_vm6, %v3440_v43  ;;  %v4014_v60 = vpop.permute.xlu0 %4013  ;;  %v9361_v44 = vld [vmem:[#allocation2 + $0x2f] sm:$0xff]  ;;  %7083 = vmatpush1.bf16.msra.mxu1 %v7082_v58 }
 0x51e   : > { %v4203_v32 = vld [vmem:[#allocation3 + $0xa0] sm:$0xff]  ;;  %4098 = vst.msk [vmem:[#allocation3 + $0xb0] sm:$0xff] %vm2140_vm9, %v4014_v60  ;;  %3851 = vrot.lane.b32.xlu1 %v8830_v28, %s7161_s26  ;;  %v3957_v43 = vld [vmem:[#allocation2 + $0x228] sm:$0xff] }
 0x51f   : > { %4485 = vmatmul.mubr.f32.gmra.mrb[76].mxu0 %v4203_v32  ;;  %3659 = vrot.lane.b32.xlu0 %v10791_v62, %s7159_s12  ;;  %4694 = vst.msk [vmem:[#allocation3 + $0x30] sm:$0xff] %vm253_vm1, %v9361_v44  ;;  %v10792_v28 = vld [vmem:[#allocation18_spill] sm:$0xff]  ;;  %v4660_v60 = vld [vmem:[#allocation2 + $0xf] sm:$0xff] }
 0x520   : > { %6867 = vmatprep.mubr.msk.f32.mxu0 %vm253_vm1, %v4206_v55  ;;  %v3824_v52 = vpop.permute.xlu1 %3823  ;;  %4692 = vst.msk [vmem:[#allocation3 + $0x10] sm:$0xff] %vm253_vm1, %v4660_v60  ;;  %v4725_v58 = vld [vmem:[#allocation2 + $0x28] sm:$0xff] }
 0x521   : > { %v4446_v47 = vpop.f32.mrb[60].mxu0  ;;  %v3632_v0 = vpop.permute.xlu0 %3631 }
 0x522   : > { %v4447_v9 = vadd.f32 %v9308_v15, %v4446_v47  ;;  %3715 = vst.msk [vmem:[#allocation3 + $0xc0] sm:$0xff] %vm1753_vm7, %v3632_v0  ;;  %v4448_v10 = vpop.f32.mrb[61].mxu0  ;;  %3469 = vrot.lane.b32.xlu1 %v9040_v19, %s7158_s11  ;;  %v4208_v19 = vld [vmem:[#allocation3 + $0xc8] sm:$0xff]  ;;  %v10797_v0 = vmov 0.0|0.0  }
 0x523   : > { %3907 = vst.msk [vmem:[#allocation3 + $0xc0] sm:$0xff] %vm1947_vm8, %v3824_v52  ;;  %4043 = vrot.lane.b32.xlu0 %v10792_v28, %s7162_s16  ;;  %v4659_v47 = vld [vmem:[#allocation2 + $0x7] sm:$0xff]  ;;  %7084 = vmatprep.subr.bf16.mxu1 %v10797_v0 }
 0x524   : > { %v4597_v13 = vmax.f32 %v4447_v9, 0.0  ;;  %v3442_v27 = vpop.permute.xlu1 %3441  ;;  %v6890_v9 = vld [vmem:[%s10742_s3 + $0x130] sm:$0xff]  ;;  %v4216_v10 = vld [vmem:[#allocation3 + $0x108] sm:$0xff]  ;;  %4691 = vst.msk [vmem:[#allocation3] sm:$0xff] %vm253_vm1, %v4659_v47 }
 0x525   : > { %3524 = vst.msk [vmem:[#allocation3 + $0xd0] sm:$0xff] %vm1560_vm6, %v3442_v27  ;;  %v4016_v51 = vpop.permute.xlu0 %4015  ;;  %v4205_v23 = vld [vmem:[#allocation3 + $0xb0] sm:$0xff] }
 0x526   : > { %4629 = vst.msk [vmem:[#allocation2 + $0x48] sm:$0xff] %vm253_vm1, %v4597_v13  ;;  %4490 = vmatmul.mubr.f32.gmra.mrb[78].mxu0 %v4205_v23  ;;  %3853 = vrot.lane.b32.xlu1 %v10793_v40, %s7161_s26  ;;  %v6892_v23 = vld [vmem:[%s10742_s3 + $0x140] sm:$0xff] }
 0x527   : > { %4099 = vst.msk [vmem:[#allocation3 + $0xc0] sm:$0xff] %vm2140_vm9, %v4016_v51  ;;  %3661 = vrot.lane.b32.xlu0 %v10794_v22, %s7159_s12  ;;  %6868 = vmatprep.mubr.msk.f32.mxu0 %vm253_vm1, %v4208_v19  ;;  %v10798_v19 = vld [vmem:[#allocation20_spill] sm:$0xff] }
 0x528   : > { %v3826_v16 = vpop.permute.xlu1 %3825 }
 0x529   : > { %v3634_v18 = vpop.permute.xlu0 %3633 }
 0x52a   : > { %3716 = vst.msk [vmem:[#allocation3 + $0xd0] sm:$0xff] %vm1753_vm7, %v3634_v18  ;;  %3471 = vrot.lane.b32.xlu1 %v10792_v28, %s7158_s11  ;;  %v6891_v28 = vld [vmem:[%s10742_s3 + $0x138] sm:$0xff] }
 0x52b   : > { %3908 = vst.msk [vmem:[#allocation3 + $0xd0] sm:$0xff] %vm1947_vm8, %v3826_v16  ;;  %4045 = vrot.lane.b32.xlu0 %v9070_v14, %s7162_s16  ;;  %v7085_v13 = vpack.c.bf16 %v6891_v28, %v6890_v9  ;;  %v3958_v16 = vld [vmem:[#allocation2 + $0x230] sm:$0xff] }
 0x52c   : > { %v3444_v31 = vpop.permute.xlu1 %3443 }
 0x52d   : > { %3525 = vst.msk [vmem:[#allocation3 + $0xe0] sm:$0xff] %vm1560_vm6, %v3444_v31  ;;  %v4018_v50 = vpop.permute.xlu0 %4017  ;;  %v4451_v38 = vpop.f32.mrb[62].mxu0  ;;  %v9390_v2 = vld [vmem:[#allocation2 + $0x47] sm:$0xff]  ;;  %7086 = vmatpush1.bf16.msra.mxu1 %v7085_v13  ;;  %v3766_v31 = vld [vmem:[#allocation2 + $0x22f] sm:$0xff] }
 0x52e   : > { %v4207_v54 = vld [vmem:[#allocation3 + $0xc0] sm:$0xff]  ;;  %4100 = vst.msk [vmem:[#allocation3 + $0xd0] sm:$0xff] %vm2140_vm9, %v4018_v50  ;;  %v4452_v33 = vadd.f32 %v9308_v15, %v4451_v38  ;;  %3855 = vrot.lane.b32.xlu1 %v3763_v42, %s7161_s26  ;;  %v4453_v57 = vpop.f32.mrb[63].mxu0  ;;  %7087 = vmatprep.subr.bf16.mxu1 %v10797_v0  ;;  %v4224_v13 = vld [vmem:[#allocation3 + $0x148] sm:$0xff] }
 0x52f   : > { %4495 = vmatmul.mubr.f32.gmra.mrb[80].mxu0 %v4207_v54  ;;  %4695 = vst.msk [vmem:[#allocation3 + $0x40] sm:$0xff] %vm253_vm1, %v9390_v2  ;;  %3663 = vrot.lane.b32.xlu0 %v9084_v4, %s7159_s12  ;;  %v6895_v57 = vld [vmem:[%s10742_s3 + $0x158] sm:$0xff] }
 0x530   : > { %6869 = vmatprep.mubr.msk.f32.mxu0 %vm253_vm1, %v4210_v30  ;;  %v4598_v14 = vmax.f32 %v4452_v33, 0.0  ;;  %v3828_v24 = vpop.permute.xlu1 %3827  ;;  %v6894_v33 = vld [vmem:[%s10742_s3 + $0x150] sm:$0xff] }
 0x531   : > { %v3636_v5 = vpop.permute.xlu0 %3635  ;;  %v4724_v30 = vld [vmem:[#allocation2 + $0x10] sm:$0xff] }
 0x532   : > { %4630 = vst.msk [vmem:[#allocation2 + $0x50] sm:$0xff] %vm253_vm1, %v4598_v14  ;;  %4047 = vrot.lane.b32.xlu1 %v3955_v45, %s7162_s16  ;;  %v7091_v14 = vpack.c.bf16 %v6895_v57, %v6894_v33 }
 0x533   : > { %3717 = vst.msk [vmem:[#allocation3 + $0xe0] sm:$0xff] %vm1753_vm7, %v3636_v5  ;;  %3281 = vrot.lane.b32.xlu0 %v10793_v40, %s7157_s10  ;;  %v6893_v40 = vld [vmem:[%s10742_s3 + $0x148] sm:$0xff] }
 0x534   : > { %3909 = vst.msk [vmem:[#allocation3 + $0xe0] sm:$0xff] %vm1947_vm8, %v3828_v24  ;;  %v3446_v29 = vpop.permute.xlu1 %3445  ;;  %v7088_v22 = vpack.c.bf16 %v6893_v40, %v6892_v23  ;;  %v4723_v5 = vld [vmem:[#allocation2 + $0x8] sm:$0xff] }
 0x535   : > { %3526 = vst.msk [vmem:[#allocation3 + $0xf0] sm:$0xff] %vm1560_vm6, %v3446_v29  ;;  %v4020_v4 = vpop.permute.xlu0 %4019  ;;  %v4209_v46 = vld [vmem:[#allocation3 + $0xd0] sm:$0xff]  ;;  %v6896_v29 = vld [vmem:[%s10742_s3 + $0x160] sm:$0xff] }
 0x536   : > { %4101 = vst.msk [vmem:[#allocation3 + $0xe0] sm:$0xff] %vm2140_vm9, %v4020_v4  ;;  %4500 = vmatmul.mubr.f32.gmra.mrb[82].mxu0 %v4209_v46  ;;  %3665 = vrot.lane.b32.xlu1 %v10795_v63, %s7159_s12  ;;  %v6897_v4 = vld [vmem:[%s10742_s3 + $0x168] sm:$0xff] }
 0x537   : > { %3473 = vrot.lane.b32.xlu0 %v3380_v17, %s7158_s11  ;;  %6870 = vmatprep.mubr.msk.f32.mxu0 %vm253_vm1, %v4212_v61  ;;  %v7094_v46 = vpack.c.bf16 %v6897_v4, %v6896_v29  ;;  %v4915_v17 = vld [vmem:[#allocation2 + $0x9] sm:$0xff] }
 0x538   : > { %v3830_v21 = vpop.permute.xlu1 %3829  ;;  %7089 = vmatpush1.bf16.msra.mxu1 %v7088_v22 }
 0x539   : > { %v3638_v11 = vpop.permute.xlu0 %3637  ;;  %v9412_v39 = vld [vmem:[#allocation2 + $0x49] sm:$0xff]  ;;  %v9420_v6 = vld [vmem:[#allocation2 + $0x51] sm:$0xff]  ;;  %7090 = vmatprep.subr.bf16.mxu1 %v10797_v0 }
 0x53a   : > { %v9414_v26 = vld [vmem:[#allocation2 + $0x4f] sm:$0xff]  ;;  %3718 = vst.msk [vmem:[#allocation3 + $0xf0] sm:$0xff] %vm1753_vm7, %v3638_v11  ;;  %3283 = vrot.lane.b32.xlu1 %v3763_v42, %s7157_s10  ;;  %v4218_v42 = vld [vmem:[#allocation3 + $0x118] sm:$0xff] }
 0x53b   : > { %6099 = vst.msk [vmem:[#allocation3 + $0x8] sm:$0xff] %vm253_vm1, %v9412_v39  ;;  %4696 = vst.msk [vmem:[#allocation3 + $0x50] sm:$0xff] %vm253_vm1, %v9414_v26  ;;  %3857 = vrot.lane.b32.xlu0 %v3764_v37, %s7161_s26  ;;  %v6898_v11 = vld [vmem:[%s10742_s3 + $0x170] sm:$0xff] }
 0x53c   : > { %3910 = vst.msk [vmem:[#allocation3 + $0xf0] sm:$0xff] %vm1947_vm8, %v3830_v21  ;;  %v3448_v41 = vpop.permute.xlu1 %3447  ;;  %7092 = vmatpush1.bf16.msra.mxu1 %v7091_v14  ;;  %v4728_v22 = vld [vmem:[#allocation2 + $0x50] sm:$0xff] }
 0x53d   : > { %6100 = vst.msk [vmem:[#allocation3 + $0x18] sm:$0xff] %vm253_vm1, %v9420_v6  ;;  %v4022_v34 = vpop.permute.xlu0 %4021  ;;  %v4211_v25 = vld [vmem:[#allocation3 + $0xe0] sm:$0xff]  ;;  %7093 = vmatprep.subr.bf16.mxu1 %v10797_v0 }
 0x53e   : > { %3527 = vst.msk [vmem:[#allocation3 + $0x100] sm:$0xff] %vm1560_vm6, %v3448_v41  ;;  %4505 = vmatmul.mubr.f32.gmra.mrb[84].mxu0 %v4211_v25  ;;  %3475 = vrot.lane.b32.xlu1 %v3955_v45, %s7158_s11  ;;  %v4220_v41 = vld [vmem:[#allocation3 + $0x128] sm:$0xff] }
 0x53f   : > { %4102 = vst.msk [vmem:[#allocation3 + $0xf0] sm:$0xff] %vm2140_vm9, %v4022_v34  ;;  %4049 = vrot.lane.b32.xlu0 %v3956_v35, %s7162_s16  ;;  %6871 = vmatprep.mubr.msk.f32.mxu0 %vm253_vm1, %v4214_v49 }
 0x540   : > { %v3832_v3 = vpop.permute.xlu1 %3831  ;;  %7095 = vmatpush1.bf16.msra.mxu1 %v7094_v46 }
 0x541   : > { %v3640_v1 = vpop.permute.xlu0 %3639  ;;  %v4456_v12 = vpop.f32.mrb[64].mxu0  ;;  %7096 = vmatprep.subr.bf16.mxu1 %v10797_v0 }
 0x542   : > { %v6132_v20 = vld [vmem:[#allocation3 + $0x8] sm:$0xff]  ;;  %3719 = vst.msk [vmem:[#allocation3 + $0x100] sm:$0xff] %vm1753_vm7, %v3640_v1  ;;  %v4457_v56 = vadd.f32 %v9308_v15, %v4456_v12  ;;  %v4458_v53 = vpop.f32.mrb[65].mxu0  ;;  %3859 = vrot.lane.b32.xlu1 %v3765_v36, %s7161_s26  ;;  %v4726_v36 = vld [vmem:[#allocation2 + $0x30] sm:$0xff] }
 0x543   : > { %6908 = vmatprep.mubr.msk.f32.mxu1 %vm253_vm1, %v6132_v20  ;;  %3911 = vst.msk [vmem:[#allocation3 + $0x100] sm:$0xff] %vm1947_vm8, %v3832_v3  ;;  %3667 = vrot.lane.b32.xlu0 %v10796_v59, %s7159_s12  ;;  %v6900_v3 = vld [vmem:[%s10742_s3 + $0x180] sm:$0xff]  ;;  %v5491_v20 = vld [vmem:[#allocation2 + $0x29] sm:$0xff]  ;;  %v6903_v53 = vld [vmem:[%s10742_s3 + $0x198] sm:$0xff] }
 0x544   : > { %v4599_v32 = vmax.f32 %v4457_v56, 0.0  ;;  %v3450_v55 = vpop.permute.xlu1 %3449  ;;  %v6902_v56 = vld [vmem:[%s10742_s3 + $0x190] sm:$0xff]  ;;  %v4222_v59 = vld [vmem:[#allocation3 + $0x138] sm:$0xff] }
 0x545   : > { %3528 = vst.msk [vmem:[#allocation3 + $0x110] sm:$0xff] %vm1560_vm6, %v3450_v55  ;;  %v4024_v62 = vpop.permute.xlu0 %4023  ;;  %v5492_v55 = vld [vmem:[#allocation2 + $0x31] sm:$0xff] }
 0x546   : > { %v4213_v52 = vld [vmem:[#allocation3 + $0xf0] sm:$0xff]  ;;  %4631 = vst.msk [vmem:[#allocation2 + $0x68] sm:$0xff] %vm253_vm1, %v4599_v32  ;;  %4051 = vrot.lane.b32.xlu1 %v3957_v43, %s7162_s16  ;;  %v7103_v43 = vpack.c.bf16 %v6903_v53, %v6902_v56 }
 0x547   : > { %4103 = vst.msk [vmem:[#allocation3 + $0x100] sm:$0xff] %vm2140_vm9, %v4024_v62  ;;  %4510 = vmatmul.mubr.f32.gmra.mrb[86].mxu0 %v4213_v52  ;;  %3285 = vrot.lane.b32.xlu0 %v3764_v37, %s7157_s10  ;;  %v6899_v37 = vld [vmem:[%s10742_s3 + $0x178] sm:$0xff]  ;;  %v6904_v62 = vld [vmem:[%s10742_s3 + $0x1a0] sm:$0xff]  ;;  %v6905_v52 = vld [vmem:[%s10742_s3 + $0x1a8] sm:$0xff] }
 0x548   : > { %6872 = vmatprep.mubr.msk.f32.mxu0 %vm253_vm1, %v4216_v10  ;;  %v3834_v27 = vpop.permute.xlu1 %3833  ;;  %v7097_v34 = vpack.c.bf16 %v6899_v37, %v6898_v11  ;;  %v7106_v47 = vpack.c.bf16 %v6905_v52, %v6904_v62 }
 0x549   : > { %v3642_v51 = vpop.permute.xlu0 %3641 }
 0x54a   : > { %3720 = vst.msk [vmem:[#allocation3 + $0x110] sm:$0xff] %vm1753_vm7, %v3642_v51  ;;  %3669 = vrot.lane.b32.xlu1 %v10798_v19, %s7159_s12  ;;  %7098 = vmatpush1.bf16.msra.mxu1 %v7097_v34  ;;  %v5875_v51 = vld [vmem:[#allocation2 + $0x48] sm:$0xff] }
 0x54b   : > { %3912 = vst.msk [vmem:[#allocation3 + $0x110] sm:$0xff] %vm1947_vm8, %v3834_v27  ;;  %3477 = vrot.lane.b32.xlu0 %v3956_v35, %s7158_s11  ;;  %v4916_v35 = vld [vmem:[#allocation2 + $0x11] sm:$0xff]  ;;  %7099 = vmatprep.subr.bf16.mxu1 %v10797_v0 }
 0x54c   : > { %v3452_v18 = vpop.permute.xlu1 %3451 }
 0x54d   : > { %3529 = vst.msk [vmem:[#allocation3 + $0x120] sm:$0xff] %vm1560_vm6, %v3452_v18  ;;  %v4026_v50 = vpop.permute.xlu0 %4025  ;;  %v9474_v54 = vld [vmem:[#allocation2 + $0x67] sm:$0xff] }
 0x54e   : > { %v4215_v38 = vld [vmem:[#allocation3 + $0x100] sm:$0xff]  ;;  %4104 = vst.msk [vmem:[#allocation3 + $0x110] sm:$0xff] %vm2140_vm9, %v4026_v50  ;;  %4053 = vrot.lane.b32.xlu1 %v3958_v16, %s7162_s16 }
 0x54f   : > { %4515 = vmatmul.mubr.f32.gmra.mrb[88].mxu0 %v4215_v38  ;;  %4697 = vst.msk [vmem:[#allocation3 + $0x60] sm:$0xff] %vm253_vm1, %v9474_v54  ;;  %3861 = vrot.lane.b32.xlu0 %v3766_v31, %s7161_s26 }
 0x550   : > { %6873 = vmatprep.mubr.msk.f32.mxu0 %vm253_vm1, %v4218_v42  ;;  %v3836_v24 = vpop.permute.xlu1 %3835  ;;  %v4228_v42 = vld [vmem:[#allocation3 + $0x168] sm:$0xff] }
 0x551   : > { %v3644_v45 = vpop.permute.xlu0 %3643 }
 0x552   : > { %3721 = vst.msk [vmem:[#allocation3 + $0x120] sm:$0xff] %vm1753_vm7, %v3644_v45  ;;  %4789 = vrot.lane.b32.xlu1 %v4724_v30, %s7155_s30 }
 0x553   : > { %3913 = vst.msk [vmem:[#allocation3 + $0x120] sm:$0xff] %vm1947_vm8, %v3836_v24  ;;  %4787 = vrot.lane.b32.xlu0 %v4723_v5, %s7155_s30  ;;  %v4230_v5 = vld [vmem:[#allocation3 + $0x178] sm:$0xff] }
 0x554   : > { %v3454_v63 = vpop.permute.xlu1 %3453 }
 0x555   : > { %3530 = vst.msk [vmem:[#allocation3 + $0x130] sm:$0xff] %vm1560_vm6, %v3454_v63  ;;  %v4028_v61 = vpop.permute.xlu0 %4027  ;;  %v4217_v21 = vld [vmem:[#allocation3 + $0x110] sm:$0xff]  ;;  %v9592_v63 = vld [vmem:[#allocation2 + $0x68] sm:$0xff] }
 0x556   : > { %4105 = vst.msk [vmem:[#allocation3 + $0x120] sm:$0xff] %vm2140_vm9, %v4028_v61  ;;  %4520 = vmatmul.mubr.f32.gmra.mrb[90].mxu0 %v4217_v21  ;;  %5171 = vrot.lane.b32.xlu1 %v9332_v8, %s7157_s10  ;;  %v6901_v8 = vld [vmem:[%s10742_s3 + $0x188] sm:$0xff] }
 0x557   : > { %4979 = vrot.lane.b32.xlu0 %v4915_v17, %s7156_s7  ;;  %6874 = vmatprep.mubr.msk.f32.mxu0 %vm253_vm1, %v4220_v41  ;;  %v7100_v1 = vpack.c.bf16 %v6901_v8, %v6900_v3  ;;  %v4232_v17 = vld [vmem:[#allocation3 + $0x188] sm:$0xff]  ;;  %v4234_v41 = vld [vmem:[#allocation3 + $0x198] sm:$0xff] }
 0x558   : > { %v3838_v25 = vpop.permute.xlu1 %3837  ;;  %v4236_v3 = vld [vmem:[#allocation3 + $0x1a8] sm:$0xff] }
 0x559   : > { %v3646_v49 = vpop.permute.xlu0 %3645  ;;  %7101 = vmatpush1.bf16.msra.mxu1 %v7100_v1 }
 0x55a   : > { %3722 = vst.msk [vmem:[#allocation3 + $0x130] sm:$0xff] %vm1753_vm7, %v3646_v49  ;;  %4793 = vrot.lane.b32.xlu1 %v4726_v36, %s7155_s30  ;;  %7102 = vmatprep.subr.bf16.mxu1 %v10797_v0 }
 0x55b   : > { %3914 = vst.msk [vmem:[#allocation3 + $0x130] sm:$0xff] %vm1947_vm8, %v3838_v25  ;;  %4981 = vrot.lane.b32.xlu0 %v4916_v35, %s7156_s7 }
 0x55c   : > { %v3456_v12 = vpop.permute.xlu1 %3455 }
 0x55d   : > { %3531 = vst.msk [vmem:[#allocation3 + $0x140] sm:$0xff] %vm1560_vm6, %v3456_v12  ;;  %v4030_v7 = vpop.permute.xlu0 %4029  ;;  %v4219_v48 = vld [vmem:[#allocation3 + $0x120] sm:$0xff]  ;;  %7104 = vmatpush1.bf16.msra.mxu1 %v7103_v43  ;;  %v4240_v43 = vld [vmem:[#allocation3 + $0x1c8] sm:$0xff] }
 0x55e   : > { %4106 = vst.msk [vmem:[#allocation3 + $0x130] sm:$0xff] %vm2140_vm9, %v4030_v7  ;;  %4525 = vmatmul.mubr.f32.gmra.mrb[92].mxu0 %v4219_v48  ;;  %5555 = vrot.lane.b32.xlu1 %v5491_v20, %s7159_s12  ;;  %v4238_v7 = vld [vmem:[#allocation3 + $0x1b8] sm:$0xff] }
 0x55f   : > { %4791 = vrot.lane.b32.xlu0 %v4725_v58, %s7155_s30  ;;  %6875 = vmatprep.mubr.msk.f32.mxu0 %vm253_vm1, %v4222_v59 }
 0x560   : > { %v3840_v60 = vpop.permute.xlu1 %3839  ;;  %7105 = vmatprep.subr.bf16.mxu1 %v10797_v0 }
 0x561   : > { %v3648_v32 = vpop.permute.xlu0 %3647  ;;  %7107 = vmatpush1.bf16.msra.mxu1 %v7106_v47  ;;  %v4242_v47 = vld [vmem:[#allocation3 + $0x1d8] sm:$0xff] }
 0x562   : > { %3723 = vst.msk [vmem:[#allocation3 + $0x140] sm:$0xff] %vm1753_vm7, %v3648_v32  ;;  %5557 = vrot.lane.b32.xlu1 %v5492_v55, %s7159_s12 }
 0x563   : > { %3915 = vst.msk [vmem:[#allocation3 + $0x140] sm:$0xff] %vm1947_vm8, %v3840_v60  ;;  %5363 = vrot.lane.b32.xlu0 %v4725_v58, %s7158_s11 }
 0x564   : > { %v3458_v9 = vpop.permute.xlu1 %3457 }
 0x565   : > { %3532 = vst.msk [vmem:[#allocation3 + $0x150] sm:$0xff] %vm1560_vm6, %v3458_v9  ;;  %v4032_v10 = vpop.permute.xlu0 %4031  ;;  %v4221_v28 = vld [vmem:[#allocation3 + $0x130] sm:$0xff]  ;;  %v4244_v9 = vld [vmem:[#allocation3 + $0x1e8] sm:$0xff] }
 0x566   : > { %4107 = vst.msk [vmem:[#allocation3 + $0x140] sm:$0xff] %vm2140_vm9, %v4032_v10  ;;  %4530 = vmatmul.mubr.f32.gmra.mrb[94].mxu0 %v4221_v28  ;;  %5747 = vrot.lane.b32.xlu1 %v9390_v2, %s7161_s26  ;;  %v6097_v10 = vld [vmem:[#allocation2 + $0x229] sm:$0xff]  ;;  %v4246_v28 = vld [vmem:[#allocation3 + $0x1f8] sm:$0xff] }
 0x567   : > { %5173 = vrot.lane.b32.xlu0 %v9361_v44, %s7157_s10  ;;  %6876 = vmatprep.mubr.msk.f32.mxu0 %vm253_vm1, %v4224_v13  ;;  %v4226_v44 = vld [vmem:[#allocation3 + $0x158] sm:$0xff]  ;;  %6129 = vst.msk [vmem:[#allocation3 + $0x1e8] sm:$0xff] %vm253_vm1, %v6097_v10 }
 0x568   : > { %v3842_v0 = vpop.permute.xlu1 %3841  ;;  %v6098_v13 = vld [vmem:[#allocation2 + $0x231] sm:$0xff] }
 0x569   : > { %v3650_v27 = vpop.permute.xlu0 %3649  ;;  %6130 = vst.msk [vmem:[#allocation3 + $0x1f8] sm:$0xff] %vm253_vm1, %v6098_v13 }
 0x56a   : > { %3724 = vst.msk [vmem:[#allocation3 + $0x150] sm:$0xff] %vm1753_vm7, %v3650_v27  ;;  %5939 = vrot.lane.b32.xlu1 %v5875_v51, %s7162_s16 }
 0x56b   : > { %3916 = vst.msk [vmem:[#allocation3 + $0x150] sm:$0xff] %vm1947_vm8, %v3842_v0  ;;  %5365 = vrot.lane.b32.xlu0 %v4726_v36, %s7158_s11 }
 0x56c   : > { %v3460_v23 = vpop.permute.xlu1 %3459 }
 0x56d   : > { %3533 = vst.msk [vmem:[#allocation3 + $0x160] sm:$0xff] %vm1560_vm6, %v3460_v23  ;;  %v4034_v40 = vpop.permute.xlu0 %4033  ;;  %v4223_v19 = vld [vmem:[#allocation3 + $0x140] sm:$0xff] }
 0x56e   : > { %4108 = vst.msk [vmem:[#allocation3 + $0x150] sm:$0xff] %vm2140_vm9, %v4034_v40  ;;  %4535 = vmatmul.mubr.f32.gmra.mrb[96].mxu0 %v4223_v19  ;;  %4797 = vrot.lane.b32.xlu1 %v4728_v22, %s7155_s30 }
 0x56f   : > { %4983 = vrot.lane.b32.xlu0 %v5491_v20, %s7156_s7  ;;  %6877 = vmatprep.mubr.msk.f32.mxu0 %vm253_vm1, %v4226_v44 }
 0x570   : > { %v3844_v16 = vpop.permute.xlu1 %3843 }
 0x571   : > { %v3652_v18 = vpop.permute.xlu0 %3651 }
 0x572   : > { %3725 = vst.msk [vmem:[#allocation3 + $0x160] sm:$0xff] %vm1753_vm7, %v3652_v18  ;;  %5749 = vrot.lane.b32.xlu1 %v9414_v26, %s7161_s26 }
 0x573   : > { %3917 = vst.msk [vmem:[#allocation3 + $0x160] sm:$0xff] %vm1947_vm8, %v3844_v16  ;;  %4985 = vrot.lane.b32.xlu0 %v5492_v55, %s7156_s7 }
 0x574   : > { %v3462_v31 = vpop.permute.xlu1 %3461 }
 0x575   : > { %3534 = vst.msk [vmem:[#allocation3 + $0x170] sm:$0xff] %vm1560_vm6, %v3462_v31  ;;  %v4036_v50 = vpop.permute.xlu0 %4035  ;;  %v4225_v38 = vld [vmem:[#allocation3 + $0x150] sm:$0xff] }
 0x576   : > { %4109 = vst.msk [vmem:[#allocation3 + $0x160] sm:$0xff] %vm2140_vm9, %v4036_v50  ;;  %4540 = vmatmul.mubr.f32.gmra.mrb[98].mxu0 %v4225_v38  ;;  %5941 = vrot.lane.b32.xlu1 %v4728_v22, %s7162_s16 }
 0x577   : > { %4795 = vrot.lane.b32.xlu0 %v5875_v51, %s7155_s30  ;;  %6878 = vmatprep.mubr.msk.f32.mxu0 %vm253_vm1, %v4228_v42 }
 0x578   : > { %v3846_v33 = vpop.permute.xlu1 %3845 }
 0x579   : > { %v3654_v57 = vpop.permute.xlu0 %3653 }
 0x57a   : > { %3726 = vst.msk [vmem:[#allocation3 + $0x170] sm:$0xff] %vm1753_vm7, %v3654_v57  ;;  %5559 = vrot.lane.b32.xlu1 %v9412_v39, %s7159_s12 }
 0x57b   : > { %3918 = vst.msk [vmem:[#allocation3 + $0x170] sm:$0xff] %vm1947_vm8, %v3846_v33  ;;  %5175 = vrot.lane.b32.xlu0 %v9390_v2, %s7157_s10 }
 0x57c   : > { %v3464_v30 = vpop.permute.xlu1 %3463 }
 0x57d   : > { %3535 = vst.msk [vmem:[#allocation3 + $0x180] sm:$0xff] %vm1560_vm6, %v3464_v30  ;;  %v4038_v14 = vpop.permute.xlu0 %4037  ;;  %v4227_v24 = vld [vmem:[#allocation3 + $0x160] sm:$0xff] }
 0x57e   : > { %4110 = vst.msk [vmem:[#allocation3 + $0x170] sm:$0xff] %vm2140_vm9, %v4038_v14  ;;  %4545 = vmatmul.mubr.f32.gmra.mrb[100].mxu0 %v4227_v24  ;;  %5561 = vrot.lane.b32.xlu1 %v9420_v6, %s7159_s12 }
 0x57f   : > { %5367 = vrot.lane.b32.xlu0 %v5875_v51, %s7158_s11  ;;  %6879 = vmatprep.mubr.msk.f32.mxu0 %vm253_vm1, %v4230_v5 }
 0x580   : > { %v3848_v45 = vpop.permute.xlu1 %3847 }
 0x581   : > { %v3656_v29 = vpop.permute.xlu0 %3655 }
 0x582   : > { %3727 = vst.msk [vmem:[#allocation3 + $0x180] sm:$0xff] %vm1753_vm7, %v3656_v29  ;;  %5751 = vrot.lane.b32.xlu1 %v9474_v54, %s7161_s26 }
 0x583   : > { %3919 = vst.msk [vmem:[#allocation3 + $0x180] sm:$0xff] %vm1947_vm8, %v3848_v45  ;;  %5177 = vrot.lane.b32.xlu0 %v9414_v26, %s7157_s10 }
 0x584   : > { %v3466_v2 = vpop.permute.xlu1 %3465 }
 0x585   : > { %3536 = vst.msk [vmem:[#allocation3 + $0x190] sm:$0xff] %vm1560_vm6, %v3466_v2  ;;  %v4040_v4 = vpop.permute.xlu0 %4039  ;;  %v4229_v46 = vld [vmem:[#allocation3 + $0x170] sm:$0xff] }
 0x586   : > { %4111 = vst.msk [vmem:[#allocation3 + $0x180] sm:$0xff] %vm2140_vm9, %v4040_v4  ;;  %4550 = vmatmul.mubr.f32.gmra.mrb[102].mxu0 %v4229_v46  ;;  %5943 = vrot.lane.b32.xlu1 %v9592_v63, %s7162_s16 }
 0x587   : > { %5369 = vrot.lane.b32.xlu0 %v4728_v22, %s7158_s11  ;;  %6880 = vmatprep.mubr.msk.f32.mxu0 %vm253_vm1, %v4232_v17 }
 0x588   : > { %v3850_v61 = vpop.permute.xlu1 %3849 }
 0x589   : > { %v3658_v26 = vpop.permute.xlu0 %3657 }
 0x58a   : > { %3728 = vst.msk [vmem:[#allocation3 + $0x190] sm:$0xff] %vm1753_vm7, %v3658_v26 }
 0x58b   : > { %3920 = vst.msk [vmem:[#allocation3 + $0x190] sm:$0xff] %vm1947_vm8, %v3850_v61  ;;  %4799 = vrot.lane.b32.xlu0 %v9592_v63, %s7155_s30 }
 0x58c   : > { %v3468_v21 = vpop.permute.xlu1 %3467 }
 0x58d   : > { %3537 = vst.msk [vmem:[#allocation3 + $0x1a0] sm:$0xff] %vm1560_vm6, %v3468_v21  ;;  %v4042_v11 = vpop.permute.xlu0 %4041  ;;  %v4231_v37 = vld [vmem:[#allocation3 + $0x180] sm:$0xff] }
 0x58e   : > { %4112 = vst.msk [vmem:[#allocation3 + $0x190] sm:$0xff] %vm2140_vm9, %v4042_v11  ;;  %4555 = vmatmul.mubr.f32.gmra.mrb[104].mxu0 %v4231_v37 }
 0x58f   : > { %6881 = vmatprep.mubr.msk.f32.mxu0 %vm253_vm1, %v4234_v41  ;;  %4987 = vrot.lane.b32.xlu0 %v9412_v39, %s7156_s7 }
 0x590   : > { %v3852_v34 = vpop.permute.xlu1 %3851 }
 0x591   : > { %v3660_v25 = vpop.permute.xlu0 %3659 }
 0x592   : > { %3729 = vst.msk [vmem:[#allocation3 + $0x1a0] sm:$0xff] %vm1753_vm7, %v3660_v25 }
 0x593   : > { %3921 = vst.msk [vmem:[#allocation3 + $0x1a0] sm:$0xff] %vm1947_vm8, %v3852_v34 }
 0x594   : > { %v3470_v35 = vpop.permute.xlu1 %3469 }
 0x595   : > { %3538 = vst.msk [vmem:[#allocation3 + $0x1b0] sm:$0xff] %vm1560_vm6, %v3470_v35  ;;  %v4044_v49 = vpop.permute.xlu0 %4043  ;;  %v4233_v36 = vld [vmem:[#allocation3 + $0x190] sm:$0xff] }
 0x596   : > { %4113 = vst.msk [vmem:[#allocation3 + $0x1a0] sm:$0xff] %vm2140_vm9, %v4044_v49  ;;  %4560 = vmatmul.mubr.f32.gmra.mrb[106].mxu0 %v4233_v36 }
 0x597   : > { %6882 = vmatprep.mubr.msk.f32.mxu0 %vm253_vm1, %v4236_v3  ;;  %v9676_v3 = vld [vmem:[%s10743_s4 + $0x1] ss:$0 sm:$0xff] }
 0x598   : > { %v3854_v8 = vpop.permute.xlu1 %3853 }
 0x599   : > { %v3662_v1 = vpop.permute.xlu0 %3661 }
 0x59a   : > { %3730 = vst.msk [vmem:[#allocation3 + $0x1b0] sm:$0xff] %vm1753_vm7, %v3662_v1 }
 0x59b   : > { %3922 = vst.msk [vmem:[#allocation3 + $0x1b0] sm:$0xff] %vm1947_vm8, %v3854_v8 }
 0x59c   : > { %v3472_v39 = vpop.permute.xlu1 %3471 }
 0x59d   : > { %3539 = vst.msk [vmem:[#allocation3 + $0x1c0] sm:$0xff] %vm1560_vm6, %v3472_v39  ;;  %v4046_v12 = vpop.permute.xlu0 %4045  ;;  %v4235_v20 = vld [vmem:[#allocation3 + $0x1a0] sm:$0xff] }
 0x59e   : > { %4114 = vst.msk [vmem:[#allocation3 + $0x1b0] sm:$0xff] %vm2140_vm9, %v4046_v12  ;;  %4565 = vmatmul.mubr.f32.gmra.mrb[108].mxu0 %v4235_v20 }
 0x59f   : > { %6883 = vmatprep.mubr.msk.f32.mxu0 %vm253_vm1, %v4238_v7 }
 0x5a0   : > { %v3856_v48 = vpop.permute.xlu1 %3855 }
 0x5a1   : > { %v3664_v56 = vpop.permute.xlu0 %3663 }
 0x5a2   : > { %3731 = vst.msk [vmem:[#allocation3 + $0x1c0] sm:$0xff] %vm1753_vm7, %v3664_v56 }
 0x5a3   : > { %3923 = vst.msk [vmem:[#allocation3 + $0x1c0] sm:$0xff] %vm1947_vm8, %v3856_v48 }
 0x5a4   : > { %v4048_v53 = vpop.permute.xlu1 %4047 }
 0x5a5   : > { %4115 = vst.msk [vmem:[#allocation3 + $0x1c0] sm:$0xff] %vm2140_vm9, %v4048_v53  ;;  %v3282_v58 = vpop.permute.xlu0 %3281  ;;  %v4237_v59 = vld [vmem:[#allocation3 + $0x1b0] sm:$0xff] }
 0x5a6   : > { %3348 = vst.msk [vmem:[#allocation3 + $0x1d0] sm:$0xff] %vm1367_vm5, %v3282_v58  ;;  %4570 = vmatmul.mubr.f32.gmra.mrb[110].mxu0 %v4237_v59 }
 0x5a7   : > { %6884 = vmatprep.mubr.msk.f32.mxu0 %vm253_vm1, %v4240_v43 }
 0x5a8   : > { %v3666_v60 = vpop.permute.xlu1 %3665 }
 0x5a9   : > { %v3474_v32 = vpop.permute.xlu0 %3473 }
 0x5aa   : > { %3540 = vst.msk [vmem:[#allocation3 + $0x1d0] sm:$0xff] %vm1560_vm6, %v3474_v32 }
 0x5ab   : > { %3732 = vst.msk [vmem:[#allocation3 + $0x1d0] sm:$0xff] %vm1753_vm7, %v3666_v60 }
 0x5ac   : > { %v3284_v55 = vpop.permute.xlu1 %3283  ;;  %v4239_v62 = vld [vmem:[#allocation3 + $0x1c0] sm:$0xff] }
 0x5ad   : > { %3349 = vst.msk [vmem:[#allocation3 + $0x1e0] sm:$0xff] %vm1367_vm5, %v3284_v55  ;;  %v3858_v52 = vpop.permute.xlu0 %3857  ;;  %4575 = vmatmul.mubr.f32.gmra.mrb[112].mxu0 %v4239_v62  ;;  %v6134_v62 = vld [vmem:[#allocation3 + $0x18] sm:$0xff] }
 0x5ae   : > { %3924 = vst.msk [vmem:[#allocation3 + $0x1d0] sm:$0xff] %vm1947_vm8, %v3858_v52  ;;  %6885 = vmatprep.mubr.msk.f32.mxu0 %vm253_vm1, %v4242_v47 }
 0x5b0   : > { %v3476_v0 = vpop.permute.xlu1 %3475 }
 0x5b1   : > { %3541 = vst.msk [vmem:[#allocation3 + $0x1e0] sm:$0xff] %vm1560_vm6, %v3476_v0  ;;  %v4050_v27 = vpop.permute.xlu0 %4049 }
 0x5b2   : > { %4116 = vst.msk [vmem:[#allocation3 + $0x1d0] sm:$0xff] %vm2140_vm9, %v4050_v27 }
 0x5b4   : > { %v3860_v51 = vpop.permute.xlu1 %3859 }
 0x5b5   : > { %v3668_v23 = vpop.permute.xlu0 %3667 }
 0x5b6   : > { %3733 = vst.msk [vmem:[#allocation3 + $0x1e0] sm:$0xff] %vm1753_vm7, %v3668_v23 }
 0x5b7   : > { %3925 = vst.msk [vmem:[#allocation3 + $0x1e0] sm:$0xff] %vm1947_vm8, %v3860_v51 }
 0x5b8   : > { %v4052_v40 = vpop.permute.xlu1 %4051 }
 0x5b9   : > { %4117 = vst.msk [vmem:[#allocation3 + $0x1e0] sm:$0xff] %vm2140_vm9, %v4052_v40  ;;  %v3286_v19 = vpop.permute.xlu0 %3285  ;;  %v4241_v22 = vld [vmem:[#allocation3 + $0x1d0] sm:$0xff] }
 0x5ba   : > { %3350 = vst.msk [vmem:[#allocation3 + $0x1f0] sm:$0xff] %vm1367_vm5, %v3286_v19  ;;  %4580 = vmatmul.mubr.f32.gmra.mrb[114].mxu0 %v4241_v22 }
 0x5bb   : > { %6886 = vmatprep.mubr.msk.f32.mxu0 %vm253_vm1, %v4244_v9 }
 0x5bc   : > { %v3670_v44 = vpop.permute.xlu1 %3669 }
 0x5bd   : > { %v3478_v16 = vpop.permute.xlu0 %3477 }
 0x5be   : > { %3542 = vst.msk [vmem:[#allocation3 + $0x1f0] sm:$0xff] %vm1560_vm6, %v3478_v16 }
 0x5bf   : > { %3734 = vst.msk [vmem:[#allocation3 + $0x1f0] sm:$0xff] %vm1753_vm7, %v3670_v44 }
 0x5c0   : > { %v4054_v18 = vpop.permute.xlu1 %4053  ;;  %v4243_v31 = vld [vmem:[#allocation3 + $0x1e0] sm:$0xff] }
 0x5c1   : > { %v3862_v50 = vpop.permute.xlu0 %3861  ;;  %4585 = vmatmul.mubr.f32.gmra.mrb[116].mxu0 %v4243_v31 }
 0x5c2   : > { %3926 = vst.msk [vmem:[#allocation3 + $0x1f0] sm:$0xff] %vm1947_vm8, %v3862_v50  ;;  %6887 = vmatprep.mubr.msk.f32.mxu0 %vm253_vm1, %v4246_v28 }
 0x5c3   : > { %4118 = vst.msk [vmem:[#allocation3 + $0x1f0] sm:$0xff] %vm2140_vm9, %v4054_v18 }
 0x5c4   : > { %v4790_v38 = vpop.permute.xlu1 %4789 }
 0x5c5   : > { %4884 = vst.msk [vmem:[#allocation3 + $0x10] sm:$0xff] %vm981_vm3, %v4790_v38  ;;  %v4788_v42 = vpop.permute.xlu0 %4787 }
 0x5c6   : > { %4883 = vst.msk [vmem:[#allocation3] sm:$0xff] %vm981_vm3, %v4788_v42 }
 0x5c8   : > { %v5172_v33 = vpop.permute.xlu1 %5171 }
 0x5c9   : > { %v4980_v57 = vpop.permute.xlu0 %4979  ;;  %v4461_v30 = vpop.f32.mrb[66].mxu0 }
 0x5ca   : > { %5075 = vst.msk [vmem:[#allocation3] sm:$0xff] %vm1174_vm4, %v4980_v57  ;;  %v4462_v14 = vadd.f32 %v9308_v15, %v4461_v30  ;;  %v4463_v24 = vpop.f32.mrb[67].mxu0  ;;  %v4245_v5 = vld [vmem:[#allocation3 + $0x1f0] sm:$0xff] }
 0x5cb   : > { %5267 = vst.msk [vmem:[#allocation3] sm:$0xff] %vm1367_vm5, %v5172_v33  ;;  %4590 = vmatmul.mubr.f32.gmra.mrb[118].mxu0 %v4245_v5 }
 0x5cc   : > { %v4600_v45 = vmax.f32 %v4462_v14, 0.0  ;;  %v4794_v29 = vpop.permute.xlu1 %4793 }
 0x5cd   : > { %4886 = vst.msk [vmem:[#allocation3 + $0x30] sm:$0xff] %vm981_vm3, %v4794_v29  ;;  %v4982_v2 = vpop.permute.xlu0 %4981 }
 0x5ce   : > { %4632 = vst.msk [vmem:[#allocation2 + $0x70] sm:$0xff] %vm253_vm1, %v4600_v45 }
 0x5cf   : > { %5076 = vst.msk [vmem:[#allocation3 + $0x10] sm:$0xff] %vm1174_vm4, %v4982_v2 }
 0x5d0   : > { %v5556_v4 = vpop.permute.xlu1 %5555 }
 0x5d1   : > { %v4792_v46 = vpop.permute.xlu0 %4791  ;;  %v4466_v17 = vpop.f32.mrb[68].mxu0 }
 0x5d2   : > { %4885 = vst.msk [vmem:[#allocation3 + $0x20] sm:$0xff] %vm981_vm3, %v4792_v46  ;;  %v4467_v61 = vadd.f32 %v9308_v15, %v4466_v17  ;;  %v4468_v26 = vpop.f32.mrb[69].mxu0 }
 0x5d4   : > { %v4601_v21 = vmax.f32 %v4467_v61, 0.0  ;;  %v5558_v11 = vpop.permute.xlu1 %5557 }
 0x5d5   : > { %v5364_v37 = vpop.permute.xlu0 %5363  ;;  %v9652_v41 = vld [vmem:[#allocation2 + $0x70] sm:$0xff] }
 0x5d6   : > { %v9654_v34 = vld [vmem:[#allocation2 + $0x6f] sm:$0xff]  ;;  %4633 = vst.msk [vmem:[#allocation2 + $0x88] sm:$0xff] %vm253_vm1, %v4601_v21  ;;  %4801 = vrot.lane.b32.xlu1 %v9652_v41, %s7155_s30 }
 0x5d7   : > { %v9656_v25 = vld [vmem:[#allocation2 + $0x69] sm:$0xff]  ;;  %5459 = vst.msk [vmem:[#allocation3] sm:$0xff] %vm1560_vm6, %v5364_v37  ;;  %v9664_v15 = vld [vmem:[#allocation2 + $0x71] sm:$0xff] }
 0x5d8   : > { %6101 = vst.msk [vmem:[#allocation3 + $0x28] sm:$0xff] %vm253_vm1, %v9656_v25  ;;  %4698 = vst.msk [vmem:[#allocation3 + $0x70] sm:$0xff] %vm253_vm1, %v9654_v34  ;;  %v5748_v35 = vpop.permute.xlu1 %5747 }
 0x5d9   : > { %5651 = vst.msk [vmem:[#allocation3] sm:$0xff] %vm1753_vm7, %v5556_v4  ;;  %v5174_v49 = vpop.permute.xlu0 %5173  ;;  %v4471_v36 = vpop.f32.mrb[70].mxu0 }
 0x5da   : > { %6102 = vst.msk [vmem:[#allocation3 + $0x38] sm:$0xff] %vm253_vm1, %v9664_v15  ;;  %v4472_v8 = vadd.f32 %v9676_v3, %v4471_v36  ;;  %v4473_v1 = vpop.f32.mrb[71].mxu0  ;;  %5753 = vrot.lane.b32.xlu1 %v9654_v34, %s7161_s26 }
 0x5db   : > { %5843 = vst.msk [vmem:[#allocation3] sm:$0xff] %vm1947_vm8, %v5748_v35 }
 0x5dc   : > { %5268 = vst.msk [vmem:[#allocation3 + $0x10] sm:$0xff] %vm1367_vm5, %v5174_v49  ;;  %v4602_v39 = vmax.f32 %v4472_v8, 0.0  ;;  %v5940_v12 = vpop.permute.xlu1 %5939 }
 0x5dd   : > { %v5366_v20 = vpop.permute.xlu0 %5365  ;;  %6035 = vst.msk [vmem:[#allocation3] sm:$0xff] %vm2140_vm9, %v5940_v12  ;;  %v9682_v7 = vld [vmem:[#allocation2 + $0x88] sm:$0xff] }
 0x5de   : > { %v9684_v48 = vld [vmem:[#allocation2 + $0x87] sm:$0xff]  ;;  %4634 = vst.msk [vmem:[#allocation2 + $0x90] sm:$0xff] %vm253_vm1, %v4602_v39  ;;  %5945 = vrot.lane.b32.xlu1 %v9652_v41, %s7162_s16  ;;  %4803 = vrot.lane.b32.xlu0 %v9682_v7, %s7155_s30 }
 0x5df   : > { %5460 = vst.msk [vmem:[#allocation3 + $0x10] sm:$0xff] %vm1560_vm6, %v5366_v20  ;;  %v6136_v38 = vld [vmem:[#allocation3 + $0x28] sm:$0xff] }
 0x5e0   : > { %4699 = vst.msk [vmem:[#allocation3 + $0x80] sm:$0xff] %vm253_vm1, %v9684_v48  ;;  %v4798_v56 = vpop.permute.xlu1 %4797 }
 0x5e1   : > { %5652 = vst.msk [vmem:[#allocation3 + $0x10] sm:$0xff] %vm1753_vm7, %v5558_v11  ;;  %v4984_v53 = vpop.permute.xlu0 %4983  ;;  %v4476_v58 = vpop.f32.mrb[72].mxu0  ;;  %v6138_v36 = vld [vmem:[#allocation3 + $0x38] sm:$0xff] }
 0x5e2   : > { %4888 = vst.msk [vmem:[#allocation3 + $0x50] sm:$0xff] %vm981_vm3, %v4798_v56  ;;  %v4477_v59 = vadd.f32 %v9676_v3, %v4476_v58  ;;  %v4478_v43 = vpop.f32.mrb[73].mxu0  ;;  %5179 = vrot.lane.b32.xlu0 %v9474_v54, %s7157_s10 }
 0x5e3   : > { %5077 = vst.msk [vmem:[#allocation3 + $0x20] sm:$0xff] %vm1174_vm4, %v4984_v53 }
 0x5e4   : > { %v4603_v60 = vmax.f32 %v4477_v59, 0.0  ;;  %v5750_v32 = vpop.permute.xlu1 %5749  ;;  %v6131_v55 = vld [vmem:[#allocation3] sm:$0xff] }
 0x5e5   : > { %v4986_v52 = vpop.permute.xlu0 %4985  ;;  %5844 = vst.msk [vmem:[#allocation3 + $0x10] sm:$0xff] %vm1947_vm8, %v5750_v32  ;;  %6383 = vmatmul.mubr.f32.vlgmr.msra.gmra.mrb[40].mxu1 %v6131_v55  ;;  %v9701_v47 = vld [vmem:[#allocation2 + $0x90] sm:$0xff] }
 0x5e6   : > { %v9703_v9 = vld [vmem:[#allocation2 + $0x8f] sm:$0xff]  ;;  %4635 = vst.msk [vmem:[#allocation2 + $0xa8] sm:$0xff] %vm253_vm1, %v4603_v60  ;;  %4805 = vrot.lane.b32.xlu1 %v9701_v47, %s7155_s30  ;;  %6909 = vmatprep.mubr.msk.f32.mxu1 %vm253_vm1, %v6134_v62 }
 0x5e7   : > { %v9705_v10 = vld [vmem:[#allocation2 + $0x89] sm:$0xff]  ;;  %5078 = vst.msk [vmem:[#allocation3 + $0x30] sm:$0xff] %vm1174_vm4, %v4986_v52  ;;  %v9712_v54 = vld [vmem:[#allocation2 + $0x91] sm:$0xff] }
 0x5e8   : > { %4700 = vst.msk [vmem:[#allocation3 + $0x90] sm:$0xff] %vm253_vm1, %v9703_v9  ;;  %6103 = vst.msk [vmem:[#allocation3 + $0x48] sm:$0xff] %vm253_vm1, %v9705_v10  ;;  %v5942_v28 = vpop.permute.xlu1 %5941 }
 0x5e9   : > { %6104 = vst.msk [vmem:[#allocation3 + $0x58] sm:$0xff] %vm253_vm1, %v9712_v54  ;;  %v4796_v13 = vpop.permute.xlu0 %4795  ;;  %v4481_v0 = vpop.f32.mrb[74].mxu0 }
 0x5ea   : > { %6036 = vst.msk [vmem:[#allocation3 + $0x10] sm:$0xff] %vm2140_vm9, %v5942_v28  ;;  %v4482_v27 = vadd.f32 %v9676_v3, %v4481_v0  ;;  %v4483_v51 = vpop.f32.mrb[75].mxu0  ;;  %5563 = vrot.lane.b32.xlu1 %v9656_v25, %s7159_s12 }
 0x5eb   : > { %4887 = vst.msk [vmem:[#allocation3 + $0x40] sm:$0xff] %vm981_vm3, %v4796_v13 }
 0x5ec   : > { %v4604_v23 = vmax.f32 %v4482_v27, 0.0  ;;  %v5560_v40 = vpop.permute.xlu1 %5559 }
 0x5ed   : > { %v5176_v19 = vpop.permute.xlu0 %5175  ;;  %v9725_v22 = vld [vmem:[#allocation2 + $0xa8] sm:$0xff] }
 0x5ee   : > { %v9727_v44 = vld [vmem:[#allocation2 + $0xa7] sm:$0xff]  ;;  %4636 = vst.msk [vmem:[#allocation2 + $0xb0] sm:$0xff] %vm253_vm1, %v4604_v23  ;;  %4807 = vrot.lane.b32.xlu0 %v9725_v22, %s7155_s30 }
 0x5ef   : > { %5269 = vst.msk [vmem:[#allocation3 + $0x20] sm:$0xff] %vm1367_vm5, %v5176_v19 }
 0x5f0   : > { %4701 = vst.msk [vmem:[#allocation3 + $0xa0] sm:$0xff] %vm253_vm1, %v9727_v44  ;;  %v5562_v16 = vpop.permute.xlu1 %5561 }
 0x5f1   : > { %v6133_v18 = vld [vmem:[#allocation3 + $0x10] sm:$0xff]  ;;  %v5368_v31 = vpop.permute.xlu0 %5367 }
 0x5f2   : > { %v4486_v50 = vpop.f32.mrb[76].mxu0  ;;  %6388 = vmatmul.mubr.f32.gmra.mrb[42].mxu1 %v6133_v18  ;;  %5461 = vst.msk [vmem:[#allocation3 + $0x20] sm:$0xff] %vm1560_vm6, %v5368_v31  ;;  %5371 = vrot.lane.b32.xlu0 %v9592_v63, %s7158_s11 }
 0x5f3   : > { %v4487_v42 = vadd.f32 %v9676_v3, %v4486_v50  ;;  %v4488_v33 = vpop.f32.mrb[77].mxu0  ;;  %6910 = vmatprep.mubr.msk.f32.mxu1 %vm253_vm1, %v6136_v38  ;;  %5653 = vst.msk [vmem:[#allocation3 + $0x20] sm:$0xff] %vm1753_vm7, %v5560_v40 }
 0x5f4   : > { %v5752_v30 = vpop.permute.xlu1 %5751 }
 0x5f5   : > { %v4605_v57 = vmax.f32 %v4487_v42, 0.0  ;;  %v5178_v14 = vpop.permute.xlu0 %5177  ;;  %5845 = vst.msk [vmem:[#allocation3 + $0x20] sm:$0xff] %vm1947_vm8, %v5752_v30  ;;  %v9742_v24 = vld [vmem:[#allocation2 + $0xb0] sm:$0xff] }
 0x5f6   : > { %v9744_v5 = vld [vmem:[#allocation2 + $0xaf] sm:$0xff]  ;;  %5270 = vst.msk [vmem:[#allocation3 + $0x30] sm:$0xff] %vm1367_vm5, %v5178_v14  ;;  %4809 = vrot.lane.b32.xlu1 %v9742_v24, %s7155_s30 }
 0x5f7   : > { %v9746_v45 = vld [vmem:[#allocation2 + $0xa9] sm:$0xff]  ;;  %4637 = vst.msk [vmem:[#allocation2 + $0xc8] sm:$0xff] %vm253_vm1, %v4605_v57  ;;  %v9752_v63 = vld [vmem:[#allocation2 + $0xb1] sm:$0xff]  ;;  %4702 = vst.msk [vmem:[#allocation3 + $0xb0] sm:$0xff] %vm253_vm1, %v9744_v5 }
 0x5f8   : > { %6105 = vst.msk [vmem:[#allocation3 + $0x68] sm:$0xff] %vm253_vm1, %v9746_v45  ;;  %6106 = vst.msk [vmem:[#allocation3 + $0x78] sm:$0xff] %vm253_vm1, %v9752_v63  ;;  %v5944_v29 = vpop.permute.xlu1 %5943 }
 0x5f9   : > { %v5370_v2 = vpop.permute.xlu0 %5369  ;;  %v4491_v4 = vpop.f32.mrb[78].mxu0  ;;  %6037 = vst.msk [vmem:[#allocation3 + $0x20] sm:$0xff] %vm2140_vm9, %v5944_v29 }
 0x5fa   : > { %5462 = vst.msk [vmem:[#allocation3 + $0x30] sm:$0xff] %vm1560_vm6, %v5370_v2  ;;  %v4492_v46 = vadd.f32 %v9676_v3, %v4491_v4  ;;  %v4493_v17 = vpop.f32.mrb[79].mxu0  ;;  %5755 = vrot.lane.b32.xlu1 %v9684_v48, %s7161_s26 }
 0x5fb   : > { %5654 = vst.msk [vmem:[#allocation3 + $0x30] sm:$0xff] %vm1753_vm7, %v5562_v16 }
 0x5fc   : > { %v4606_v61 = vmax.f32 %v4492_v46, 0.0 }
 0x5fd   : > { %v4800_v26 = vpop.permute.xlu0 %4799 }
 0x5fe   : > { %v9766_v21 = vld [vmem:[#allocation2 + $0xc8] sm:$0xff]  ;;  %4638 = vst.msk [vmem:[#allocation2 + $0xd0] sm:$0xff] %vm253_vm1, %v4606_v61 }
 0x5ff   : > { %v9768_v11 = vld [vmem:[#allocation2 + $0xc7] sm:$0xff]  ;;  %4889 = vst.msk [vmem:[#allocation3 + $0x60] sm:$0xff] %vm981_vm3, %v4800_v26  ;;  %4811 = vrot.lane.b32.xlu0 %v9766_v21, %s7155_s30 }
 0x600   : > { %4703 = vst.msk [vmem:[#allocation3 + $0xc0] sm:$0xff] %vm253_vm1, %v9768_v11  ;;  %v6135_v37 = vld [vmem:[#allocation3 + $0x20] sm:$0xff] }
 0x601   : > { %v4988_v49 = vpop.permute.xlu0 %4987  ;;  %6393 = vmatmul.mubr.f32.gmra.mrb[44].mxu1 %v6135_v37 }
 0x602   : > { %v4496_v35 = vpop.f32.mrb[80].mxu0  ;;  %5079 = vst.msk [vmem:[#allocation3 + $0x40] sm:$0xff] %vm1174_vm4, %v4988_v49  ;;  %6911 = vmatprep.mubr.msk.f32.mxu1 %vm253_vm1, %v6138_v36 }
 0x603   : > { %v4497_v8 = vadd.f32 %v9676_v3, %v4496_v35  ;;  %v4498_v1 = vpop.f32.mrb[81].mxu0  ;;  %4989 = vrot.lane.b32.xlu0 %v9420_v6, %s7156_s7 }
 0x605   : > { %v4607_v39 = vmax.f32 %v4497_v8, 0.0  ;;  %v9781_v12 = vld [vmem:[#allocation2 + $0xd0] sm:$0xff] }
 0x606   : > { %v9783_v20 = vld [vmem:[#allocation2 + $0xcf] sm:$0xff]  ;;  %4813 = vrot.lane.b32.xlu1 %v9781_v12, %s7155_s30 }
 0x607   : > { %v9785_v56 = vld [vmem:[#allocation2 + $0xc9] sm:$0xff]  ;;  %4639 = vst.msk [vmem:[#allocation2 + $0xe8] sm:$0xff] %vm253_vm1, %v4607_v39  ;;  %v9790_v53 = vld [vmem:[#allocation2 + $0xd1] sm:$0xff]  ;;  %4704 = vst.msk [vmem:[#allocation3 + $0xd0] sm:$0xff] %vm253_vm1, %v9783_v20 }
 0x608   : > { %6107 = vst.msk [vmem:[#allocation3 + $0x88] sm:$0xff] %vm253_vm1, %v9785_v56  ;;  %6108 = vst.msk [vmem:[#allocation3 + $0x98] sm:$0xff] %vm253_vm1, %v9790_v53 }
 0x609   : > { %v4501_v6 = vpop.f32.mrb[82].mxu0 }
 0x60a   : > { %v4502_v58 = vadd.f32 %v9676_v3, %v4501_v6  ;;  %v4503_v59 = vpop.f32.mrb[83].mxu0  ;;  %5947 = vrot.lane.b32.xlu1 %v9682_v7, %s7162_s16 }
 0x60c   : > { %v4608_v43 = vmax.f32 %v4502_v58, 0.0 }
 0x60e   : > { %v9801_v60 = vld [vmem:[#allocation2 + $0xe8] sm:$0xff]  ;;  %4640 = vst.msk [vmem:[#allocation2 + $0xf0] sm:$0xff] %vm253_vm1, %v4608_v43 }
 0x60f   : > { %v9803_v32 = vld [vmem:[#allocation2 + $0xe7] sm:$0xff]  ;;  %4815 = vrot.lane.b32.xlu0 %v9801_v60, %s7155_s30 }
 0x610   : > { %4705 = vst.msk [vmem:[#allocation3 + $0xe0] sm:$0xff] %vm253_vm1, %v9803_v32 }
 0x611   : > { %v4506_v55 = vpop.f32.mrb[84].mxu0 }
 0x612   : > { %v4507_v62 = vadd.f32 %v9676_v3, %v4506_v55  ;;  %v4508_v52 = vpop.f32.mrb[85].mxu0 }
 0x613   : > { %5181 = vrot.lane.b32.xlu0 %v9654_v34, %s7157_s10 }
 0x614   : > { %v4609_v28 = vmax.f32 %v4507_v62, 0.0 }
 0x615   : > { %v9813_v13 = vld [vmem:[#allocation2 + $0xf0] sm:$0xff] }
 0x616   : > { %v9815_v0 = vld [vmem:[#allocation2 + $0xef] sm:$0xff]  ;;  %4641 = vst.msk [vmem:[#allocation2 + $0x108] sm:$0xff] %vm253_vm1, %v4609_v28  ;;  %4817 = vrot.lane.b32.xlu1 %v9813_v13, %s7155_s30 }
 0x617   : > { %v9817_v27 = vld [vmem:[#allocation2 + $0xe9] sm:$0xff]  ;;  %v9822_v51 = vld [vmem:[#allocation2 + $0xf1] sm:$0xff]  ;;  %4706 = vst.msk [vmem:[#allocation3 + $0xf0] sm:$0xff] %vm253_vm1, %v9815_v0 }
 0x618   : > { %6109 = vst.msk [vmem:[#allocation3 + $0xa8] sm:$0xff] %vm253_vm1, %v9817_v27  ;;  %6110 = vst.msk [vmem:[#allocation3 + $0xb8] sm:$0xff] %vm253_vm1, %v9822_v51 }
 0x61a   : > { %v4511_v34 = vpop.f32.mrb[86].mxu0  ;;  %5565 = vrot.lane.b32.xlu1 %v9664_v15, %s7159_s12 }
 0x61b   : > { %v4512_v23 = vadd.f32 %v9676_v3, %v4511_v34  ;;  %v4513_v40 = vpop.f32.mrb[87].mxu0 }
 0x61d   : > { %v4610_v19 = vmax.f32 %v4512_v23, 0.0  ;;  %v9833_v16 = vld [vmem:[#allocation2 + $0x108] sm:$0xff] }
 0x61e   : > { %v9835_v18 = vld [vmem:[#allocation2 + $0x107] sm:$0xff]  ;;  %4819 = vrot.lane.b32.xlu0 %v9833_v16, %s7155_s30 }
 0x61f   : > { %4642 = vst.msk [vmem:[#allocation2 + $0x110] sm:$0xff] %vm253_vm1, %v4610_v19  ;;  %4707 = vst.msk [vmem:[#allocation3 + $0x100] sm:$0xff] %vm253_vm1, %v9835_v18 }
 0x622   : > { %v4516_v31 = vpop.f32.mrb[88].mxu0  ;;  %5373 = vrot.lane.b32.xlu0 %v9652_v41, %s7158_s11 }
 0x623   : > { %v4517_v50 = vadd.f32 %v9676_v3, %v4516_v31  ;;  %v4518_v38 = vpop.f32.mrb[89].mxu0 }
 0x625   : > { %v4611_v42 = vmax.f32 %v4517_v50, 0.0 }
 0x626   : > { %v9845_v33 = vld [vmem:[#allocation2 + $0x110] sm:$0xff]  ;;  %4991 = vrot.lane.b32.xlu0 %v9656_v25, %s7156_s7 }
 0x627   : > { %v9847_v57 = vld [vmem:[#allocation2 + $0x10f] sm:$0xff]  ;;  %4643 = vst.msk [vmem:[#allocation2 + $0x128] sm:$0xff] %vm253_vm1, %v4611_v42  ;;  %4821 = vrot.lane.b32.xlu1 %v9845_v33, %s7155_s30 }
 0x628   : > { %v9849_v30 = vld [vmem:[#allocation2 + $0x109] sm:$0xff]  ;;  %4708 = vst.msk [vmem:[#allocation3 + $0x110] sm:$0xff] %vm253_vm1, %v9847_v57  ;;  %v9858_v14 = vld [vmem:[#allocation2 + $0x111] sm:$0xff] }
 0x629   : > { %6111 = vst.msk [vmem:[#allocation3 + $0xc8] sm:$0xff] %vm253_vm1, %v9849_v30  ;;  %6112 = vst.msk [vmem:[#allocation3 + $0xd8] sm:$0xff] %vm253_vm1, %v9858_v14  ;;  %v4521_v41 = vpop.f32.mrb[90].mxu0 }
 0x62a   : > { %v4522_v29 = vadd.f32 %v9676_v3, %v4521_v41  ;;  %v4523_v2 = vpop.f32.mrb[91].mxu0  ;;  %5183 = vrot.lane.b32.xlu0 %v9684_v48, %s7157_s10 }
 0x62b   : > { %5757 = vrot.lane.b32.xlu1 %v9703_v9, %s7161_s26 }
 0x62c   : > { %v4612_v25 = vmax.f32 %v4522_v29, 0.0  ;;  %v6140_v29 = vld [vmem:[#allocation3 + $0x48] sm:$0xff] }
 0x62e   : > { %v9869_v4 = vld [vmem:[#allocation2 + $0x127] sm:$0xff]  ;;  %4644 = vst.msk [vmem:[#allocation2 + $0x130] sm:$0xff] %vm253_vm1, %v4612_v25  ;;  %5375 = vrot.lane.b32.xlu0 %v9682_v7, %s7158_s11 }
 0x62f   : > { %5949 = vrot.lane.b32.xlu1 %v9701_v47, %s7162_s16  ;;  %4709 = vst.msk [vmem:[#allocation3 + $0x120] sm:$0xff] %vm253_vm1, %v9869_v4 }
 0x631   : > { %v4526_v46 = vpop.f32.mrb[92].mxu0 }
 0x632   : > { %v4527_v17 = vadd.f32 %v9676_v3, %v4526_v46  ;;  %v4528_v61 = vpop.f32.mrb[93].mxu0  ;;  %4993 = vrot.lane.b32.xlu0 %v9664_v15, %s7156_s7 }
 0x633   : > { %5567 = vrot.lane.b32.xlu1 %v9705_v10, %s7159_s12 }
 0x634   : > { %v4613_v48 = vmax.f32 %v4527_v17, 0.0 }
 0x635   : > { %v9883_v26 = vld [vmem:[#allocation2 + $0x12f] sm:$0xff] }
 0x636   : > { %v9885_v37 = vld [vmem:[#allocation2 + $0x129] sm:$0xff]  ;;  %4645 = vst.msk [vmem:[#allocation2 + $0x148] sm:$0xff] %vm253_vm1, %v4613_v48  ;;  %5185 = vrot.lane.b32.xlu0 %v9703_v9, %s7157_s10  ;;  %v9892_v7 = vld [vmem:[#allocation2 + $0x131] sm:$0xff]  ;;  %4710 = vst.msk [vmem:[#allocation3 + $0x130] sm:$0xff] %vm253_vm1, %v9883_v26 }
 0x637   : > { %5759 = vrot.lane.b32.xlu1 %v9727_v44, %s7161_s26  ;;  %6113 = vst.msk [vmem:[#allocation3 + $0xe8] sm:$0xff] %vm253_vm1, %v9885_v37  ;;  %6114 = vst.msk [vmem:[#allocation3 + $0xf8] sm:$0xff] %vm253_vm1, %v9892_v7 }
 0x639   : > { %v4531_v15 = vpop.f32.mrb[94].mxu0 }
 0x63a   : > { %v4532_v35 = vadd.f32 %v9676_v3, %v4531_v15  ;;  %v4533_v49 = vpop.f32.mrb[95].mxu0  ;;  %5377 = vrot.lane.b32.xlu0 %v9701_v47, %s7158_s11 }
 0x63b   : > { %5951 = vrot.lane.b32.xlu1 %v9725_v22, %s7162_s16 }
 0x63c   : > { %v4614_v9 = vmax.f32 %v4532_v35, 0.0 }
 0x63d   : > { %v9905_v36 = vld [vmem:[#allocation2 + $0x147] sm:$0xff] }
 0x63e   : > { %4646 = vst.msk [vmem:[#allocation2 + $0x150] sm:$0xff] %vm253_vm1, %v4614_v9  ;;  %4995 = vrot.lane.b32.xlu0 %v9705_v10, %s7156_s7  ;;  %4711 = vst.msk [vmem:[#allocation3 + $0x140] sm:$0xff] %vm253_vm1, %v9905_v36 }
 0x63f   : > { %5569 = vrot.lane.b32.xlu1 %v9712_v54, %s7159_s12 }
 0x641   : > { %v4536_v8 = vpop.f32.mrb[96].mxu0 }
 0x642   : > { %v4537_v1 = vadd.f32 %v9676_v3, %v4536_v8  ;;  %v4538_v39 = vpop.f32.mrb[97].mxu0  ;;  %5187 = vrot.lane.b32.xlu0 %v9727_v44, %s7157_s10 }
 0x643   : > { %5761 = vrot.lane.b32.xlu1 %v9744_v5, %s7161_s26 }
 0x644   : > { %v4615_v47 = vmax.f32 %v4537_v1, 0.0 }
 0x645   : > { %v9919_v6 = vld [vmem:[#allocation2 + $0x14f] sm:$0xff] }
 0x646   : > { %v9921_v58 = vld [vmem:[#allocation2 + $0x149] sm:$0xff]  ;;  %4647 = vst.msk [vmem:[#allocation2 + $0x168] sm:$0xff] %vm253_vm1, %v4615_v47  ;;  %5379 = vrot.lane.b32.xlu0 %v9725_v22, %s7158_s11  ;;  %v9928_v10 = vld [vmem:[#allocation2 + $0x151] sm:$0xff]  ;;  %4712 = vst.msk [vmem:[#allocation3 + $0x150] sm:$0xff] %vm253_vm1, %v9919_v6 }
 0x647   : > { %5953 = vrot.lane.b32.xlu1 %v9742_v24, %s7162_s16  ;;  %6115 = vst.msk [vmem:[#allocation3 + $0x108] sm:$0xff] %vm253_vm1, %v9921_v58  ;;  %6116 = vst.msk [vmem:[#allocation3 + $0x118] sm:$0xff] %vm253_vm1, %v9928_v10 }
 0x648   : > { %v4802_v44 = vpop.permute.xlu1 %4801 }
 0x649   : > { %4890 = vst.msk [vmem:[#allocation3 + $0x70] sm:$0xff] %vm981_vm3, %v4802_v44  ;;  %v4541_v59 = vpop.f32.mrb[98].mxu0 }
 0x64a   : > { %v4542_v43 = vadd.f32 %v9676_v3, %v4541_v59  ;;  %v4543_v55 = vpop.f32.mrb[99].mxu0  ;;  %4997 = vrot.lane.b32.xlu0 %v9712_v54, %s7156_s7 }
 0x64b   : > { %5571 = vrot.lane.b32.xlu1 %v9746_v45, %s7159_s12 }
 0x64c   : > { %v4616_v22 = vmax.f32 %v4542_v43, 0.0  ;;  %v5754_v62 = vpop.permute.xlu1 %5753 }
 0x64d   : > { %5846 = vst.msk [vmem:[#allocation3 + $0x30] sm:$0xff] %vm1947_vm8, %v5754_v62  ;;  %v9943_v52 = vld [vmem:[#allocation2 + $0x167] sm:$0xff] }
 0x64e   : > { %4648 = vst.msk [vmem:[#allocation2 + $0x170] sm:$0xff] %vm253_vm1, %v4616_v22  ;;  %5189 = vrot.lane.b32.xlu0 %v9744_v5, %s7157_s10  ;;  %4713 = vst.msk [vmem:[#allocation3 + $0x160] sm:$0xff] %vm253_vm1, %v9943_v52 }
 0x64f   : > { %5763 = vrot.lane.b32.xlu1 %v9768_v11, %s7161_s26 }
 0x650   : > { %v5946_v28 = vpop.permute.xlu1 %5945  ;;  %v4804_v34 = vpop.permute.xlu0 %4803 }
 0x651   : > { %6038 = vst.msk [vmem:[#allocation3 + $0x30] sm:$0xff] %vm2140_vm9, %v5946_v28  ;;  %v4546_v54 = vpop.f32.mrb[100].mxu0 }
 0x652   : > { %4891 = vst.msk [vmem:[#allocation3 + $0x80] sm:$0xff] %vm981_vm3, %v4804_v34  ;;  %v4547_v23 = vadd.f32 %v9676_v3, %v4546_v54  ;;  %v4548_v40 = vpop.f32.mrb[101].mxu0  ;;  %5381 = vrot.lane.b32.xlu0 %v9742_v24, %s7158_s11 }
 0x653   : > { %5955 = vrot.lane.b32.xlu1 %v9766_v21, %s7162_s16 }
 0x654   : > { %v4617_v5 = vmax.f32 %v4547_v23, 0.0  ;;  %v5180_v19 = vpop.permute.xlu0 %5179 }
 0x655   : > { %5271 = vst.msk [vmem:[#allocation3 + $0x40] sm:$0xff] %vm1367_vm5, %v5180_v19  ;;  %v9960_v31 = vld [vmem:[#allocation2 + $0x16f] sm:$0xff] }
 0x656   : > { %v9962_v50 = vld [vmem:[#allocation2 + $0x169] sm:$0xff]  ;;  %4649 = vst.msk [vmem:[#allocation2 + $0x188] sm:$0xff] %vm253_vm1, %v4617_v5  ;;  %4999 = vrot.lane.b32.xlu0 %v9746_v45, %s7156_s7  ;;  %v9969_v38 = vld [vmem:[#allocation2 + $0x171] sm:$0xff]  ;;  %4714 = vst.msk [vmem:[#allocation3 + $0x170] sm:$0xff] %vm253_vm1, %v9960_v31 }
 0x657   : > { %5573 = vrot.lane.b32.xlu1 %v9752_v63, %s7159_s12  ;;  %6117 = vst.msk [vmem:[#allocation3 + $0x128] sm:$0xff] %vm253_vm1, %v9962_v50  ;;  %6118 = vst.msk [vmem:[#allocation3 + $0x138] sm:$0xff] %vm253_vm1, %v9969_v38 }
 0x658   : > { %v4806_v24 = vpop.permute.xlu1 %4805  ;;  %v6137_v42 = vld [vmem:[#allocation3 + $0x30] sm:$0xff] }
 0x659   : > { %4892 = vst.msk [vmem:[#allocation3 + $0x90] sm:$0xff] %vm981_vm3, %v4806_v24  ;;  %v4551_v41 = vpop.f32.mrb[102].mxu0  ;;  %6398 = vmatmul.mubr.f32.gmra.mrb[46].mxu1 %v6137_v42 }
 0x65a   : > { %v4552_v45 = vadd.f32 %v9676_v3, %v4551_v41  ;;  %v4553_v2 = vpop.f32.mrb[103].mxu0  ;;  %6912 = vmatprep.mubr.msk.f32.mxu1 %vm253_vm1, %v6140_v29  ;;  %5191 = vrot.lane.b32.xlu0 %v9768_v11, %s7157_s10 }
 0x65b   : > { %5765 = vrot.lane.b32.xlu1 %v9783_v20, %s7161_s26 }
 0x65c   : > { %v4618_v25 = vmax.f32 %v4552_v45, 0.0  ;;  %v5564_v15 = vpop.permute.xlu1 %5563 }
 0x65d   : > { %v9984_v46 = vld [vmem:[#allocation2 + $0x187] sm:$0xff] }
 0x65e   : > { %4650 = vst.msk [vmem:[#allocation2 + $0x190] sm:$0xff] %vm253_vm1, %v4618_v25  ;;  %4715 = vst.msk [vmem:[#allocation3 + $0x180] sm:$0xff] %vm253_vm1, %v9984_v46  ;;  %5383 = vrot.lane.b32.xlu0 %v9766_v21, %s7158_s11 }
 0x65f   : > { %5957 = vrot.lane.b32.xlu1 %v9781_v12, %s7162_s16 }
 0x660   : > { %v4808_v17 = vpop.permute.xlu0 %4807 }
 0x661   : > { %4893 = vst.msk [vmem:[#allocation3 + $0xa0] sm:$0xff] %vm981_vm3, %v4808_v17  ;;  %v4556_v61 = vpop.f32.mrb[104].mxu0 }
 0x662   : > { %v4557_v11 = vadd.f32 %v9676_v3, %v4556_v61  ;;  %v4558_v48 = vpop.f32.mrb[105].mxu0  ;;  %5001 = vrot.lane.b32.xlu0 %v9752_v63, %s7156_s7 }
 0x663   : > { %5575 = vrot.lane.b32.xlu1 %v9785_v56, %s7159_s12 }
 0x664   : > { %v4619_v35 = vmax.f32 %v4557_v11, 0.0  ;;  %v5372_v49 = vpop.permute.xlu0 %5371 }
 0x665   : > { %5463 = vst.msk [vmem:[#allocation3 + $0x40] sm:$0xff] %vm1560_vm6, %v5372_v49  ;;  %v10000_v9 = vld [vmem:[#allocation2 + $0x18f] sm:$0xff] }
 0x666   : > { %v10002_v21 = vld [vmem:[#allocation2 + $0x189] sm:$0xff]  ;;  %4651 = vst.msk [vmem:[#allocation2 + $0x1a8] sm:$0xff] %vm253_vm1, %v4619_v35  ;;  %v10008_v8 = vld [vmem:[#allocation2 + $0x191] sm:$0xff]  ;;  %4716 = vst.msk [vmem:[#allocation3 + $0x190] sm:$0xff] %vm253_vm1, %v10000_v9  ;;  %5193 = vrot.lane.b32.xlu0 %v9783_v20, %s7157_s10 }
 0x667   : > { %5655 = vst.msk [vmem:[#allocation3 + $0x40] sm:$0xff] %vm1753_vm7, %v5564_v15  ;;  %5767 = vrot.lane.b32.xlu1 %v9803_v32, %s7161_s26 }
 0x668   : > { %6119 = vst.msk [vmem:[#allocation3 + $0x148] sm:$0xff] %vm253_vm1, %v10002_v21  ;;  %6120 = vst.msk [vmem:[#allocation3 + $0x158] sm:$0xff] %vm253_vm1, %v10008_v8  ;;  %v4810_v63 = vpop.permute.xlu1 %4809 }
 0x669   : > { %4894 = vst.msk [vmem:[#allocation3 + $0xb0] sm:$0xff] %vm981_vm3, %v4810_v63  ;;  %v4561_v1 = vpop.f32.mrb[106].mxu0 }
 0x66a   : > { %v4562_v39 = vadd.f32 %v9676_v3, %v4561_v1  ;;  %v4563_v47 = vpop.f32.mrb[107].mxu0  ;;  %5385 = vrot.lane.b32.xlu0 %v9781_v12, %s7158_s11 }
 0x66b   : > { %5959 = vrot.lane.b32.xlu1 %v9801_v60, %s7162_s16 }
 0x66c   : > { %v4620_v44 = vmax.f32 %v4562_v39, 0.0  ;;  %v5756_v59 = vpop.permute.xlu1 %5755 }
 0x66d   : > { %5847 = vst.msk [vmem:[#allocation3 + $0x40] sm:$0xff] %vm1947_vm8, %v5756_v59  ;;  %v10025_v20 = vld [vmem:[#allocation2 + $0x1a7] sm:$0xff] }
 0x66e   : > { %4652 = vst.msk [vmem:[#allocation2 + $0x1b0] sm:$0xff] %vm253_vm1, %v4620_v44  ;;  %4717 = vst.msk [vmem:[#allocation3 + $0x1a0] sm:$0xff] %vm253_vm1, %v10025_v20  ;;  %5003 = vrot.lane.b32.xlu0 %v9785_v56, %s7156_s7 }
 0x66f   : > { %5577 = vrot.lane.b32.xlu1 %v9790_v53, %s7159_s12 }
 0x671   : > { %v4812_v43 = vpop.permute.xlu0 %4811  ;;  %v4566_v12 = vpop.f32.mrb[108].mxu0 }
 0x672   : > { %4895 = vst.msk [vmem:[#allocation3 + $0xc0] sm:$0xff] %vm981_vm3, %v4812_v43  ;;  %v4567_v55 = vadd.f32 %v9676_v3, %v4566_v12  ;;  %v4568_v22 = vpop.f32.mrb[109].mxu0  ;;  %5195 = vrot.lane.b32.xlu0 %v9803_v32, %s7157_s10 }
 0x673   : > { %5769 = vrot.lane.b32.xlu1 %v9815_v0, %s7161_s26 }
 0x674   : > { %v4621_v62 = vmax.f32 %v4567_v55, 0.0 }
 0x675   : > { %v4990_v28 = vpop.permute.xlu0 %4989  ;;  %v10041_v34 = vld [vmem:[#allocation2 + $0x1af] sm:$0xff] }
 0x676   : > { %5080 = vst.msk [vmem:[#allocation3 + $0x50] sm:$0xff] %vm1174_vm4, %v4990_v28  ;;  %v10043_v56 = vld [vmem:[#allocation2 + $0x1a9] sm:$0xff]  ;;  %v10048_v54 = vld [vmem:[#allocation2 + $0x1b1] sm:$0xff]  ;;  %5387 = vrot.lane.b32.xlu0 %v9801_v60, %s7158_s11 }
 0x677   : > { %4653 = vst.msk [vmem:[#allocation2 + $0x1c8] sm:$0xff] %vm253_vm1, %v4621_v62  ;;  %5961 = vrot.lane.b32.xlu1 %v9813_v13, %s7162_s16  ;;  %6121 = vst.msk [vmem:[#allocation3 + $0x168] sm:$0xff] %vm253_vm1, %v10043_v56 }
 0x678   : > { %4718 = vst.msk [vmem:[#allocation3 + $0x1b0] sm:$0xff] %vm253_vm1, %v10041_v34  ;;  %6122 = vst.msk [vmem:[#allocation3 + $0x178] sm:$0xff] %vm253_vm1, %v10048_v54  ;;  %v4814_v32 = vpop.permute.xlu1 %4813 }
 0x679   : > { %4896 = vst.msk [vmem:[#allocation3 + $0xd0] sm:$0xff] %vm981_vm3, %v4814_v32  ;;  %v4571_v23 = vpop.f32.mrb[110].mxu0 }
 0x67a   : > { %v4572_v40 = vadd.f32 %v9676_v3, %v4571_v23  ;;  %v4573_v5 = vpop.f32.mrb[111].mxu0  ;;  %5005 = vrot.lane.b32.xlu0 %v9790_v53, %s7156_s7 }
 0x67b   : > { %5579 = vrot.lane.b32.xlu1 %v9817_v27, %s7159_s12 }
 0x67c   : > { %v4622_v19 = vmax.f32 %v4572_v40, 0.0  ;;  %v5948_v24 = vpop.permute.xlu1 %5947 }
 0x67d   : > { %6039 = vst.msk [vmem:[#allocation3 + $0x40] sm:$0xff] %vm2140_vm9, %v5948_v24 }
 0x67e   : > { %v10065_v60 = vld [vmem:[#allocation2 + $0x1c7] sm:$0xff]  ;;  %4654 = vst.msk [vmem:[#allocation2 + $0x1d0] sm:$0xff] %vm253_vm1, %v4622_v19  ;;  %5197 = vrot.lane.b32.xlu0 %v9815_v0, %s7157_s10  ;;  %v6142_v0 = vld [vmem:[#allocation3 + $0x58] sm:$0xff] }
 0x67f   : > { %5771 = vrot.lane.b32.xlu1 %v9835_v18, %s7161_s26  ;;  %4719 = vst.msk [vmem:[#allocation3 + $0x1c0] sm:$0xff] %vm253_vm1, %v10065_v60 }
 0x680   : > { %v4576_v41 = vpop.f32.mrb[112].mxu0 }
 0x681   : > { %v4816_v42 = vpop.permute.xlu0 %4815  ;;  %v4577_v53 = vadd.f32 %v9676_v3, %v4576_v41  ;;  %v4578_v29 = vpop.f32.mrb[113].mxu0 }
 0x682   : > { %4897 = vst.msk [vmem:[#allocation3 + $0xe0] sm:$0xff] %vm981_vm3, %v4816_v42  ;;  %5389 = vrot.lane.b32.xlu0 %v9813_v13, %s7158_s11 }
 0x683   : > { %5963 = vrot.lane.b32.xlu1 %v9833_v16, %s7162_s16  ;;  %v4623_v45 = vmax.f32 %v4577_v53, 0.0 }
 0x684   : > { %v6139_v25 = vld [vmem:[#allocation3 + $0x40] sm:$0xff] }
 0x685   : > { %v5182_v2 = vpop.permute.xlu0 %5181  ;;  %4655 = vst.msk [vmem:[#allocation2 + $0x1e8] sm:$0xff] %vm253_vm1, %v4623_v45  ;;  %6403 = vmatmul.mubr.f32.gmra.mrb[48].mxu1 %v6139_v25  ;;  %v10082_v17 = vld [vmem:[#allocation2 + $0x1cf] sm:$0xff] }
 0x686   : > { %5272 = vst.msk [vmem:[#allocation3 + $0x50] sm:$0xff] %vm1367_vm5, %v5182_v2  ;;  %v10084_v61 = vld [vmem:[#allocation2 + $0x1c9] sm:$0xff]  ;;  %6913 = vmatprep.mubr.msk.f32.mxu1 %vm253_vm1, %v6142_v0  ;;  %v10089_v11 = vld [vmem:[#allocation2 + $0x1d1] sm:$0xff]  ;;  %5007 = vrot.lane.b32.xlu0 %v9817_v27, %s7156_s7 }
 0x687   : > { %5581 = vrot.lane.b32.xlu1 %v9822_v51, %s7159_s12  ;;  %6123 = vst.msk [vmem:[#allocation3 + $0x188] sm:$0xff] %vm253_vm1, %v10084_v61  ;;  %4720 = vst.msk [vmem:[#allocation3 + $0x1d0] sm:$0xff] %vm253_vm1, %v10082_v17  ;;  %v10192_v0 = vld [vmem:[#allocation2 + $0x148] sm:$0xff] }
 0x688   : > { %6124 = vst.msk [vmem:[#allocation3 + $0x198] sm:$0xff] %vm253_vm1, %v10089_v11  ;;  %v4818_v13 = vpop.permute.xlu1 %4817 }
 0x689   : > { %4898 = vst.msk [vmem:[#allocation3 + $0xf0] sm:$0xff] %vm981_vm3, %v4818_v13 }
 0x68a   : > { %5199 = vrot.lane.b32.xlu0 %v9835_v18, %s7157_s10 }
 0x68b   : > { %5773 = vrot.lane.b32.xlu1 %v9847_v57, %s7161_s26 }
 0x68c   : > { %v10104_v48 = vld [vmem:[#allocation2 + $0x1e7] sm:$0xff]  ;;  %v5566_v18 = vpop.permute.xlu1 %5565 }
 0x68d   : > { %v4581_v15 = vpop.f32.mrb[114].mxu0  ;;  %4721 = vst.msk [vmem:[#allocation3 + $0x1e0] sm:$0xff] %vm253_vm1, %v10104_v48 }
 0x68e   : > { %v4582_v27 = vadd.f32 %v9676_v3, %v4581_v15  ;;  %v4583_v35 = vpop.f32.mrb[115].mxu0  ;;  %5391 = vrot.lane.b32.xlu0 %v9833_v16, %s7158_s11 }
 0x68f   : > { %5965 = vrot.lane.b32.xlu1 %v9845_v33, %s7162_s16  ;;  %v10208_v35 = vld [vmem:[%s10743_s4 + $0x2] ss:$0 sm:$0xff] }
 0x690   : > { %v4624_v49 = vmax.f32 %v4582_v27, 0.0  ;;  %v4820_v63 = vpop.permute.xlu0 %4819 }
 0x691   : > { %4899 = vst.msk [vmem:[#allocation3 + $0x100] sm:$0xff] %vm981_vm3, %v4820_v63 }
 0x692   : > { %4656 = vst.msk [vmem:[#allocation2 + $0x1f0] sm:$0xff] %vm253_vm1, %v4624_v49  ;;  %5009 = vrot.lane.b32.xlu0 %v9822_v51, %s7156_s7  ;;  %v10128_v51 = vld [vmem:[#allocation2 + $0x128] sm:$0xff] }
 0x693   : > { %5583 = vrot.lane.b32.xlu1 %v9849_v30, %s7159_s12 }
 0x694   : > { %v5374_v1 = vpop.permute.xlu0 %5373  ;;  %v4586_v39 = vpop.f32.mrb[116].mxu0 }
 0x695   : > { %5464 = vst.msk [vmem:[#allocation3 + $0x50] sm:$0xff] %vm1560_vm6, %v5374_v1  ;;  %v4587_v47 = vadd.f32 %v9676_v3, %v4586_v39  ;;  %v4588_v16 = vpop.f32.mrb[117].mxu0  ;;  %v6576_v1 = vld [vmem:[#allocation4] sm:$0xff]  ;;  %v10212_v39 = vstv %s6575_s22 }
 0x696   : > { %5656 = vst.msk [vmem:[#allocation3 + $0x50] sm:$0xff] %vm1753_vm7, %v5566_v18  ;;  %5201 = vrot.lane.b32.xlu0 %v9847_v57, %s7157_s10 }
 0x697   : > { %5775 = vrot.lane.b32.xlu1 %v9869_v4, %s7161_s26  ;;  %v4625_v44 = vmax.f32 %v4587_v47, 0.0 }
 0x698   : > { %v4992_v43 = vpop.permute.xlu0 %4991 }
 0x699   : > { %v4822_v59 = vpop.permute.xlu1 %4821  ;;  %5081 = vst.msk [vmem:[#allocation3 + $0x60] sm:$0xff] %vm1174_vm4, %v4992_v43  ;;  %v10131_v12 = vld [vmem:[#allocation2 + $0x1ef] sm:$0xff] }
 0x69a   : > { %4900 = vst.msk [vmem:[#allocation3 + $0x110] sm:$0xff] %vm981_vm3, %v4822_v59  ;;  %v10133_v55 = vld [vmem:[#allocation2 + $0x1e9] sm:$0xff]  ;;  %v10137_v22 = vld [vmem:[#allocation2 + $0x1f1] sm:$0xff]  ;;  %5393 = vrot.lane.b32.xlu0 %v9845_v33, %s7158_s11  ;;  %v6609_v59 = vmul.f32 %v10212_v39, %v6576_v1 }
 0x69b   : > { %4657 = vst.msk [vmem:[#allocation2 + $0x208] sm:$0xff] %vm253_vm1, %v4625_v44  ;;  %5967 = vrot.lane.b32.xlu1 %v10128_v51, %s7162_s16  ;;  %6125 = vst.msk [vmem:[#allocation3 + $0x1a8] sm:$0xff] %vm253_vm1, %v10133_v55 }
 0x69c   : > { %4722 = vst.msk [vmem:[#allocation3 + $0x1f0] sm:$0xff] %vm253_vm1, %v10131_v12  ;;  %6126 = vst.msk [vmem:[#allocation3 + $0x1b8] sm:$0xff] %vm253_vm1, %v10137_v22  ;;  %v5184_v62 = vpop.permute.xlu0 %5183 }
 0x69d   : > { %v5758_v57 = vpop.permute.xlu1 %5757  ;;  %5273 = vst.msk [vmem:[#allocation3 + $0x60] sm:$0xff] %vm1367_vm5, %v5184_v62 }
 0x69e   : > { %5848 = vst.msk [vmem:[#allocation3 + $0x50] sm:$0xff] %vm1947_vm8, %v5758_v57  ;;  %v4591_v28 = vpop.f32.mrb[118].mxu0  ;;  %5011 = vrot.lane.b32.xlu0 %v9849_v30, %s7156_s7  ;;  %v10231_v57 = vld [vmem:[#allocation2 + $0x150] sm:$0xff] }
 0x69f   : > { %5585 = vrot.lane.b32.xlu1 %v9858_v14, %s7159_s12  ;;  %v4592_v32 = vadd.f32 %v9676_v3, %v4591_v28  ;;  %v4593_v23 = vpop.f32.mrb[119].mxu0  ;;  %v10163_v3 = vld [vmem:[#allocation2 + $0x130] sm:$0xff] }
 0x6a0   : > { %v5376_v40 = vpop.permute.xlu0 %5375  ;;  %v6148_v23 = vld [vmem:[#allocation3 + $0x88] sm:$0xff] }
 0x6a1   : > { %v5950_v33 = vpop.permute.xlu1 %5949  ;;  %5465 = vst.msk [vmem:[#allocation3 + $0x60] sm:$0xff] %vm1560_vm6, %v5376_v40  ;;  %v4626_v5 = vmax.f32 %v4592_v32, 0.0 }
 0x6a2   : > { %6040 = vst.msk [vmem:[#allocation3 + $0x50] sm:$0xff] %vm2140_vm9, %v5950_v33  ;;  %5203 = vrot.lane.b32.xlu0 %v9869_v4, %s7157_s10  ;;  %v6144_v4 = vld [vmem:[#allocation3 + $0x68] sm:$0xff] }
 0x6a3   : > { %5777 = vrot.lane.b32.xlu1 %v9883_v26, %s7161_s26  ;;  %4658 = vst.msk [vmem:[#allocation2 + $0x210] sm:$0xff] %vm253_vm1, %v4626_v5  ;;  %v6577_v5 = vld [vmem:[#allocation4 + $0x8] sm:$0xff] }
 0x6a4   : > { %v4994_v30 = vpop.permute.xlu0 %4993 }
 0x6a5   : > { %v5568_v19 = vpop.permute.xlu1 %5567  ;;  %5082 = vst.msk [vmem:[#allocation3 + $0x70] sm:$0xff] %vm1174_vm4, %v4994_v30 }
 0x6a6   : > { %5657 = vst.msk [vmem:[#allocation3 + $0x60] sm:$0xff] %vm1753_vm7, %v5568_v19  ;;  %5395 = vrot.lane.b32.xlu0 %v10128_v51, %s7158_s11 }
 0x6a7   : > { %5969 = vrot.lane.b32.xlu1 %v10163_v3, %s7162_s16 }
 0x6a8   : > { %v5186_v42 = vpop.permute.xlu0 %5185 }
 0x6a9   : > { %v5760_v24 = vpop.permute.xlu1 %5759  ;;  %v6141_v41 = vld [vmem:[#allocation3 + $0x50] sm:$0xff]  ;;  %5274 = vst.msk [vmem:[#allocation3 + $0x70] sm:$0xff] %vm1367_vm5, %v5186_v42 }
 0x6aa   : > { %5849 = vst.msk [vmem:[#allocation3 + $0x60] sm:$0xff] %vm1947_vm8, %v5760_v24  ;;  %6408 = vmatmul.mubr.f32.gmra.mrb[50].mxu1 %v6141_v41  ;;  %v10174_v53 = vld [vmem:[#allocation2 + $0x209] sm:$0xff]  ;;  %5013 = vrot.lane.b32.xlu0 %v9858_v14, %s7156_s7  ;;  %v10178_v29 = vld [vmem:[#allocation2 + $0x211] sm:$0xff] }
 0x6ab   : > { %5587 = vrot.lane.b32.xlu1 %v9885_v37, %s7159_s12  ;;  %6914 = vmatprep.mubr.msk.f32.mxu1 %vm253_vm1, %v6144_v4  ;;  %6127 = vst.msk [vmem:[#allocation3 + $0x1c8] sm:$0xff] %vm253_vm1, %v10174_v53  ;;  %6128 = vst.msk [vmem:[#allocation3 + $0x1d8] sm:$0xff] %vm253_vm1, %v10178_v29 }
 0x6ac   : > { %v5378_v2 = vpop.permute.xlu0 %5377 }
 0x6ad   : > { %v5952_v45 = vpop.permute.xlu1 %5951  ;;  %5466 = vst.msk [vmem:[#allocation3 + $0x70] sm:$0xff] %vm1560_vm6, %v5378_v2 }
 0x6ae   : > { %6041 = vst.msk [vmem:[#allocation3 + $0x60] sm:$0xff] %vm2140_vm9, %v5952_v45  ;;  %5205 = vrot.lane.b32.xlu0 %v9883_v26, %s7157_s10  ;;  %v6146_v26 = vld [vmem:[#allocation3 + $0x78] sm:$0xff] }
 0x6af   : > { %5779 = vrot.lane.b32.xlu1 %v9905_v36, %s7161_s26 }
 0x6b0   : > { %v4996_v25 = vpop.permute.xlu0 %4995 }
 0x6b1   : > { %v5570_v14 = vpop.permute.xlu1 %5569  ;;  %5083 = vst.msk [vmem:[#allocation3 + $0x80] sm:$0xff] %vm1174_vm4, %v4996_v25  ;;  %v6150_v25 = vld [vmem:[#allocation3 + $0x98] sm:$0xff] }
 0x6b2   : > { %5658 = vst.msk [vmem:[#allocation3 + $0x70] sm:$0xff] %vm1753_vm7, %v5570_v14  ;;  %5397 = vrot.lane.b32.xlu0 %v10163_v3, %s7158_s11  ;;  %v10261_v14 = vld [vmem:[#allocation2 + $0x168] sm:$0xff] }
 0x6b3   : > { %5971 = vrot.lane.b32.xlu1 %v10192_v0, %s7162_s16 }
 0x6b4   : > { %v5188_v15 = vpop.permute.xlu0 %5187 }
 0x6b5   : > { %v5762_v13 = vpop.permute.xlu1 %5761  ;;  %v6143_v27 = vld [vmem:[#allocation3 + $0x60] sm:$0xff]  ;;  %5275 = vst.msk [vmem:[#allocation3 + $0x80] sm:$0xff] %vm1367_vm5, %v5188_v15 }
 0x6b6   : > { %5850 = vst.msk [vmem:[#allocation3 + $0x70] sm:$0xff] %vm1947_vm8, %v5762_v13  ;;  %6413 = vmatmul.mubr.f32.gmra.mrb[52].mxu1 %v6143_v27  ;;  %5589 = vrot.lane.b32.xlu0 %v9892_v7, %s7159_s12 }
 0x6b7   : > { %4823 = vrot.lane.b32.xlu1 %v10128_v51, %s7155_s30  ;;  %6915 = vmatprep.mubr.msk.f32.mxu1 %vm253_vm1, %v6146_v26  ;;  %v6578_v26 = vld [vmem:[#allocation4 + $0x10] sm:$0xff] }
 0x6b8   : > { %v5380_v63 = vpop.permute.xlu0 %5379  ;;  %v6384_v18 = vpop.f32.mrb[40].mxu1 }
 0x6b9   : > { %v5954_v49 = vpop.permute.xlu1 %5953  ;;  %5467 = vst.msk [vmem:[#allocation3 + $0x80] sm:$0xff] %vm1560_vm6, %v5380_v63  ;;  %v6385_v47 = vadd.f32 %v10208_v35, %v6384_v18  ;;  %v6386_v16 = vpop.f32.mrb[41].mxu1 }
 0x6ba   : > { %6042 = vst.msk [vmem:[#allocation3 + $0x70] sm:$0xff] %vm2140_vm9, %v5954_v49  ;;  %5781 = vrot.lane.b32.xlu0 %v9919_v6, %s7161_s26 }
 0x6bb   : > { %5015 = vrot.lane.b32.xlu1 %v9885_v37, %s7156_s7  ;;  %v6543_v44 = vmax.f32 %v6385_v47, 0.0 }
 0x6bc   : > { %v4998_v51 = vpop.permute.xlu0 %4997 }
 0x6bd   : > { %v5572_v43 = vpop.permute.xlu1 %5571  ;;  %5084 = vst.msk [vmem:[#allocation3 + $0x90] sm:$0xff] %vm1174_vm4, %v4998_v51  ;;  %v6641_v37 = vadd.f32 %v6609_v59, %v6543_v44 }
 0x6be   : > { %5659 = vst.msk [vmem:[#allocation3 + $0x80] sm:$0xff] %vm1753_vm7, %v5572_v43  ;;  %5973 = vrot.lane.b32.xlu0 %v10231_v57, %s7162_s16  ;;  %v6152_v43 = vld [vmem:[#allocation3 + $0xa8] sm:$0xff] }
 0x6bf   : > { %5207 = vrot.lane.b32.xlu1 %v9905_v36, %s7157_s10  ;;  %6673 = vst.msk [vmem:[%s10225_s8] sm:$0xff] %vm253_vm1, %v6641_v37 }
 0x6c0   : > { %v5190_v28 = vpop.permute.xlu0 %5189 }
 0x6c1   : > { %v5764_v62 = vpop.permute.xlu1 %5763  ;;  %v6145_v32 = vld [vmem:[#allocation3 + $0x70] sm:$0xff]  ;;  %5276 = vst.msk [vmem:[#allocation3 + $0x90] sm:$0xff] %vm1367_vm5, %v5190_v28 }
 0x6c2   : > { %5851 = vst.msk [vmem:[#allocation3 + $0x80] sm:$0xff] %vm1947_vm8, %v5764_v62  ;;  %6418 = vmatmul.mubr.f32.gmra.mrb[54].mxu1 %v6145_v32  ;;  %4825 = vrot.lane.b32.xlu0 %v10163_v3, %s7155_s30  ;;  %v6610_v3 = vmul.f32 %v10212_v39, %v6577_v5 }
 0x6c3   : > { %5399 = vrot.lane.b32.xlu1 %v10192_v0, %s7158_s11  ;;  %6916 = vmatprep.mubr.msk.f32.mxu1 %vm253_vm1, %v6148_v23 }
 0x6c4   : > { %v5382_v33 = vpop.permute.xlu0 %5381 }
 0x6c5   : > { %v5956_v36 = vpop.permute.xlu1 %5955  ;;  %5468 = vst.msk [vmem:[#allocation3 + $0x90] sm:$0xff] %vm1560_vm6, %v5382_v33  ;;  %v6389_v40 = vpop.f32.mrb[42].mxu1  ;;  %v10311_v33 = vld [vmem:[#allocation2 + $0x188] sm:$0xff] }
 0x6c6   : > { %6043 = vst.msk [vmem:[#allocation3 + $0x80] sm:$0xff] %vm2140_vm9, %v5956_v36  ;;  %v6390_v19 = vadd.f32 %v10208_v35, %v6389_v40  ;;  %v6391_v30 = vpop.f32.mrb[43].mxu1  ;;  %5017 = vrot.lane.b32.xlu0 %v9892_v7, %s7156_s7  ;;  %v6154_v36 = vld [vmem:[#allocation3 + $0xb8] sm:$0xff] }
 0x6c7   : > { %5591 = vrot.lane.b32.xlu1 %v9921_v58, %s7159_s12 }
 0x6c8   : > { %v6544_v24 = vmax.f32 %v6390_v19, 0.0  ;;  %v5000_v41 = vpop.permute.xlu0 %4999 }
 0x6c9   : > { %v5574_v42 = vpop.permute.xlu1 %5573  ;;  %5085 = vst.msk [vmem:[#allocation3 + $0xa0] sm:$0xff] %vm1174_vm4, %v5000_v41  ;;  %v10334_v41 = vld [vmem:[#allocation2 + $0x190] sm:$0xff] }
 0x6ca   : > { %5660 = vst.msk [vmem:[#allocation3 + $0x90] sm:$0xff] %vm1753_vm7, %v5574_v42  ;;  %v6642_v4 = vadd.f32 %v6610_v3, %v6544_v24  ;;  %5209 = vrot.lane.b32.xlu0 %v9919_v6, %s7157_s10  ;;  %v6156_v24 = vld [vmem:[#allocation3 + $0xc8] sm:$0xff] }
 0x6cb   : > { %5783 = vrot.lane.b32.xlu1 %v9943_v52, %s7161_s26 }
 0x6cc   : > { %6674 = vst.msk [vmem:[%s10225_s8 + $0x8] sm:$0xff] %vm253_vm1, %v6642_v4  ;;  %v5192_v2 = vpop.permute.xlu0 %5191 }
 0x6cd   : > { %v5766_v45 = vpop.permute.xlu1 %5765  ;;  %v6147_v7 = vld [vmem:[#allocation3 + $0x80] sm:$0xff]  ;;  %5277 = vst.msk [vmem:[#allocation3 + $0xa0] sm:$0xff] %vm1367_vm5, %v5192_v2  ;;  %v6158_v2 = vld [vmem:[#allocation3 + $0xd8] sm:$0xff] }
 0x6ce   : > { %5852 = vst.msk [vmem:[#allocation3 + $0x90] sm:$0xff] %vm1947_vm8, %v5766_v45  ;;  %6423 = vmatmul.mubr.f32.gmra.mrb[56].mxu1 %v6147_v7  ;;  %5401 = vrot.lane.b32.xlu0 %v10231_v57, %s7158_s11 }
 0x6cf   : > { %5975 = vrot.lane.b32.xlu1 %v10261_v14, %s7162_s16  ;;  %6917 = vmatprep.mubr.msk.f32.mxu1 %vm253_vm1, %v6150_v25 }
 0x6d0   : > { %v5384_v13 = vpop.permute.xlu0 %5383 }
 0x6d1   : > { %v5958_v6 = vpop.permute.xlu1 %5957  ;;  %5469 = vst.msk [vmem:[#allocation3 + $0xa0] sm:$0xff] %vm1560_vm6, %v5384_v13 }
 0x6d2   : > { %6044 = vst.msk [vmem:[#allocation3 + $0x90] sm:$0xff] %vm2140_vm9, %v5958_v6  ;;  %5593 = vrot.lane.b32.xlu0 %v9928_v10, %s7159_s12 }
 0x6d3   : > { %4827 = vrot.lane.b32.xlu1 %v10192_v0, %s7155_s30  ;;  %v6611_v0 = vmul.f32 %v10212_v39, %v6578_v26 }
 0x6d4   : > { %v6394_v27 = vpop.f32.mrb[44].mxu1  ;;  %v5002_v49 = vpop.permute.xlu0 %5001 }
 0x6d5   : > { %v5576_v15 = vpop.permute.xlu1 %5575  ;;  %v6395_v63 = vadd.f32 %v10208_v35, %v6394_v27  ;;  %v6396_v18 = vpop.f32.mrb[45].mxu1  ;;  %5086 = vst.msk [vmem:[#allocation3 + $0xb0] sm:$0xff] %vm1174_vm4, %v5002_v49 }
 0x6d6   : > { %5661 = vst.msk [vmem:[#allocation3 + $0xa0] sm:$0xff] %vm1753_vm7, %v5576_v15  ;;  %5785 = vrot.lane.b32.xlu0 %v9960_v31, %s7161_s26  ;;  %v10357_v15 = vld [vmem:[#allocation2 + $0x1a8] sm:$0xff] }
 0x6d7   : > { %5019 = vrot.lane.b32.xlu1 %v9921_v58, %s7156_s7  ;;  %v6545_v1 = vmax.f32 %v6395_v63, 0.0  ;;  %v5894_v58 = vld [vmem:[#allocation2 + $0x170] sm:$0xff] }
 0x6d8   : > { %v5194_v59 = vpop.permute.xlu0 %5193 }
 0x6d9   : > { %v5768_v47 = vpop.permute.xlu1 %5767  ;;  %v6149_v16 = vld [vmem:[#allocation3 + $0x90] sm:$0xff]  ;;  %v6643_v44 = vadd.f32 %v6611_v0, %v6545_v1  ;;  %5278 = vst.msk [vmem:[#allocation3 + $0xb0] sm:$0xff] %vm1367_vm5, %v5194_v59 }
 0x6da   : > { %5853 = vst.msk [vmem:[#allocation3 + $0xa0] sm:$0xff] %vm1947_vm8, %v5768_v47  ;;  %6428 = vmatmul.mubr.f32.gmra.mrb[58].mxu1 %v6149_v16  ;;  %5977 = vrot.lane.b32.xlu0 %v5894_v58, %s7162_s16  ;;  %v10381_v0 = vld [vmem:[#allocation2 + $0x1b0] sm:$0xff] }
 0x6db   : > { %5211 = vrot.lane.b32.xlu1 %v9943_v52, %s7157_s10  ;;  %6918 = vmatprep.mubr.msk.f32.mxu1 %vm253_vm1, %v6152_v43  ;;  %6675 = vst.msk [vmem:[%s10225_s8 + $0x10] sm:$0xff] %vm253_vm1, %v6643_v44  ;;  %v6162_v44 = vld [vmem:[#allocation3 + $0xf8] sm:$0xff] }
 0x6dc   : > { %v5386_v37 = vpop.permute.xlu0 %5385 }
 0x6dd   : > { %v5960_v51 = vpop.permute.xlu1 %5959  ;;  %5470 = vst.msk [vmem:[#allocation3 + $0xb0] sm:$0xff] %vm1560_vm6, %v5386_v37 }
 0x6de   : > { %6045 = vst.msk [vmem:[#allocation3 + $0xa0] sm:$0xff] %vm2140_vm9, %v5960_v51  ;;  %4829 = vrot.lane.b32.xlu0 %v10231_v57, %s7155_s30 }
 0x6df   : > { %5403 = vrot.lane.b32.xlu1 %v10261_v14, %s7158_s11 }
 0x6e0   : > { %v5004_v62 = vpop.permute.xlu0 %5003 }
 0x6e1   : > { %v5578_v52 = vpop.permute.xlu1 %5577  ;;  %5087 = vst.msk [vmem:[#allocation3 + $0xc0] sm:$0xff] %vm1174_vm4, %v5004_v62  ;;  %v10405_v62 = vld [vmem:[#allocation2 + $0x1c8] sm:$0xff] }
 0x6e2   : > { %5662 = vst.msk [vmem:[#allocation3 + $0xb0] sm:$0xff] %vm1753_vm7, %v5578_v52  ;;  %5021 = vrot.lane.b32.xlu0 %v9928_v10, %s7156_s7 }
 0x6e3   : > { %5595 = vrot.lane.b32.xlu1 %v9962_v50, %s7159_s12 }
 0x6e4   : > { %v5196_v23 = vpop.permute.xlu0 %5195 }
 0x6e5   : > { %v5770_v28 = vpop.permute.xlu1 %5769  ;;  %v6151_v32 = vld [vmem:[#allocation3 + $0xa0] sm:$0xff]  ;;  %5279 = vst.msk [vmem:[#allocation3 + $0xc0] sm:$0xff] %vm1367_vm5, %v5196_v23 }
 0x6e6   : > { %5854 = vst.msk [vmem:[#allocation3 + $0xb0] sm:$0xff] %vm1947_vm8, %v5770_v28  ;;  %6433 = vmatmul.mubr.f32.gmra.mrb[60].mxu1 %v6151_v32  ;;  %5213 = vrot.lane.b32.xlu0 %v9960_v31, %s7157_s10 }
 0x6e7   : > { %5787 = vrot.lane.b32.xlu1 %v9984_v46, %s7161_s26  ;;  %6919 = vmatprep.mubr.msk.f32.mxu1 %vm253_vm1, %v6154_v36 }
 0x6e8   : > { %v5388_v10 = vpop.permute.xlu0 %5387 }
 0x6e9   : > { %v5962_v57 = vpop.permute.xlu1 %5961  ;;  %5471 = vst.msk [vmem:[#allocation3 + $0xc0] sm:$0xff] %vm1560_vm6, %v5388_v10 }
 0x6ea   : > { %6046 = vst.msk [vmem:[#allocation3 + $0xb0] sm:$0xff] %vm2140_vm9, %v5962_v57  ;;  %5405 = vrot.lane.b32.xlu0 %v5894_v58, %s7158_s11  ;;  %v6579_v57 = vld [vmem:[#allocation4 + $0x18] sm:$0xff] }
 0x6eb   : > { %5979 = vrot.lane.b32.xlu1 %v10311_v33, %s7162_s16 }
 0x6ec   : > { %v5006_v5 = vpop.permute.xlu0 %5005 }
 0x6ed   : > { %v5580_v40 = vpop.permute.xlu1 %5579  ;;  %5088 = vst.msk [vmem:[#allocation3 + $0xd0] sm:$0xff] %vm1174_vm4, %v5006_v5 }
 0x6ee   : > { %5663 = vst.msk [vmem:[#allocation3 + $0xc0] sm:$0xff] %vm1753_vm7, %v5580_v40  ;;  %5597 = vrot.lane.b32.xlu0 %v9969_v38, %s7159_s12 }
 0x6ef   : > { %4831 = vrot.lane.b32.xlu1 %v10261_v14, %s7155_s30 }
 0x6f0   : > { %v5198_v30 = vpop.permute.xlu0 %5197 }
 0x6f1   : > { %v5772_v31 = vpop.permute.xlu1 %5771  ;;  %v6153_v19 = vld [vmem:[#allocation3 + $0xb0] sm:$0xff]  ;;  %5280 = vst.msk [vmem:[#allocation3 + $0xd0] sm:$0xff] %vm1367_vm5, %v5198_v30 }
 0x6f2   : > { %5855 = vst.msk [vmem:[#allocation3 + $0xc0] sm:$0xff] %vm1947_vm8, %v5772_v31  ;;  %6438 = vmatmul.mubr.f32.gmra.mrb[62].mxu1 %v6153_v19  ;;  %5789 = vrot.lane.b32.xlu0 %v10000_v9, %s7161_s26  ;;  %v6166_v19 = vld [vmem:[#allocation3 + $0x118] sm:$0xff] }
 0x6f3   : > { %5023 = vrot.lane.b32.xlu1 %v9962_v50, %s7156_s7  ;;  %6920 = vmatprep.mubr.msk.f32.mxu1 %vm253_vm1, %v6156_v24  ;;  %v6612_v24 = vmul.f32 %v10212_v39, %v6579_v57  ;;  %v6174_v57 = vld [vmem:[#allocation3 + $0x158] sm:$0xff] }
 0x6f4   : > { %v5390_v42 = vpop.permute.xlu0 %5389 }
 0x6f5   : > { %v5964_v3 = vpop.permute.xlu1 %5963  ;;  %5472 = vst.msk [vmem:[#allocation3 + $0xd0] sm:$0xff] %vm1560_vm6, %v5390_v42 }
 0x6f6   : > { %6047 = vst.msk [vmem:[#allocation3 + $0xc0] sm:$0xff] %vm2140_vm9, %v5964_v3  ;;  %5981 = vrot.lane.b32.xlu0 %v10334_v41, %s7162_s16 }
 0x6f7   : > { %5215 = vrot.lane.b32.xlu1 %v9984_v46, %s7157_s10 }
 0x6f8   : > { %v5008_v4 = vpop.permute.xlu0 %5007 }
 0x6f9   : > { %v5582_v50 = vpop.permute.xlu1 %5581  ;;  %5089 = vst.msk [vmem:[#allocation3 + $0xe0] sm:$0xff] %vm1174_vm4, %v5008_v4 }
 0x6fa   : > { %5664 = vst.msk [vmem:[#allocation3 + $0xd0] sm:$0xff] %vm1753_vm7, %v5582_v50  ;;  %4833 = vrot.lane.b32.xlu0 %v5894_v58, %s7155_s30 }
 0x6fb   : > { %5407 = vrot.lane.b32.xlu1 %v10311_v33, %s7158_s11 }
 0x6fc   : > { %v5200_v46 = vpop.permute.xlu0 %5199 }
 0x6fd   : > { %v5774_v45 = vpop.permute.xlu1 %5773  ;;  %v6155_v7 = vld [vmem:[#allocation3 + $0xc0] sm:$0xff]  ;;  %5281 = vst.msk [vmem:[#allocation3 + $0xe0] sm:$0xff] %vm1367_vm5, %v5200_v46  ;;  %v6168_v46 = vld [vmem:[#allocation3 + $0x128] sm:$0xff] }
 0x6fe   : > { %5856 = vst.msk [vmem:[#allocation3 + $0xd0] sm:$0xff] %vm1947_vm8, %v5774_v45  ;;  %6443 = vmatmul.mubr.f32.gmra.mrb[64].mxu1 %v6155_v7  ;;  %5025 = vrot.lane.b32.xlu0 %v9969_v38, %s7156_s7 }
 0x6ff   : > { %5599 = vrot.lane.b32.xlu1 %v10002_v21, %s7159_s12  ;;  %6921 = vmatprep.mubr.msk.f32.mxu1 %vm253_vm1, %v6158_v2 }
 0x700   : > { %v5392_v25 = vpop.permute.xlu0 %5391 }
 0x701   : > { %v5966_v14 = vpop.permute.xlu1 %5965  ;;  %5473 = vst.msk [vmem:[#allocation3 + $0xe0] sm:$0xff] %vm1560_vm6, %v5392_v25 }
 0x702   : > { %6048 = vst.msk [vmem:[#allocation3 + $0xd0] sm:$0xff] %vm2140_vm9, %v5966_v14  ;;  %5217 = vrot.lane.b32.xlu0 %v10000_v9, %s7157_s10  ;;  %v6160_v9 = vld [vmem:[#allocation3 + $0xe8] sm:$0xff] }
 0x703   : > { %5791 = vrot.lane.b32.xlu1 %v10025_v20, %s7161_s26  ;;  %v10458_v14 = vld [vmem:[#allocation2 + $0x1e8] sm:$0xff] }
 0x704   : > { %v5010_v13 = vpop.permute.xlu0 %5009 }
 0x705   : > { %v5584_v6 = vpop.permute.xlu1 %5583  ;;  %5090 = vst.msk [vmem:[#allocation3 + $0xf0] sm:$0xff] %vm1174_vm4, %v5010_v13 }
 0x706   : > { %5665 = vst.msk [vmem:[#allocation3 + $0xe0] sm:$0xff] %vm1753_vm7, %v5584_v6  ;;  %5409 = vrot.lane.b32.xlu0 %v10334_v41, %s7158_s11 }
 0x707   : > { %5983 = vrot.lane.b32.xlu1 %v10357_v15, %s7162_s16 }
 0x708   : > { %v5202_v26 = vpop.permute.xlu0 %5201 }
 0x709   : > { %v5776_v38 = vpop.permute.xlu1 %5775  ;;  %v6157_v27 = vld [vmem:[#allocation3 + $0xd0] sm:$0xff]  ;;  %5282 = vst.msk [vmem:[#allocation3 + $0xf0] sm:$0xff] %vm1367_vm5, %v5202_v26  ;;  %v6170_v26 = vld [vmem:[#allocation3 + $0x138] sm:$0xff] }
 0x70a   : > { %5857 = vst.msk [vmem:[#allocation3 + $0xe0] sm:$0xff] %vm1947_vm8, %v5776_v38  ;;  %6448 = vmatmul.mubr.f32.gmra.mrb[66].mxu1 %v6157_v27  ;;  %5601 = vrot.lane.b32.xlu0 %v10008_v8, %s7159_s12 }
 0x70b   : > { %4835 = vrot.lane.b32.xlu1 %v10311_v33, %s7155_s30  ;;  %6922 = vmatprep.mubr.msk.f32.mxu1 %vm253_vm1, %v6160_v9  ;;  %v10481_v9 = vld [vmem:[#allocation2 + $0x1f0] sm:$0xff] }
 0x70c   : > { %v5394_v63 = vpop.permute.xlu0 %5393 }
 0x70d   : > { %v5968_v49 = vpop.permute.xlu1 %5967  ;;  %5474 = vst.msk [vmem:[#allocation3 + $0xf0] sm:$0xff] %vm1560_vm6, %v5394_v63 }
 0x70e   : > { %6049 = vst.msk [vmem:[#allocation3 + $0xe0] sm:$0xff] %vm2140_vm9, %v5968_v49  ;;  %5793 = vrot.lane.b32.xlu0 %v10041_v34, %s7161_s26 }
 0x70f   : > { %5027 = vrot.lane.b32.xlu1 %v10002_v21, %s7156_s7 }
 0x710   : > { %v5012_v1 = vpop.permute.xlu0 %5011 }
 0x711   : > { %v5586_v18 = vpop.permute.xlu1 %5585  ;;  %5091 = vst.msk [vmem:[#allocation3 + $0x100] sm:$0xff] %vm1174_vm4, %v5012_v1 }
 0x712   : > { %5666 = vst.msk [vmem:[#allocation3 + $0xf0] sm:$0xff] %vm1753_vm7, %v5586_v18  ;;  %5985 = vrot.lane.b32.xlu0 %v10381_v0, %s7162_s16 }
 0x713   : > { %5219 = vrot.lane.b32.xlu1 %v10025_v20, %s7157_s10 }
 0x714   : > { %v5204_v21 = vpop.permute.xlu0 %5203 }
 0x715   : > { %v5778_v47 = vpop.permute.xlu1 %5777  ;;  %v6159_v16 = vld [vmem:[#allocation3 + $0xe0] sm:$0xff]  ;;  %5283 = vst.msk [vmem:[#allocation3 + $0x100] sm:$0xff] %vm1367_vm5, %v5204_v21 }
 0x716   : > { %5858 = vst.msk [vmem:[#allocation3 + $0xf0] sm:$0xff] %vm1947_vm8, %v5778_v47  ;;  %6453 = vmatmul.mubr.f32.gmra.mrb[68].mxu1 %v6159_v16  ;;  %4837 = vrot.lane.b32.xlu0 %v10334_v41, %s7155_s30  ;;  %v5711_v47 = vld [vmem:[#allocation2 + $0x207] sm:$0xff] }
 0x717   : > { %5411 = vrot.lane.b32.xlu1 %v10357_v15, %s7158_s11  ;;  %6923 = vmatprep.mubr.msk.f32.mxu1 %vm253_vm1, %v6162_v44  ;;  %v6172_v16 = vld [vmem:[#allocation3 + $0x148] sm:$0xff] }
 0x718   : > { %v5396_v59 = vpop.permute.xlu0 %5395 }
 0x719   : > { %v5970_v20 = vpop.permute.xlu1 %5969  ;;  %5475 = vst.msk [vmem:[#allocation3 + $0x100] sm:$0xff] %vm1560_vm6, %v5396_v59 }
 0x71a   : > { %6050 = vst.msk [vmem:[#allocation3 + $0xf0] sm:$0xff] %vm2140_vm9, %v5970_v20  ;;  %5029 = vrot.lane.b32.xlu0 %v10008_v8, %s7156_s7  ;;  %v6164_v8 = vld [vmem:[#allocation3 + $0x108] sm:$0xff] }
 0x71b   : > { %5603 = vrot.lane.b32.xlu1 %v10043_v56, %s7159_s12 }
 0x71c   : > { %v5014_v58 = vpop.permute.xlu0 %5013 }
 0x71d   : > { %v5588_v43 = vpop.permute.xlu1 %5587  ;;  %5092 = vst.msk [vmem:[#allocation3 + $0x110] sm:$0xff] %vm1174_vm4, %v5014_v58  ;;  %v5903_v58 = vld [vmem:[#allocation2 + $0x208] sm:$0xff] }
 0x71e   : > { %5667 = vst.msk [vmem:[#allocation3 + $0x100] sm:$0xff] %vm1753_vm7, %v5588_v43  ;;  %5221 = vrot.lane.b32.xlu0 %v10041_v34, %s7157_s10 }
 0x71f   : > { %5795 = vrot.lane.b32.xlu1 %v10065_v60, %s7161_s26 }
 0x720   : > { %v5206_v52 = vpop.permute.xlu0 %5205 }
 0x721   : > { %v5780_v51 = vpop.permute.xlu1 %5779  ;;  %v6161_v37 = vld [vmem:[#allocation3 + $0xf0] sm:$0xff]  ;;  %5284 = vst.msk [vmem:[#allocation3 + $0x110] sm:$0xff] %vm1367_vm5, %v5206_v52 }
 0x722   : > { %5859 = vst.msk [vmem:[#allocation3 + $0x100] sm:$0xff] %vm1947_vm8, %v5780_v51  ;;  %6458 = vmatmul.mubr.f32.gmra.mrb[70].mxu1 %v6161_v37  ;;  %5413 = vrot.lane.b32.xlu0 %v10381_v0, %s7158_s11 }
 0x723   : > { %5987 = vrot.lane.b32.xlu1 %v10405_v62, %s7162_s16  ;;  %6924 = vmatprep.mubr.msk.f32.mxu1 %vm253_vm1, %v6164_v8 }
 0x724   : > { %v5398_v28 = vpop.permute.xlu0 %5397 }
 0x725   : > { %v5972_v34 = vpop.permute.xlu1 %5971  ;;  %5476 = vst.msk [vmem:[#allocation3 + $0x110] sm:$0xff] %vm1560_vm6, %v5398_v28  ;;  %v5712_v28 = vld [vmem:[#allocation2 + $0x20f] sm:$0xff] }
 0x726   : > { %6051 = vst.msk [vmem:[#allocation3 + $0x100] sm:$0xff] %vm2140_vm9, %v5972_v34  ;;  %5605 = vrot.lane.b32.xlu0 %v10048_v54, %s7159_s12 }
 0x727   : > { %4839 = vrot.lane.b32.xlu1 %v10357_v15, %s7155_s30 }
 0x728   : > { %v5590_v23 = vpop.permute.xlu0 %5589 }
 0x729   : > { %v4824_v32 = vpop.permute.xlu1 %4823  ;;  %5668 = vst.msk [vmem:[#allocation3 + $0x110] sm:$0xff] %vm1753_vm7, %v5590_v23 }
 0x72a   : > { %4901 = vst.msk [vmem:[#allocation3 + $0x120] sm:$0xff] %vm981_vm3, %v4824_v32  ;;  %5797 = vrot.lane.b32.xlu0 %v10082_v17, %s7161_s26 }
 0x72b   : > { %5031 = vrot.lane.b32.xlu1 %v10043_v56, %s7156_s7  ;;  %v10430_v56 = vld [vmem:[#allocation2 + $0x1d0] sm:$0xff] }
 0x72c   : > { %v6399_v36 = vpop.f32.mrb[46].mxu1  ;;  %v5782_v5 = vpop.permute.xlu0 %5781 }
 0x72d   : > { %v5016_v10 = vpop.permute.xlu1 %5015  ;;  %v6163_v33 = vld [vmem:[#allocation3 + $0x100] sm:$0xff]  ;;  %v6400_v40 = vadd.f32 %v10208_v35, %v6399_v36  ;;  %v6401_v31 = vpop.f32.mrb[47].mxu1  ;;  %5860 = vst.msk [vmem:[#allocation3 + $0x110] sm:$0xff] %vm1947_vm8, %v5782_v5 }
 0x72e   : > { %5093 = vst.msk [vmem:[#allocation3 + $0x120] sm:$0xff] %vm1174_vm4, %v5016_v10  ;;  %6463 = vmatmul.mubr.f32.gmra.mrb[72].mxu1 %v6163_v33  ;;  %5989 = vrot.lane.b32.xlu0 %v10430_v56, %s7162_s16  ;;  %v5904_v10 = vld [vmem:[#allocation2 + $0x210] sm:$0xff]  ;;  %v5713_v31 = vld [vmem:[#allocation2 + $0x227] sm:$0xff] }
 0x72f   : > { %5223 = vrot.lane.b32.xlu1 %v10065_v60, %s7157_s10  ;;  %6925 = vmatprep.mubr.msk.f32.mxu1 %vm253_vm1, %v6166_v19  ;;  %v6546_v30 = vmax.f32 %v6400_v40, 0.0 }
 0x730   : > { %v5974_v41 = vpop.permute.xlu0 %5973 }
 0x731   : > { %v5208_v3 = vpop.permute.xlu1 %5207  ;;  %v6644_v42 = vadd.f32 %v6612_v24, %v6546_v30  ;;  %6052 = vst.msk [vmem:[#allocation3 + $0x110] sm:$0xff] %vm2140_vm9, %v5974_v41  ;;  %v6176_v24 = vld [vmem:[#allocation3 + $0x168] sm:$0xff] }
 0x732   : > { %5285 = vst.msk [vmem:[#allocation3 + $0x120] sm:$0xff] %vm1367_vm5, %v5208_v3  ;;  %4841 = vrot.lane.b32.xlu0 %v10381_v0, %s7155_s30  ;;  %v5714_v41 = vld [vmem:[#allocation2 + $0x22f] sm:$0xff] }
 0x733   : > { %5415 = vrot.lane.b32.xlu1 %v10405_v62, %s7158_s11  ;;  %6676 = vst.msk [vmem:[%s10225_s8 + $0x18] sm:$0xff] %vm253_vm1, %v6644_v42 }
 0x734   : > { %v4826_v50 = vpop.permute.xlu0 %4825 }
 0x735   : > { %v5400_v60 = vpop.permute.xlu1 %5399  ;;  %4902 = vst.msk [vmem:[#allocation3 + $0x130] sm:$0xff] %vm981_vm3, %v4826_v50  ;;  %v5906_v50 = vld [vmem:[#allocation2 + $0x230] sm:$0xff] }
 0x736   : > { %5477 = vst.msk [vmem:[#allocation3 + $0x120] sm:$0xff] %vm1560_vm6, %v5400_v60  ;;  %5033 = vrot.lane.b32.xlu0 %v10048_v54, %s7156_s7 }
 0x737   : > { %5607 = vrot.lane.b32.xlu1 %v10084_v61, %s7159_s12 }
 0x738   : > { %v5018_v45 = vpop.permute.xlu0 %5017  ;;  %v6165_v7 = vld [vmem:[#allocation3 + $0x110] sm:$0xff] }
 0x739   : > { %v5592_v4 = vpop.permute.xlu1 %5591  ;;  %5094 = vst.msk [vmem:[#allocation3 + $0x130] sm:$0xff] %vm1174_vm4, %v5018_v45  ;;  %6468 = vmatmul.mubr.f32.gmra.mrb[74].mxu1 %v6165_v7  ;;  %v6581_v7 = vld [vmem:[#allocation4 + $0x28] sm:$0xff] }
 0x73a   : > { %5669 = vst.msk [vmem:[#allocation3 + $0x120] sm:$0xff] %vm1753_vm7, %v5592_v4  ;;  %5225 = vrot.lane.b32.xlu0 %v10082_v17, %s7157_s10  ;;  %6926 = vmatprep.mubr.msk.f32.mxu1 %vm253_vm1, %v6168_v46 }
 0x73b   : > { %5799 = vrot.lane.b32.xlu1 %v10104_v48, %s7161_s26 }
 0x73c   : > { %v5210_v54 = vpop.permute.xlu0 %5209 }
 0x73d   : > { %v5784_v2 = vpop.permute.xlu1 %5783  ;;  %5286 = vst.msk [vmem:[#allocation3 + $0x130] sm:$0xff] %vm1367_vm5, %v5210_v54 }
 0x73e   : > { %5861 = vst.msk [vmem:[#allocation3 + $0x120] sm:$0xff] %vm1947_vm8, %v5784_v2  ;;  %5417 = vrot.lane.b32.xlu0 %v10430_v56, %s7158_s11 }
 0x73f   : > { %5991 = vrot.lane.b32.xlu1 %v10458_v14, %s7162_s16 }
 0x740   : > { %v5402_v17 = vpop.permute.xlu0 %5401 }
 0x741   : > { %v5976_v25 = vpop.permute.xlu1 %5975  ;;  %5478 = vst.msk [vmem:[#allocation3 + $0x130] sm:$0xff] %vm1560_vm6, %v5402_v17 }
 0x742   : > { %6053 = vst.msk [vmem:[#allocation3 + $0x120] sm:$0xff] %vm2140_vm9, %v5976_v25  ;;  %5609 = vrot.lane.b32.xlu0 %v10089_v11, %s7159_s12 }
 0x743   : > { %4843 = vrot.lane.b32.xlu1 %v10405_v62, %s7155_s30 }
 0x744   : > { %v5594_v13 = vpop.permute.xlu0 %5593 }
 0x745   : > { %v4828_v6 = vpop.permute.xlu1 %4827  ;;  %5670 = vst.msk [vmem:[#allocation3 + $0x130] sm:$0xff] %vm1753_vm7, %v5594_v13 }
 0x746   : > { %4903 = vst.msk [vmem:[#allocation3 + $0x140] sm:$0xff] %vm981_vm3, %v4828_v6  ;;  %5801 = vrot.lane.b32.xlu0 %v10131_v12, %s7161_s26 }
 0x747   : > { %5035 = vrot.lane.b32.xlu1 %v10084_v61, %s7156_s7 }
 0x748   : > { %v5786_v27 = vpop.permute.xlu0 %5785 }
 0x749   : > { %v5020_v15 = vpop.permute.xlu1 %5019  ;;  %v6167_v38 = vld [vmem:[#allocation3 + $0x120] sm:$0xff]  ;;  %5862 = vst.msk [vmem:[#allocation3 + $0x130] sm:$0xff] %vm1947_vm8, %v5786_v27 }
 0x74a   : > { %5095 = vst.msk [vmem:[#allocation3 + $0x140] sm:$0xff] %vm1174_vm4, %v5020_v15  ;;  %6473 = vmatmul.mubr.f32.gmra.mrb[76].mxu1 %v6167_v38  ;;  %5993 = vrot.lane.b32.xlu0 %v10481_v9, %s7162_s16  ;;  %v6178_v15 = vld [vmem:[#allocation3 + $0x178] sm:$0xff] }
 0x74b   : > { %5227 = vrot.lane.b32.xlu1 %v10104_v48, %s7157_s10  ;;  %6927 = vmatprep.mubr.msk.f32.mxu1 %vm253_vm1, %v6170_v26 }
 0x74c   : > { %v5978_v49 = vpop.permute.xlu0 %5977 }
 0x74d   : > { %v5212_v61 = vpop.permute.xlu1 %5211  ;;  %6054 = vst.msk [vmem:[#allocation3 + $0x130] sm:$0xff] %vm2140_vm9, %v5978_v49 }
 0x74e   : > { %5287 = vst.msk [vmem:[#allocation3 + $0x140] sm:$0xff] %vm1367_vm5, %v5212_v61  ;;  %4845 = vrot.lane.b32.xlu0 %v10430_v56, %s7155_s30  ;;  %v6582_v61 = vld [vmem:[#allocation4 + $0x30] sm:$0xff] }
 0x74f   : > { %5419 = vrot.lane.b32.xlu1 %v10458_v14, %s7158_s11 }
 0x750   : > { %v4830_v63 = vpop.permute.xlu0 %4829 }
 0x751   : > { %v5404_v48 = vpop.permute.xlu1 %5403  ;;  %4904 = vst.msk [vmem:[#allocation3 + $0x150] sm:$0xff] %vm981_vm3, %v4830_v63 }
 0x752   : > { %5479 = vst.msk [vmem:[#allocation3 + $0x140] sm:$0xff] %vm1560_vm6, %v5404_v48  ;;  %5037 = vrot.lane.b32.xlu0 %v10089_v11, %s7156_s7  ;;  %v6580_v11 = vld [vmem:[#allocation4 + $0x20] sm:$0xff] }
 0x753   : > { %5611 = vrot.lane.b32.xlu1 %v10133_v55, %s7159_s12 }
 0x754   : > { %v5022_v1 = vpop.permute.xlu0 %5021  ;;  %v6169_v0 = vld [vmem:[#allocation3 + $0x130] sm:$0xff] }
 0x755   : > { %v5596_v18 = vpop.permute.xlu1 %5595  ;;  %5096 = vst.msk [vmem:[#allocation3 + $0x150] sm:$0xff] %vm1174_vm4, %v5022_v1  ;;  %6478 = vmatmul.mubr.f32.gmra.mrb[78].mxu1 %v6169_v0  ;;  %v6615_v1 = vmul.f32 %v10212_v39, %v6582_v61 }
 0x756   : > { %5671 = vst.msk [vmem:[#allocation3 + $0x140] sm:$0xff] %vm1753_vm7, %v5596_v18  ;;  %5229 = vrot.lane.b32.xlu0 %v10131_v12, %s7157_s10  ;;  %6928 = vmatprep.mubr.msk.f32.mxu1 %vm253_vm1, %v6172_v16  ;;  %v6613_v12 = vmul.f32 %v10212_v39, %v6580_v11 }
 0x757   : > { %5803 = vrot.lane.b32.xlu1 %v5711_v47, %s7161_s26 }
 0x758   : > { %v6404_v44 = vpop.f32.mrb[48].mxu1  ;;  %v5214_v59 = vpop.permute.xlu0 %5213 }
 0x759   : > { %v5788_v21 = vpop.permute.xlu1 %5787  ;;  %v6405_v20 = vadd.f32 %v10208_v35, %v6404_v44  ;;  %v6406_v43 = vpop.f32.mrb[49].mxu1  ;;  %5288 = vst.msk [vmem:[#allocation3 + $0x150] sm:$0xff] %vm1367_vm5, %v5214_v59  ;;  %v6180_v44 = vld [vmem:[#allocation3 + $0x188] sm:$0xff] }
 0x75a   : > { %5863 = vst.msk [vmem:[#allocation3 + $0x140] sm:$0xff] %vm1947_vm8, %v5788_v21  ;;  %5421 = vrot.lane.b32.xlu0 %v10481_v9, %s7158_s11 }
 0x75b   : > { %5995 = vrot.lane.b32.xlu1 %v5903_v58, %s7162_s16  ;;  %v6547_v51 = vmax.f32 %v6405_v20, 0.0 }
 0x75c   : > { %v5406_v62 = vpop.permute.xlu0 %5405 }
 0x75d   : > { %v5980_v37 = vpop.permute.xlu1 %5979  ;;  %v6645_v52 = vadd.f32 %v6613_v12, %v6547_v51  ;;  %5480 = vst.msk [vmem:[#allocation3 + $0x150] sm:$0xff] %vm1560_vm6, %v5406_v62 }
 0x75e   : > { %6055 = vst.msk [vmem:[#allocation3 + $0x140] sm:$0xff] %vm2140_vm9, %v5980_v37  ;;  %5613 = vrot.lane.b32.xlu0 %v10137_v22, %s7159_s12 }
 0x75f   : > { %4847 = vrot.lane.b32.xlu1 %v10458_v14, %s7155_s30  ;;  %6677 = vst.msk [vmem:[%s10225_s8 + $0x20] sm:$0xff] %vm253_vm1, %v6645_v52 }
 0x760   : > { %v5598_v34 = vpop.permute.xlu0 %5597 }
 0x761   : > { %v4832_v8 = vpop.permute.xlu1 %4831  ;;  %5672 = vst.msk [vmem:[#allocation3 + $0x150] sm:$0xff] %vm1753_vm7, %v5598_v34 }
 0x762   : > { %4905 = vst.msk [vmem:[#allocation3 + $0x160] sm:$0xff] %vm981_vm3, %v4832_v8  ;;  %5805 = vrot.lane.b32.xlu0 %v5712_v28, %s7161_s26 }
 0x763   : > { %5039 = vrot.lane.b32.xlu1 %v10133_v55, %s7156_s7 }
 0x764   : > { %v5790_v36 = vpop.permute.xlu0 %5789 }
 0x765   : > { %v5024_v32 = vpop.permute.xlu1 %5023  ;;  %v6171_v23 = vld [vmem:[#allocation3 + $0x140] sm:$0xff]  ;;  %5864 = vst.msk [vmem:[#allocation3 + $0x150] sm:$0xff] %vm1947_vm8, %v5790_v36 }
 0x766   : > { %5097 = vst.msk [vmem:[#allocation3 + $0x160] sm:$0xff] %vm1174_vm4, %v5024_v32  ;;  %6483 = vmatmul.mubr.f32.gmra.mrb[80].mxu1 %v6171_v23  ;;  %5997 = vrot.lane.b32.xlu0 %v5904_v10, %s7162_s16 }
 0x767   : > { %5231 = vrot.lane.b32.xlu1 %v5711_v47, %s7157_s10  ;;  %6929 = vmatprep.mubr.msk.f32.mxu1 %vm253_vm1, %v6174_v57  ;;  %v6182_v57 = vld [vmem:[#allocation3 + $0x198] sm:$0xff] }
 0x768   : > { %v5982_v33 = vpop.permute.xlu0 %5981 }
 0x769   : > { %v5216_v55 = vpop.permute.xlu1 %5215  ;;  %6056 = vst.msk [vmem:[#allocation3 + $0x150] sm:$0xff] %vm2140_vm9, %v5982_v33  ;;  %v6584_v33 = vld [vmem:[#allocation4 + $0x40] sm:$0xff] }
 0x76a   : > { %5289 = vst.msk [vmem:[#allocation3 + $0x160] sm:$0xff] %vm1367_vm5, %v5216_v55  ;;  %4849 = vrot.lane.b32.xlu0 %v10481_v9, %s7155_s30 }
 0x76b   : > { %5423 = vrot.lane.b32.xlu1 %v5903_v58, %s7158_s11  ;;  %v6583_v58 = vld [vmem:[#allocation4 + $0x38] sm:$0xff] }
 0x76c   : > { %v4834_v5 = vpop.permute.xlu0 %4833  ;;  %v6616_v62 = vmul.f32 %v10212_v39, %v6583_v58 }
 0x76d   : > { %v5408_v40 = vpop.permute.xlu1 %5407  ;;  %4906 = vst.msk [vmem:[#allocation3 + $0x170] sm:$0xff] %vm981_vm3, %v4834_v5 }
 0x76e   : > { %5481 = vst.msk [vmem:[#allocation3 + $0x160] sm:$0xff] %vm1560_vm6, %v5408_v40  ;;  %5041 = vrot.lane.b32.xlu0 %v10137_v22, %s7156_s7 }
 0x76f   : > { %5615 = vrot.lane.b32.xlu1 %v10174_v53, %s7159_s12  ;;  %v5905_v53 = vld [vmem:[#allocation2 + $0x228] sm:$0xff] }
 0x770   : > { %v5026_v56 = vpop.permute.xlu0 %5025  ;;  %v6173_v30 = vld [vmem:[#allocation3 + $0x150] sm:$0xff] }
 0x771   : > { %v5600_v19 = vpop.permute.xlu1 %5599  ;;  %5098 = vst.msk [vmem:[#allocation3 + $0x170] sm:$0xff] %vm1174_vm4, %v5026_v56  ;;  %6488 = vmatmul.mubr.f32.gmra.mrb[82].mxu1 %v6173_v30  ;;  %v6617_v56 = vmul.f32 %v10212_v39, %v6584_v33 }
 0x772   : > { %5673 = vst.msk [vmem:[#allocation3 + $0x160] sm:$0xff] %vm1753_vm7, %v5600_v19  ;;  %5233 = vrot.lane.b32.xlu0 %v5712_v28, %s7157_s10  ;;  %6930 = vmatprep.mubr.msk.f32.mxu1 %vm253_vm1, %v6176_v24 }
 0x773   : > { %5807 = vrot.lane.b32.xlu1 %v5713_v31, %s7161_s26 }
 0x774   : > { %v5218_v22 = vpop.permute.xlu0 %5217 }
 0x775   : > { %v5792_v3 = vpop.permute.xlu1 %5791  ;;  %5290 = vst.msk [vmem:[#allocation3 + $0x170] sm:$0xff] %vm1367_vm5, %v5218_v22 }
 0x776   : > { %5865 = vst.msk [vmem:[#allocation3 + $0x160] sm:$0xff] %vm1947_vm8, %v5792_v3  ;;  %5425 = vrot.lane.b32.xlu0 %v5904_v10, %s7158_s11 }
 0x777   : > { %5999 = vrot.lane.b32.xlu1 %v5905_v53, %s7162_s16 }
 0x778   : > { %v5410_v60 = vpop.permute.xlu0 %5409 }
 0x779   : > { %v5984_v42 = vpop.permute.xlu1 %5983  ;;  %5482 = vst.msk [vmem:[#allocation3 + $0x170] sm:$0xff] %vm1560_vm6, %v5410_v60 }
 0x77a   : > { %6057 = vst.msk [vmem:[#allocation3 + $0x160] sm:$0xff] %vm2140_vm9, %v5984_v42  ;;  %5809 = vrot.lane.b32.xlu0 %v5714_v41, %s7161_s26  ;;  %v6184_v42 = vld [vmem:[#allocation3 + $0x1a8] sm:$0xff] }
 0x77b   : > { %5617 = vrot.lane.b32.xlu1 %v10178_v29, %s7159_s12  ;;  %v6614_v29 = vmul.f32 %v10212_v39, %v6581_v7 }
 0x77c   : > { %v5602_v2 = vpop.permute.xlu0 %5601 }
 0x77d   : > { %v4836_v4 = vpop.permute.xlu1 %4835  ;;  %v6409_v45 = vpop.f32.mrb[50].mxu1  ;;  %5674 = vst.msk [vmem:[#allocation3 + $0x170] sm:$0xff] %vm1753_vm7, %v5602_v2 }
 0x77e   : > { %4907 = vst.msk [vmem:[#allocation3 + $0x180] sm:$0xff] %vm981_vm3, %v4836_v4  ;;  %v6410_v46 = vadd.f32 %v10208_v35, %v6409_v45  ;;  %v6411_v54 = vpop.f32.mrb[51].mxu1  ;;  %v10603_v45 = vld [vmem:[%s10743_s4 + $0x2] ss:$0 sm:$0xff] }
 0x77f   : > { %6001 = vrot.lane.b32.xlu1 %v5906_v50, %s7162_s16  ;;  %v6585_v50 = vld [vmem:[#allocation4 + $0x48] sm:$0xff] }
 0x780   : > { %v6548_v14 = vmax.f32 %v6410_v46, 0.0  ;;  %v5794_v13 = vpop.permute.xlu0 %5793  ;;  %v6618_v54 = vmul.f32 %v10212_v39, %v6585_v50 }
 0x781   : > { %v5028_v25 = vpop.permute.xlu1 %5027  ;;  %v6175_v17 = vld [vmem:[#allocation3 + $0x160] sm:$0xff]  ;;  %5866 = vst.msk [vmem:[#allocation3 + $0x170] sm:$0xff] %vm1947_vm8, %v5794_v13 }
 0x782   : > { %v6646_v6 = vadd.f32 %v6614_v29, %v6548_v14  ;;  %5099 = vst.msk [vmem:[#allocation3 + $0x180] sm:$0xff] %vm1174_vm4, %v5028_v25  ;;  %6493 = vmatmul.mubr.f32.gmra.mrb[84].mxu1 %v6175_v17 }
 0x783   : > { %6931 = vmatprep.mubr.msk.f32.mxu1 %vm253_vm1, %v6178_v15 }
 0x784   : > { %6678 = vst.msk [vmem:[%s10225_s8 + $0x28] sm:$0xff] %vm253_vm1, %v6646_v6  ;;  %v5986_v27 = vpop.permute.xlu0 %5985 }
 0x785   : > { %v5220_v38 = vpop.permute.xlu1 %5219  ;;  %6058 = vst.msk [vmem:[#allocation3 + $0x170] sm:$0xff] %vm2140_vm9, %v5986_v27 }
 0x786   : > { %5291 = vst.msk [vmem:[#allocation3 + $0x180] sm:$0xff] %vm1367_vm5, %v5220_v38  ;;  %v6586_v38 = vld [vmem:[#allocation4 + $0x50] sm:$0xff] }
 0x788   : > { %v4838_v49 = vpop.permute.xlu0 %4837 }
 0x789   : > { %v5412_v26 = vpop.permute.xlu1 %5411  ;;  %v6414_v9 = vpop.f32.mrb[52].mxu1  ;;  %4908 = vst.msk [vmem:[#allocation3 + $0x190] sm:$0xff] %vm981_vm3, %v4838_v49  ;;  %v6186_v49 = vld [vmem:[#allocation3 + $0x1b8] sm:$0xff] }
 0x78a   : > { %5483 = vst.msk [vmem:[#allocation3 + $0x180] sm:$0xff] %vm1560_vm6, %v5412_v26  ;;  %v6415_v48 = vadd.f32 %v10208_v35, %v6414_v9  ;;  %v6416_v63 = vpop.f32.mrb[53].mxu1 }
 0x78b   : > { %v6619_v63 = vmul.f32 %v10212_v39, %v6586_v38 }
 0x78c   : > { %v6549_v18 = vmax.f32 %v6415_v48, 0.0  ;;  %v5030_v16 = vpop.permute.xlu0 %5029  ;;  %v6177_v21 = vld [vmem:[#allocation3 + $0x170] sm:$0xff] }
 0x78d   : > { %v5604_v0 = vpop.permute.xlu1 %5603  ;;  %5100 = vst.msk [vmem:[#allocation3 + $0x190] sm:$0xff] %vm1174_vm4, %v5030_v16  ;;  %6498 = vmatmul.mubr.f32.gmra.mrb[86].mxu1 %v6177_v21 }
 0x78e   : > { %v6647_v47 = vadd.f32 %v6615_v1, %v6549_v18  ;;  %5675 = vst.msk [vmem:[#allocation3 + $0x180] sm:$0xff] %vm1753_vm7, %v5604_v0  ;;  %6932 = vmatprep.mubr.msk.f32.mxu1 %vm253_vm1, %v6180_v44 }
 0x790   : > { %6679 = vst.msk [vmem:[%s10225_s8 + $0x30] sm:$0xff] %vm253_vm1, %v6647_v47  ;;  %v5222_v20 = vpop.permute.xlu0 %5221 }
 0x791   : > { %v5796_v11 = vpop.permute.xlu1 %5795  ;;  %5292 = vst.msk [vmem:[#allocation3 + $0x190] sm:$0xff] %vm1367_vm5, %v5222_v20 }
 0x792   : > { %5867 = vst.msk [vmem:[#allocation3 + $0x180] sm:$0xff] %vm1947_vm8, %v5796_v11  ;;  %v6587_v11 = vld [vmem:[#allocation4 + $0x58] sm:$0xff] }
 0x794   : > { %v5414_v51 = vpop.permute.xlu0 %5413 }
 0x795   : > { %v5988_v59 = vpop.permute.xlu1 %5987  ;;  %v6419_v43 = vpop.f32.mrb[54].mxu1  ;;  %5484 = vst.msk [vmem:[#allocation3 + $0x190] sm:$0xff] %vm1560_vm6, %v5414_v51  ;;  %v6188_v51 = vld [vmem:[#allocation3 + $0x1c8] sm:$0xff] }
 0x796   : > { %6059 = vst.msk [vmem:[#allocation3 + $0x180] sm:$0xff] %vm2140_vm9, %v5988_v59  ;;  %v6420_v12 = vadd.f32 %v10208_v35, %v6419_v43  ;;  %v6421_v37 = vpop.f32.mrb[55].mxu1 }
 0x797   : > { %v6620_v37 = vmul.f32 %v10212_v39, %v6587_v11 }
 0x798   : > { %v6550_v52 = vmax.f32 %v6420_v12, 0.0  ;;  %v5606_v28 = vpop.permute.xlu0 %5605 }
 0x799   : > { %v4840_v8 = vpop.permute.xlu1 %4839  ;;  %5676 = vst.msk [vmem:[#allocation3 + $0x190] sm:$0xff] %vm1753_vm7, %v5606_v28 }
 0x79a   : > { %v6648_v34 = vadd.f32 %v6616_v62, %v6550_v52  ;;  %4909 = vst.msk [vmem:[#allocation3 + $0x1a0] sm:$0xff] %vm981_vm3, %v4840_v8 }
 0x79c   : > { %6680 = vst.msk [vmem:[%s10225_s8 + $0x38] sm:$0xff] %vm253_vm1, %v6648_v34  ;;  %v5798_v36 = vpop.permute.xlu0 %5797 }
 0x79d   : > { %v5032_v32 = vpop.permute.xlu1 %5031  ;;  %v6179_v23 = vld [vmem:[#allocation3 + $0x180] sm:$0xff]  ;;  %5868 = vst.msk [vmem:[#allocation3 + $0x190] sm:$0xff] %vm1947_vm8, %v5798_v36 }
 0x79e   : > { %5101 = vst.msk [vmem:[#allocation3 + $0x1a0] sm:$0xff] %vm1174_vm4, %v5032_v32  ;;  %6503 = vmatmul.mubr.f32.gmra.mrb[88].mxu1 %v6179_v23  ;;  %v6588_v36 = vld [vmem:[#allocation4 + $0x60] sm:$0xff] }
 0x79f   : > { %6933 = vmatprep.mubr.msk.f32.mxu1 %vm253_vm1, %v6182_v57 }
 0x7a0   : > { %v5990_v40 = vpop.permute.xlu0 %5989 }
 0x7a1   : > { %v5224_v10 = vpop.permute.xlu1 %5223  ;;  %v6424_v55 = vpop.f32.mrb[56].mxu1  ;;  %6060 = vst.msk [vmem:[#allocation3 + $0x190] sm:$0xff] %vm2140_vm9, %v5990_v40  ;;  %v6621_v40 = vmul.f32 %v10212_v39, %v6588_v36 }
 0x7a2   : > { %5293 = vst.msk [vmem:[#allocation3 + $0x1a0] sm:$0xff] %vm1367_vm5, %v5224_v10  ;;  %v6425_v5 = vadd.f32 %v10208_v35, %v6424_v55  ;;  %v6426_v31 = vpop.f32.mrb[57].mxu1 }
 0x7a4   : > { %v6551_v19 = vmax.f32 %v6425_v5, 0.0  ;;  %v4842_v53 = vpop.permute.xlu0 %4841 }
 0x7a5   : > { %v5416_v30 = vpop.permute.xlu1 %5415  ;;  %4910 = vst.msk [vmem:[#allocation3 + $0x1b0] sm:$0xff] %vm981_vm3, %v4842_v53 }
 0x7a6   : > { %v6649_v24 = vadd.f32 %v6617_v56, %v6551_v19  ;;  %5485 = vst.msk [vmem:[#allocation3 + $0x1a0] sm:$0xff] %vm1560_vm6, %v5416_v30  ;;  %v6190_v30 = vld [vmem:[#allocation3 + $0x1d8] sm:$0xff] }
 0x7a8   : > { %6681 = vst.msk [vmem:[%s10225_s8 + $0x40] sm:$0xff] %vm253_vm1, %v6649_v24  ;;  %v5034_v22 = vpop.permute.xlu0 %5033  ;;  %v6181_v35 = vld [vmem:[#allocation3 + $0x190] sm:$0xff] }
 0x7a9   : > { %v5608_v3 = vpop.permute.xlu1 %5607  ;;  %5102 = vst.msk [vmem:[#allocation3 + $0x1b0] sm:$0xff] %vm1174_vm4, %v5034_v22  ;;  %6508 = vmatmul.mubr.f32.gmra.mrb[90].mxu1 %v6181_v35  ;;  %v6589_v35 = vld [vmem:[#allocation4 + $0x68] sm:$0xff] }
 0x7aa   : > { %5677 = vst.msk [vmem:[#allocation3 + $0x1a0] sm:$0xff] %vm1753_vm7, %v5608_v3  ;;  %6934 = vmatprep.mubr.msk.f32.mxu1 %vm253_vm1, %v6184_v42 }
 0x7ac   : > { %v5226_v4 = vpop.permute.xlu0 %5225 }
 0x7ad   : > { %v5800_v41 = vpop.permute.xlu1 %5799  ;;  %v6429_v60 = vpop.f32.mrb[58].mxu1  ;;  %5294 = vst.msk [vmem:[#allocation3 + $0x1b0] sm:$0xff] %vm1367_vm5, %v5226_v4  ;;  %v6622_v4 = vmul.f32 %v10212_v39, %v6589_v35 }
 0x7ae   : > { %5869 = vst.msk [vmem:[#allocation3 + $0x1a0] sm:$0xff] %vm1947_vm8, %v5800_v41  ;;  %v6430_v7 = vadd.f32 %v10603_v45, %v6429_v60  ;;  %v6431_v46 = vpop.f32.mrb[59].mxu1 }
 0x7af   : > { %v6192_v46 = vld [vmem:[#allocation3 + $0x1e8] sm:$0xff] }
 0x7b0   : > { %v6552_v2 = vmax.f32 %v6430_v7, 0.0  ;;  %v5418_v25 = vpop.permute.xlu0 %5417 }
 0x7b1   : > { %v5992_v14 = vpop.permute.xlu1 %5991  ;;  %5486 = vst.msk [vmem:[#allocation3 + $0x1b0] sm:$0xff] %vm1560_vm6, %v5418_v25 }
 0x7b2   : > { %v6650_v29 = vadd.f32 %v6618_v54, %v6552_v2  ;;  %6061 = vst.msk [vmem:[#allocation3 + $0x1a0] sm:$0xff] %vm2140_vm9, %v5992_v14 }
 0x7b4   : > { %6682 = vst.msk [vmem:[%s10225_s8 + $0x48] sm:$0xff] %vm253_vm1, %v6650_v29  ;;  %v5610_v6 = vpop.permute.xlu0 %5609 }
 0x7b5   : > { %v4844_v17 = vpop.permute.xlu1 %4843  ;;  %5678 = vst.msk [vmem:[#allocation3 + $0x1b0] sm:$0xff] %vm1753_vm7, %v5610_v6 }
 0x7b6   : > { %4911 = vst.msk [vmem:[#allocation3 + $0x1c0] sm:$0xff] %vm981_vm3, %v4844_v17 }
 0x7b8   : > { %v5802_v26 = vpop.permute.xlu0 %5801 }
 0x7b9   : > { %v5036_v13 = vpop.permute.xlu1 %5035  ;;  %v6434_v15 = vpop.f32.mrb[60].mxu1  ;;  %v6183_v27 = vld [vmem:[#allocation3 + $0x1a0] sm:$0xff]  ;;  %5870 = vst.msk [vmem:[#allocation3 + $0x1b0] sm:$0xff] %vm1947_vm8, %v5802_v26 }
 0x7ba   : > { %5103 = vst.msk [vmem:[#allocation3 + $0x1c0] sm:$0xff] %vm1174_vm4, %v5036_v13  ;;  %v6435_v9 = vadd.f32 %v10603_v45, %v6434_v15  ;;  %v6436_v61 = vpop.f32.mrb[61].mxu1  ;;  %6513 = vmatmul.mubr.f32.gmra.mrb[92].mxu1 %v6183_v27  ;;  %v6590_v13 = vld [vmem:[#allocation4 + $0x70] sm:$0xff] }
 0x7bb   : > { %6935 = vmatprep.mubr.msk.f32.mxu1 %vm253_vm1, %v6186_v49 }
 0x7bc   : > { %v6553_v48 = vmax.f32 %v6435_v9, 0.0  ;;  %v5994_v0 = vpop.permute.xlu0 %5993  ;;  %v6623_v9 = vmul.f32 %v10212_v39, %v6590_v13 }
 0x7bd   : > { %v5228_v18 = vpop.permute.xlu1 %5227  ;;  %6062 = vst.msk [vmem:[#allocation3 + $0x1b0] sm:$0xff] %vm2140_vm9, %v5994_v0 }
 0x7be   : > { %v6651_v1 = vadd.f32 %v6619_v63, %v6553_v48  ;;  %5295 = vst.msk [vmem:[#allocation3 + $0x1c0] sm:$0xff] %vm1367_vm5, %v5228_v18  ;;  %v6194_v63 = vld [vmem:[#allocation3 + $0x1f8] sm:$0xff] }
 0x7c0   : > { %6683 = vst.msk [vmem:[%s10225_s8 + $0x50] sm:$0xff] %vm253_vm1, %v6651_v1  ;;  %v4846_v16 = vpop.permute.xlu0 %4845 }
 0x7c1   : > { %v5420_v47 = vpop.permute.xlu1 %5419  ;;  %4912 = vst.msk [vmem:[#allocation3 + $0x1d0] sm:$0xff] %vm981_vm3, %v4846_v16 }
 0x7c2   : > { %5487 = vst.msk [vmem:[#allocation3 + $0x1c0] sm:$0xff] %vm1560_vm6, %v5420_v47  ;;  %v6591_v47 = vld [vmem:[#allocation4 + $0x78] sm:$0xff] }
 0x7c3   : > { %v6624_v11 = vmul.f32 %v10212_v39, %v6591_v47 }
 0x7c4   : > { %v5038_v20 = vpop.permute.xlu0 %5037  ;;  %v6185_v58 = vld [vmem:[#allocation3 + $0x1b0] sm:$0xff] }
 0x7c5   : > { %v5612_v21 = vpop.permute.xlu1 %5611  ;;  %v6439_v44 = vpop.f32.mrb[62].mxu1  ;;  %5104 = vst.msk [vmem:[#allocation3 + $0x1d0] sm:$0xff] %vm1174_vm4, %v5038_v20  ;;  %6518 = vmatmul.mubr.f32.gmra.mrb[94].mxu1 %v6185_v58  ;;  %v6592_v58 = vld [vmem:[#allocation4 + $0x80] sm:$0xff] }
 0x7c6   : > { %5679 = vst.msk [vmem:[#allocation3 + $0x1c0] sm:$0xff] %vm1753_vm7, %v5612_v21  ;;  %v6440_v59 = vadd.f32 %v10603_v45, %v6439_v44  ;;  %v6441_v43 = vpop.f32.mrb[63].mxu1  ;;  %6936 = vmatprep.mubr.msk.f32.mxu1 %vm253_vm1, %v6188_v51 }
 0x7c8   : > { %v6554_v12 = vmax.f32 %v6440_v59, 0.0  ;;  %v5230_v8 = vpop.permute.xlu0 %5229 }
 0x7c9   : > { %v5804_v52 = vpop.permute.xlu1 %5803  ;;  %5296 = vst.msk [vmem:[#allocation3 + $0x1d0] sm:$0xff] %vm1367_vm5, %v5230_v8 }
 0x7ca   : > { %v6652_v62 = vadd.f32 %v6620_v37, %v6554_v12  ;;  %5871 = vst.msk [vmem:[#allocation3 + $0x1c0] sm:$0xff] %vm1947_vm8, %v5804_v52  ;;  %v6625_v52 = vmul.f32 %v10212_v39, %v6592_v58 }
 0x7cc   : > { %6684 = vst.msk [vmem:[%s10225_s8 + $0x58] sm:$0xff] %vm253_vm1, %v6652_v62  ;;  %v5422_v28 = vpop.permute.xlu0 %5421 }
 0x7cd   : > { %v5996_v34 = vpop.permute.xlu1 %5995  ;;  %5488 = vst.msk [vmem:[#allocation3 + $0x1d0] sm:$0xff] %vm1560_vm6, %v5422_v28 }
 0x7ce   : > { %6063 = vst.msk [vmem:[#allocation3 + $0x1c0] sm:$0xff] %vm2140_vm9, %v5996_v34  ;;  %v6593_v34 = vld [vmem:[#allocation4 + $0x88] sm:$0xff] }
 0x7cf   : > { %v6626_v36 = vmul.f32 %v10212_v39, %v6593_v34 }
 0x7d0   : > { %v5614_v57 = vpop.permute.xlu0 %5613 }
 0x7d1   : > { %v4848_v32 = vpop.permute.xlu1 %4847  ;;  %v6444_v23 = vpop.f32.mrb[64].mxu1  ;;  %5680 = vst.msk [vmem:[#allocation3 + $0x1d0] sm:$0xff] %vm1753_vm7, %v5614_v57 }
 0x7d2   : > { %4913 = vst.msk [vmem:[#allocation3 + $0x1e0] sm:$0xff] %vm981_vm3, %v4848_v32  ;;  %v6445_v10 = vadd.f32 %v10603_v45, %v6444_v23  ;;  %v6446_v55 = vpop.f32.mrb[65].mxu1 }
 0x7d3   : > { %v6594_v55 = vld [vmem:[#allocation4 + $0x90] sm:$0xff] }
 0x7d4   : > { %v6555_v33 = vmax.f32 %v6445_v10, 0.0  ;;  %v5806_v56 = vpop.permute.xlu0 %5805 }
 0x7d5   : > { %v5040_v5 = vpop.permute.xlu1 %5039  ;;  %v6187_v31 = vld [vmem:[#allocation3 + $0x1c0] sm:$0xff]  ;;  %5872 = vst.msk [vmem:[#allocation3 + $0x1d0] sm:$0xff] %vm1947_vm8, %v5806_v56 }
 0x7d6   : > { %v6653_v19 = vadd.f32 %v6621_v40, %v6555_v33  ;;  %5105 = vst.msk [vmem:[#allocation3 + $0x1e0] sm:$0xff] %vm1174_vm4, %v5040_v5  ;;  %6523 = vmatmul.mubr.f32.gmra.mrb[96].mxu1 %v6187_v31  ;;  %v6627_v31 = vmul.f32 %v10212_v39, %v6594_v55 }
 0x7d7   : > { %6937 = vmatprep.mubr.msk.f32.mxu1 %vm253_vm1, %v6190_v30  ;;  %v6595_v30 = vld [vmem:[#allocation4 + $0x98] sm:$0xff] }
 0x7d8   : > { %6685 = vst.msk [vmem:[%s10225_s8 + $0x60] sm:$0xff] %vm253_vm1, %v6653_v19  ;;  %v5998_v53 = vpop.permute.xlu0 %5997 }
 0x7d9   : > { %v5232_v24 = vpop.permute.xlu1 %5231  ;;  %6064 = vst.msk [vmem:[#allocation3 + $0x1d0] sm:$0xff] %vm2140_vm9, %v5998_v53 }
 0x7da   : > { %5297 = vst.msk [vmem:[#allocation3 + $0x1e0] sm:$0xff] %vm1367_vm5, %v5232_v24 }
 0x7dc   : > { %v4850_v42 = vpop.permute.xlu0 %4849 }
 0x7dd   : > { %v5424_v3 = vpop.permute.xlu1 %5423  ;;  %v6449_v22 = vpop.f32.mrb[66].mxu1  ;;  %4914 = vst.msk [vmem:[#allocation3 + $0x1f0] sm:$0xff] %vm981_vm3, %v4850_v42 }
 0x7de   : > { %5489 = vst.msk [vmem:[#allocation3 + $0x1e0] sm:$0xff] %vm1560_vm6, %v5424_v3  ;;  %v6450_v41 = vadd.f32 %v10603_v45, %v6449_v22  ;;  %v6451_v60 = vpop.f32.mrb[67].mxu1  ;;  %v6628_v22 = vmul.f32 %v10212_v39, %v6595_v30 }
 0x7e0   : > { %v6556_v50 = vmax.f32 %v6450_v41, 0.0  ;;  %v5042_v54 = vpop.permute.xlu0 %5041  ;;  %v6189_v14 = vld [vmem:[#allocation3 + $0x1d0] sm:$0xff]  ;;  %v6596_v41 = vld [vmem:[#allocation4 + $0xa0] sm:$0xff] }
 0x7e1   : > { %v5616_v7 = vpop.permute.xlu1 %5615  ;;  %5106 = vst.msk [vmem:[#allocation3 + $0x1f0] sm:$0xff] %vm1174_vm4, %v5042_v54  ;;  %6528 = vmatmul.mubr.f32.gmra.mrb[98].mxu1 %v6189_v14  ;;  %v6597_v54 = vld [vmem:[#allocation4 + $0xa8] sm:$0xff] }
 0x7e2   : > { %v6654_v2 = vadd.f32 %v6622_v4, %v6556_v50  ;;  %5681 = vst.msk [vmem:[#allocation3 + $0x1e0] sm:$0xff] %vm1753_vm7, %v5616_v7  ;;  %6938 = vmatprep.mubr.msk.f32.mxu1 %vm253_vm1, %v6192_v46  ;;  %v6629_v7 = vmul.f32 %v10212_v39, %v6596_v41 }
 0x7e4   : > { %6686 = vst.msk [vmem:[%s10225_s8 + $0x68] sm:$0xff] %vm253_vm1, %v6654_v2  ;;  %v5234_v25 = vpop.permute.xlu0 %5233 }
 0x7e5   : > { %v5808_v29 = vpop.permute.xlu1 %5807  ;;  %5298 = vst.msk [vmem:[#allocation3 + $0x1f0] sm:$0xff] %vm1367_vm5, %v5234_v25 }
 0x7e6   : > { %5873 = vst.msk [vmem:[#allocation3 + $0x1e0] sm:$0xff] %vm1947_vm8, %v5808_v29 }
 0x7e8   : > { %v5426_v15 = vpop.permute.xlu0 %5425 }
 0x7e9   : > { %v6000_v17 = vpop.permute.xlu1 %5999  ;;  %v6454_v6 = vpop.f32.mrb[68].mxu1  ;;  %5490 = vst.msk [vmem:[#allocation3 + $0x1f0] sm:$0xff] %vm1560_vm6, %v5426_v15  ;;  %v6598_v15 = vld [vmem:[#allocation4 + $0xb0] sm:$0xff] }
 0x7ea   : > { %6065 = vst.msk [vmem:[#allocation3 + $0x1e0] sm:$0xff] %vm2140_vm9, %v6000_v17  ;;  %v6455_v38 = vadd.f32 %v10603_v45, %v6454_v6  ;;  %v6456_v27 = vpop.f32.mrb[69].mxu1  ;;  %v6630_v17 = vmul.f32 %v10212_v39, %v6597_v54 }
 0x7ec   : > { %v6557_v26 = vmax.f32 %v6455_v38, 0.0  ;;  %v5810_v48 = vpop.permute.xlu0 %5809 }
 0x7ed   : > { %v5618_v61 = vpop.permute.xlu1 %5617 }
 0x7ee   : > { %v6655_v49 = vadd.f32 %v6623_v9, %v6557_v26  ;;  %5682 = vst.msk [vmem:[#allocation3 + $0x1f0] sm:$0xff] %vm1753_vm7, %v5618_v61  ;;  %v6631_v9 = vmul.f32 %v10212_v39, %v6598_v15 }
 0x7ef   : > { %5874 = vst.msk [vmem:[#allocation3 + $0x1f0] sm:$0xff] %vm1947_vm8, %v5810_v48  ;;  %v6599_v48 = vld [vmem:[#allocation4 + $0xb8] sm:$0xff] }
 0x7f0   : > { %6687 = vst.msk [vmem:[%s10225_s8 + $0x70] sm:$0xff] %vm253_vm1, %v6655_v49 }
 0x7f1   : > { %v6002_v18 = vpop.permute.xlu1 %6001  ;;  %v6191_v1 = vld [vmem:[#allocation3 + $0x1e0] sm:$0xff] }
 0x7f2   : > { %6066 = vst.msk [vmem:[#allocation3 + $0x1f0] sm:$0xff] %vm2140_vm9, %v6002_v18  ;;  %6533 = vmatmul.mubr.f32.gmra.mrb[100].mxu1 %v6191_v1 }
 0x7f3   : > { %6939 = vmatprep.mubr.msk.f32.mxu1 %vm253_vm1, %v6194_v63 }
 0x7f5   : > { %v6459_v0 = vpop.f32.mrb[70].mxu1 }
 0x7f6   : > { %v6460_v16 = vadd.f32 %v10603_v45, %v6459_v0  ;;  %v6461_v21 = vpop.f32.mrb[71].mxu1  ;;  %v6632_v0 = vmul.f32 %v10212_v39, %v6599_v48 }
 0x7f7   : > { %v6600_v21 = vld [vmem:[#allocation4 + $0xc0] sm:$0xff] }
 0x7f8   : > { %v6558_v44 = vmax.f32 %v6460_v16, 0.0 }
 0x7f9   : > { %v6193_v20 = vld [vmem:[#allocation3 + $0x1f0] sm:$0xff] }
 0x7fa   : > { %v6656_v59 = vadd.f32 %v6624_v11, %v6558_v44  ;;  %6538 = vmatmul.mubr.f32.gmra.mrb[102].mxu1 %v6193_v20 }
 0x7fc   : > { %6688 = vst.msk [vmem:[%s10225_s8 + $0x78] sm:$0xff] %vm253_vm1, %v6656_v59  ;;  %v6633_v59 = vmul.f32 %v10212_v39, %v6600_v21 }
 0x801   : > { %v6464_v43 = vpop.f32.mrb[72].mxu1 }
 0x802   : > { %v6465_v51 = vadd.f32 %v10603_v45, %v6464_v43  ;;  %v6466_v12 = vpop.f32.mrb[73].mxu1 }
 0x804   : > { %v6559_v37 = vmax.f32 %v6465_v51, 0.0  ;;  %v6601_v51 = vld [vmem:[#allocation4 + $0xc8] sm:$0xff] }
 0x806   : > { %v6657_v62 = vadd.f32 %v6625_v52, %v6559_v37 }
 0x808   : > { %6689 = vst.msk [vmem:[%s10225_s8 + $0x80] sm:$0xff] %vm253_vm1, %v6657_v62  ;;  %v6634_v62 = vmul.f32 %v10212_v39, %v6601_v51 }
 0x80c   : > { %v6469_v8 = vpop.f32.mrb[74].mxu1 }
 0x80d   : > { %v6470_v28 = vadd.f32 %v10603_v45, %v6469_v8  ;;  %v6471_v32 = vpop.f32.mrb[75].mxu1 }
 0x80f   : > { %v6560_v23 = vmax.f32 %v6470_v28, 0.0  ;;  %v6602_v28 = vld [vmem:[#allocation4 + $0xd0] sm:$0xff] }
 0x811   : > { %v6658_v57 = vadd.f32 %v6626_v36, %v6560_v23 }
 0x813   : > { %6690 = vst.msk [vmem:[%s10225_s8 + $0x88] sm:$0xff] %vm253_vm1, %v6658_v57  ;;  %v6635_v57 = vmul.f32 %v10212_v39, %v6602_v28 }
 0x81d   : > { %v6474_v10 = vpop.f32.mrb[76].mxu1 }
 0x81e   : > { %v6475_v33 = vadd.f32 %v10603_v45, %v6474_v10  ;;  %v6476_v40 = vpop.f32.mrb[77].mxu1 }
 0x820   : > { %v6561_v5 = vmax.f32 %v6475_v33, 0.0  ;;  %v6603_v33 = vld [vmem:[#allocation4 + $0xd8] sm:$0xff] }
 0x822   : > { %v6659_v19 = vadd.f32 %v6627_v31, %v6561_v5 }
 0x824   : > { %6691 = vst.msk [vmem:[%s10225_s8 + $0x90] sm:$0xff] %vm253_vm1, %v6659_v19  ;;  %v6636_v19 = vmul.f32 %v10212_v39, %v6603_v33 }
 0x828   : > { %v6479_v56 = vpop.f32.mrb[78].mxu1 }
 0x829   : > { %v6480_v24 = vadd.f32 %v10603_v45, %v6479_v56  ;;  %v6481_v53 = vpop.f32.mrb[79].mxu1 }
 0x82b   : > { %v6562_v3 = vmax.f32 %v6480_v24, 0.0  ;;  %v6604_v24 = vld [vmem:[#allocation4 + $0xe0] sm:$0xff] }
 0x82d   : > { %v6660_v35 = vadd.f32 %v6628_v22, %v6562_v3 }
 0x82f   : > { %6692 = vst.msk [vmem:[%s10225_s8 + $0x98] sm:$0xff] %vm253_vm1, %v6660_v35  ;;  %v6637_v35 = vmul.f32 %v10212_v39, %v6604_v24 }
 0x839   : > { %v6484_v42 = vpop.f32.mrb[80].mxu1 }
 0x83a   : > { %v6485_v60 = vadd.f32 %v10603_v45, %v6484_v42  ;;  %v6486_v50 = vpop.f32.mrb[81].mxu1 }
 0x83c   : > { %v6563_v4 = vmax.f32 %v6485_v60, 0.0  ;;  %v6605_v60 = vld [vmem:[#allocation4 + $0xe8] sm:$0xff] }
 0x83e   : > { %v6661_v46 = vadd.f32 %v6629_v7, %v6563_v4 }
 0x840   : > { %6693 = vst.msk [vmem:[%s10225_s8 + $0xa0] sm:$0xff] %vm253_vm1, %v6661_v46  ;;  %v6638_v46 = vmul.f32 %v10212_v39, %v6605_v60 }
 0x844   : > { %v6489_v2 = vpop.f32.mrb[82].mxu1 }
 0x845   : > { %v6490_v14 = vadd.f32 %v10603_v45, %v6489_v2  ;;  %v6491_v29 = vpop.f32.mrb[83].mxu1 }
 0x847   : > { %v6564_v25 = vmax.f32 %v6490_v14, 0.0  ;;  %v6606_v14 = vld [vmem:[#allocation4 + $0xf0] sm:$0xff] }
 0x849   : > { %v6662_v6 = vadd.f32 %v6630_v17, %v6564_v25 }
 0x84b   : > { %6694 = vst.msk [vmem:[%s10225_s8 + $0xa8] sm:$0xff] %vm253_vm1, %v6662_v6  ;;  %v6639_v6 = vmul.f32 %v10212_v39, %v6606_v14 }
 0x855   : > { %v6494_v13 = vpop.f32.mrb[84].mxu1 }
 0x856   : > { %v6495_v38 = vadd.f32 %v10603_v45, %v6494_v13  ;;  %v6496_v27 = vpop.f32.mrb[85].mxu1 }
 0x858   : > { %v6565_v26 = vmax.f32 %v6495_v38, 0.0  ;;  %v6607_v38 = vld [vmem:[#allocation4 + $0xf8] sm:$0xff] }
 0x85a   : > { %v6663_v61 = vadd.f32 %v6631_v9, %v6565_v26 }
 0x85c   : > { %6695 = vst.msk [vmem:[%s10225_s8 + $0xb0] sm:$0xff] %vm253_vm1, %v6663_v61  ;;  %v6640_v61 = vmul.f32 %v10212_v39, %v6607_v38 }
 0x860   : > { %v6499_v49 = vpop.f32.mrb[86].mxu1 }
 0x861   : > { %v6500_v63 = vadd.f32 %v10603_v45, %v6499_v49  ;;  %v6501_v18 = vpop.f32.mrb[87].mxu1 }
 0x863   : > { %v6566_v1 = vmax.f32 %v6500_v63, 0.0 }
 0x865   : > { %v6664_v47 = vadd.f32 %v6632_v0, %v6566_v1 }
 0x867   : > { %6696 = vst.msk [vmem:[%s10225_s8 + $0xb8] sm:$0xff] %vm253_vm1, %v6664_v47 }
 0x871   : > { %v6504_v16 = vpop.f32.mrb[88].mxu1 }
 0x872   : > { %v6505_v44 = vadd.f32 %v10603_v45, %v6504_v16  ;;  %v6506_v11 = vpop.f32.mrb[89].mxu1 }
 0x874   : > { %v6567_v20 = vmax.f32 %v6505_v44, 0.0 }
 0x876   : > { %v6665_v43 = vadd.f32 %v6633_v59, %v6567_v20 }
 0x878   : > { %6697 = vst.msk [vmem:[%s10225_s8 + $0xc0] sm:$0xff] %vm253_vm1, %v6665_v43 }
 0x87c   : > { %v6509_v58 = vpop.f32.mrb[90].mxu1 }
 0x87d   : > { %v6510_v12 = vadd.f32 %v10603_v45, %v6509_v58  ;;  %v6511_v37 = vpop.f32.mrb[91].mxu1 }
 0x87f   : > { %v6568_v52 = vmax.f32 %v6510_v12, 0.0 }
 0x881   : > { %v6666_v8 = vadd.f32 %v6634_v62, %v6568_v52 }
 0x883   : > { %6698 = vst.msk [vmem:[%s10225_s8 + $0xc8] sm:$0xff] %vm253_vm1, %v6666_v8 }
 0x88d   : > { %v6514_v34 = vpop.f32.mrb[92].mxu1 }
 0x88e   : > { %v6515_v32 = vadd.f32 %v10603_v45, %v6514_v34  ;;  %v6516_v23 = vpop.f32.mrb[93].mxu1 }
 0x890   : > { %v6569_v36 = vmax.f32 %v6515_v32, 0.0 }
 0x892   : > { %v6667_v10 = vadd.f32 %v6635_v57, %v6569_v36 }
 0x894   : > { %6699 = vst.msk [vmem:[%s10225_s8 + $0xd0] sm:$0xff] %vm253_vm1, %v6667_v10 }
 0x898   : > { %v6519_v55 = vpop.f32.mrb[94].mxu1 }
 0x899   : > { %v6520_v40 = vadd.f32 %v10603_v45, %v6519_v55  ;;  %v6521_v5 = vpop.f32.mrb[95].mxu1 }
 0x89b   : > { %v6570_v31 = vmax.f32 %v6520_v40, 0.0 }
 0x89d   : > { %v6668_v56 = vadd.f32 %v6636_v19, %v6570_v31 }
 0x89f   : > { %6700 = vst.msk [vmem:[%s10225_s8 + $0xd8] sm:$0xff] %vm253_vm1, %v6668_v56 }
 0x8a9   : > { %v6524_v30 = vpop.f32.mrb[96].mxu1 }
 0x8aa   : > { %v6525_v53 = vadd.f32 %v10603_v45, %v6524_v30  ;;  %v6526_v3 = vpop.f32.mrb[97].mxu1 }
 0x8ac   : > { %v6571_v22 = vmax.f32 %v6525_v53, 0.0 }
 0x8ae   : > { %v6669_v42 = vadd.f32 %v6637_v35, %v6571_v22 }
 0x8b0   : > { %6701 = vst.msk [vmem:[%s10225_s8 + $0xe0] sm:$0xff] %vm253_vm1, %v6669_v42 }
 0x8b4   : > { %v6529_v41 = vpop.f32.mrb[98].mxu1 }
 0x8b5   : > { %v6530_v50 = vadd.f32 %v10603_v45, %v6529_v41  ;;  %v6531_v4 = vpop.f32.mrb[99].mxu1 }
 0x8b7   : > { %v6572_v7 = vmax.f32 %v6530_v50, 0.0 }
 0x8b9   : > { %v6670_v2 = vadd.f32 %v6638_v46, %v6572_v7 }
 0x8bb   : > { %6702 = vst.msk [vmem:[%s10225_s8 + $0xe8] sm:$0xff] %vm253_vm1, %v6670_v2 }
 0x8c5   : > { %v6534_v54 = vpop.f32.mrb[100].mxu1 }
 0x8c6   : > { %v6535_v29 = vadd.f32 %v10603_v45, %v6534_v54  ;;  %v6536_v25 = vpop.f32.mrb[101].mxu1 }
 0x8c8   : > { %v6573_v17 = vmax.f32 %v6535_v29, 0.0 }
 0x8ca   : > { %v6671_v13 = vadd.f32 %v6639_v6, %v6573_v17 }
 0x8cc   : > { %6703 = vst.msk [vmem:[%s10225_s8 + $0xf0] sm:$0xff] %vm253_vm1, %v6671_v13 }
 0x8cd   : > { %v6539_v15 = vpop.f32.mrb[102].mxu1 }
 0x8ce   : > { %v6540_v27 = vadd.f32 %v10603_v45, %v6539_v15  ;;  %v6541_v26 = vpop.f32.mrb[103].mxu1 }
 0x8d0   : > { %v6574_v9 = vmax.f32 %v6540_v27, 0.0 }
 0x8d2   : > { %v6672_v49 = vadd.f32 %v6640_v61, %v6574_v9 }
 0x8d4   : > { %6704 = vst.msk [vmem:[%s10225_s8 + $0xf8] sm:$0xff] %vm253_vm1, %v6672_v49 }
 0x8d5 PF: > { %s17_s23 = sadd.s32 1, %s7152_s23  }
 0x8d6   : > { %p14_p4 = scmp.ge.s32.totalorder %s17_s23, 4  }
 0x8d8   :  { %16 = sbr.rel (!%p14_p4) target bundleno = 2 (0x2), region = 80 }

</bundles_post_ra>
